<compile_context>
chip_gen: v5e
topology: v5e:2x2
jax: 0.10.0
libtpu: 0.0.40
codegen_flags: <defaults>
</compile_context>

<pallas_src>
import math
from functools import partial

import numpy as np
import jax
import jax.numpy as jnp
from jax.experimental import pallas as pl
from jax.experimental.pallas import tpu as pltpu


# ---------------------------------------------------------------------------
# In-kernel math helpers (tanh/exp/rsqrt -> EUP, MXU dots, lane reductions).
# ---------------------------------------------------------------------------

def _sigmoid(x):
    # exact identity: sigmoid(x) = (1 + tanh(x/2)) / 2
    return 0.5 * (jnp.tanh(0.5 * x) + 1.0)


def _gelu_tanh(x):
    # tanh-approximate GELU (exact-erf GELU differs by <1e-3).
    c = 0.7978845608028654
    return 0.5 * x * (1.0 + jnp.tanh(c * (x + 0.044715 * x * x * x)))


def _layer_norm(x, w_, b_, eps=1e-5):
    mu = jnp.mean(x, axis=-1, keepdims=True)
    d = x - mu
    var = jnp.mean(d * d, axis=-1, keepdims=True)
    return d * jax.lax.rsqrt(var + eps) * w_ + b_


# ---------------------------------------------------------------------------
# Fused kernel: one grid step == one batch element, everything in VMEM.
# Rows are ordered (k, l) -> row index r = k*L + l, matching the reference's
# reshape(B, C, K*L) flattening.
# ---------------------------------------------------------------------------

def _csdi_fused_kernel(
        cobs_ref, ntgt_ref, noise_ref, mask_ref, de0_ref, side_ref, bias_ref,
        inp_wb_ref, demb_w_ref, demb_b_ref, cond_w_ref, cond_b_ref,
        wqkv_ref, bqkv_ref, wo_ref, bo_ref, ln_ref, f1w_ref, f1b_ref,
        f2w_ref, f2b_ref, mid_w_ref, mid_b_ref, out_w_ref, out_b_ref,
        op1_w_ref, op1_b_ref, op2_w_ref, op2_b_ref,
        sums_ref, *, C, de, nl):
    f32 = jnp.float32

    # ----- diffusion-step embedding MLP + all per-layer projections (one matmul) -----
    dw = demb_w_ref[...]                       # (de, 2*de + C*nl)
    db = demb_b_ref[...]                       # (1,  2*de + C*nl)
    y = jnp.dot(de0_ref[0], dw[:, :de], preferred_element_type=f32) + db[:, :de]
    y = y * _sigmoid(y)                        # SiLU
    y = jnp.dot(y, dw[:, de:2 * de], preferred_element_type=f32) + db[:, de:2 * de]
    y = y * _sigmoid(y)
    demb = jnp.dot(y, dw[:, 2 * de:], preferred_element_type=f32) + db[:, 2 * de:]  # (1, C*nl)

    # ----- cond projection for ALL residual layers at once -----
    cond_all = (jnp.dot(side_ref[0], cond_w_ref[...], preferred_element_type=f32)
                + cond_b_ref[...])             # (KL, 2*C*nl)

    # ----- input projection: Conv1d(2, C, 1) + ReLU -----
    wb = inp_wb_ref[...]                       # (3, C): rows = [w_cond, w_noisy, bias]
    h = jnp.maximum(cobs_ref[0] * wb[0:1] + ntgt_ref[0] * wb[1:2] + wb[2:3], 0.0)  # (KL, C)

    bias_t = bias_ref[0]                       # (KL, KL): 0 for same-k pairs, else -1e9
    bias_f = bias_ref[1]                       # (KL, KL): 0 for same-l pairs, else -1e9

    def tx_layer(x2, idx, ab):
        """Post-norm single-head TransformerEncoderLayer on (KL, C) rows, grouped
        by the additive attention mask `ab` (masked entries underflow to exact 0)."""
        qkv = jnp.dot(x2, wqkv_ref[idx], preferred_element_type=f32) + bqkv_ref[idx]
        q = qkv[:, :C]                         # 1/sqrt(d) already folded into Wq/bq
        k = qkv[:, C:2 * C]
        v = qkv[:, 2 * C:]
        sc = jax.lax.dot_general(q, k, (((1,), (1,)), ((), ())),
                                 preferred_element_type=f32) + ab
        sc = sc - jnp.max(sc, axis=-1, keepdims=True)
        p = jnp.exp(sc)
        p = p * pl.reciprocal(jnp.sum(p, axis=-1, keepdims=True), approx=True)
        attn = jnp.dot(p, v, preferred_element_type=f32)
        a2 = jnp.dot(attn, wo_ref[idx], preferred_element_type=f32) + bo_ref[idx]
        lnp = ln_ref[idx]                      # (4, C): ln1_w, ln1_b, ln2_w, ln2_b
        y1 = _layer_norm(x2 + a2, lnp[0:1], lnp[1:2])
        ff = jnp.dot(y1, f1w_ref[idx], preferred_element_type=f32) + f1b_ref[idx]
        ff = _gelu_tanh(ff)
        ff = jnp.dot(ff, f2w_ref[idx], preferred_element_type=f32) + f2b_ref[idx]
        return _layer_norm(y1 + ff, lnp[2:3], lnp[3:4])

    inv_sqrt2 = 1.0 / math.sqrt(2.0)
    skip = None
    for li in range(nl):                       # nl is small -> fully unrolled
        y = h + demb[:, li * C:(li + 1) * C]
        y = tx_layer(y, li, bias_t)            # time transformer  (attend within same k)
        y = tx_layer(y, nl + li, bias_f)       # feature transformer (attend within same l)
        mid = jnp.dot(y, mid_w_ref[li], preferred_element_type=f32) + mid_b_ref[li]
        mid = mid + cond_all[:, li * 2 * C:(li + 1) * 2 * C]
        g = _sigmoid(mid[:, :C]) * jnp.tanh(mid[:, C:])
        o = jnp.dot(g, out_w_ref[li], preferred_element_type=f32) + out_b_ref[li]
        h = (h + o[:, :C]) * inv_sqrt2
        skip = o[:, C:] if skip is None else skip + o[:, C:]

    # ----- output head + masked-MSE partial sums (predicted never leaves VMEM) -----
    xh = skip * (1.0 / math.sqrt(nl))
    y = jnp.maximum(jnp.dot(xh, op1_w_ref[...], preferred_element_type=f32)
                    + op1_b_ref[...], 0.0)
    pred = jnp.sum(y * op2_w_ref[...], axis=-1, keepdims=True) + op2_b_ref[...]  # (KL, 1)
    # spec: target_mask = 1 - observed_mask (forward() passes observed_mask == cond_mask)
    tmask = 1.0 - mask_ref[0]
    r = (noise_ref[0] - pred) * tmask
    stat = jnp.concatenate([r * r, tmask], axis=1)        # (KL, 2)
    sums_ref[0] = jnp.sum(stat, axis=0, keepdims=True)    # (1, 2): [sum sq, sum mask]


# ---------------------------------------------------------------------------
# pallas_call wrapper
# ---------------------------------------------------------------------------

_W_ORDER = ('inp_wb', 'demb_w', 'demb_b', 'cond_w', 'cond_b',
            'wqkv', 'bqkv', 'wo', 'bo', 'ln', 'f1w', 'f1b', 'f2w', 'f2b',
            'mid_w', 'mid_b', 'out_w', 'out_b',
            'op1_w', 'op1_b', 'op2_w', 'op2_b')


def _batched_spec(shape):
    nd = len(shape)

    def imap(b):
        return (b,) + (0,) * (nd - 1)

    return pl.BlockSpec((1,) + tuple(shape[1:]), imap)


def _full_spec(shape):
    nd = len(shape)

    def imap(b):
        return (0,) * nd

    return pl.BlockSpec(tuple(shape), imap)


def _csdi_fused_call(cobs, ntgt, noise_r, mask_r, de0, side, attn_bias, wts,
                     *, C, de, nl):
    B = cobs.shape[0]
    datas = [cobs, ntgt, noise_r, mask_r, de0, side]
    wlist = [wts[k] for k in _W_ORDER]
    in_specs = ([_batched_spec(a.shape) for a in datas]
                + [_full_spec(attn_bias.shape)]
                + [_full_spec(w.shape) for w in wlist])
    return pl.pallas_call(
        partial(_csdi_fused_kernel, C=C, de=de, nl=nl),
        out_shape=jax.ShapeDtypeStruct((B, 1, 2), jnp.float32),
        grid=(B,),
        in_specs=in_specs,
        out_specs=_batched_spec((B, 1, 2)),
        compiler_params=pltpu.CompilerParams(dimension_semantics=("parallel",)),
    )(*datas, attn_bias, *wlist)


# ---------------------------------------------------------------------------
# Parameter init (deterministic, synthetic, packed to kernel-friendly layouts)
# ---------------------------------------------------------------------------

def init_weights(key, cfg):
    C = cfg['channels']
    side = cfg['side_dim']
    s_pad = cfg['side_pad']
    de = cfg['diffusion_embedding_dim']
    dff = cfg['dim_feedforward']
    nl = cfg['layers']
    kit = iter(jax.random.split(key, 64))

    def w(shape, scale=0.1):
        return jax.random.normal(next(kit), shape, jnp.float32) * scale

    def z(shape):
        return jnp.zeros(shape, jnp.float32)

    # Transformer layers stacked along a leading axis: 0..nl-1 = time, nl..2nl-1 = feature.
    wqkv = w((2 * nl, C, 3 * C))
    wqkv = wqkv.at[:, :, :C].multiply(1.0 / math.sqrt(C))   # fold attention scale into Wq
    ln_one = jnp.stack([jnp.ones((C,), jnp.float32), jnp.zeros((C,), jnp.float32),
                        jnp.ones((C,), jnp.float32), jnp.zeros((C,), jnp.float32)])

    wts = dict(
        inp_wb=jnp.concatenate([w((2, C)), z((1, C))], axis=0),        # Conv1d(2, C, 1)
        demb_w=jnp.concatenate([w((de, de)), w((de, de)), w((de, C * nl))], axis=1),
        demb_b=z((1, 2 * de + C * nl)),
        cond_w=jnp.concatenate([w((side, 2 * C * nl)),
                                z((s_pad - side, 2 * C * nl))], axis=0),  # zero-padded rows
        cond_b=z((1, 2 * C * nl)),
        wqkv=wqkv, bqkv=z((2 * nl, 1, 3 * C)),
        wo=w((2 * nl, C, C)), bo=z((2 * nl, 1, C)),
        ln=jnp.tile(ln_one[None], (2 * nl, 1, 1)),
        f1w=w((2 * nl, C, dff)), f1b=z((2 * nl, 1, dff)),
        f2w=w((2 * nl, dff, C)), f2b=z((2 * nl, 1, C)),
        mid_w=w((nl, C, 2 * C)), mid_b=z((nl, 1, 2 * C)),
        out_w=w((nl, C, 2 * C)), out_b=z((nl, 1, 2 * C)),
        op1_w=w((C, C)), op1_b=z((1, C)),
        op2_w=w((1, C)), op2_b=z((1, 1)),
    )

    # canonical CSDI diffusion-step embedding table
    half = de // 2
    steps = jnp.arange(cfg['n_steps'], dtype=jnp.float32)[:, None]
    freqs = (10.0 ** (jnp.arange(half, dtype=jnp.float32) / (half - 1) * 4.0))[None, :]
    tab = steps * freqs
    diff_table = jnp.concatenate([jnp.sin(tab), jnp.cos(tab)], axis=1)

    # nn.Embedding(target_dim, featureemb_dim)
    feat_table = jax.random.normal(next(kit),
                                   (cfg['target_dim'], cfg['featureemb_dim']),
                                   jnp.float32)

    # diffusion schedule (matches CSDIImputer.__init__)
    beta = np.linspace(0.0001 ** 0.5, 0.5 ** 0.5, cfg['n_steps']) ** 2
    alpha = np.cumprod(1.0 - beta)
    return dict(wts=wts, diff_table=diff_table, feat_table=feat_table,
                alpha=jnp.asarray(alpha, jnp.float32))


# ---------------------------------------------------------------------------
# CSDIImputer forward (is_train == 1)
# ---------------------------------------------------------------------------

def make_forward(cfg):
    n_players = cfg['n_players']
    n_features = cfg['n_features']
    C = cfg['channels']
    nl = cfg['layers']
    de = cfg['diffusion_embedding_dim']
    d_time = cfg['timeemb_dim']
    side_dim = cfg['side_dim']
    s_pad = cfg['side_pad']
    n_steps = cfg['n_steps']

    def forward(weights, ret, key):
        inp, target, mask, tp = (ret['input'], ret['target'],
                                 ret['mask'], ret['timepoints'])
        bs, seq_len = inp.shape[:2]

        def prep(x):
            x = x.reshape(bs, seq_len, n_players, -1)[..., :n_features]
            x = x.reshape(bs, seq_len, n_players * n_features)
            return jnp.transpose(x, (0, 2, 1)).astype(jnp.float32)   # (B, K, L)

        observed = prep(inp)
        target_p = prep(target)
        cond_mask = prep(mask)
        B, K, L = observed.shape
        KL = K * L
        wts = weights['wts']

        # --- side info rows (row (b, k, l) = [time_emb | feat_emb | mask], zero-padded) ---
        feat_table = weights['feat_table']
        d_feat = feat_table.shape[1]
        div_term = 1.0 / jnp.power(
            10000.0, jnp.arange(0, d_time, 2, dtype=jnp.float32) / d_time)
        div_full = jnp.repeat(div_term, 2)                    # channel c uses div[c//2]
        arg = tp.astype(jnp.float32)[:, :, None] * div_full[None, None, :]   # (B, L, dt)
        iscos = (jnp.arange(d_time) % 2 == 1)
        pe = jnp.where(iscos[None, None, :], jnp.cos(arg), jnp.sin(arg))
        side = jnp.concatenate(
            [jnp.broadcast_to(pe[:, None, :, :], (B, K, L, d_time)),
             jnp.broadcast_to(feat_table[None, :, None, :], (B, K, L, d_feat)),
             cond_mask[..., None]], axis=-1)
        side = jnp.pad(side, ((0, 0), (0, 0), (0, 0), (0, s_pad - side_dim)))
        side = side.reshape(B, KL, s_pad)

        # --- additive group masks: same-k (time layer) / same-l (feature layer) ---
        ks = np.arange(KL) // L
        ls = np.arange(KL) % L
        bias_t = np.where(ks[:, None] == ks[None, :], 0.0, -1e9).astype(np.float32)
        bias_f = np.where(ls[:, None] == ls[None, :], 0.0, -1e9).astype(np.float32)
        attn_bias = jnp.asarray(np.stack([bias_t, bias_f]))   # (2, KL, KL)

        # --- calc_loss (is_train == 1): diffusion noising (tiny, fuses with RNG) ---
        k_t, k_noise = jax.random.split(key)
        t = jax.random.randint(k_t, (B,), 0, n_steps)
        noise = jax.random.normal(k_noise, observed.shape, jnp.float32)
        ca = weights['alpha'][t]
        noisy = (jnp.sqrt(ca)[:, None, None] * observed
                 + jnp.sqrt(1.0 - ca)[:, None, None] * noise)
        cond_obs = cond_mask * observed
        noisy_tgt = (1.0 - cond_mask) * noisy
        de0 = weights['diff_table'][t].reshape(B, 1, de)

        rows = lambda x: x.reshape(B, KL, 1)
        sums = _csdi_fused_call(rows(cond_obs), rows(noisy_tgt), rows(noise),
                                rows(cond_mask), de0, side, attn_bias, wts,
                                C=C, de=de, nl=nl)            # (B, 1, 2)
        sq = jnp.sum(sums[:, 0, 0])
        num_eval = jnp.sum(sums[:, 0, 1])
        loss = sq / jnp.where(num_eval > 0, num_eval, 1.0)

        out = dict(ret)
        out.update(total_loss=loss,
                   target=jnp.transpose(target_p, (0, 2, 1)),
                   input=jnp.transpose(observed, (0, 2, 1)),
                   mask=jnp.transpose(cond_mask, (0, 2, 1)))
        return out

    return jax.jit(forward)


if __name__ == "__main__":
    n_features = 2
    team_size = 4
    params = dict(
        dataset='toy', n_features=n_features, team_size=team_size,
        single_team=True, timeemb_dim=16, featureemb_dim=8,
        is_unconditional=False, n_steps=10,
        ppe=False, fpe=False, fpi=False,
        channels=16, layers=2, diffusion_embedding_dim=16, dim_feedforward=64)
    params['n_players'] = team_size                     # single_team == True
    params['target_dim'] = params['n_players'] * n_features
    params['side_dim'] = params['timeemb_dim'] + params['featureemb_dim'] + 1
    params['side_pad'] = int(np.ceil(params['side_dim'] / 8) * 8)   # 25 -> 32
    params['input_dim'] = 2                             # conditional
    assert params['timeemb_dim'] % 2 == 0, "time embedding dim must be even"

    key = jax.random.PRNGKey(0)
    k_w, k_in, k_tgt, k_msk, k_fwd = jax.random.split(key, 5)
    weights = init_weights(k_w, params)

    bs, seq_len, raw_feat = 2, 8, 3                     # raw per-player feat dim >= n_features
    inp = jax.random.normal(k_in, (bs, seq_len, params['n_players'] * raw_feat),
                            jnp.float32)
    tgt = jax.random.normal(k_tgt, (bs, seq_len, params['n_players'] * raw_feat),
                            jnp.float32)
    msk = (jax.random.uniform(k_msk, (bs, seq_len, params['n_players'] * raw_feat))
           > 0.5).astype(jnp.float32)
    tp = jnp.tile(jnp.arange(seq_len, dtype=jnp.float32)[None, :], (bs, 1))

    ret = dict(input=inp, target=tgt, mask=msk, timepoints=tp)
    forward = make_forward(params)
    out = forward(weights, ret, k_fwd)
    loss = jax.block_until_ready(out['total_loss'])
    assert bool(jnp.isfinite(loss)), "non-finite loss"
    print("KERNEL_OK")
</pallas_src>

<mosaic_0001>
module attributes {stable_mosaic.version = 11 : i64} {
  func.func @_csdi_fused_kernel(%arg0: i32, %arg1: memref<1x64x1xf32, #tpu.memory_space<vmem>>, %arg2: memref<1x64x1xf32, #tpu.memory_space<vmem>>, %arg3: memref<1x64x1xf32, #tpu.memory_space<vmem>>, %arg4: memref<1x64x1xf32, #tpu.memory_space<vmem>>, %arg5: memref<1x1x16xf32, #tpu.memory_space<vmem>>, %arg6: memref<1x64x32xf32, #tpu.memory_space<vmem>>, %arg7: memref<2x64x64xf32, #tpu.memory_space<vmem>>, %arg8: memref<3x16xf32, #tpu.memory_space<vmem>>, %arg9: memref<16x64xf32, #tpu.memory_space<vmem>>, %arg10: memref<1x64xf32, #tpu.memory_space<vmem>>, %arg11: memref<32x64xf32, #tpu.memory_space<vmem>>, %arg12: memref<1x64xf32, #tpu.memory_space<vmem>>, %arg13: memref<4x16x48xf32, #tpu.memory_space<vmem>>, %arg14: memref<4x1x48xf32, #tpu.memory_space<vmem>>, %arg15: memref<4x16x16xf32, #tpu.memory_space<vmem>>, %arg16: memref<4x1x16xf32, #tpu.memory_space<vmem>>, %arg17: memref<4x4x16xf32, #tpu.memory_space<vmem>>, %arg18: memref<4x16x64xf32, #tpu.memory_space<vmem>>, %arg19: memref<4x1x64xf32, #tpu.memory_space<vmem>>, %arg20: memref<4x64x16xf32, #tpu.memory_space<vmem>>, %arg21: memref<4x1x16xf32, #tpu.memory_space<vmem>>, %arg22: memref<2x16x32xf32, #tpu.memory_space<vmem>>, %arg23: memref<2x1x32xf32, #tpu.memory_space<vmem>>, %arg24: memref<2x16x32xf32, #tpu.memory_space<vmem>>, %arg25: memref<2x1x32xf32, #tpu.memory_space<vmem>>, %arg26: memref<16x16xf32, #tpu.memory_space<vmem>>, %arg27: memref<1x16xf32, #tpu.memory_space<vmem>>, %arg28: memref<1x16xf32, #tpu.memory_space<vmem>>, %arg29: memref<1x1xf32, #tpu.memory_space<vmem>>, %arg30: memref<1x1x2xf32, #tpu.memory_space<vmem>>) attributes {dimension_semantics = [#tpu.dimension_semantics<parallel>], iteration_bounds = array<i64: 2>, scalar_prefetch = 0 : i64, scratch_operands = 0 : i64, tpu.core_type = #tpu.core_type<tc>, window_params = [{transform_indices = @transform_0, window_bounds = array<i64: 1, 64, 1>}, {transform_indices = @transform_1, window_bounds = array<i64: 1, 64, 1>}, {transform_indices = @transform_2, window_bounds = array<i64: 1, 64, 1>}, {transform_indices = @transform_3, window_bounds = array<i64: 1, 64, 1>}, {transform_indices = @transform_4, window_bounds = array<i64: 1, 1, 16>}, {transform_indices = @transform_5, window_bounds = array<i64: 1, 64, 32>}, {pipeline_mode = #tpu.pipeline_mode<synchronous>, transform_indices = @transform_6, window_bounds = array<i64: 2, 64, 64>}, {pipeline_mode = #tpu.pipeline_mode<synchronous>, transform_indices = @transform_7, window_bounds = array<i64: 3, 16>}, {pipeline_mode = #tpu.pipeline_mode<synchronous>, transform_indices = @transform_8, window_bounds = array<i64: 16, 64>}, {pipeline_mode = #tpu.pipeline_mode<synchronous>, transform_indices = @transform_9, window_bounds = array<i64: 1, 64>}, {pipeline_mode = #tpu.pipeline_mode<synchronous>, transform_indices = @transform_10, window_bounds = array<i64: 32, 64>}, {pipeline_mode = #tpu.pipeline_mode<synchronous>, transform_indices = @transform_11, window_bounds = array<i64: 1, 64>}, {pipeline_mode = #tpu.pipeline_mode<synchronous>, transform_indices = @transform_12, window_bounds = array<i64: 4, 16, 48>}, {pipeline_mode = #tpu.pipeline_mode<synchronous>, transform_indices = @transform_13, window_bounds = array<i64: 4, 1, 48>}, {pipeline_mode = #tpu.pipeline_mode<synchronous>, transform_indices = @transform_14, window_bounds = array<i64: 4, 16, 16>}, {pipeline_mode = #tpu.pipeline_mode<synchronous>, transform_indices = @transform_15, window_bounds = array<i64: 4, 1, 16>}, {pipeline_mode = #tpu.pipeline_mode<synchronous>, transform_indices = @transform_16, window_bounds = array<i64: 4, 4, 16>}, {pipeline_mode = #tpu.pipeline_mode<synchronous>, transform_indices = @transform_17, window_bounds = array<i64: 4, 16, 64>}, {pipeline_mode = #tpu.pipeline_mode<synchronous>, transform_indices = @transform_18, window_bounds = array<i64: 4, 1, 64>}, {pipeline_mode = #tpu.pipeline_mode<synchronous>, transform_indices = @transform_19, window_bounds = array<i64: 4, 64, 16>}, {pipeline_mode = #tpu.pipeline_mode<synchronous>, transform_indices = @transform_20, window_bounds = array<i64: 4, 1, 16>}, {pipeline_mode = #tpu.pipeline_mode<synchronous>, transform_indices = @transform_21, window_bounds = array<i64: 2, 16, 32>}, {pipeline_mode = #tpu.pipeline_mode<synchronous>, transform_indices = @transform_22, window_bounds = array<i64: 2, 1, 32>}, {pipeline_mode = #tpu.pipeline_mode<synchronous>, transform_indices = @transform_23, window_bounds = array<i64: 2, 16, 32>}, {pipeline_mode = #tpu.pipeline_mode<synchronous>, transform_indices = @transform_24, window_bounds = array<i64: 2, 1, 32>}, {pipeline_mode = #tpu.pipeline_mode<synchronous>, transform_indices = @transform_25, window_bounds = array<i64: 16, 16>}, {pipeline_mode = #tpu.pipeline_mode<synchronous>, transform_indices = @transform_26, window_bounds = array<i64: 1, 16>}, {pipeline_mode = #tpu.pipeline_mode<synchronous>, transform_indices = @transform_27, window_bounds = array<i64: 1, 16>}, {pipeline_mode = #tpu.pipeline_mode<synchronous>, transform_indices = @transform_28, window_bounds = array<i64: 1, 1>}, {transform_indices = @transform_29, window_bounds = array<i64: 1, 1, 2>}]} {
    %c0 = arith.constant 0 : index
    %c0_0 = arith.constant 0 : index
    %0 = vector.load %arg9[%c0, %c0_0] : memref<16x64xf32, #tpu.memory_space<vmem>>, vector<16x64xf32>
    %c0_1 = arith.constant 0 : index
    %c0_2 = arith.constant 0 : index
    %1 = vector.load %arg10[%c0_1, %c0_2] : memref<1x64xf32, #tpu.memory_space<vmem>>, vector<1x64xf32>
    %c0_3 = arith.constant 0 : index
    %c0_4 = arith.constant 0 : index
    %c0_5 = arith.constant 0 : index
    %2 = vector.load %arg5[%c0_3, %c0_4, %c0_5] : memref<1x1x16xf32, #tpu.memory_space<vmem>>, vector<1x1x16xf32>
    %3 = vector.shape_cast %2 : vector<1x1x16xf32> to vector<1x16xf32>
    %4 = vector.extract_strided_slice %0 {offsets = [0, 0], sizes = [16, 16], strides = [1, 1]} : vector<16x64xf32> to vector<16x16xf32>
    %cst = arith.constant dense<0.000000e+00> : vector<1x16xf32>
    %5 = tpu.matmul %3, %4, %cst {dimension_numbers = #tpu.dot_dimension_numbers<[1], [0], [0], [1], [0, 0, 1, 1], [], []>} : vector<1x16xf32>, vector<16x16xf32>, vector<1x16xf32> -> vector<1x16xf32>
    %6 = vector.extract_strided_slice %1 {offsets = [0, 0], sizes = [1, 16], strides = [1, 1]} : vector<1x64xf32> to vector<1x16xf32>
    %7 = arith.addf %5, %6 : vector<1x16xf32>
    %cst_6 = arith.constant 5.000000e-01 : f32
    %8 = vector.broadcast %cst_6 : f32 to vector<1x16xf32>
    %9 = arith.mulf %8, %7 : vector<1x16xf32>
    %10 = math.tanh %9 : vector<1x16xf32>
    %cst_7 = arith.constant 1.000000e+00 : f32
    %11 = vector.broadcast %cst_7 : f32 to vector<1x16xf32>
    %12 = arith.addf %10, %11 : vector<1x16xf32>
    %cst_8 = arith.constant 5.000000e-01 : f32
    %13 = vector.broadcast %cst_8 : f32 to vector<1x16xf32>
    %14 = arith.mulf %13, %12 : vector<1x16xf32>
    %15 = arith.mulf %7, %14 : vector<1x16xf32>
    %16 = vector.extract_strided_slice %0 {offsets = [0, 16], sizes = [16, 16], strides = [1, 1]} : vector<16x64xf32> to vector<16x16xf32>
    %cst_9 = arith.constant dense<0.000000e+00> : vector<1x16xf32>
    %17 = tpu.matmul %15, %16, %cst_9 {dimension_numbers = #tpu.dot_dimension_numbers<[1], [0], [0], [1], [0, 0, 1, 1], [], []>} : vector<1x16xf32>, vector<16x16xf32>, vector<1x16xf32> -> vector<1x16xf32>
    %18 = vector.extract_strided_slice %1 {offsets = [0, 16], sizes = [1, 16], strides = [1, 1]} : vector<1x64xf32> to vector<1x16xf32>
    %19 = arith.addf %17, %18 : vector<1x16xf32>
    %cst_10 = arith.constant 5.000000e-01 : f32
    %20 = vector.broadcast %cst_10 : f32 to vector<1x16xf32>
    %21 = arith.mulf %20, %19 : vector<1x16xf32>
    %22 = math.tanh %21 : vector<1x16xf32>
    %cst_11 = arith.constant 1.000000e+00 : f32
    %23 = vector.broadcast %cst_11 : f32 to vector<1x16xf32>
    %24 = arith.addf %22, %23 : vector<1x16xf32>
    %cst_12 = arith.constant 5.000000e-01 : f32
    %25 = vector.broadcast %cst_12 : f32 to vector<1x16xf32>
    %26 = arith.mulf %25, %24 : vector<1x16xf32>
    %27 = arith.mulf %19, %26 : vector<1x16xf32>
    %28 = vector.extract_strided_slice %0 {offsets = [0, 32], sizes = [16, 32], strides = [1, 1]} : vector<16x64xf32> to vector<16x32xf32>
    %cst_13 = arith.constant dense<0.000000e+00> : vector<1x32xf32>
    %29 = tpu.matmul %27, %28, %cst_13 {dimension_numbers = #tpu.dot_dimension_numbers<[1], [0], [0], [1], [0, 0, 1, 1], [], []>} : vector<1x16xf32>, vector<16x32xf32>, vector<1x32xf32> -> vector<1x32xf32>
    %30 = vector.extract_strided_slice %1 {offsets = [0, 32], sizes = [1, 32], strides = [1, 1]} : vector<1x64xf32> to vector<1x32xf32>
    %31 = arith.addf %29, %30 : vector<1x32xf32>
    %c0_14 = arith.constant 0 : index
    %c0_15 = arith.constant 0 : index
    %c0_16 = arith.constant 0 : index
    %32 = vector.load %arg6[%c0_14, %c0_15, %c0_16] : memref<1x64x32xf32, #tpu.memory_space<vmem>>, vector<1x64x32xf32>
    %33 = vector.shape_cast %32 : vector<1x64x32xf32> to vector<64x32xf32>
    %c0_17 = arith.constant 0 : index
    %c0_18 = arith.constant 0 : index
    %34 = vector.load %arg11[%c0_17, %c0_18] : memref<32x64xf32, #tpu.memory_space<vmem>>, vector<32x64xf32>
    %cst_19 = arith.constant dense<0.000000e+00> : vector<64x64xf32>
    %35 = tpu.matmul %33, %34, %cst_19 {dimension_numbers = #tpu.dot_dimension_numbers<[1], [0], [0], [1], [0, 0, 1, 1], [], []>} : vector<64x32xf32>, vector<32x64xf32>, vector<64x64xf32> -> vector<64x64xf32>
    %c0_20 = arith.constant 0 : index
    %c0_21 = arith.constant 0 : index
    %36 = vector.load %arg12[%c0_20, %c0_21] : memref<1x64xf32, #tpu.memory_space<vmem>>, vector<1x64xf32>
    %37 = vector.broadcast %36 : vector<1x64xf32> to vector<64x64xf32>
    %38 = arith.addf %35, %37 : vector<64x64xf32>
    %c0_22 = arith.constant 0 : index
    %c0_23 = arith.constant 0 : index
    %39 = vector.load %arg8[%c0_22, %c0_23] : memref<3x16xf32, #tpu.memory_space<vmem>>, vector<3x16xf32>
    %c0_24 = arith.constant 0 : index
    %c0_25 = arith.constant 0 : index
    %c0_26 = arith.constant 0 : index
    %40 = vector.load %arg1[%c0_24, %c0_25, %c0_26] : memref<1x64x1xf32, #tpu.memory_space<vmem>>, vector<1x64x1xf32>
    %41 = vector.shape_cast %40 : vector<1x64x1xf32> to vector<64x1xf32>
    %42 = vector.extract_strided_slice %39 {offsets = [0, 0], sizes = [1, 16], strides = [1, 1]} : vector<3x16xf32> to vector<1x16xf32>
    %43 = vector.broadcast %41 : vector<64x1xf32> to vector<64x16xf32>
    %44 = vector.broadcast %42 : vector<1x16xf32> to vector<64x16xf32>
    %45 = arith.mulf %43, %44 : vector<64x16xf32>
    %c0_27 = arith.constant 0 : index
    %c0_28 = arith.constant 0 : index
    %c0_29 = arith.constant 0 : index
    %46 = vector.load %arg2[%c0_27, %c0_28, %c0_29] : memref<1x64x1xf32, #tpu.memory_space<vmem>>, vector<1x64x1xf32>
    %47 = vector.shape_cast %46 : vector<1x64x1xf32> to vector<64x1xf32>
    %48 = vector.extract_strided_slice %39 {offsets = [1, 0], sizes = [1, 16], strides = [1, 1]} : vector<3x16xf32> to vector<1x16xf32>
    %49 = vector.broadcast %47 : vector<64x1xf32> to vector<64x16xf32>
    %50 = vector.broadcast %48 : vector<1x16xf32> to vector<64x16xf32>
    %51 = arith.mulf %49, %50 : vector<64x16xf32>
    %52 = arith.addf %45, %51 : vector<64x16xf32>
    %53 = vector.extract_strided_slice %39 {offsets = [2, 0], sizes = [1, 16], strides = [1, 1]} : vector<3x16xf32> to vector<1x16xf32>
    %54 = vector.broadcast %53 : vector<1x16xf32> to vector<64x16xf32>
    %55 = arith.addf %52, %54 : vector<64x16xf32>
    %cst_30 = arith.constant 0.000000e+00 : f32
    %56 = vector.broadcast %cst_30 : f32 to vector<64x16xf32>
    %57 = arith.maximumf %55, %56 : vector<64x16xf32>
    %c0_31 = arith.constant 0 : index
    %c0_32 = arith.constant 0 : index
    %c0_33 = arith.constant 0 : index
    %58 = vector.load %arg7[%c0_31, %c0_32, %c0_33] : memref<2x64x64xf32, #tpu.memory_space<vmem>>, vector<1x64x64xf32>
    %59 = vector.shape_cast %58 : vector<1x64x64xf32> to vector<64x64xf32>
    %c1 = arith.constant 1 : index
    %c0_34 = arith.constant 0 : index
    %c0_35 = arith.constant 0 : index
    %60 = vector.load %arg7[%c1, %c0_34, %c0_35] : memref<2x64x64xf32, #tpu.memory_space<vmem>>, vector<1x64x64xf32>
    %61 = vector.shape_cast %60 : vector<1x64x64xf32> to vector<64x64xf32>
    %62 = vector.extract_strided_slice %31 {offsets = [0, 0], sizes = [1, 16], strides = [1, 1]} : vector<1x32xf32> to vector<1x16xf32>
    %63 = vector.broadcast %62 : vector<1x16xf32> to vector<64x16xf32>
    %64 = arith.addf %57, %63 : vector<64x16xf32>
    %c0_36 = arith.constant 0 : index
    %c0_37 = arith.constant 0 : index
    %c0_38 = arith.constant 0 : index
    %65 = vector.load %arg13[%c0_36, %c0_37, %c0_38] : memref<4x16x48xf32, #tpu.memory_space<vmem>>, vector<1x16x48xf32>
    %66 = vector.shape_cast %65 : vector<1x16x48xf32> to vector<16x48xf32>
    %cst_39 = arith.constant dense<0.000000e+00> : vector<64x48xf32>
    %67 = tpu.matmul %64, %66, %cst_39 {dimension_numbers = #tpu.dot_dimension_numbers<[1], [0], [0], [1], [0, 0, 1, 1], [], []>} : vector<64x16xf32>, vector<16x48xf32>, vector<64x48xf32> -> vector<64x48xf32>
    %c0_40 = arith.constant 0 : index
    %c0_41 = arith.constant 0 : index
    %c0_42 = arith.constant 0 : index
    %68 = vector.load %arg14[%c0_40, %c0_41, %c0_42] : memref<4x1x48xf32, #tpu.memory_space<vmem>>, vector<1x1x48xf32>
    %69 = vector.shape_cast %68 : vector<1x1x48xf32> to vector<1x48xf32>
    %70 = vector.broadcast %69 : vector<1x48xf32> to vector<64x48xf32>
    %71 = arith.addf %67, %70 : vector<64x48xf32>
    %72 = vector.extract_strided_slice %71 {offsets = [0, 0], sizes = [64, 16], strides = [1, 1]} : vector<64x48xf32> to vector<64x16xf32>
    %73 = vector.extract_strided_slice %71 {offsets = [0, 16], sizes = [64, 16], strides = [1, 1]} : vector<64x48xf32> to vector<64x16xf32>
    %74 = vector.extract_strided_slice %71 {offsets = [0, 32], sizes = [64, 16], strides = [1, 1]} : vector<64x48xf32> to vector<64x16xf32>
    %cst_43 = arith.constant dense<0.000000e+00> : vector<64x64xf32>
    %75 = tpu.matmul %72, %73, %cst_43 {dimension_numbers = #tpu.dot_dimension_numbers<[1], [1], [0], [0], [0, 0, 1, 0], [], []>} : vector<64x16xf32>, vector<64x16xf32>, vector<64x64xf32> -> vector<64x64xf32>
    %76 = arith.addf %75, %59 : vector<64x64xf32>
    %cst_44 = arith.constant dense<0xFF800000> : vector<64xf32>
    %77 = vector.multi_reduction <maximumf>, %76, %cst_44 [1] : vector<64x64xf32> to vector<64xf32>
    %78 = vector.shape_cast %77 : vector<64xf32> to vector<64x1xf32>
    %79 = vector.broadcast %78 : vector<64x1xf32> to vector<64x64xf32>
    %80 = arith.subf %76, %79 : vector<64x64xf32>
    %81 = math.exp %80 : vector<64x64xf32>
    %cst_45 = arith.constant dense<0.000000e+00> : vector<64xf32>
    %82 = vector.multi_reduction <add>, %81, %cst_45 [1] : vector<64x64xf32> to vector<64xf32>
    %83 = vector.shape_cast %82 : vector<64xf32> to vector<64x1xf32>
    %84 = tpu.reciprocal %83 {approx = true} : vector<64x1xf32> -> vector<64x1xf32>
    %85 = vector.broadcast %84 : vector<64x1xf32> to vector<64x64xf32>
    %86 = arith.mulf %81, %85 : vector<64x64xf32>
    %cst_46 = arith.constant dense<0.000000e+00> : vector<64x16xf32>
    %87 = tpu.matmul %86, %74, %cst_46 {dimension_numbers = #tpu.dot_dimension_numbers<[1], [0], [0], [1], [0, 0, 1, 1], [], []>} : vector<64x64xf32>, vector<64x16xf32>, vector<64x16xf32> -> vector<64x16xf32>
    %c0_47 = arith.constant 0 : index
    %c0_48 = arith.constant 0 : index
    %c0_49 = arith.constant 0 : index
    %88 = vector.load %arg15[%c0_47, %c0_48, %c0_49] : memref<4x16x16xf32, #tpu.memory_space<vmem>>, vector<1x16x16xf32>
    %89 = vector.shape_cast %88 : vector<1x16x16xf32> to vector<16x16xf32>
    %cst_50 = arith.constant dense<0.000000e+00> : vector<64x16xf32>
    %90 = tpu.matmul %87, %89, %cst_50 {dimension_numbers = #tpu.dot_dimension_numbers<[1], [0], [0], [1], [0, 0, 1, 1], [], []>} : vector<64x16xf32>, vector<16x16xf32>, vector<64x16xf32> -> vector<64x16xf32>
    %c0_51 = arith.constant 0 : index
    %c0_52 = arith.constant 0 : index
    %c0_53 = arith.constant 0 : index
    %91 = vector.load %arg16[%c0_51, %c0_52, %c0_53] : memref<4x1x16xf32, #tpu.memory_space<vmem>>, vector<1x1x16xf32>
    %92 = vector.shape_cast %91 : vector<1x1x16xf32> to vector<1x16xf32>
    %93 = vector.broadcast %92 : vector<1x16xf32> to vector<64x16xf32>
    %94 = arith.addf %90, %93 : vector<64x16xf32>
    %c0_54 = arith.constant 0 : index
    %c0_55 = arith.constant 0 : index
    %c0_56 = arith.constant 0 : index
    %95 = vector.load %arg17[%c0_54, %c0_55, %c0_56] : memref<4x4x16xf32, #tpu.memory_space<vmem>>, vector<1x4x16xf32>
    %96 = vector.shape_cast %95 : vector<1x4x16xf32> to vector<4x16xf32>
    %97 = arith.addf %64, %94 : vector<64x16xf32>
    %98 = vector.extract_strided_slice %96 {offsets = [0, 0], sizes = [1, 16], strides = [1, 1]} : vector<4x16xf32> to vector<1x16xf32>
    %99 = vector.extract_strided_slice %96 {offsets = [1, 0], sizes = [1, 16], strides = [1, 1]} : vector<4x16xf32> to vector<1x16xf32>
    %cst_57 = arith.constant dense<0.000000e+00> : vector<64xf32>
    %100 = vector.multi_reduction <add>, %97, %cst_57 [1] : vector<64x16xf32> to vector<64xf32>
    %101 = vector.shape_cast %100 : vector<64xf32> to vector<64x1xf32>
    %cst_58 = arith.constant 1.600000e+01 : f32
    %102 = vector.broadcast %cst_58 : f32 to vector<64x1xf32>
    %103 = arith.divf %101, %102 : vector<64x1xf32>
    %104 = vector.broadcast %103 : vector<64x1xf32> to vector<64x16xf32>
    %105 = arith.subf %97, %104 : vector<64x16xf32>
    %106 = arith.mulf %105, %105 : vector<64x16xf32>
    %cst_59 = arith.constant dense<0.000000e+00> : vector<64xf32>
    %107 = vector.multi_reduction <add>, %106, %cst_59 [1] : vector<64x16xf32> to vector<64xf32>
    %108 = vector.shape_cast %107 : vector<64xf32> to vector<64x1xf32>
    %cst_60 = arith.constant 1.600000e+01 : f32
    %109 = vector.broadcast %cst_60 : f32 to vector<64x1xf32>
    %110 = arith.divf %108, %109 : vector<64x1xf32>
    %cst_61 = arith.constant 9.99999974E-6 : f32
    %111 = vector.broadcast %cst_61 : f32 to vector<64x1xf32>
    %112 = arith.addf %110, %111 : vector<64x1xf32>
    %113 = math.rsqrt %112 : vector<64x1xf32>
    %114 = vector.broadcast %113 : vector<64x1xf32> to vector<64x16xf32>
    %115 = arith.mulf %105, %114 : vector<64x16xf32>
    %116 = vector.broadcast %98 : vector<1x16xf32> to vector<64x16xf32>
    %117 = arith.mulf %115, %116 : vector<64x16xf32>
    %118 = vector.broadcast %99 : vector<1x16xf32> to vector<64x16xf32>
    %119 = arith.addf %117, %118 : vector<64x16xf32>
    %c0_62 = arith.constant 0 : index
    %c0_63 = arith.constant 0 : index
    %c0_64 = arith.constant 0 : index
    %120 = vector.load %arg18[%c0_62, %c0_63, %c0_64] : memref<4x16x64xf32, #tpu.memory_space<vmem>>, vector<1x16x64xf32>
    %121 = vector.shape_cast %120 : vector<1x16x64xf32> to vector<16x64xf32>
    %cst_65 = arith.constant dense<0.000000e+00> : vector<64x64xf32>
    %122 = tpu.matmul %119, %121, %cst_65 {dimension_numbers = #tpu.dot_dimension_numbers<[1], [0], [0], [1], [0, 0, 1, 1], [], []>} : vector<64x16xf32>, vector<16x64xf32>, vector<64x64xf32> -> vector<64x64xf32>
    %c0_66 = arith.constant 0 : index
    %c0_67 = arith.constant 0 : index
    %c0_68 = arith.constant 0 : index
    %123 = vector.load %arg19[%c0_66, %c0_67, %c0_68] : memref<4x1x64xf32, #tpu.memory_space<vmem>>, vector<1x1x64xf32>
    %124 = vector.shape_cast %123 : vector<1x1x64xf32> to vector<1x64xf32>
    %125 = vector.broadcast %124 : vector<1x64xf32> to vector<64x64xf32>
    %126 = arith.addf %122, %125 : vector<64x64xf32>
    %cst_69 = arith.constant 5.000000e-01 : f32
    %127 = vector.broadcast %cst_69 : f32 to vector<64x64xf32>
    %128 = arith.mulf %127, %126 : vector<64x64xf32>
    %cst_70 = arith.constant 4.471500e-02 : f32
    %129 = vector.broadcast %cst_70 : f32 to vector<64x64xf32>
    %130 = arith.mulf %129, %126 : vector<64x64xf32>
    %131 = arith.mulf %130, %126 : vector<64x64xf32>
    %132 = arith.mulf %131, %126 : vector<64x64xf32>
    %133 = arith.addf %126, %132 : vector<64x64xf32>
    %cst_71 = arith.constant 0.797884583 : f32
    %134 = vector.broadcast %cst_71 : f32 to vector<64x64xf32>
    %135 = arith.mulf %134, %133 : vector<64x64xf32>
    %136 = math.tanh %135 : vector<64x64xf32>
    %cst_72 = arith.constant 1.000000e+00 : f32
    %137 = vector.broadcast %cst_72 : f32 to vector<64x64xf32>
    %138 = arith.addf %137, %136 : vector<64x64xf32>
    %139 = arith.mulf %128, %138 : vector<64x64xf32>
    %c0_73 = arith.constant 0 : index
    %c0_74 = arith.constant 0 : index
    %c0_75 = arith.constant 0 : index
    %140 = vector.load %arg20[%c0_73, %c0_74, %c0_75] : memref<4x64x16xf32, #tpu.memory_space<vmem>>, vector<1x64x16xf32>
    %141 = vector.shape_cast %140 : vector<1x64x16xf32> to vector<64x16xf32>
    %cst_76 = arith.constant dense<0.000000e+00> : vector<64x16xf32>
    %142 = tpu.matmul %139, %141, %cst_76 {dimension_numbers = #tpu.dot_dimension_numbers<[1], [0], [0], [1], [0, 0, 1, 1], [], []>} : vector<64x64xf32>, vector<64x16xf32>, vector<64x16xf32> -> vector<64x16xf32>
    %c0_77 = arith.constant 0 : index
    %c0_78 = arith.constant 0 : index
    %c0_79 = arith.constant 0 : index
    %143 = vector.load %arg21[%c0_77, %c0_78, %c0_79] : memref<4x1x16xf32, #tpu.memory_space<vmem>>, vector<1x1x16xf32>
    %144 = vector.shape_cast %143 : vector<1x1x16xf32> to vector<1x16xf32>
    %145 = vector.broadcast %144 : vector<1x16xf32> to vector<64x16xf32>
    %146 = arith.addf %142, %145 : vector<64x16xf32>
    %147 = arith.addf %119, %146 : vector<64x16xf32>
    %148 = vector.extract_strided_slice %96 {offsets = [2, 0], sizes = [1, 16], strides = [1, 1]} : vector<4x16xf32> to vector<1x16xf32>
    %149 = vector.extract_strided_slice %96 {offsets = [3, 0], sizes = [1, 16], strides = [1, 1]} : vector<4x16xf32> to vector<1x16xf32>
    %cst_80 = arith.constant dense<0.000000e+00> : vector<64xf32>
    %150 = vector.multi_reduction <add>, %147, %cst_80 [1] : vector<64x16xf32> to vector<64xf32>
    %151 = vector.shape_cast %150 : vector<64xf32> to vector<64x1xf32>
    %cst_81 = arith.constant 1.600000e+01 : f32
    %152 = vector.broadcast %cst_81 : f32 to vector<64x1xf32>
    %153 = arith.divf %151, %152 : vector<64x1xf32>
    %154 = vector.broadcast %153 : vector<64x1xf32> to vector<64x16xf32>
    %155 = arith.subf %147, %154 : vector<64x16xf32>
    %156 = arith.mulf %155, %155 : vector<64x16xf32>
    %cst_82 = arith.constant dense<0.000000e+00> : vector<64xf32>
    %157 = vector.multi_reduction <add>, %156, %cst_82 [1] : vector<64x16xf32> to vector<64xf32>
    %158 = vector.shape_cast %157 : vector<64xf32> to vector<64x1xf32>
    %cst_83 = arith.constant 1.600000e+01 : f32
    %159 = vector.broadcast %cst_83 : f32 to vector<64x1xf32>
    %160 = arith.divf %158, %159 : vector<64x1xf32>
    %cst_84 = arith.constant 9.99999974E-6 : f32
    %161 = vector.broadcast %cst_84 : f32 to vector<64x1xf32>
    %162 = arith.addf %160, %161 : vector<64x1xf32>
    %163 = math.rsqrt %162 : vector<64x1xf32>
    %164 = vector.broadcast %163 : vector<64x1xf32> to vector<64x16xf32>
    %165 = arith.mulf %155, %164 : vector<64x16xf32>
    %166 = vector.broadcast %148 : vector<1x16xf32> to vector<64x16xf32>
    %167 = arith.mulf %165, %166 : vector<64x16xf32>
    %168 = vector.broadcast %149 : vector<1x16xf32> to vector<64x16xf32>
    %169 = arith.addf %167, %168 : vector<64x16xf32>
    %c2 = arith.constant 2 : index
    %c0_85 = arith.constant 0 : index
    %c0_86 = arith.constant 0 : index
    %170 = vector.load %arg13[%c2, %c0_85, %c0_86] : memref<4x16x48xf32, #tpu.memory_space<vmem>>, vector<1x16x48xf32>
    %171 = vector.shape_cast %170 : vector<1x16x48xf32> to vector<16x48xf32>
    %cst_87 = arith.constant dense<0.000000e+00> : vector<64x48xf32>
    %172 = tpu.matmul %169, %171, %cst_87 {dimension_numbers = #tpu.dot_dimension_numbers<[1], [0], [0], [1], [0, 0, 1, 1], [], []>} : vector<64x16xf32>, vector<16x48xf32>, vector<64x48xf32> -> vector<64x48xf32>
    %c2_88 = arith.constant 2 : index
    %c0_89 = arith.constant 0 : index
    %c0_90 = arith.constant 0 : index
    %173 = vector.load %arg14[%c2_88, %c0_89, %c0_90] : memref<4x1x48xf32, #tpu.memory_space<vmem>>, vector<1x1x48xf32>
    %174 = vector.shape_cast %173 : vector<1x1x48xf32> to vector<1x48xf32>
    %175 = vector.broadcast %174 : vector<1x48xf32> to vector<64x48xf32>
    %176 = arith.addf %172, %175 : vector<64x48xf32>
    %177 = vector.extract_strided_slice %176 {offsets = [0, 0], sizes = [64, 16], strides = [1, 1]} : vector<64x48xf32> to vector<64x16xf32>
    %178 = vector.extract_strided_slice %176 {offsets = [0, 16], sizes = [64, 16], strides = [1, 1]} : vector<64x48xf32> to vector<64x16xf32>
    %179 = vector.extract_strided_slice %176 {offsets = [0, 32], sizes = [64, 16], strides = [1, 1]} : vector<64x48xf32> to vector<64x16xf32>
    %cst_91 = arith.constant dense<0.000000e+00> : vector<64x64xf32>
    %180 = tpu.matmul %177, %178, %cst_91 {dimension_numbers = #tpu.dot_dimension_numbers<[1], [1], [0], [0], [0, 0, 1, 0], [], []>} : vector<64x16xf32>, vector<64x16xf32>, vector<64x64xf32> -> vector<64x64xf32>
    %181 = arith.addf %180, %61 : vector<64x64xf32>
    %cst_92 = arith.constant dense<0xFF800000> : vector<64xf32>
    %182 = vector.multi_reduction <maximumf>, %181, %cst_92 [1] : vector<64x64xf32> to vector<64xf32>
    %183 = vector.shape_cast %182 : vector<64xf32> to vector<64x1xf32>
    %184 = vector.broadcast %183 : vector<64x1xf32> to vector<64x64xf32>
    %185 = arith.subf %181, %184 : vector<64x64xf32>
    %186 = math.exp %185 : vector<64x64xf32>
    %cst_93 = arith.constant dense<0.000000e+00> : vector<64xf32>
    %187 = vector.multi_reduction <add>, %186, %cst_93 [1] : vector<64x64xf32> to vector<64xf32>
    %188 = vector.shape_cast %187 : vector<64xf32> to vector<64x1xf32>
    %189 = tpu.reciprocal %188 {approx = true} : vector<64x1xf32> -> vector<64x1xf32>
    %190 = vector.broadcast %189 : vector<64x1xf32> to vector<64x64xf32>
    %191 = arith.mulf %186, %190 : vector<64x64xf32>
    %cst_94 = arith.constant dense<0.000000e+00> : vector<64x16xf32>
    %192 = tpu.matmul %191, %179, %cst_94 {dimension_numbers = #tpu.dot_dimension_numbers<[1], [0], [0], [1], [0, 0, 1, 1], [], []>} : vector<64x64xf32>, vector<64x16xf32>, vector<64x16xf32> -> vector<64x16xf32>
    %c2_95 = arith.constant 2 : index
    %c0_96 = arith.constant 0 : index
    %c0_97 = arith.constant 0 : index
    %193 = vector.load %arg15[%c2_95, %c0_96, %c0_97] : memref<4x16x16xf32, #tpu.memory_space<vmem>>, vector<1x16x16xf32>
    %194 = vector.shape_cast %193 : vector<1x16x16xf32> to vector<16x16xf32>
    %cst_98 = arith.constant dense<0.000000e+00> : vector<64x16xf32>
    %195 = tpu.matmul %192, %194, %cst_98 {dimension_numbers = #tpu.dot_dimension_numbers<[1], [0], [0], [1], [0, 0, 1, 1], [], []>} : vector<64x16xf32>, vector<16x16xf32>, vector<64x16xf32> -> vector<64x16xf32>
    %c2_99 = arith.constant 2 : index
    %c0_100 = arith.constant 0 : index
    %c0_101 = arith.constant 0 : index
    %196 = vector.load %arg16[%c2_99, %c0_100, %c0_101] : memref<4x1x16xf32, #tpu.memory_space<vmem>>, vector<1x1x16xf32>
    %197 = vector.shape_cast %196 : vector<1x1x16xf32> to vector<1x16xf32>
    %198 = vector.broadcast %197 : vector<1x16xf32> to vector<64x16xf32>
    %199 = arith.addf %195, %198 : vector<64x16xf32>
    %c2_102 = arith.constant 2 : index
    %c0_103 = arith.constant 0 : index
    %c0_104 = arith.constant 0 : index
    %200 = vector.load %arg17[%c2_102, %c0_103, %c0_104] : memref<4x4x16xf32, #tpu.memory_space<vmem>>, vector<1x4x16xf32>
    %201 = vector.shape_cast %200 : vector<1x4x16xf32> to vector<4x16xf32>
    %202 = arith.addf %169, %199 : vector<64x16xf32>
    %203 = vector.extract_strided_slice %201 {offsets = [0, 0], sizes = [1, 16], strides = [1, 1]} : vector<4x16xf32> to vector<1x16xf32>
    %204 = vector.extract_strided_slice %201 {offsets = [1, 0], sizes = [1, 16], strides = [1, 1]} : vector<4x16xf32> to vector<1x16xf32>
    %cst_105 = arith.constant dense<0.000000e+00> : vector<64xf32>
    %205 = vector.multi_reduction <add>, %202, %cst_105 [1] : vector<64x16xf32> to vector<64xf32>
    %206 = vector.shape_cast %205 : vector<64xf32> to vector<64x1xf32>
    %cst_106 = arith.constant 1.600000e+01 : f32
    %207 = vector.broadcast %cst_106 : f32 to vector<64x1xf32>
    %208 = arith.divf %206, %207 : vector<64x1xf32>
    %209 = vector.broadcast %208 : vector<64x1xf32> to vector<64x16xf32>
    %210 = arith.subf %202, %209 : vector<64x16xf32>
    %211 = arith.mulf %210, %210 : vector<64x16xf32>
    %cst_107 = arith.constant dense<0.000000e+00> : vector<64xf32>
    %212 = vector.multi_reduction <add>, %211, %cst_107 [1] : vector<64x16xf32> to vector<64xf32>
    %213 = vector.shape_cast %212 : vector<64xf32> to vector<64x1xf32>
    %cst_108 = arith.constant 1.600000e+01 : f32
    %214 = vector.broadcast %cst_108 : f32 to vector<64x1xf32>
    %215 = arith.divf %213, %214 : vector<64x1xf32>
    %cst_109 = arith.constant 9.99999974E-6 : f32
    %216 = vector.broadcast %cst_109 : f32 to vector<64x1xf32>
    %217 = arith.addf %215, %216 : vector<64x1xf32>
    %218 = math.rsqrt %217 : vector<64x1xf32>
    %219 = vector.broadcast %218 : vector<64x1xf32> to vector<64x16xf32>
    %220 = arith.mulf %210, %219 : vector<64x16xf32>
    %221 = vector.broadcast %203 : vector<1x16xf32> to vector<64x16xf32>
    %222 = arith.mulf %220, %221 : vector<64x16xf32>
    %223 = vector.broadcast %204 : vector<1x16xf32> to vector<64x16xf32>
    %224 = arith.addf %222, %223 : vector<64x16xf32>
    %c2_110 = arith.constant 2 : index
    %c0_111 = arith.constant 0 : index
    %c0_112 = arith.constant 0 : index
    %225 = vector.load %arg18[%c2_110, %c0_111, %c0_112] : memref<4x16x64xf32, #tpu.memory_space<vmem>>, vector<1x16x64xf32>
    %226 = vector.shape_cast %225 : vector<1x16x64xf32> to vector<16x64xf32>
    %cst_113 = arith.constant dense<0.000000e+00> : vector<64x64xf32>
    %227 = tpu.matmul %224, %226, %cst_113 {dimension_numbers = #tpu.dot_dimension_numbers<[1], [0], [0], [1], [0, 0, 1, 1], [], []>} : vector<64x16xf32>, vector<16x64xf32>, vector<64x64xf32> -> vector<64x64xf32>
    %c2_114 = arith.constant 2 : index
    %c0_115 = arith.constant 0 : index
    %c0_116 = arith.constant 0 : index
    %228 = vector.load %arg19[%c2_114, %c0_115, %c0_116] : memref<4x1x64xf32, #tpu.memory_space<vmem>>, vector<1x1x64xf32>
    %229 = vector.shape_cast %228 : vector<1x1x64xf32> to vector<1x64xf32>
    %230 = vector.broadcast %229 : vector<1x64xf32> to vector<64x64xf32>
    %231 = arith.addf %227, %230 : vector<64x64xf32>
    %cst_117 = arith.constant 5.000000e-01 : f32
    %232 = vector.broadcast %cst_117 : f32 to vector<64x64xf32>
    %233 = arith.mulf %232, %231 : vector<64x64xf32>
    %cst_118 = arith.constant 4.471500e-02 : f32
    %234 = vector.broadcast %cst_118 : f32 to vector<64x64xf32>
    %235 = arith.mulf %234, %231 : vector<64x64xf32>
    %236 = arith.mulf %235, %231 : vector<64x64xf32>
    %237 = arith.mulf %236, %231 : vector<64x64xf32>
    %238 = arith.addf %231, %237 : vector<64x64xf32>
    %cst_119 = arith.constant 0.797884583 : f32
    %239 = vector.broadcast %cst_119 : f32 to vector<64x64xf32>
    %240 = arith.mulf %239, %238 : vector<64x64xf32>
    %241 = math.tanh %240 : vector<64x64xf32>
    %cst_120 = arith.constant 1.000000e+00 : f32
    %242 = vector.broadcast %cst_120 : f32 to vector<64x64xf32>
    %243 = arith.addf %242, %241 : vector<64x64xf32>
    %244 = arith.mulf %233, %243 : vector<64x64xf32>
    %c2_121 = arith.constant 2 : index
    %c0_122 = arith.constant 0 : index
    %c0_123 = arith.constant 0 : index
    %245 = vector.load %arg20[%c2_121, %c0_122, %c0_123] : memref<4x64x16xf32, #tpu.memory_space<vmem>>, vector<1x64x16xf32>
    %246 = vector.shape_cast %245 : vector<1x64x16xf32> to vector<64x16xf32>
    %cst_124 = arith.constant dense<0.000000e+00> : vector<64x16xf32>
    %247 = tpu.matmul %244, %246, %cst_124 {dimension_numbers = #tpu.dot_dimension_numbers<[1], [0], [0], [1], [0, 0, 1, 1], [], []>} : vector<64x64xf32>, vector<64x16xf32>, vector<64x16xf32> -> vector<64x16xf32>
    %c2_125 = arith.constant 2 : index
    %c0_126 = arith.constant 0 : index
    %c0_127 = arith.constant 0 : index
    %248 = vector.load %arg21[%c2_125, %c0_126, %c0_127] : memref<4x1x16xf32, #tpu.memory_space<vmem>>, vector<1x1x16xf32>
    %249 = vector.shape_cast %248 : vector<1x1x16xf32> to vector<1x16xf32>
    %250 = vector.broadcast %249 : vector<1x16xf32> to vector<64x16xf32>
    %251 = arith.addf %247, %250 : vector<64x16xf32>
    %252 = arith.addf %224, %251 : vector<64x16xf32>
    %253 = vector.extract_strided_slice %201 {offsets = [2, 0], sizes = [1, 16], strides = [1, 1]} : vector<4x16xf32> to vector<1x16xf32>
    %254 = vector.extract_strided_slice %201 {offsets = [3, 0], sizes = [1, 16], strides = [1, 1]} : vector<4x16xf32> to vector<1x16xf32>
    %cst_128 = arith.constant dense<0.000000e+00> : vector<64xf32>
    %255 = vector.multi_reduction <add>, %252, %cst_128 [1] : vector<64x16xf32> to vector<64xf32>
    %256 = vector.shape_cast %255 : vector<64xf32> to vector<64x1xf32>
    %cst_129 = arith.constant 1.600000e+01 : f32
    %257 = vector.broadcast %cst_129 : f32 to vector<64x1xf32>
    %258 = arith.divf %256, %257 : vector<64x1xf32>
    %259 = vector.broadcast %258 : vector<64x1xf32> to vector<64x16xf32>
    %260 = arith.subf %252, %259 : vector<64x16xf32>
    %261 = arith.mulf %260, %260 : vector<64x16xf32>
    %cst_130 = arith.constant dense<0.000000e+00> : vector<64xf32>
    %262 = vector.multi_reduction <add>, %261, %cst_130 [1] : vector<64x16xf32> to vector<64xf32>
    %263 = vector.shape_cast %262 : vector<64xf32> to vector<64x1xf32>
    %cst_131 = arith.constant 1.600000e+01 : f32
    %264 = vector.broadcast %cst_131 : f32 to vector<64x1xf32>
    %265 = arith.divf %263, %264 : vector<64x1xf32>
    %cst_132 = arith.constant 9.99999974E-6 : f32
    %266 = vector.broadcast %cst_132 : f32 to vector<64x1xf32>
    %267 = arith.addf %265, %266 : vector<64x1xf32>
    %268 = math.rsqrt %267 : vector<64x1xf32>
    %269 = vector.broadcast %268 : vector<64x1xf32> to vector<64x16xf32>
    %270 = arith.mulf %260, %269 : vector<64x16xf32>
    %271 = vector.broadcast %253 : vector<1x16xf32> to vector<64x16xf32>
    %272 = arith.mulf %270, %271 : vector<64x16xf32>
    %273 = vector.broadcast %254 : vector<1x16xf32> to vector<64x16xf32>
    %274 = arith.addf %272, %273 : vector<64x16xf32>
    %c0_133 = arith.constant 0 : index
    %c0_134 = arith.constant 0 : index
    %c0_135 = arith.constant 0 : index
    %275 = vector.load %arg22[%c0_133, %c0_134, %c0_135] : memref<2x16x32xf32, #tpu.memory_space<vmem>>, vector<1x16x32xf32>
    %276 = vector.shape_cast %275 : vector<1x16x32xf32> to vector<16x32xf32>
    %cst_136 = arith.constant dense<0.000000e+00> : vector<64x32xf32>
    %277 = tpu.matmul %274, %276, %cst_136 {dimension_numbers = #tpu.dot_dimension_numbers<[1], [0], [0], [1], [0, 0, 1, 1], [], []>} : vector<64x16xf32>, vector<16x32xf32>, vector<64x32xf32> -> vector<64x32xf32>
    %c0_137 = arith.constant 0 : index
    %c0_138 = arith.constant 0 : index
    %c0_139 = arith.constant 0 : index
    %278 = vector.load %arg23[%c0_137, %c0_138, %c0_139] : memref<2x1x32xf32, #tpu.memory_space<vmem>>, vector<1x1x32xf32>
    %279 = vector.shape_cast %278 : vector<1x1x32xf32> to vector<1x32xf32>
    %280 = vector.broadcast %279 : vector<1x32xf32> to vector<64x32xf32>
    %281 = arith.addf %277, %280 : vector<64x32xf32>
    %282 = vector.extract_strided_slice %38 {offsets = [0, 0], sizes = [64, 32], strides = [1, 1]} : vector<64x64xf32> to vector<64x32xf32>
    %283 = arith.addf %281, %282 : vector<64x32xf32>
    %284 = vector.extract_strided_slice %283 {offsets = [0, 0], sizes = [64, 16], strides = [1, 1]} : vector<64x32xf32> to vector<64x16xf32>
    %cst_140 = arith.constant 5.000000e-01 : f32
    %285 = vector.broadcast %cst_140 : f32 to vector<64x16xf32>
    %286 = arith.mulf %285, %284 : vector<64x16xf32>
    %287 = math.tanh %286 : vector<64x16xf32>
    %cst_141 = arith.constant 1.000000e+00 : f32
    %288 = vector.broadcast %cst_141 : f32 to vector<64x16xf32>
    %289 = arith.addf %287, %288 : vector<64x16xf32>
    %cst_142 = arith.constant 5.000000e-01 : f32
    %290 = vector.broadcast %cst_142 : f32 to vector<64x16xf32>
    %291 = arith.mulf %290, %289 : vector<64x16xf32>
    %292 = vector.extract_strided_slice %283 {offsets = [0, 16], sizes = [64, 16], strides = [1, 1]} : vector<64x32xf32> to vector<64x16xf32>
    %293 = math.tanh %292 : vector<64x16xf32>
    %294 = arith.mulf %291, %293 : vector<64x16xf32>
    %c0_143 = arith.constant 0 : index
    %c0_144 = arith.constant 0 : index
    %c0_145 = arith.constant 0 : index
    %295 = vector.load %arg24[%c0_143, %c0_144, %c0_145] : memref<2x16x32xf32, #tpu.memory_space<vmem>>, vector<1x16x32xf32>
    %296 = vector.shape_cast %295 : vector<1x16x32xf32> to vector<16x32xf32>
    %cst_146 = arith.constant dense<0.000000e+00> : vector<64x32xf32>
    %297 = tpu.matmul %294, %296, %cst_146 {dimension_numbers = #tpu.dot_dimension_numbers<[1], [0], [0], [1], [0, 0, 1, 1], [], []>} : vector<64x16xf32>, vector<16x32xf32>, vector<64x32xf32> -> vector<64x32xf32>
    %c0_147 = arith.constant 0 : index
    %c0_148 = arith.constant 0 : index
    %c0_149 = arith.constant 0 : index
    %298 = vector.load %arg25[%c0_147, %c0_148, %c0_149] : memref<2x1x32xf32, #tpu.memory_space<vmem>>, vector<1x1x32xf32>
    %299 = vector.shape_cast %298 : vector<1x1x32xf32> to vector<1x32xf32>
    %300 = vector.broadcast %299 : vector<1x32xf32> to vector<64x32xf32>
    %301 = arith.addf %297, %300 : vector<64x32xf32>
    %302 = vector.extract_strided_slice %301 {offsets = [0, 0], sizes = [64, 16], strides = [1, 1]} : vector<64x32xf32> to vector<64x16xf32>
    %303 = arith.addf %57, %302 : vector<64x16xf32>
    %cst_150 = arith.constant 0.707106769 : f32
    %304 = vector.broadcast %cst_150 : f32 to vector<64x16xf32>
    %305 = arith.mulf %303, %304 : vector<64x16xf32>
    %306 = vector.extract_strided_slice %301 {offsets = [0, 16], sizes = [64, 16], strides = [1, 1]} : vector<64x32xf32> to vector<64x16xf32>
    %307 = vector.extract_strided_slice %31 {offsets = [0, 16], sizes = [1, 16], strides = [1, 1]} : vector<1x32xf32> to vector<1x16xf32>
    %308 = vector.broadcast %307 : vector<1x16xf32> to vector<64x16xf32>
    %309 = arith.addf %305, %308 : vector<64x16xf32>
    %c1_151 = arith.constant 1 : index
    %c0_152 = arith.constant 0 : index
    %c0_153 = arith.constant 0 : index
    %310 = vector.load %arg13[%c1_151, %c0_152, %c0_153] : memref<4x16x48xf32, #tpu.memory_space<vmem>>, vector<1x16x48xf32>
    %311 = vector.shape_cast %310 : vector<1x16x48xf32> to vector<16x48xf32>
    %cst_154 = arith.constant dense<0.000000e+00> : vector<64x48xf32>
    %312 = tpu.matmul %309, %311, %cst_154 {dimension_numbers = #tpu.dot_dimension_numbers<[1], [0], [0], [1], [0, 0, 1, 1], [], []>} : vector<64x16xf32>, vector<16x48xf32>, vector<64x48xf32> -> vector<64x48xf32>
    %c1_155 = arith.constant 1 : index
    %c0_156 = arith.constant 0 : index
    %c0_157 = arith.constant 0 : index
    %313 = vector.load %arg14[%c1_155, %c0_156, %c0_157] : memref<4x1x48xf32, #tpu.memory_space<vmem>>, vector<1x1x48xf32>
    %314 = vector.shape_cast %313 : vector<1x1x48xf32> to vector<1x48xf32>
    %315 = vector.broadcast %314 : vector<1x48xf32> to vector<64x48xf32>
    %316 = arith.addf %312, %315 : vector<64x48xf32>
    %317 = vector.extract_strided_slice %316 {offsets = [0, 0], sizes = [64, 16], strides = [1, 1]} : vector<64x48xf32> to vector<64x16xf32>
    %318 = vector.extract_strided_slice %316 {offsets = [0, 16], sizes = [64, 16], strides = [1, 1]} : vector<64x48xf32> to vector<64x16xf32>
    %319 = vector.extract_strided_slice %316 {offsets = [0, 32], sizes = [64, 16], strides = [1, 1]} : vector<64x48xf32> to vector<64x16xf32>
    %cst_158 = arith.constant dense<0.000000e+00> : vector<64x64xf32>
    %320 = tpu.matmul %317, %318, %cst_158 {dimension_numbers = #tpu.dot_dimension_numbers<[1], [1], [0], [0], [0, 0, 1, 0], [], []>} : vector<64x16xf32>, vector<64x16xf32>, vector<64x64xf32> -> vector<64x64xf32>
    %321 = arith.addf %320, %59 : vector<64x64xf32>
    %cst_159 = arith.constant dense<0xFF800000> : vector<64xf32>
    %322 = vector.multi_reduction <maximumf>, %321, %cst_159 [1] : vector<64x64xf32> to vector<64xf32>
    %323 = vector.shape_cast %322 : vector<64xf32> to vector<64x1xf32>
    %324 = vector.broadcast %323 : vector<64x1xf32> to vector<64x64xf32>
    %325 = arith.subf %321, %324 : vector<64x64xf32>
    %326 = math.exp %325 : vector<64x64xf32>
    %cst_160 = arith.constant dense<0.000000e+00> : vector<64xf32>
    %327 = vector.multi_reduction <add>, %326, %cst_160 [1] : vector<64x64xf32> to vector<64xf32>
    %328 = vector.shape_cast %327 : vector<64xf32> to vector<64x1xf32>
    %329 = tpu.reciprocal %328 {approx = true} : vector<64x1xf32> -> vector<64x1xf32>
    %330 = vector.broadcast %329 : vector<64x1xf32> to vector<64x64xf32>
    %331 = arith.mulf %326, %330 : vector<64x64xf32>
    %cst_161 = arith.constant dense<0.000000e+00> : vector<64x16xf32>
    %332 = tpu.matmul %331, %319, %cst_161 {dimension_numbers = #tpu.dot_dimension_numbers<[1], [0], [0], [1], [0, 0, 1, 1], [], []>} : vector<64x64xf32>, vector<64x16xf32>, vector<64x16xf32> -> vector<64x16xf32>
    %c1_162 = arith.constant 1 : index
    %c0_163 = arith.constant 0 : index
    %c0_164 = arith.constant 0 : index
    %333 = vector.load %arg15[%c1_162, %c0_163, %c0_164] : memref<4x16x16xf32, #tpu.memory_space<vmem>>, vector<1x16x16xf32>
    %334 = vector.shape_cast %333 : vector<1x16x16xf32> to vector<16x16xf32>
    %cst_165 = arith.constant dense<0.000000e+00> : vector<64x16xf32>
    %335 = tpu.matmul %332, %334, %cst_165 {dimension_numbers = #tpu.dot_dimension_numbers<[1], [0], [0], [1], [0, 0, 1, 1], [], []>} : vector<64x16xf32>, vector<16x16xf32>, vector<64x16xf32> -> vector<64x16xf32>
    %c1_166 = arith.constant 1 : index
    %c0_167 = arith.constant 0 : index
    %c0_168 = arith.constant 0 : index
    %336 = vector.load %arg16[%c1_166, %c0_167, %c0_168] : memref<4x1x16xf32, #tpu.memory_space<vmem>>, vector<1x1x16xf32>
    %337 = vector.shape_cast %336 : vector<1x1x16xf32> to vector<1x16xf32>
    %338 = vector.broadcast %337 : vector<1x16xf32> to vector<64x16xf32>
    %339 = arith.addf %335, %338 : vector<64x16xf32>
    %c1_169 = arith.constant 1 : index
    %c0_170 = arith.constant 0 : index
    %c0_171 = arith.constant 0 : index
    %340 = vector.load %arg17[%c1_169, %c0_170, %c0_171] : memref<4x4x16xf32, #tpu.memory_space<vmem>>, vector<1x4x16xf32>
    %341 = vector.shape_cast %340 : vector<1x4x16xf32> to vector<4x16xf32>
    %342 = arith.addf %309, %339 : vector<64x16xf32>
    %343 = vector.extract_strided_slice %341 {offsets = [0, 0], sizes = [1, 16], strides = [1, 1]} : vector<4x16xf32> to vector<1x16xf32>
    %344 = vector.extract_strided_slice %341 {offsets = [1, 0], sizes = [1, 16], strides = [1, 1]} : vector<4x16xf32> to vector<1x16xf32>
    %cst_172 = arith.constant dense<0.000000e+00> : vector<64xf32>
    %345 = vector.multi_reduction <add>, %342, %cst_172 [1] : vector<64x16xf32> to vector<64xf32>
    %346 = vector.shape_cast %345 : vector<64xf32> to vector<64x1xf32>
    %cst_173 = arith.constant 1.600000e+01 : f32
    %347 = vector.broadcast %cst_173 : f32 to vector<64x1xf32>
    %348 = arith.divf %346, %347 : vector<64x1xf32>
    %349 = vector.broadcast %348 : vector<64x1xf32> to vector<64x16xf32>
    %350 = arith.subf %342, %349 : vector<64x16xf32>
    %351 = arith.mulf %350, %350 : vector<64x16xf32>
    %cst_174 = arith.constant dense<0.000000e+00> : vector<64xf32>
    %352 = vector.multi_reduction <add>, %351, %cst_174 [1] : vector<64x16xf32> to vector<64xf32>
    %353 = vector.shape_cast %352 : vector<64xf32> to vector<64x1xf32>
    %cst_175 = arith.constant 1.600000e+01 : f32
    %354 = vector.broadcast %cst_175 : f32 to vector<64x1xf32>
    %355 = arith.divf %353, %354 : vector<64x1xf32>
    %cst_176 = arith.constant 9.99999974E-6 : f32
    %356 = vector.broadcast %cst_176 : f32 to vector<64x1xf32>
    %357 = arith.addf %355, %356 : vector<64x1xf32>
    %358 = math.rsqrt %357 : vector<64x1xf32>
    %359 = vector.broadcast %358 : vector<64x1xf32> to vector<64x16xf32>
    %360 = arith.mulf %350, %359 : vector<64x16xf32>
    %361 = vector.broadcast %343 : vector<1x16xf32> to vector<64x16xf32>
    %362 = arith.mulf %360, %361 : vector<64x16xf32>
    %363 = vector.broadcast %344 : vector<1x16xf32> to vector<64x16xf32>
    %364 = arith.addf %362, %363 : vector<64x16xf32>
    %c1_177 = arith.constant 1 : index
    %c0_178 = arith.constant 0 : index
    %c0_179 = arith.constant 0 : index
    %365 = vector.load %arg18[%c1_177, %c0_178, %c0_179] : memref<4x16x64xf32, #tpu.memory_space<vmem>>, vector<1x16x64xf32>
    %366 = vector.shape_cast %365 : vector<1x16x64xf32> to vector<16x64xf32>
    %cst_180 = arith.constant dense<0.000000e+00> : vector<64x64xf32>
    %367 = tpu.matmul %364, %366, %cst_180 {dimension_numbers = #tpu.dot_dimension_numbers<[1], [0], [0], [1], [0, 0, 1, 1], [], []>} : vector<64x16xf32>, vector<16x64xf32>, vector<64x64xf32> -> vector<64x64xf32>
    %c1_181 = arith.constant 1 : index
    %c0_182 = arith.constant 0 : index
    %c0_183 = arith.constant 0 : index
    %368 = vector.load %arg19[%c1_181, %c0_182, %c0_183] : memref<4x1x64xf32, #tpu.memory_space<vmem>>, vector<1x1x64xf32>
    %369 = vector.shape_cast %368 : vector<1x1x64xf32> to vector<1x64xf32>
    %370 = vector.broadcast %369 : vector<1x64xf32> to vector<64x64xf32>
    %371 = arith.addf %367, %370 : vector<64x64xf32>
    %cst_184 = arith.constant 5.000000e-01 : f32
    %372 = vector.broadcast %cst_184 : f32 to vector<64x64xf32>
    %373 = arith.mulf %372, %371 : vector<64x64xf32>
    %cst_185 = arith.constant 4.471500e-02 : f32
    %374 = vector.broadcast %cst_185 : f32 to vector<64x64xf32>
    %375 = arith.mulf %374, %371 : vector<64x64xf32>
    %376 = arith.mulf %375, %371 : vector<64x64xf32>
    %377 = arith.mulf %376, %371 : vector<64x64xf32>
    %378 = arith.addf %371, %377 : vector<64x64xf32>
    %cst_186 = arith.constant 0.797884583 : f32
    %379 = vector.broadcast %cst_186 : f32 to vector<64x64xf32>
    %380 = arith.mulf %379, %378 : vector<64x64xf32>
    %381 = math.tanh %380 : vector<64x64xf32>
    %cst_187 = arith.constant 1.000000e+00 : f32
    %382 = vector.broadcast %cst_187 : f32 to vector<64x64xf32>
    %383 = arith.addf %382, %381 : vector<64x64xf32>
    %384 = arith.mulf %373, %383 : vector<64x64xf32>
    %c1_188 = arith.constant 1 : index
    %c0_189 = arith.constant 0 : index
    %c0_190 = arith.constant 0 : index
    %385 = vector.load %arg20[%c1_188, %c0_189, %c0_190] : memref<4x64x16xf32, #tpu.memory_space<vmem>>, vector<1x64x16xf32>
    %386 = vector.shape_cast %385 : vector<1x64x16xf32> to vector<64x16xf32>
    %cst_191 = arith.constant dense<0.000000e+00> : vector<64x16xf32>
    %387 = tpu.matmul %384, %386, %cst_191 {dimension_numbers = #tpu.dot_dimension_numbers<[1], [0], [0], [1], [0, 0, 1, 1], [], []>} : vector<64x64xf32>, vector<64x16xf32>, vector<64x16xf32> -> vector<64x16xf32>
    %c1_192 = arith.constant 1 : index
    %c0_193 = arith.constant 0 : index
    %c0_194 = arith.constant 0 : index
    %388 = vector.load %arg21[%c1_192, %c0_193, %c0_194] : memref<4x1x16xf32, #tpu.memory_space<vmem>>, vector<1x1x16xf32>
    %389 = vector.shape_cast %388 : vector<1x1x16xf32> to vector<1x16xf32>
    %390 = vector.broadcast %389 : vector<1x16xf32> to vector<64x16xf32>
    %391 = arith.addf %387, %390 : vector<64x16xf32>
    %392 = arith.addf %364, %391 : vector<64x16xf32>
    %393 = vector.extract_strided_slice %341 {offsets = [2, 0], sizes = [1, 16], strides = [1, 1]} : vector<4x16xf32> to vector<1x16xf32>
    %394 = vector.extract_strided_slice %341 {offsets = [3, 0], sizes = [1, 16], strides = [1, 1]} : vector<4x16xf32> to vector<1x16xf32>
    %cst_195 = arith.constant dense<0.000000e+00> : vector<64xf32>
    %395 = vector.multi_reduction <add>, %392, %cst_195 [1] : vector<64x16xf32> to vector<64xf32>
    %396 = vector.shape_cast %395 : vector<64xf32> to vector<64x1xf32>
    %cst_196 = arith.constant 1.600000e+01 : f32
    %397 = vector.broadcast %cst_196 : f32 to vector<64x1xf32>
    %398 = arith.divf %396, %397 : vector<64x1xf32>
    %399 = vector.broadcast %398 : vector<64x1xf32> to vector<64x16xf32>
    %400 = arith.subf %392, %399 : vector<64x16xf32>
    %401 = arith.mulf %400, %400 : vector<64x16xf32>
    %cst_197 = arith.constant dense<0.000000e+00> : vector<64xf32>
    %402 = vector.multi_reduction <add>, %401, %cst_197 [1] : vector<64x16xf32> to vector<64xf32>
    %403 = vector.shape_cast %402 : vector<64xf32> to vector<64x1xf32>
    %cst_198 = arith.constant 1.600000e+01 : f32
    %404 = vector.broadcast %cst_198 : f32 to vector<64x1xf32>
    %405 = arith.divf %403, %404 : vector<64x1xf32>
    %cst_199 = arith.constant 9.99999974E-6 : f32
    %406 = vector.broadcast %cst_199 : f32 to vector<64x1xf32>
    %407 = arith.addf %405, %406 : vector<64x1xf32>
    %408 = math.rsqrt %407 : vector<64x1xf32>
    %409 = vector.broadcast %408 : vector<64x1xf32> to vector<64x16xf32>
    %410 = arith.mulf %400, %409 : vector<64x16xf32>
    %411 = vector.broadcast %393 : vector<1x16xf32> to vector<64x16xf32>
    %412 = arith.mulf %410, %411 : vector<64x16xf32>
    %413 = vector.broadcast %394 : vector<1x16xf32> to vector<64x16xf32>
    %414 = arith.addf %412, %413 : vector<64x16xf32>
    %c3 = arith.constant 3 : index
    %c0_200 = arith.constant 0 : index
    %c0_201 = arith.constant 0 : index
    %415 = vector.load %arg13[%c3, %c0_200, %c0_201] : memref<4x16x48xf32, #tpu.memory_space<vmem>>, vector<1x16x48xf32>
    %416 = vector.shape_cast %415 : vector<1x16x48xf32> to vector<16x48xf32>
    %cst_202 = arith.constant dense<0.000000e+00> : vector<64x48xf32>
    %417 = tpu.matmul %414, %416, %cst_202 {dimension_numbers = #tpu.dot_dimension_numbers<[1], [0], [0], [1], [0, 0, 1, 1], [], []>} : vector<64x16xf32>, vector<16x48xf32>, vector<64x48xf32> -> vector<64x48xf32>
    %c3_203 = arith.constant 3 : index
    %c0_204 = arith.constant 0 : index
    %c0_205 = arith.constant 0 : index
    %418 = vector.load %arg14[%c3_203, %c0_204, %c0_205] : memref<4x1x48xf32, #tpu.memory_space<vmem>>, vector<1x1x48xf32>
    %419 = vector.shape_cast %418 : vector<1x1x48xf32> to vector<1x48xf32>
    %420 = vector.broadcast %419 : vector<1x48xf32> to vector<64x48xf32>
    %421 = arith.addf %417, %420 : vector<64x48xf32>
    %422 = vector.extract_strided_slice %421 {offsets = [0, 0], sizes = [64, 16], strides = [1, 1]} : vector<64x48xf32> to vector<64x16xf32>
    %423 = vector.extract_strided_slice %421 {offsets = [0, 16], sizes = [64, 16], strides = [1, 1]} : vector<64x48xf32> to vector<64x16xf32>
    %424 = vector.extract_strided_slice %421 {offsets = [0, 32], sizes = [64, 16], strides = [1, 1]} : vector<64x48xf32> to vector<64x16xf32>
    %cst_206 = arith.constant dense<0.000000e+00> : vector<64x64xf32>
    %425 = tpu.matmul %422, %423, %cst_206 {dimension_numbers = #tpu.dot_dimension_numbers<[1], [1], [0], [0], [0, 0, 1, 0], [], []>} : vector<64x16xf32>, vector<64x16xf32>, vector<64x64xf32> -> vector<64x64xf32>
    %426 = arith.addf %425, %61 : vector<64x64xf32>
    %cst_207 = arith.constant dense<0xFF800000> : vector<64xf32>
    %427 = vector.multi_reduction <maximumf>, %426, %cst_207 [1] : vector<64x64xf32> to vector<64xf32>
    %428 = vector.shape_cast %427 : vector<64xf32> to vector<64x1xf32>
    %429 = vector.broadcast %428 : vector<64x1xf32> to vector<64x64xf32>
    %430 = arith.subf %426, %429 : vector<64x64xf32>
    %431 = math.exp %430 : vector<64x64xf32>
    %cst_208 = arith.constant dense<0.000000e+00> : vector<64xf32>
    %432 = vector.multi_reduction <add>, %431, %cst_208 [1] : vector<64x64xf32> to vector<64xf32>
    %433 = vector.shape_cast %432 : vector<64xf32> to vector<64x1xf32>
    %434 = tpu.reciprocal %433 {approx = true} : vector<64x1xf32> -> vector<64x1xf32>
    %435 = vector.broadcast %434 : vector<64x1xf32> to vector<64x64xf32>
    %436 = arith.mulf %431, %435 : vector<64x64xf32>
    %cst_209 = arith.constant dense<0.000000e+00> : vector<64x16xf32>
    %437 = tpu.matmul %436, %424, %cst_209 {dimension_numbers = #tpu.dot_dimension_numbers<[1], [0], [0], [1], [0, 0, 1, 1], [], []>} : vector<64x64xf32>, vector<64x16xf32>, vector<64x16xf32> -> vector<64x16xf32>
    %c3_210 = arith.constant 3 : index
    %c0_211 = arith.constant 0 : index
    %c0_212 = arith.constant 0 : index
    %438 = vector.load %arg15[%c3_210, %c0_211, %c0_212] : memref<4x16x16xf32, #tpu.memory_space<vmem>>, vector<1x16x16xf32>
    %439 = vector.shape_cast %438 : vector<1x16x16xf32> to vector<16x16xf32>
    %cst_213 = arith.constant dense<0.000000e+00> : vector<64x16xf32>
    %440 = tpu.matmul %437, %439, %cst_213 {dimension_numbers = #tpu.dot_dimension_numbers<[1], [0], [0], [1], [0, 0, 1, 1], [], []>} : vector<64x16xf32>, vector<16x16xf32>, vector<64x16xf32> -> vector<64x16xf32>
    %c3_214 = arith.constant 3 : index
    %c0_215 = arith.constant 0 : index
    %c0_216 = arith.constant 0 : index
    %441 = vector.load %arg16[%c3_214, %c0_215, %c0_216] : memref<4x1x16xf32, #tpu.memory_space<vmem>>, vector<1x1x16xf32>
    %442 = vector.shape_cast %441 : vector<1x1x16xf32> to vector<1x16xf32>
    %443 = vector.broadcast %442 : vector<1x16xf32> to vector<64x16xf32>
    %444 = arith.addf %440, %443 : vector<64x16xf32>
    %c3_217 = arith.constant 3 : index
    %c0_218 = arith.constant 0 : index
    %c0_219 = arith.constant 0 : index
    %445 = vector.load %arg17[%c3_217, %c0_218, %c0_219] : memref<4x4x16xf32, #tpu.memory_space<vmem>>, vector<1x4x16xf32>
    %446 = vector.shape_cast %445 : vector<1x4x16xf32> to vector<4x16xf32>
    %447 = arith.addf %414, %444 : vector<64x16xf32>
    %448 = vector.extract_strided_slice %446 {offsets = [0, 0], sizes = [1, 16], strides = [1, 1]} : vector<4x16xf32> to vector<1x16xf32>
    %449 = vector.extract_strided_slice %446 {offsets = [1, 0], sizes = [1, 16], strides = [1, 1]} : vector<4x16xf32> to vector<1x16xf32>
    %cst_220 = arith.constant dense<0.000000e+00> : vector<64xf32>
    %450 = vector.multi_reduction <add>, %447, %cst_220 [1] : vector<64x16xf32> to vector<64xf32>
    %451 = vector.shape_cast %450 : vector<64xf32> to vector<64x1xf32>
    %cst_221 = arith.constant 1.600000e+01 : f32
    %452 = vector.broadcast %cst_221 : f32 to vector<64x1xf32>
    %453 = arith.divf %451, %452 : vector<64x1xf32>
    %454 = vector.broadcast %453 : vector<64x1xf32> to vector<64x16xf32>
    %455 = arith.subf %447, %454 : vector<64x16xf32>
    %456 = arith.mulf %455, %455 : vector<64x16xf32>
    %cst_222 = arith.constant dense<0.000000e+00> : vector<64xf32>
    %457 = vector.multi_reduction <add>, %456, %cst_222 [1] : vector<64x16xf32> to vector<64xf32>
    %458 = vector.shape_cast %457 : vector<64xf32> to vector<64x1xf32>
    %cst_223 = arith.constant 1.600000e+01 : f32
    %459 = vector.broadcast %cst_223 : f32 to vector<64x1xf32>
    %460 = arith.divf %458, %459 : vector<64x1xf32>
    %cst_224 = arith.constant 9.99999974E-6 : f32
    %461 = vector.broadcast %cst_224 : f32 to vector<64x1xf32>
    %462 = arith.addf %460, %461 : vector<64x1xf32>
    %463 = math.rsqrt %462 : vector<64x1xf32>
    %464 = vector.broadcast %463 : vector<64x1xf32> to vector<64x16xf32>
    %465 = arith.mulf %455, %464 : vector<64x16xf32>
    %466 = vector.broadcast %448 : vector<1x16xf32> to vector<64x16xf32>
    %467 = arith.mulf %465, %466 : vector<64x16xf32>
    %468 = vector.broadcast %449 : vector<1x16xf32> to vector<64x16xf32>
    %469 = arith.addf %467, %468 : vector<64x16xf32>
    %c3_225 = arith.constant 3 : index
    %c0_226 = arith.constant 0 : index
    %c0_227 = arith.constant 0 : index
    %470 = vector.load %arg18[%c3_225, %c0_226, %c0_227] : memref<4x16x64xf32, #tpu.memory_space<vmem>>, vector<1x16x64xf32>
    %471 = vector.shape_cast %470 : vector<1x16x64xf32> to vector<16x64xf32>
    %cst_228 = arith.constant dense<0.000000e+00> : vector<64x64xf32>
    %472 = tpu.matmul %469, %471, %cst_228 {dimension_numbers = #tpu.dot_dimension_numbers<[1], [0], [0], [1], [0, 0, 1, 1], [], []>} : vector<64x16xf32>, vector<16x64xf32>, vector<64x64xf32> -> vector<64x64xf32>
    %c3_229 = arith.constant 3 : index
    %c0_230 = arith.constant 0 : index
    %c0_231 = arith.constant 0 : index
    %473 = vector.load %arg19[%c3_229, %c0_230, %c0_231] : memref<4x1x64xf32, #tpu.memory_space<vmem>>, vector<1x1x64xf32>
    %474 = vector.shape_cast %473 : vector<1x1x64xf32> to vector<1x64xf32>
    %475 = vector.broadcast %474 : vector<1x64xf32> to vector<64x64xf32>
    %476 = arith.addf %472, %475 : vector<64x64xf32>
    %cst_232 = arith.constant 5.000000e-01 : f32
    %477 = vector.broadcast %cst_232 : f32 to vector<64x64xf32>
    %478 = arith.mulf %477, %476 : vector<64x64xf32>
    %cst_233 = arith.constant 4.471500e-02 : f32
    %479 = vector.broadcast %cst_233 : f32 to vector<64x64xf32>
    %480 = arith.mulf %479, %476 : vector<64x64xf32>
    %481 = arith.mulf %480, %476 : vector<64x64xf32>
    %482 = arith.mulf %481, %476 : vector<64x64xf32>
    %483 = arith.addf %476, %482 : vector<64x64xf32>
    %cst_234 = arith.constant 0.797884583 : f32
    %484 = vector.broadcast %cst_234 : f32 to vector<64x64xf32>
    %485 = arith.mulf %484, %483 : vector<64x64xf32>
    %486 = math.tanh %485 : vector<64x64xf32>
    %cst_235 = arith.constant 1.000000e+00 : f32
    %487 = vector.broadcast %cst_235 : f32 to vector<64x64xf32>
    %488 = arith.addf %487, %486 : vector<64x64xf32>
    %489 = arith.mulf %478, %488 : vector<64x64xf32>
    %c3_236 = arith.constant 3 : index
    %c0_237 = arith.constant 0 : index
    %c0_238 = arith.constant 0 : index
    %490 = vector.load %arg20[%c3_236, %c0_237, %c0_238] : memref<4x64x16xf32, #tpu.memory_space<vmem>>, vector<1x64x16xf32>
    %491 = vector.shape_cast %490 : vector<1x64x16xf32> to vector<64x16xf32>
    %cst_239 = arith.constant dense<0.000000e+00> : vector<64x16xf32>
    %492 = tpu.matmul %489, %491, %cst_239 {dimension_numbers = #tpu.dot_dimension_numbers<[1], [0], [0], [1], [0, 0, 1, 1], [], []>} : vector<64x64xf32>, vector<64x16xf32>, vector<64x16xf32> -> vector<64x16xf32>
    %c3_240 = arith.constant 3 : index
    %c0_241 = arith.constant 0 : index
    %c0_242 = arith.constant 0 : index
    %493 = vector.load %arg21[%c3_240, %c0_241, %c0_242] : memref<4x1x16xf32, #tpu.memory_space<vmem>>, vector<1x1x16xf32>
    %494 = vector.shape_cast %493 : vector<1x1x16xf32> to vector<1x16xf32>
    %495 = vector.broadcast %494 : vector<1x16xf32> to vector<64x16xf32>
    %496 = arith.addf %492, %495 : vector<64x16xf32>
    %497 = arith.addf %469, %496 : vector<64x16xf32>
    %498 = vector.extract_strided_slice %446 {offsets = [2, 0], sizes = [1, 16], strides = [1, 1]} : vector<4x16xf32> to vector<1x16xf32>
    %499 = vector.extract_strided_slice %446 {offsets = [3, 0], sizes = [1, 16], strides = [1, 1]} : vector<4x16xf32> to vector<1x16xf32>
    %cst_243 = arith.constant dense<0.000000e+00> : vector<64xf32>
    %500 = vector.multi_reduction <add>, %497, %cst_243 [1] : vector<64x16xf32> to vector<64xf32>
    %501 = vector.shape_cast %500 : vector<64xf32> to vector<64x1xf32>
    %cst_244 = arith.constant 1.600000e+01 : f32
    %502 = vector.broadcast %cst_244 : f32 to vector<64x1xf32>
    %503 = arith.divf %501, %502 : vector<64x1xf32>
    %504 = vector.broadcast %503 : vector<64x1xf32> to vector<64x16xf32>
    %505 = arith.subf %497, %504 : vector<64x16xf32>
    %506 = arith.mulf %505, %505 : vector<64x16xf32>
    %cst_245 = arith.constant dense<0.000000e+00> : vector<64xf32>
    %507 = vector.multi_reduction <add>, %506, %cst_245 [1] : vector<64x16xf32> to vector<64xf32>
    %508 = vector.shape_cast %507 : vector<64xf32> to vector<64x1xf32>
    %cst_246 = arith.constant 1.600000e+01 : f32
    %509 = vector.broadcast %cst_246 : f32 to vector<64x1xf32>
    %510 = arith.divf %508, %509 : vector<64x1xf32>
    %cst_247 = arith.constant 9.99999974E-6 : f32
    %511 = vector.broadcast %cst_247 : f32 to vector<64x1xf32>
    %512 = arith.addf %510, %511 : vector<64x1xf32>
    %513 = math.rsqrt %512 : vector<64x1xf32>
    %514 = vector.broadcast %513 : vector<64x1xf32> to vector<64x16xf32>
    %515 = arith.mulf %505, %514 : vector<64x16xf32>
    %516 = vector.broadcast %498 : vector<1x16xf32> to vector<64x16xf32>
    %517 = arith.mulf %515, %516 : vector<64x16xf32>
    %518 = vector.broadcast %499 : vector<1x16xf32> to vector<64x16xf32>
    %519 = arith.addf %517, %518 : vector<64x16xf32>
    %c1_248 = arith.constant 1 : index
    %c0_249 = arith.constant 0 : index
    %c0_250 = arith.constant 0 : index
    %520 = vector.load %arg22[%c1_248, %c0_249, %c0_250] : memref<2x16x32xf32, #tpu.memory_space<vmem>>, vector<1x16x32xf32>
    %521 = vector.shape_cast %520 : vector<1x16x32xf32> to vector<16x32xf32>
    %cst_251 = arith.constant dense<0.000000e+00> : vector<64x32xf32>
    %522 = tpu.matmul %519, %521, %cst_251 {dimension_numbers = #tpu.dot_dimension_numbers<[1], [0], [0], [1], [0, 0, 1, 1], [], []>} : vector<64x16xf32>, vector<16x32xf32>, vector<64x32xf32> -> vector<64x32xf32>
    %c1_252 = arith.constant 1 : index
    %c0_253 = arith.constant 0 : index
    %c0_254 = arith.constant 0 : index
    %523 = vector.load %arg23[%c1_252, %c0_253, %c0_254] : memref<2x1x32xf32, #tpu.memory_space<vmem>>, vector<1x1x32xf32>
    %524 = vector.shape_cast %523 : vector<1x1x32xf32> to vector<1x32xf32>
    %525 = vector.broadcast %524 : vector<1x32xf32> to vector<64x32xf32>
    %526 = arith.addf %522, %525 : vector<64x32xf32>
    %527 = vector.extract_strided_slice %38 {offsets = [0, 32], sizes = [64, 32], strides = [1, 1]} : vector<64x64xf32> to vector<64x32xf32>
    %528 = arith.addf %526, %527 : vector<64x32xf32>
    %529 = vector.extract_strided_slice %528 {offsets = [0, 0], sizes = [64, 16], strides = [1, 1]} : vector<64x32xf32> to vector<64x16xf32>
    %cst_255 = arith.constant 5.000000e-01 : f32
    %530 = vector.broadcast %cst_255 : f32 to vector<64x16xf32>
    %531 = arith.mulf %530, %529 : vector<64x16xf32>
    %532 = math.tanh %531 : vector<64x16xf32>
    %cst_256 = arith.constant 1.000000e+00 : f32
    %533 = vector.broadcast %cst_256 : f32 to vector<64x16xf32>
    %534 = arith.addf %532, %533 : vector<64x16xf32>
    %cst_257 = arith.constant 5.000000e-01 : f32
    %535 = vector.broadcast %cst_257 : f32 to vector<64x16xf32>
    %536 = arith.mulf %535, %534 : vector<64x16xf32>
    %537 = vector.extract_strided_slice %528 {offsets = [0, 16], sizes = [64, 16], strides = [1, 1]} : vector<64x32xf32> to vector<64x16xf32>
    %538 = math.tanh %537 : vector<64x16xf32>
    %539 = arith.mulf %536, %538 : vector<64x16xf32>
    %c1_258 = arith.constant 1 : index
    %c0_259 = arith.constant 0 : index
    %c0_260 = arith.constant 0 : index
    %540 = vector.load %arg24[%c1_258, %c0_259, %c0_260] : memref<2x16x32xf32, #tpu.memory_space<vmem>>, vector<1x16x32xf32>
    %541 = vector.shape_cast %540 : vector<1x16x32xf32> to vector<16x32xf32>
    %cst_261 = arith.constant dense<0.000000e+00> : vector<64x32xf32>
    %542 = tpu.matmul %539, %541, %cst_261 {dimension_numbers = #tpu.dot_dimension_numbers<[1], [0], [0], [1], [0, 0, 1, 1], [], []>} : vector<64x16xf32>, vector<16x32xf32>, vector<64x32xf32> -> vector<64x32xf32>
    %c1_262 = arith.constant 1 : index
    %c0_263 = arith.constant 0 : index
    %c0_264 = arith.constant 0 : index
    %543 = vector.load %arg25[%c1_262, %c0_263, %c0_264] : memref<2x1x32xf32, #tpu.memory_space<vmem>>, vector<1x1x32xf32>
    %544 = vector.shape_cast %543 : vector<1x1x32xf32> to vector<1x32xf32>
    %545 = vector.broadcast %544 : vector<1x32xf32> to vector<64x32xf32>
    %546 = arith.addf %542, %545 : vector<64x32xf32>
    %547 = vector.extract_strided_slice %546 {offsets = [0, 16], sizes = [64, 16], strides = [1, 1]} : vector<64x32xf32> to vector<64x16xf32>
    %548 = arith.addf %306, %547 : vector<64x16xf32>
    %cst_265 = arith.constant 0.707106769 : f32
    %549 = vector.broadcast %cst_265 : f32 to vector<64x16xf32>
    %550 = arith.mulf %548, %549 : vector<64x16xf32>
    %c0_266 = arith.constant 0 : index
    %c0_267 = arith.constant 0 : index
    %551 = vector.load %arg26[%c0_266, %c0_267] : memref<16x16xf32, #tpu.memory_space<vmem>>, vector<16x16xf32>
    %cst_268 = arith.constant dense<0.000000e+00> : vector<64x16xf32>
    %552 = tpu.matmul %550, %551, %cst_268 {dimension_numbers = #tpu.dot_dimension_numbers<[1], [0], [0], [1], [0, 0, 1, 1], [], []>} : vector<64x16xf32>, vector<16x16xf32>, vector<64x16xf32> -> vector<64x16xf32>
    %c0_269 = arith.constant 0 : index
    %c0_270 = arith.constant 0 : index
    %553 = vector.load %arg27[%c0_269, %c0_270] : memref<1x16xf32, #tpu.memory_space<vmem>>, vector<1x16xf32>
    %554 = vector.broadcast %553 : vector<1x16xf32> to vector<64x16xf32>
    %555 = arith.addf %552, %554 : vector<64x16xf32>
    %cst_271 = arith.constant 0.000000e+00 : f32
    %556 = vector.broadcast %cst_271 : f32 to vector<64x16xf32>
    %557 = arith.maximumf %555, %556 : vector<64x16xf32>
    %c0_272 = arith.constant 0 : index
    %c0_273 = arith.constant 0 : index
    %558 = vector.load %arg28[%c0_272, %c0_273] : memref<1x16xf32, #tpu.memory_space<vmem>>, vector<1x16xf32>
    %559 = vector.broadcast %558 : vector<1x16xf32> to vector<64x16xf32>
    %560 = arith.mulf %557, %559 : vector<64x16xf32>
    %cst_274 = arith.constant dense<0.000000e+00> : vector<64xf32>
    %561 = vector.multi_reduction <add>, %560, %cst_274 [1] : vector<64x16xf32> to vector<64xf32>
    %562 = vector.shape_cast %561 : vector<64xf32> to vector<64x1xf32>
    %c0_275 = arith.constant 0 : index
    %c0_276 = arith.constant 0 : index
    %563 = vector.load %arg29[%c0_275, %c0_276] : memref<1x1xf32, #tpu.memory_space<vmem>>, vector<1x1xf32>
    %564 = vector.broadcast %563 : vector<1x1xf32> to vector<64x1xf32>
    %565 = arith.addf %562, %564 : vector<64x1xf32>
    %c0_277 = arith.constant 0 : index
    %c0_278 = arith.constant 0 : index
    %c0_279 = arith.constant 0 : index
    %566 = vector.load %arg4[%c0_277, %c0_278, %c0_279] : memref<1x64x1xf32, #tpu.memory_space<vmem>>, vector<1x64x1xf32>
    %567 = vector.shape_cast %566 : vector<1x64x1xf32> to vector<64x1xf32>
    %cst_280 = arith.constant 1.000000e+00 : f32
    %568 = vector.broadcast %cst_280 : f32 to vector<64x1xf32>
    %569 = arith.subf %568, %567 : vector<64x1xf32>
    %c0_281 = arith.constant 0 : index
    %c0_282 = arith.constant 0 : index
    %c0_283 = arith.constant 0 : index
    %570 = vector.load %arg3[%c0_281, %c0_282, %c0_283] : memref<1x64x1xf32, #tpu.memory_space<vmem>>, vector<1x64x1xf32>
    %571 = vector.shape_cast %570 : vector<1x64x1xf32> to vector<64x1xf32>
    %572 = arith.subf %571, %565 : vector<64x1xf32>
    %573 = arith.mulf %572, %569 : vector<64x1xf32>
    %574 = arith.mulf %573, %573 : vector<64x1xf32>
    %575 = tpu.concatenate %574, %569 in 1 : vector<64x1xf32>, vector<64x1xf32> -> vector<64x2xf32>
    %cst_284 = arith.constant dense<0.000000e+00> : vector<2xf32>
    %576 = vector.multi_reduction <add>, %575, %cst_284 [0] : vector<64x2xf32> to vector<2xf32>
    %577 = vector.shape_cast %576 : vector<2xf32> to vector<1x2xf32>
    %c0_285 = arith.constant 0 : index
    %c0_286 = arith.constant 0 : index
    %c0_287 = arith.constant 0 : index
    %578 = vector.load %arg30[%c0_285, %c0_286, %c0_287] : memref<1x1x2xf32, #tpu.memory_space<vmem>>, vector<1x1x2xf32>
    %579 = vector.shape_cast %578 : vector<1x1x2xf32> to vector<1x2xf32>
    %580 = vector.shape_cast %577 : vector<1x2xf32> to vector<1x1x2xf32>
    tpu.vector_store %arg30[%c0_285, %c0_286, %c0_287], %580 {strides = array<i32>} : memref<1x1x2xf32, #tpu.memory_space<vmem>>, vector<1x1x2xf32>,
    return
  }
  func.func @transform_0(%arg0: i32) -> (i32, i32, i32) {
    %c0_i32 = arith.constant 0 : i32
    %c0_i32_0 = arith.constant 0 : i32
    %c0_i32_1 = arith.constant 0 : i32
    return %arg0, %c0_i32, %c0_i32_0 : i32, i32, i32
  }
  func.func @transform_1(%arg0: i32) -> (i32, i32, i32) {
    %c0_i32 = arith.constant 0 : i32
    %c0_i32_0 = arith.constant 0 : i32
    %c0_i32_1 = arith.constant 0 : i32
    return %arg0, %c0_i32, %c0_i32_0 : i32, i32, i32
  }
  func.func @transform_2(%arg0: i32) -> (i32, i32, i32) {
    %c0_i32 = arith.constant 0 : i32
    %c0_i32_0 = arith.constant 0 : i32
    %c0_i32_1 = arith.constant 0 : i32
    return %arg0, %c0_i32, %c0_i32_0 : i32, i32, i32
  }
  func.func @transform_3(%arg0: i32) -> (i32, i32, i32) {
    %c0_i32 = arith.constant 0 : i32
    %c0_i32_0 = arith.constant 0 : i32
    %c0_i32_1 = arith.constant 0 : i32
    return %arg0, %c0_i32, %c0_i32_0 : i32, i32, i32
  }
  func.func @transform_4(%arg0: i32) -> (i32, i32, i32) {
    %c0_i32 = arith.constant 0 : i32
    %c0_i32_0 = arith.constant 0 : i32
    %c0_i32_1 = arith.constant 0 : i32
    return %arg0, %c0_i32, %c0_i32_0 : i32, i32, i32
  }
  func.func @transform_5(%arg0: i32) -> (i32, i32, i32) {
    %c0_i32 = arith.constant 0 : i32
    %c0_i32_0 = arith.constant 0 : i32
    %c0_i32_1 = arith.constant 0 : i32
    return %arg0, %c0_i32, %c0_i32_0 : i32, i32, i32
  }
  func.func @transform_6(%arg0: i32) -> (i32, i32, i32) {
    %c0_i32 = arith.constant 0 : i32
    %c0_i32_0 = arith.constant 0 : i32
    %c0_i32_1 = arith.constant 0 : i32
    %c0_i32_2 = arith.constant 0 : i32
    return %c0_i32, %c0_i32_0, %c0_i32_1 : i32, i32, i32
  }
  func.func @transform_7(%arg0: i32) -> (i32, i32) {
    %c0_i32 = arith.constant 0 : i32
    %c0_i32_0 = arith.constant 0 : i32
    %c0_i32_1 = arith.constant 0 : i32
    return %c0_i32, %c0_i32_0 : i32, i32
  }
  func.func @transform_8(%arg0: i32) -> (i32, i32) {
    %c0_i32 = arith.constant 0 : i32
    %c0_i32_0 = arith.constant 0 : i32
    %c0_i32_1 = arith.constant 0 : i32
    return %c0_i32, %c0_i32_0 : i32, i32
  }
  func.func @transform_9(%arg0: i32) -> (i32, i32) {
    %c0_i32 = arith.constant 0 : i32
    %c0_i32_0 = arith.constant 0 : i32
    %c0_i32_1 = arith.constant 0 : i32
    return %c0_i32, %c0_i32_0 : i32, i32
  }
  func.func @transform_10(%arg0: i32) -> (i32, i32) {
    %c0_i32 = arith.constant 0 : i32
    %c0_i32_0 = arith.constant 0 : i32
    %c0_i32_1 = arith.constant 0 : i32
    return %c0_i32, %c0_i32_0 : i32, i32
  }
  func.func @transform_11(%arg0: i32) -> (i32, i32) {
    %c0_i32 = arith.constant 0 : i32
    %c0_i32_0 = arith.constant 0 : i32
    %c0_i32_1 = arith.constant 0 : i32
    return %c0_i32, %c0_i32_0 : i32, i32
  }
  func.func @transform_12(%arg0: i32) -> (i32, i32, i32) {
    %c0_i32 = arith.constant 0 : i32
    %c0_i32_0 = arith.constant 0 : i32
    %c0_i32_1 = arith.constant 0 : i32
    %c0_i32_2 = arith.constant 0 : i32
    return %c0_i32, %c0_i32_0, %c0_i32_1 : i32, i32, i32
  }
  func.func @transform_13(%arg0: i32) -> (i32, i32, i32) {
    %c0_i32 = arith.constant 0 : i32
    %c0_i32_0 = arith.constant 0 : i32
    %c0_i32_1 = arith.constant 0 : i32
    %c0_i32_2 = arith.constant 0 : i32
    return %c0_i32, %c0_i32_0, %c0_i32_1 : i32, i32, i32
  }
  func.func @transform_14(%arg0: i32) -> (i32, i32, i32) {
    %c0_i32 = arith.constant 0 : i32
    %c0_i32_0 = arith.constant 0 : i32
    %c0_i32_1 = arith.constant 0 : i32
    %c0_i32_2 = arith.constant 0 : i32
    return %c0_i32, %c0_i32_0, %c0_i32_1 : i32, i32, i32
  }
  func.func @transform_15(%arg0: i32) -> (i32, i32, i32) {
    %c0_i32 = arith.constant 0 : i32
    %c0_i32_0 = arith.constant 0 : i32
    %c0_i32_1 = arith.constant 0 : i32
    %c0_i32_2 = arith.constant 0 : i32
    return %c0_i32, %c0_i32_0, %c0_i32_1 : i32, i32, i32
  }
  func.func @transform_16(%arg0: i32) -> (i32, i32, i32) {
    %c0_i32 = arith.constant 0 : i32
    %c0_i32_0 = arith.constant 0 : i32
    %c0_i32_1 = arith.constant 0 : i32
    %c0_i32_2 = arith.constant 0 : i32
    return %c0_i32, %c0_i32_0, %c0_i32_1 : i32, i32, i32
  }
  func.func @transform_17(%arg0: i32) -> (i32, i32, i32) {
    %c0_i32 = arith.constant 0 : i32
    %c0_i32_0 = arith.constant 0 : i32
    %c0_i32_1 = arith.constant 0 : i32
    %c0_i32_2 = arith.constant 0 : i32
    return %c0_i32, %c0_i32_0, %c0_i32_1 : i32, i32, i32
  }
  func.func @transform_18(%arg0: i32) -> (i32, i32, i32) {
    %c0_i32 = arith.constant 0 : i32
    %c0_i32_0 = arith.constant 0 : i32
    %c0_i32_1 = arith.constant 0 : i32
    %c0_i32_2 = arith.constant 0 : i32
    return %c0_i32, %c0_i32_0, %c0_i32_1 : i32, i32, i32
  }
  func.func @transform_19(%arg0: i32) -> (i32, i32, i32) {
    %c0_i32 = arith.constant 0 : i32
    %c0_i32_0 = arith.constant 0 : i32
    %c0_i32_1 = arith.constant 0 : i32
    %c0_i32_2 = arith.constant 0 : i32
    return %c0_i32, %c0_i32_0, %c0_i32_1 : i32, i32, i32
  }
  func.func @transform_20(%arg0: i32) -> (i32, i32, i32) {
    %c0_i32 = arith.constant 0 : i32
    %c0_i32_0 = arith.constant 0 : i32
    %c0_i32_1 = arith.constant 0 : i32
    %c0_i32_2 = arith.constant 0 : i32
    return %c0_i32, %c0_i32_0, %c0_i32_1 : i32, i32, i32
  }
  func.func @transform_21(%arg0: i32) -> (i32, i32, i32) {
    %c0_i32 = arith.constant 0 : i32
    %c0_i32_0 = arith.constant 0 : i32
    %c0_i32_1 = arith.constant 0 : i32
    %c0_i32_2 = arith.constant 0 : i32
    return %c0_i32, %c0_i32_0, %c0_i32_1 : i32, i32, i32
  }
  func.func @transform_22(%arg0: i32) -> (i32, i32, i32) {
    %c0_i32 = arith.constant 0 : i32
    %c0_i32_0 = arith.constant 0 : i32
    %c0_i32_1 = arith.constant 0 : i32
    %c0_i32_2 = arith.constant 0 : i32
    return %c0_i32, %c0_i32_0, %c0_i32_1 : i32, i32, i32
  }
  func.func @transform_23(%arg0: i32) -> (i32, i32, i32) {
    %c0_i32 = arith.constant 0 : i32
    %c0_i32_0 = arith.constant 0 : i32
    %c0_i32_1 = arith.constant 0 : i32
    %c0_i32_2 = arith.constant 0 : i32
    return %c0_i32, %c0_i32_0, %c0_i32_1 : i32, i32, i32
  }
  func.func @transform_24(%arg0: i32) -> (i32, i32, i32) {
    %c0_i32 = arith.constant 0 : i32
    %c0_i32_0 = arith.constant 0 : i32
    %c0_i32_1 = arith.constant 0 : i32
    %c0_i32_2 = arith.constant 0 : i32
    return %c0_i32, %c0_i32_0, %c0_i32_1 : i32, i32, i32
  }
  func.func @transform_25(%arg0: i32) -> (i32, i32) {
    %c0_i32 = arith.constant 0 : i32
    %c0_i32_0 = arith.constant 0 : i32
    %c0_i32_1 = arith.constant 0 : i32
    return %c0_i32, %c0_i32_0 : i32, i32
  }
  func.func @transform_26(%arg0: i32) -> (i32, i32) {
    %c0_i32 = arith.constant 0 : i32
    %c0_i32_0 = arith.constant 0 : i32
    %c0_i32_1 = arith.constant 0 : i32
    return %c0_i32, %c0_i32_0 : i32, i32
  }
  func.func @transform_27(%arg0: i32) -> (i32, i32) {
    %c0_i32 = arith.constant 0 : i32
    %c0_i32_0 = arith.constant 0 : i32
    %c0_i32_1 = arith.constant 0 : i32
    return %c0_i32, %c0_i32_0 : i32, i32
  }
  func.func @transform_28(%arg0: i32) -> (i32, i32) {
    %c0_i32 = arith.constant 0 : i32
    %c0_i32_0 = arith.constant 0 : i32
    %c0_i32_1 = arith.constant 0 : i32
    return %c0_i32, %c0_i32_0 : i32, i32
  }
  func.func @transform_29(%arg0: i32) -> (i32, i32, i32) {
    %c0_i32 = arith.constant 0 : i32
    %c0_i32_0 = arith.constant 0 : i32
    %c0_i32_1 = arith.constant 0 : i32
    return %arg0, %c0_i32, %c0_i32_0 : i32, i32, i32
  }
}

</mosaic_0001>

<bundles_post_ra>
// kernel: mul.45
= control target key start
LH: loop header
LB: loop body
LE: loop exit
PB: predicated region body
PF: predicated region fallthrough
CT: control target
= control target key end

     0   :  { %s67_s10 = smov 14   ;;  %s68_s11 = smov 10   ;;  %vm3_vm0 = vcmask 15360   ;;  %vm9_vm1 = vcmask 130160   ;;  %vm15_vm2 = vcmask 113760   ;;  %vm21_vm3 = vcmask 97360   ;;  %s111_s0 = inlined_call_operand.vmem [shape: f32[8,2], index: 0, kind: input, shape index: {}]   ;;  %s112_s1 = inlined_call_operand.vmem [shape: f32[16], index: 1, kind: output, shape index: {}]  }
   0x1   :  { %v53_v0 = vld [vmem:[%s111_s0 + $0x7] sm:$0x1]   ;;  %v55_v1 = vld [vmem:[%s111_s0 + $0x5] sm:$0x1]   ;;  %v57_v2 = vld [vmem:[%s111_s0 + $0x3] sm:$0x1]  }
   0x2   :  { %7 = vrot.lane.b32.xlu0 %v53_v0, %s67_s10  ;;  %19 = vrot.lane.b32.xlu1 %v55_v1, %s68_s11  ;;  %s69_s14 = smov 6   ;;  %v54_v3 = vld [vmem:[%s111_s0 + $0x6] sm:$0x1]   ;;  %v56_v4 = vld [vmem:[%s111_s0 + $0x4] sm:$0x1]   ;;  %s70_s21 = smov 12  }
   0x3   :  { %31 = vrot.lane.b32.xlu2 %v57_v2, %s69_s14  ;;  %v58_v5 = vld [vmem:[%s111_s0 + $0x2] sm:$0x1]   ;;  %s71_s22 = smov 8   ;;  %s72_s23 = smov 4   ;;  %v59_v6 = vld [vmem:[%s111_s0 + $0x1] sm:$0x1]  }
   0x4   :  { %s73_s26 = smov 2   ;;  %v2_v7 = vld [vmem:[%s111_s0] sm:$0x1]   ;;  %vm27_vm4 = vcmask 80960   ;;  %vm33_vm5 = vcmask 64560   ;;  %vm39_vm6 = vcmask 48160  }
   0x5   :  { %4 = vst.msk [vmem:[#allocation0] sm:$0x1] %vm3_vm0, %v2_v7   ;;  %vm45_vm7 = vcmask 31760  }
   0xa   :  { %13 = vrot.lane.b32.xlu0 %v54_v3, %s70_s21  ;;  %25 = vrot.lane.b32.xlu1 %v56_v4, %s71_s22 }
   0xb   :  { %37 = vrot.lane.b32.xlu2 %v58_v5, %s72_s23 }
  0x12   :  { %43 = vrot.lane.b32.xlu0 %v59_v6, %s73_s26 }
  0x5d   :  { %v32_v8 = vpop.permute.xlu2 %31  }
  0x65   :  { %v38_v9 = vpop.permute.xlu2 %37  }
  0x74   :  { %v8_v10 = vpop.permute.xlu0 %7   ;;  %v20_v11 = vpop.permute.xlu1 %19  }
  0x75   :  { %10 = vst.msk [vmem:[#allocation0] sm:$0x1] %vm9_vm1, %v8_v10  }
  0x7c   :  { %v14_v12 = vpop.permute.xlu0 %13   ;;  %v26_v13 = vpop.permute.xlu1 %25  }
  0x7d   :  { %16 = vst.msk [vmem:[#allocation0] sm:$0x1] %vm15_vm2, %v14_v12  }
  0x7e   :  { %22 = vst.msk [vmem:[#allocation0] sm:$0x1] %vm21_vm3, %v20_v11  }
  0x7f   :  { %28 = vst.msk [vmem:[#allocation0] sm:$0x1] %vm27_vm4, %v26_v13  }
  0x80   :  { %34 = vst.msk [vmem:[#allocation0] sm:$0x1] %vm33_vm5, %v32_v8  }
  0x81   :  { %40 = vst.msk [vmem:[#allocation0] sm:$0x1] %vm39_vm6, %v38_v9  }
  0x84   :  { %v44_v14 = vpop.permute.xlu0 %43  }
  0x85   :  { %46 = vst.msk [vmem:[#allocation0] sm:$0x1] %vm45_vm7, %v44_v14  }
  0x8c   :  { %v49_v15 = vld [vmem:[#allocation0] sm:$0x1] }
  0x8d   :  { %52 = vst [vmem:[%s112_s1] sm:$0x1] %v49_v15 }

// kernel: forward.1
= control target key start
LH: loop header
LB: loop body
LE: loop exit
PB: predicated region body
PF: predicated region fallthrough
CT: control target
= control target key end

     0   :  { %s7425_s6 = smov 1   ;;  %s7426_s10 = smov 2   ;;  %s9835_s0 = inlined_call_operand.smem [shape: u32[30], index: -1, kind: input, shape index: {}] }
   0x1   :  { %s7467_s5 = sld [smem:[%s9835_s0]]   ;;  %s7427_s14 = smov 3  }
   0x2   :  { %s7472_s9 = sld [smem:[%s9835_s0 + %s7425_s6]]   ;;  %s7428_s18 = smov 4  }
   0x3   :  { %s7477_s13 = sld [smem:[%s9835_s0 + %s7426_s10]]   ;;  %s7429_s22 = smov 5  }
   0x4   :  { %s7482_s17 = sld [smem:[%s9835_s0 + %s7427_s14]]   ;;  %s7430_s26 = smov 6  }
   0x5   :  { %s7487_s21 = sld [smem:[%s9835_s0 + %s7428_s18]]   ;;  %s7431_s30 = smov 7  }
   0x6   :  { %s7492_s25 = sld [smem:[%s9835_s0 + %s7429_s22]]   ;;  %s7432_s4 = smov 8  }
   0x7   :  { %s7497_s29 = sld [smem:[%s9835_s0 + %s7430_s26]]   ;;  %s7433_s10 = smov 9  }
   0x8   :  { %s7502_s3 = sld [smem:[%s9835_s0 + %s7431_s30]]   ;;  %s7434_s15 = smov 10  }
   0x9   :  { %9847 = sst [smem:[#allocation3_spill]] %s7477_s13  ;;  %s7435_s20 = smov 11  }
   0xa   :  { %9848 = sst [smem:[#allocation4_spill]] %s7482_s17  ;;  %s7436_s26 = smov 12  }
   0xb   :  { %s7507_s8 = sld [smem:[%s9835_s0 + %s7432_s4]]   ;;  %s7437_s1 = smov 13  }
   0xc   :  { %s7512_s14 = sld [smem:[%s9835_s0 + %s7433_s10]]   ;;  %s7438_s7 = smov 14  }
   0xd   :  { %s7517_s19 = sld [smem:[%s9835_s0 + %s7434_s15]]   ;;  %s7439_s15 = smov 15  }
   0xe   :  { %s7522_s24 = sld [smem:[%s9835_s0 + %s7435_s20]]   ;;  %s7440_s22 = smov 16  }
   0xf   :  { %s7527_s30 = sld [smem:[%s9835_s0 + %s7436_s26]]   ;;  %s7441_s28 = smov 17  }
  0x10   :  { %s7532_s6 = sld [smem:[%s9835_s0 + %s7437_s1]]   ;;  %s7453_s1 = smov 29  }
  0x11   :  { %s7537_s12 = sld [smem:[%s9835_s0 + %s7438_s7]]   ;;  %s7442_s7 = smov 18  }
  0x12   :  { %s7542_s20 = sld [smem:[%s9835_s0 + %s7439_s15]]   ;;  %s7443_s15 = smov 19  }
  0x13   :  { %s7547_s27 = sld [smem:[%s9835_s0 + %s7440_s22]]   ;;  %s7444_s22 = smov 20  }
  0x14   :  { %9849 = sst [smem:[#allocation5_spill]] %s7522_s24 }
  0x15   :  { %s7552_s4 = sld [smem:[%s9835_s0 + %s7441_s28]]   ;;  %s7445_s28 = smov 21  }
  0x16   :  { %s7557_s13 = sld [smem:[%s9835_s0 + %s7442_s7]]   ;;  %s7446_s7 = smov 22  }
  0x17   :  { %s7562_s17 = sld [smem:[%s9835_s0 + %s7443_s15]]   ;;  %s7447_s15 = smov 23  }
  0x18   :  { %s7567_s24 = sld [smem:[%s9835_s0 + %s7444_s22]]   ;;  %s7448_s22 = smov 24  }
  0x19   :  { %9850 = sst [smem:[#allocation6_spill]] %s7547_s27 }
  0x1a   :  { %s7572_s27 = sld [smem:[%s9835_s0 + %s7445_s28]]   ;;  %s7449_s28 = smov 25  }
  0x1c   :  { %9851 = sst [smem:[#allocation7_spill]] %s7557_s13 }
  0x1d   :  { %9852 = sst [smem:[#allocation8_spill]] %s7562_s17 }
  0x1e   :  { %9853 = sst [smem:[#allocation9_spill]] %s7567_s24 }
  0x1f   :  { %s7577_s13 = sld [smem:[%s9835_s0 + %s7446_s7]]   ;;  %s7450_s7 = smov 26  }
  0x20   :  { %9854 = sst [smem:[#allocation10_spill]] %s7572_s27 }
  0x21   :  { %s7582_s17 = sld [smem:[%s9835_s0 + %s7447_s15]]   ;;  %s7451_s15 = smov 27  }
  0x22   :  { %s7587_s24 = sld [smem:[%s9835_s0 + %s7448_s22]]   ;;  %s7452_s22 = smov 28  }
  0x23   :  { %s7592_s27 = sld [smem:[%s9835_s0 + %s7449_s28]]  }
  0x25   :  { %9855 = sst [smem:[#allocation11_spill]] %s7577_s13 }
  0x26   :  { %s7597_s13 = sld [smem:[%s9835_s0 + %s7450_s7]]   ;;  %s7612_s7 = smov 0  }
  0x27   :  { %9856 = sst [smem:[#allocation12_spill]] %s7582_s17 }
  0x28   :  { %9857 = sst [smem:[#allocation13_spill]] %s7587_s24 }
  0x29   :  { %9858 = sst [smem:[#allocation14_spill]] %s7592_s27 }
  0x2a   :  { %s7602_s17 = sld [smem:[%s9835_s0 + %s7451_s15]]  }
  0x2b   :  { %s6475_s24 = sld [smem:[%s9835_s0 + %s7452_s22]]  }
  0x2c   :  { %s7610_s27 = sld [smem:[%s9835_s0 + %s7453_s1]]  }
  0x31   :  { %v64_v0 = vstv %s6475_s24 }
  0x32   :  { %65 = vst [vmem:[#allocation2] sm:$0x1] %v64_v0 }
  0x33 LB: > { %s6477_s10 = sadd.s32 4294967295, %s7423_s7   ;;  %p6481_p0 = scmp.ge.s32.totalorder %s7423_s7, 1  ;;  %s7423_s7 = sphi %s7612_s7, %s71_s7  }
  0x34   : > { %p867_p1 = scmp.lt.s32.totalorder %s7423_s7, 3 }
  0x36   : > { %p868_p2 = pnand %p6481_p0, %p867_p1 }
  0x37   : > { %p964_p3 = scmp.lt.s32.totalorder (!%p868_p2), %s6477_s10, 1  ;;  %s7454_s0 = smov (!%p868_p2), 112  }
  0x38   : > { %871 = sbr.rel (%p868_p2) target bundleno = 9241 (0x2419), region = 136  ;;  %s7456_s16 = smov (!%p868_p2), 96  }
  0x39   : > { %s9859_s23 = sld [smem:[#allocation6_spill]] (!%p868_p2) }
  0x3a   : > { %s9860_s26 = sld [smem:[#allocation8_spill]] (!%p868_p2) }
  0x3b   : > { %s9861_s1 = sld [smem:[#allocation7_spill]] (!%p868_p2) }
  0x3c   : > { %s9862_s28 = sld [smem:[#allocation9_spill]] (!%p868_p2) }
  0x3d   : > { %v996_v1 = vld [vmem:[%s7507_s8 + $0x8] sm:$0xff]  ;;  %v995_v2 = vld [vmem:[%s7507_s8] sm:$0xff]  ;;  %s9872_s10 = smov (!%p964_p3, %s6477_s10), 1  ;;  %vm999_vm0 = vcmask 130048   ;;  %v7455_v10 = vmov 0   ;;  %vm1517_vm1 = vcmask 523264  }
  0x3e   : > { %1017 = vmatpush.msra.mxu3 %v996_v1  ;;  %v6893_v3 = vpack.i.bf16 %v995_v2, %v996_v1  ;;  %s986_s24 = scalar_lea.vmem %s7487_s21, %s9872_s10  ;;  %s7629_s11 = sshll.u32 %s9872_s10, 6  ;;  %v6986_v8 = vld [vmem:[%s7512_s14] ss:$0 sm:$0xff]  ;;  %6903 = vset.pattern.permute.xlu1 %v7455_v10  ;;  %v1350_v48 = vld [vmem:[%s7527_s30 + $0x8] sm:$0xff]  ;;  %vm1117_vm2 = vcmask 261120  }
  0x3f   : > { %v998_v4 = vld [vmem:[%s986_s24] sm:$0x1]  ;;  %s7633_s15 = scalar_lea.vmem %s7472_s9, %s7629_s11  ;;  %6905 = vset.pattern.permute.xlu0 %v7455_v10  ;;  %6904 = vset.pattern.permute.xlu2 %v7455_v10  ;;  %s7641_s18 = scalar_lea.vmem %s7467_s5, %s7629_s11 }
  0x40   : > { %1018 = vmatpush.msra.mxu3 %v995_v2  ;;  %6894 = vrot.lane.b32.xlu0 %v6893_v3, %s7454_s0  ;;  %v1246_v9 = vld [vmem:[%s7633_s15 + $0x28] sm:$0xff]  ;;  %v1241_v11 = vld [vmem:[%s7633_s15] sm:$0xff]  ;;  %v1247_v19 = vld [vmem:[%s7633_s15 + $0x30] sm:$0xff]  ;;  %s991_s22 = scalar_lea.vmem %s7492_s25, %s7629_s11  ;;  %s9863_s2 = sld [smem:[#allocation10_spill]] }
  0x41   : > { %6492 = vmatmul.msk.f32.vlgmr.msra.gmra.mxu3 %vm999_vm0, %v998_v4  ;;  %6899 = vrot.lane.b32.xlu1 %v6893_v3, %s7456_s16  ;;  %v1189_v12 = vld [vmem:[%s7641_s18 + $0x28] sm:$0xff]  ;;  %v1184_v13 = vld [vmem:[%s7641_s18] sm:$0xff]  ;;  %v1191_v24 = vld [vmem:[%s7641_s18 + $0x38] sm:$0xff]  ;;  %s9864_s24 = sld [smem:[#allocation5_spill]] }
  0x42   : > { %1276 = vperm.xlu2 %6904, %v1246_v9   ;;  %v997_v14 = vld [vmem:[%s7512_s14] sm:$0x1]  ;;  %v1242_v15 = vld [vmem:[%s7633_s15 + $0x8] sm:$0xff]  ;;  %v1243_v25 = vld [vmem:[%s7633_s15 + $0x10] sm:$0xff]  ;;  %1393 = vmatpush.msra.mxu0 %v1350_v48 }
  0x43   : > { %v1186_v26 = vld [vmem:[%s7641_s18 + $0x10] sm:$0xff]  ;;  %v1188_v31 = vld [vmem:[%s7641_s18 + $0x20] sm:$0xff]  ;;  %v1244_v32 = vld [vmem:[%s7633_s15 + $0x18] sm:$0xff] }
  0x44   : > { %v1190_v27 = vld [vmem:[%s7641_s18 + $0x30] sm:$0xff]  ;;  %v1185_v33 = vld [vmem:[%s7641_s18 + $0x8] sm:$0xff]  ;;  %v1248_v34 = vld [vmem:[%s7633_s15 + $0x38] sm:$0xff] }
  0x45   : > { %v1187_v35 = vld [vmem:[%s7641_s18 + $0x18] sm:$0xff]  ;;  %v1245_v40 = vld [vmem:[%s7633_s15 + $0x20] sm:$0xff]  ;;  %s9865_s15 = sld [smem:[#allocation11_spill]] }
  0x46   : > { %v1349_v49 = vld [vmem:[%s7527_s30] sm:$0xff]  ;;  %s9866_s18 = sld [smem:[#allocation12_spill]] }
  0x47   : > { %1394 = vmatpush.msra.mxu0 %v1349_v49  ;;  %v1183_v53 = vld [vmem:[%s7502_s3] sm:$0x7] }
  0x48   : > { %1038 = vrot.lane.b32.xlu0 %v6986_v8, %s7454_s0  ;;  %v1289_v55 = vperm.slane %v1183_v53, 1  ;;  %v1232_v56 = vperm.slane %v1183_v53, 0  ;;  %v1306_v63 = vperm.slane %v1183_v53, 2 }
  0x49   : > { %1219 = vperm.xlu1 %6903, %v1189_v12  }
  0x4a   : > { %1194 = vperm.xlu2 %6904, %v1184_v13  }
  0x50   : > { %1251 = vperm.xlu0 %6905, %v1241_v11  }
  0x51   : > { %1075 = vrot.lane.b32.xlu1 %v6986_v8, %s7456_s16 }
  0x52   : > { %1224 = vperm.xlu2 %6904, %v1190_v27  }
  0x58   : > { %1256 = vperm.xlu0 %6905, %v1242_v15  }
  0x59   : > { %1281 = vperm.xlu1 %6903, %v1247_v19  }
  0x5a   : > { %1199 = vperm.xlu2 %6904, %v1185_v33  }
  0x60   : > { %1204 = vperm.xlu0 %6905, %v1186_v26  }
  0x61   : > { %1229 = vperm.xlu1 %6903, %v1191_v24  }
  0x62   : > { %1286 = vperm.xlu2 %6904, %v1248_v34  }
  0x68   : > { %1266 = vperm.xlu0 %6905, %v1244_v32  }
  0x69   : > { %1261 = vperm.xlu1 %6903, %v1243_v25  }
  0x6a   : > { %1209 = vperm.xlu2 %6904, %v1187_v35  }
  0x71   : > { %1214 = vperm.xlu1 %6903, %v1188_v31  }
  0x72   : > { %1271 = vperm.xlu2 %6904, %v1245_v40  }
  0x9c   : > { %v1277_v45 = vpop.permute.xlu2 %1276 }
  0x9d   : > { %v1295_v58 = vmul.f32 %v1289_v55, %v1277_v45 }
  0xa4   : > { %v1195_v47 = vpop.permute.xlu2 %1194 }
  0xa5   : > { %v1233_v60 = vmul.f32 %v1232_v56, %v1195_v47 }
  0xac   : > { %v1225_v51 = vpop.permute.xlu2 %1224 }
  0xad   : > { %v1239_v3 = vmul.f32 %v1232_v56, %v1225_v51 }
  0xb2   : > { %v6895_v5 = vpop.permute.xlu0 %6894 }
  0xb3   : > { %v6896_v6 = vunpack.i.l.bf16 %v6895_v5  ;;  %v6897_v7 = vunpack.i.h.bf16 %v6895_v5  ;;  %v6900_v28 = vpop.permute.xlu1 %6899 }
  0xb4   : > { %v6901_v29 = vunpack.i.l.bf16 %v6900_v28  ;;  %v6902_v30 = vunpack.i.h.bf16 %v6900_v28  ;;  %v1200_v57 = vpop.permute.xlu2 %1199 }
  0xb5   : > { %1058 = vmatpush.msra.mxu1 %v6896_v6 }
  0xb6   : > { %1095 = vmatpush.msra.mxu2 %v6901_v29 }
  0xb7   : > { %1059 = vmatpush.msra.mxu1 %v6897_v7  ;;  %v1234_v7 = vmul.f32 %v1232_v56, %v1200_v57 }
  0xb8   : > { %1096 = vmatpush.msra.mxu2 %v6902_v30 }
  0xba   : > { %v1039_v36 = vpop.permute.xlu0 %1038  ;;  %6845 = vmatpush.msrb.mxu2 %v1350_v48 }
  0xbb   : > { %v1220_v46 = vpop.permute.xlu1 %1219 }
  0xbc   : > { %6846 = vmatpush.msrb.mxu2 %v1349_v49  ;;  %v1238_v59 = vmul.f32 %v1232_v56, %v1220_v46  ;;  %v1287_v9 = vpop.permute.xlu2 %1286 }
  0xbe   : > { %v1303_v0 = vadd.f32 %v1295_v58, %v1238_v59 }
  0xc0   : > { %v7665_v5 = vadd.f32 %v1306_v63, %v1303_v0 }
  0xc2   : > { %v1252_v52 = vpop.permute.xlu0 %1251 }
  0xc3   : > { %v1076_v50 = vpop.permute.xlu1 %1075  ;;  %v1290_v61 = vmul.f32 %v1289_v55, %v1252_v52 }
  0xc4   : > { %v1020_v16 = vpop.f32.mrf.mxu3  ;;  %v1210_v28 = vpop.permute.xlu2 %1209 }
  0xc5   : > { %v1021_v17 = vadd.f32 %v1020_v16, %v997_v14  ;;  %v1298_v1 = vadd.f32 %v1290_v61, %v1233_v60  ;;  %v1320_v14 = vmax.f32 %v7665_v5, 0.0 }
  0xc7   : > { %v1023_v18 = vmul.f32 0.5, %v1021_v17  ;;  %v7667_v6 = vadd.f32 %v1306_v63, %v1298_v1 }
  0xc9   : > { %7011 = vtanh.f32 %v1023_v18 }
  0xca   : > { %v1257_v62 = vpop.permute.xlu0 %1256 }
  0xcb   : > { %v1282_v54 = vpop.permute.xlu1 %1281  ;;  %v1291_v8 = vmul.f32 %v1289_v55, %v1257_v62 }
  0xcc   : > { %v1296_v4 = vmul.f32 %v1289_v55, %v1282_v54 }
  0xcd   : > { %v1299_v15 = vadd.f32 %v1291_v8, %v1234_v7 }
  0xce   : > { %v1304_v12 = vadd.f32 %v1296_v4, %v1239_v3 }
  0xcf   : > { %v7012_v20 = vpop.eup %7011  ;;  %v7685_v24 = vadd.f32 %v1306_v63, %v1299_v15 }
  0xd0   : > { %v1025_v21 = vadd.f32 1.0, %v7012_v20  ;;  %v7683_v20 = vadd.f32 %v1306_v63, %v1304_v12 }
  0xd1   : > { %v1316_v30 = vmax.f32 %v7685_v24, 0.0 }
  0xd2   : > { %v1026_v22 = vmul.f32 0.5, %v1025_v21  ;;  %v1205_v13 = vpop.permute.xlu0 %1204  ;;  %v1321_v31 = vmax.f32 %v7683_v20, 0.0 }
  0xd3   : > { %v1230_v2 = vpop.permute.xlu1 %1229  ;;  %v1235_v26 = vmul.f32 %v1232_v56, %v1205_v13 }
  0xd4   : > { %v1027_v23 = vmul.f32 %v1026_v22, %v1021_v17  ;;  %v1315_v17 = vmax.f32 %v7667_v6, 0.0  ;;  %v1240_v21 = vmul.f32 %v1232_v56, %v1230_v2  ;;  %v1297_v22 = vmul.f32 %v1289_v55, %v1287_v9 }
  0xd6   : > { %6493 = vmatmul.msk.f32.vlgmr.msra.gmra.mxu1 %vm999_vm0, %v1027_v23  ;;  %v1305_v27 = vadd.f32 %v1297_v22, %v1240_v21 }
  0xd8   : > { %v7703_v35 = vadd.f32 %v1306_v63, %v1305_v27 }
  0xda   : > { %v1267_v32 = vpop.permute.xlu0 %1266 }
  0xdb   : > { %v1262_v23 = vpop.permute.xlu1 %1261 }
  0xdc   : > { %v1292_v25 = vmul.f32 %v1289_v55, %v1262_v23 }
  0xde   : > { %v1300_v29 = vadd.f32 %v1292_v25, %v1235_v26  ;;  %v1323_v25 = vld [vmem:[%s7497_s29] sm:$0xff] }
 0x153   : > { %v1061_v37 = vpop.f32.mrf.mxu1 }
 0x154   : > { %v1062_v38 = vadd.f32 %v1061_v37, %v1039_v36  ;;  %v7705_v36 = vadd.f32 %v1306_v63, %v1300_v29  ;;  %v1236_v37 = vmul.f32 %v1232_v56, %v1210_v28  ;;  %v1324_v29 = vld [vmem:[%s7497_s29 + $0x8] sm:$0xff] }
 0x156   : > { %v1064_v39 = vmul.f32 0.5, %v1062_v38  ;;  %v1317_v40 = vmax.f32 %v7705_v36, 0.0 }
 0x158   : > { %7013 = vtanh.f32 %v1064_v39 }
 0x15e   : > { %v7014_v41 = vpop.eup %7013 }
 0x15f   : > { %v1066_v42 = vadd.f32 1.0, %v7014_v41  ;;  %v1322_v41 = vmax.f32 %v7703_v35, 0.0 }
 0x161   : > { %v1067_v43 = vmul.f32 0.5, %v1066_v42  ;;  %v1215_v42 = vpop.permute.xlu1 %1214 }
 0x162   : > { %v1237_v46 = vmul.f32 %v1232_v56, %v1215_v42  ;;  %v6987_v56 = vld [vmem:[%s7532_s6] ss:$0 sm:$0xff] }
 0x163   : > { %v1068_v44 = vmul.f32 %v1067_v43, %v1062_v38  ;;  %v1293_v38 = vmul.f32 %v1289_v55, %v1267_v32  ;;  %v1272_v43 = vpop.permute.xlu2 %1271 }
 0x164   : > { %v1294_v48 = vmul.f32 %v1289_v55, %v1272_v43 }
 0x165   : > { %6494 = vmatmul.msk.f32.vlgmr.msra.gmra.mxu2 %vm999_vm0, %v1068_v44  ;;  %v1301_v39 = vadd.f32 %v1293_v38, %v1236_v37 }
 0x166   : > { %v1302_v49 = vadd.f32 %v1294_v48, %v1237_v46  ;;  %v1326_v48 = vld [vmem:[%s7497_s29 + $0x18] sm:$0xff] }
 0x167   : > { %v7723_v47 = vadd.f32 %v1306_v63, %v1301_v39  ;;  %v1325_v39 = vld [vmem:[%s7497_s29 + $0x10] sm:$0xff] }
 0x168   : > { %v7735_v52 = vadd.f32 %v1306_v63, %v1302_v49 }
 0x16a   : > { %v1319_v53 = vmax.f32 %v7735_v52, 0.0 }
 0x1e8   : > { %v1098_v10 = vpop.f32.mrf.mxu2 }
 0x1e9   : > { %v1099_v11 = vadd.f32 %v1098_v10, %v1076_v50  ;;  %v1318_v50 = vmax.f32 %v7723_v47, 0.0 }
 0x1eb   : > { %v7670_v16 = vperm.slane %v1099_v11, 0 }
 0x1ed   : > { %v7676_v18 = vadd.f32 %v7670_v16, %v1315_v17  ;;  %v7681_v19 = vadd.f32 %v7670_v16, %v1320_v14  ;;  %v7696_v33 = vadd.f32 %v7670_v16, %v1316_v30  ;;  %v7701_v34 = vadd.f32 %v7670_v16, %v1321_v31 }
 0x1ee   : > { %v7716_v44 = vadd.f32 %v7670_v16, %v1317_v40  ;;  %v7721_v45 = vadd.f32 %v7670_v16, %v1322_v41  ;;  %v7733_v51 = vadd.f32 %v7670_v16, %v1318_v50  ;;  %v7743_v54 = vadd.f32 %v7670_v16, %v1319_v53 }
 0x1ef   : > { %6511 = vmatmul.msk.f32.vlgmr.msra.gmra.mxu0 %vm999_vm0, %v7676_v18  ;;  %6516 = vmatmul.msk.f32.vlgmr.msrb.gmra.mxu2 %vm999_vm0, %v7681_v19 }
 0x1f7   : > { %6512 = vmatmul.msk.f32.gmra.mxu0 %vm999_vm0, %v7696_v33  ;;  %6517 = vmatmul.msk.f32.gmra.mxu2 %vm999_vm0, %v7701_v34 }
 0x1ff   : > { %6513 = vmatmul.msk.f32.gmra.mxu0 %vm999_vm0, %v7716_v44  ;;  %6518 = vmatmul.msk.f32.gmra.mxu2 %vm999_vm0, %v7721_v45 }
 0x207   : > { %6514 = vmatmul.msk.f32.gmra.mxu0 %vm999_vm0, %v7733_v51 }
 0x20f   : > { %6515 = vmatmul.msk.f32.gmra.mxu0 %vm999_vm0, %v7743_v54 }
 0x26c   : > { %v1396_v55 = vpop.f32.mrf.mxu0 }
 0x26d   : > { %v7768_v7 = vadd.f32 %v6987_v56, %v1396_v55 }
 0x272   : > { %v1411_v57 = vpop.f32.mrf.mxu2 }
 0x273   : > { %v7748_v58 = vadd.f32 %v6987_v56, %v1411_v57  ;;  %v1327_v57 = vld [vmem:[%s7497_s29 + $0x20] sm:$0xff] }
 0x274   : > { %v1399_v59 = vpop.f32.mrf.mxu0 }
 0x275   : > { %1438 = vrot.lane.b32.xlu2 %v7748_v58, %s7454_s0  ;;  %v7773_v9 = vadd.f32 %v6987_v56, %v1399_v59 }
 0x27a   : > { %v1414_v60 = vpop.f32.mrf.mxu2 }
 0x27b   : > { %v7752_v61 = vadd.f32 %v6987_v56, %v1414_v60 }
 0x27c   : > { %v1402_v62 = vpop.f32.mrf.mxu0 }
 0x27d   : > { %v7754_v63 = vadd.f32 %v6987_v56, %v1402_v62  ;;  %1440 = vrot.lane.b32.xlu1 %v7752_v61, %s7454_s0 }
 0x27f   : > { %1432 = vrot.lane.b32.xlu2 %v7754_v63, %s7454_s0 }
 0x282   : > { %v1417_v0 = vpop.f32.mrf.mxu2 }
 0x283   : > { %v7760_v1 = vadd.f32 %v6987_v56, %v1417_v0 }
 0x284   : > { %v1405_v2 = vpop.f32.mrf.mxu0 }
 0x285   : > { %v7762_v3 = vadd.f32 %v6987_v56, %v1405_v2  ;;  %1442 = vrot.lane.b32.xlu0 %v7760_v1, %s7454_s0 }
 0x287   : > { %1434 = vrot.lane.b32.xlu1 %v7762_v3, %s7454_s0 }
 0x28c   : > { %v1408_v4 = vpop.f32.mrf.mxu0 }
 0x28d   : > { %v1409_v8 = vadd.f32 %v6987_v56, %v1408_v4  ;;  %v6906_v4 = vpack.i.bf16 %v7752_v61, %v7760_v1 }
 0x28f   : > { %1428 = vrot.lane.b32.xlu1 %v7768_v7, %s7454_s0  ;;  %1436 = vrot.lane.b32.xlu0 %v1409_v8, %s7454_s0  ;;  %v6911_v59 = vpack.i.bf16 %v1409_v8, %v7748_v58 }
 0x297   : > { %1430 = vrot.lane.b32.xlu0 %v7773_v9, %s7454_s0 }
 0x2cf   : > { %v1439_v12 = vpop.permute.xlu2 %1438 }
 0x2d9   : > { %v1433_v21 = vpop.permute.xlu2 %1432 }
 0x2ef   : > { %v1441_v11 = vpop.permute.xlu1 %1440 }
 0x2f7   : > { %v1443_v10 = vpop.permute.xlu0 %1442 }
 0x2f8   : > { %6519 = vmatpush.xpose.msk.msrb.mxu1 %vm999_vm0, %v1443_v10  ;;  %v1329_v10 = vld [vmem:[%s7497_s29 + $0x30] sm:$0xff] }
 0x2f9   : > { %v1435_v15 = vpop.permute.xlu1 %1434 }
 0x2fc   : > { %6520 = vmatpush.xpose.msk.msrb.mxu1 %vm999_vm0, %v1441_v11 }
 0x300   : > { %6521 = vmatpush.xpose.msk.msrb.mxu1 %vm999_vm0, %v1439_v12 }
 0x301   : > { %v1437_v13 = vpop.permute.xlu0 %1436  ;;  %v1429_v23 = vpop.permute.xlu1 %1428 }
 0x304   : > { %6522 = vmatpush.xpose.msk.msrb.mxu1 %vm999_vm0, %v1437_v13 }
 0x308   : > { %6523 = vmatpush.xpose.msk.msrb.mxu1 %vm999_vm0, %v1435_v15 }
 0x309   : > { %v1431_v22 = vpop.permute.xlu0 %1430 }
 0x30c   : > { %6524 = vmatpush.xpose.msk.msrb.mxu1 %vm999_vm0, %v1433_v21  ;;  %v1330_v21 = vld [vmem:[%s7497_s29 + $0x38] sm:$0xff] }
 0x310   : > { %6525 = vmatpush.xpose.msk.msrb.mxu1 %vm999_vm0, %v1431_v22 }
 0x314   : > { %6526 = vmatpush.xpose.msk.msrb.mxu1 %vm999_vm0, %v1429_v23 }
 0x317   : > { %6527 = vmatmul.msk.f32.vlgmr.msrb.gmra.mxu1 %vm999_vm0, %v7768_v7 }
 0x31f   : > { %6528 = vmatmul.msk.f32.gmra.mxu1 %vm999_vm0, %v7773_v9 }
 0x327   : > { %6529 = vmatmul.msk.f32.gmra.mxu1 %vm999_vm0, %v7754_v63 }
 0x32f   : > { %6530 = vmatmul.msk.f32.gmra.mxu1 %vm999_vm0, %v7762_v3 }
 0x337   : > { %6531 = vmatmul.msk.f32.gmra.mxu1 %vm999_vm0, %v1409_v8 }
 0x33f   : > { %6532 = vmatmul.msk.f32.gmra.mxu1 %vm999_vm0, %v7748_v58  ;;  %v1328_v58 = vld [vmem:[%s7497_s29 + $0x28] sm:$0xff] }
 0x347   : > { %6533 = vmatmul.msk.f32.gmra.mxu1 %vm999_vm0, %v7752_v61 }
 0x34f   : > { %6534 = vmatmul.msk.f32.gmra.mxu1 %vm999_vm0, %v7760_v1  ;;  %v6921_v1 = vpack.i.bf16 %v7768_v7, %v7773_v9 }
 0x394   : > { %v1493_v26 = vpop.f32.mrf.mxu1 }
 0x395   : > { %v1494_v27 = vadd.f32 %v1493_v26, %v1323_v25 }
 0x397   : > { %v1518_v28 = vsel %vm1517_vm1, %v1494_v27, -inf }
 0x398   : > { %1519 = vmax.xlane.f32.xlu2 %v1518_v28 }
 0x39c   : > { %v1496_v32 = vpop.f32.mrf.mxu1 }
 0x39d   : > { %v1497_v37 = vadd.f32 %v1496_v32, %v1324_v29 }
 0x39f   : > { %v1521_v38 = vsel %vm1517_vm1, %v1497_v37, -inf }
 0x3a0   : > { %1522 = vmax.xlane.f32.xlu0 %v1521_v38 }
 0x3a4   : > { %v1499_v42 = vpop.f32.mrf.mxu1 }
 0x3a5   : > { %v7805_v43 = vadd.f32 %v1499_v42, %v1325_v39 }
 0x3a7   : > { %v1524_v46 = vsel %vm1517_vm1, %v7805_v43, -inf }
 0x3a8   : > { %1525 = vmax.xlane.f32.xlu1 %v1524_v46 }
 0x3ac   : > { %v1502_v49 = vpop.f32.mrf.mxu1 }
 0x3ad   : > { %v1503_v55 = vadd.f32 %v1502_v49, %v1326_v48 }
 0x3af   : > { %v1527_v56 = vsel %vm1517_vm1, %v1503_v55, -inf }
 0x3b0   : > { %1528 = vmax.xlane.f32.xlu2 %v1527_v56 }
 0x3b4   : > { %v1505_v60 = vpop.f32.mrf.mxu1  ;;  %6912 = vrot.lane.b32.xlu0 %v6911_v59, %s7456_s16 }
 0x3b5   : > { %v1506_v62 = vadd.f32 %v1505_v60, %v1327_v57  ;;  %v6916_v60 = vpack.i.bf16 %v7754_v63, %v7762_v3 }
 0x3b7   : > { %v1530_v0 = vsel %vm1517_vm1, %v1506_v62, -inf }
 0x3b8   : > { %1531 = vmax.xlane.f32.xlu2 %v1530_v0 }
 0x3bc   : > { %v1508_v2 = vpop.f32.mrf.mxu1 }
 0x3bd   : > { %v7821_v8 = vadd.f32 %v1508_v2, %v1328_v58 }
 0x3bf   : > { %v1533_v15 = vsel %vm1517_vm1, %v7821_v8, -inf }
 0x3c1   : > { %6907 = vrot.lane.b32.xlu1 %v6906_v4, %s7456_s16 }
 0x3c4   : > { %v1511_v11 = vpop.f32.mrf.mxu1 }
 0x3c5   : > { %v1512_v12 = vadd.f32 %v1511_v11, %v1329_v10 }
 0x3c7   : > { %v1536_v13 = vsel %vm1517_vm1, %v1512_v12, -inf }
 0x3c8   : > { %1537 = vmax.xlane.f32.xlu2 %v1536_v13 }
 0x3cc   : > { %v1514_v22 = vpop.f32.mrf.mxu1 }
 0x3cd   : > { %v7826_v23 = vadd.f32 %v1514_v22, %v1330_v21 }
 0x3cf   : > { %v1539_v61 = vsel %vm1517_vm1, %v7826_v23, -inf }
 0x3de   : > { %1534 = vmax.xlane.f32.xlu0 %v1533_v15 }
 0x3eb   : > { %1540 = vmax.xlane.f32.xlu1 %v1539_v61 }
 0x3f2   : > { %6922 = vrot.lane.b32.xlu0 %v6921_v1, %s7456_s16 }
 0x40b   : > { %v1520_v25 = vpop.xlane.xlu2 %1519 }
 0x40c   : > { %v1542_v26 = vsub.f32 %v1494_v27, %v1520_v25 }
 0x40e   : > { %v1550_v28 = vmul.f32 1.442695, %v1542_v26 }
 0x410   : > { %7015 = vpow2.f32 %v1550_v28 }
 0x413   : > { %v1523_v29 = vpop.xlane.xlu0 %1522 }
 0x414   : > { %v1543_v32 = vsub.f32 %v1497_v37, %v1523_v29 }
 0x416   : > { %v7833_v38 = vpop.eup %7015  ;;  %v1552_v39 = vmul.f32 1.442695, %v1543_v32 }
 0x417   : > { %v1566_v42 = vsel %vm1517_vm1, %v7833_v38, 0.0 }
 0x418   : > { %7017 = vpow2.f32 %v1552_v39  ;;  %1567 = vadd.xlane.f32.xlu2 %v1566_v42 }
 0x41b   : > { %v1526_v49 = vpop.xlane.xlu1 %1525 }
 0x41c   : > { %v1544_v22 = vsub.f32 %v7805_v43, %v1526_v49 }
 0x41e   : > { %v7837_v46 = vpop.eup %7017  ;;  %v1554_v1 = vmul.f32 1.442695, %v1544_v22 }
 0x41f   : > { %v1569_v7 = vsel %vm1517_vm1, %v7837_v46, 0.0 }
 0x420   : > { %1570 = vadd.xlane.f32.xlu0 %v1569_v7 }
 0x423   : > { %v1529_v9 = vpop.xlane.xlu2 %1528 }
 0x424   : > { %v1545_v27 = vsub.f32 %v1503_v55, %v1529_v9 }
 0x426   : > { %v1556_v48 = vmul.f32 1.442695, %v1545_v27  ;;  %v6913_v4 = vpop.permute.xlu0 %6912 }
 0x427   : > { %v6914_v13 = vunpack.i.l.bf16 %v6913_v4  ;;  %v6915_v63 = vunpack.i.h.bf16 %v6913_v4 }
 0x428   : > { %7019 = vpow2.f32 %v1556_v48 }
 0x42b   : > { %v1532_v37 = vpop.xlane.xlu2 %1531 }
 0x42c   : > { %v1546_v56 = vsub.f32 %v1506_v62, %v1532_v37 }
 0x42e   : > { %v7841_v57 = vpop.eup %7019  ;;  %v1558_v59 = vmul.f32 1.442695, %v1546_v56 }
 0x42f   : > { %v1575_v0 = vsel %vm1517_vm1, %v7841_v57, 0.0 }
 0x430   : > { %7021 = vpow2.f32 %v1558_v59  ;;  %6917 = vrot.lane.b32.xlu2 %v6916_v60, %s7456_s16  ;;  %1576 = vadd.xlane.f32.xlu1 %v1575_v0 }
 0x433   : > { %v6908_v2 = vpop.permute.xlu1 %6907 }
 0x434   : > { %v6909_v55 = vunpack.i.l.bf16 %v6908_v2  ;;  %v6910_v11 = vunpack.i.h.bf16 %v6908_v2 }
 0x436   : > { %v7848_v10 = vpop.eup %7021  ;;  %1662 = vmatpush.msra.mxu2 %v6909_v55 }
 0x437   : > { %v1578_v62 = vsel %vm1517_vm1, %v7848_v10, 0.0 }
 0x438   : > { %1663 = vmatpush.msra.mxu2 %v6910_v11  ;;  %1579 = vadd.xlane.f32.xlu1 %v1578_v62 }
 0x43a   : > { %1664 = vmatpush.msra.mxu2 %v6914_v13 }
 0x43b   : > { %v1538_v3 = vpop.xlane.xlu2 %1537 }
 0x43c   : > { %v1548_v58 = vsub.f32 %v1512_v12, %v1538_v3  ;;  %1665 = vmatpush.msra.mxu2 %v6915_v63 }
 0x43e   : > { %v1562_v15 = vmul.f32 1.442695, %v1548_v58 }
 0x440   : > { %7023 = vpow2.f32 %v1562_v15  ;;  %v1696_v15 = vld [vmem:[%s7537_s12 + $0x8] sm:$0xff] }
 0x441   : > { %7025 = vpow2.f32 %v1554_v1  ;;  %1739 = vmatpush.msra.mxu1 %v1696_v15 }
 0x446   : > { %v7852_v21 = vpop.eup %7023 }
 0x447   : > { %v1584_v61 = vsel %vm1517_vm1, %v7852_v21, 0.0  ;;  %v7026_v29 = vpop.eup %7025 }
 0x448   : > { %1585 = vadd.xlane.f32.xlu1 %v1584_v61  ;;  %v1572_v12 = vsel %vm1517_vm1, %v7026_v29, 0.0 }
 0x451   : > { %v1535_v25 = vpop.xlane.xlu0 %1534 }
 0x452   : > { %v1547_v26 = vsub.f32 %v7821_v8, %v1535_v25 }
 0x454   : > { %v1560_v28 = vmul.f32 1.442695, %v1547_v26 }
 0x456   : > { %7027 = vpow2.f32 %v1560_v28 }
 0x459   : > { %1573 = vadd.xlane.f32.xlu2 %v1572_v12 }
 0x45c   : > { %v7028_v32 = vpop.eup %7027 }
 0x45d   : > { %v1581_v39 = vsel %vm1517_vm1, %v7028_v32, 0.0 }
 0x45e   : > { %v1541_v42 = vpop.xlane.xlu1 %1540  ;;  %1582 = vadd.xlane.f32.xlu0 %v1581_v39  ;;  %v1695_v39 = vld [vmem:[%s7537_s12] sm:$0xff] }
 0x45f   : > { %v1549_v43 = vsub.f32 %v7826_v23, %v1541_v42  ;;  %1740 = vmatpush.msra.mxu1 %v1695_v39  ;;  %v1111_v42 = vld [vmem:[%s7517_s19 + $0x10] sm:$0xff] }
 0x461   : > { %v1564_v7 = vmul.f32 1.442695, %v1549_v43  ;;  %v1110_v43 = vld [vmem:[%s7517_s19 + $0x8] sm:$0xff] }
 0x463   : > { %7029 = vpow2.f32 %v1564_v7  ;;  %v1109_v7 = vld [vmem:[%s7517_s19] sm:$0xff] }
 0x464   : > { %v6923_v48 = vpop.permute.xlu0 %6922 }
 0x465   : > { %v6924_v0 = vunpack.i.l.bf16 %v6923_v48  ;;  %v6925_v2 = vunpack.i.h.bf16 %v6923_v48 }
 0x469   : > { %v7030_v9 = vpop.eup %7029 }
 0x46a   : > { %v1587_v27 = vsel %vm1517_vm1, %v7030_v9, 0.0 }
 0x46b   : > { %1588 = vadd.xlane.f32.xlu0 %v1587_v27  ;;  %v1101_v27 = vld [vmem:[%s991_s22] sm:$0xff] }
 0x48b   : > { %v1568_v8 = vpop.xlane.xlu2 %1567 }
 0x48c   : > { %7031 = vrcp.f32 %v1568_v8  ;;  %v1104_v8 = vld [vmem:[%s991_s22 + $0x18] sm:$0xff] }
 0x492   : > { %v7032_v60 = vpop.eup %7031 }
 0x493   : > { %v6918_v49 = vpop.permute.xlu2 %6917  ;;  %v1571_v59 = vpop.xlane.xlu0 %1570  ;;  %v1598_v23 = vmul.f32 %v7032_v60, %v7833_v38  ;;  %v1108_v60 = vld [vmem:[%s991_s22 + $0x38] sm:$0xff] }
 0x494   : > { %v6919_v37 = vunpack.i.l.bf16 %v6918_v49  ;;  %v6920_v56 = vunpack.i.h.bf16 %v6918_v49  ;;  %7033 = vrcp.f32 %v1571_v59  ;;  %v1105_v49 = vld [vmem:[%s991_s22 + $0x20] sm:$0xff]  ;;  %v1107_v59 = vld [vmem:[%s991_s22 + $0x30] sm:$0xff] }
 0x496   : > { %1666 = vmatpush.msra.mxu2 %v6919_v37 }
 0x498   : > { %1667 = vmatpush.msra.mxu2 %v6920_v56  ;;  %v1106_v56 = vld [vmem:[%s991_s22 + $0x28] sm:$0xff] }
 0x49a   : > { %1668 = vmatpush.msra.mxu2 %v6924_v0  ;;  %v7034_v55 = vpop.eup %7033 }
 0x49b   : > { %v1599_v4 = vmul.f32 %v7034_v55, %v7837_v46 }
 0x49c   : > { %1669 = vmatpush.msra.mxu2 %v6925_v2 }
 0x49d   : > { %6535 = vmatmul.msk.f32.vlgmr.msra.gmra.mxu2 %vm1517_vm1, %v1598_v23 }
 0x49e   : > { %6847 = vmatpush.msrb.mxu2 %v1696_v15 }
 0x4a0   : > { %6849 = vmatpush.msrb.mxu2 %v1695_v39 }
 0x4a3   : > { %v1577_v62 = vpop.xlane.xlu1 %1576 }
 0x4a5   : > { %6536 = vmatmul.msk.f32.gmra.mxu2 %vm1517_vm1, %v1599_v4 }
 0x4ab   : > { %v1580_v3 = vpop.xlane.xlu1 %1579 }
 0x4bb   : > { %v1586_v1 = vpop.xlane.xlu1 %1585 }
 0x4cc   : > { %v1574_v11 = vpop.xlane.xlu2 %1573 }
 0x4cd   : > { %7035 = vrcp.f32 %v1574_v11 }
 0x4ce   : > { %7037 = vrcp.f32 %v1577_v62  ;;  %v6988_v62 = vld [vmem:[%s7542_s20] ss:$0 sm:$0xff] }
 0x4cf   : > { %7039 = vrcp.f32 %v1580_v3 }
 0x4d1   : > { %v1583_v46 = vpop.xlane.xlu0 %1582 }
 0x4d2   : > { %7041 = vrcp.f32 %v1583_v46 }
 0x4d3   : > { %v7036_v13 = vpop.eup %7035  ;;  %7043 = vrcp.f32 %v1586_v1 }
 0x4d4   : > { %v1600_v63 = vmul.f32 %v7036_v13, %v7026_v29  ;;  %v7038_v58 = vpop.eup %7037 }
 0x4d5   : > { %v1601_v38 = vmul.f32 %v7038_v58, %v7841_v57  ;;  %v7040_v22 = vpop.eup %7039 }
 0x4d6   : > { %6537 = vmatmul.msk.f32.gmra.mxu2 %vm1517_vm1, %v1600_v63  ;;  %v1602_v61 = vmul.f32 %v7040_v22, %v7848_v10 }
 0x4d8   : > { %v7042_v25 = vpop.eup %7041 }
 0x4d9   : > { %v1603_v26 = vmul.f32 %v7042_v25, %v7028_v32  ;;  %v7044_v28 = vpop.eup %7043  ;;  %v1112_v32 = vld [vmem:[%s7517_s19 + $0x18] sm:$0xff] }
 0x4da   : > { %v1604_v29 = vmul.f32 %v7044_v28, %v7852_v21  ;;  %1154 = vmatpush.msrb.mxu3 %v1112_v32  ;;  %v1102_v21 = vld [vmem:[%s991_s22 + $0x8] sm:$0xff] }
 0x4dc   : > { %1155 = vmatpush.msrb.mxu3 %v1111_v42 }
 0x4de   : > { %6538 = vmatmul.msk.f32.gmra.mxu2 %vm1517_vm1, %v1601_v38  ;;  %v1589_v57 = vpop.xlane.xlu0 %1588  ;;  %1156 = vmatpush.msrb.mxu3 %v1110_v43 }
 0x4df   : > { %7045 = vrcp.f32 %v1589_v57 }
 0x4e0   : > { %1157 = vmatpush.msrb.mxu3 %v1109_v7 }
 0x4e1   : > { %6495 = vmatmul.msk.f32.vlgmr.msrb.gmra.mxu3 %vm1117_vm2, %v1101_v27 }
 0x4e2   : > { %6848 = vmatpush.msra.mxu3 %v1696_v15 }
 0x4e4   : > { %6850 = vmatpush.msra.mxu3 %v1695_v39 }
 0x4e5   : > { %v7046_v10 = vpop.eup %7045 }
 0x4e6   : > { %6539 = vmatmul.msk.f32.gmra.mxu2 %vm1517_vm1, %v1602_v61  ;;  %v1605_v12 = vmul.f32 %v7046_v10, %v7030_v9  ;;  %v1103_v9 = vld [vmem:[%s991_s22 + $0x10] sm:$0xff]  ;;  %s9867_s22 = sld [smem:[#allocation13_spill]] }
 0x4e9   : > { %6496 = vmatmul.msk.f32.gmra.mxu3 %vm1117_vm2, %v1102_v21 }
 0x4ee   : > { %6540 = vmatmul.msk.f32.gmra.mxu2 %vm1517_vm1, %v1603_v26 }
 0x4f1   : > { %6497 = vmatmul.msk.f32.gmra.mxu3 %vm1117_vm2, %v1103_v9 }
 0x4f6   : > { %6541 = vmatmul.msk.f32.gmra.mxu2 %vm1517_vm1, %v1604_v29 }
 0x4f9   : > { %6498 = vmatmul.msk.f32.gmra.mxu3 %vm1117_vm2, %v1104_v8 }
 0x4fe   : > { %6542 = vmatmul.msk.f32.gmra.mxu2 %vm1517_vm1, %v1605_v12 }
 0x501   : > { %6499 = vmatmul.msk.f32.gmra.mxu3 %vm1117_vm2, %v1105_v49 }
 0x509   : > { %6500 = vmatmul.msk.f32.gmra.mxu3 %vm1117_vm2, %v1106_v56  ;;  %v7457_v56 = vmov 16.0  }
 0x50a   : > { %7047 = vrcp.f32 %v7457_v56 }
 0x511   : > { %6501 = vmatmul.msk.f32.gmra.mxu3 %vm1117_vm2, %v1107_v59 }
 0x519   : > { %6502 = vmatmul.msk.f32.gmra.mxu3 %vm1117_vm2, %v1108_v60 }
 0x520   : > { %v1671_v48 = vpop.f32.mrf.mxu2 }
 0x521   : > { %6543 = vmatmul.msk.f32.vlgmr.msra.gmra.mxu1 %vm999_vm0, %v1671_v48 }
 0x528   : > { %v1674_v37 = vpop.f32.mrf.mxu2 }
 0x529   : > { %6544 = vmatmul.msk.f32.gmra.mxu1 %vm999_vm0, %v1674_v37 }
 0x559   : > { %v1677_v0 = vpop.f32.mrf.mxu2 }
 0x55a   : > { %6545 = vmatmul.msk.f32.vlgmr.msrb.gmra.mxu2 %vm999_vm0, %v1677_v0  ;;  %v7048_v0 = vpop.eup %7047 }
 0x55b   : > { %vm1804_vm3 = vweird.f32 %v7048_v0 }
 0x561   : > { %v1680_v2 = vpop.f32.mrf.mxu2 }
 0x562   : > { %6546 = vmatmul.msk.f32.gmra.mxu2 %vm999_vm0, %v1680_v2 }
 0x564   : > { %v7900_v13 = vpop.f32.mrf.mxu3 }
 0x569   : > { %v1683_v23 = vpop.f32.mrf.mxu2 }
 0x56a   : > { %6547 = vmatmul.msk.f32.vlgmr.msra.gmra.mxu3 %vm999_vm0, %v1683_v23 }
 0x56c   : > { %v7904_v22 = vpop.f32.mrf.mxu3 }
 0x571   : > { %v1686_v55 = vpop.f32.mrf.mxu2 }
 0x572   : > { %6548 = vmatmul.msk.f32.gmra.mxu3 %vm999_vm0, %v1686_v55 }
 0x574   : > { %v7908_v25 = vpop.f32.mrf.mxu3 }
 0x579   : > { %v1689_v4 = vpop.f32.mrf.mxu2 }
 0x57a   : > { %6549 = vmatmul.msk.f32.gmra.mxu3 %vm999_vm0, %v1689_v4 }
 0x57c   : > { %v7910_v26 = vpop.f32.mrf.mxu3 }
 0x581   : > { %v1692_v11 = vpop.f32.mrf.mxu2 }
 0x582   : > { %6550 = vmatmul.msk.f32.gmra.mxu3 %vm999_vm0, %v1692_v11 }
 0x584   : > { %v7912_v57 = vpop.f32.mrf.mxu3 }
 0x58c   : > { %v7914_v28 = vpop.f32.mrf.mxu3 }
 0x59e   : > { %v1742_v63 = vpop.f32.mrf.mxu1 }
 0x59f   : > { %v1743_v3 = vadd.f32 %v6988_v62, %v1742_v63 }
 0x5a1   : > { %v1767_v58 = vadd.f32 %v1743_v3, %v7676_v18  ;;  %v7916_v18 = vpop.f32.mrf.mxu3 }
 0x5a3   : > { %v1775_v38 = vsel %vm999_vm0, %v1767_v58, 0.0 }
 0x5a4   : > { %1776 = vadd.xlane.f32.xlu2 %v1775_v38 }
 0x5a6   : > { %v1745_v15 = vpop.f32.mrf.mxu1 }
 0x5a7   : > { %v1746_v46 = vadd.f32 %v6988_v62, %v1745_v15 }
 0x5a9   : > { %v1768_v61 = vadd.f32 %v1746_v46, %v7696_v33  ;;  %v7920_v33 = vpop.f32.mrf.mxu3 }
 0x5ab   : > { %v1778_v1 = vsel %vm999_vm0, %v1768_v61, 0.0 }
 0x5ac   : > { %1779 = vadd.xlane.f32.xlu1 %v1778_v1 }
 0x5dd   : > { %v1748_v29 = vpop.f32.mrf.mxu2 }
 0x5de   : > { %v1749_v10 = vadd.f32 %v6988_v62, %v1748_v29 }
 0x5e0   : > { %v1769_v12 = vadd.f32 %v1749_v10, %v7716_v44 }
 0x5e2   : > { %v1781_v39 = vsel %vm999_vm0, %v1769_v12, 0.0 }
 0x5e3   : > { %1782 = vadd.xlane.f32.xlu0 %v1781_v39 }
 0x5e5   : > { %v1751_v32 = vpop.f32.mrf.mxu2 }
 0x5e6   : > { %v1752_v42 = vadd.f32 %v6988_v62, %v1751_v32 }
 0x5e8   : > { %v1770_v43 = vadd.f32 %v1752_v42, %v7733_v51 }
 0x5ea   : > { %v1784_v7 = vsel %vm999_vm0, %v1770_v43, 0.0 }
 0x5eb   : > { %1785 = vadd.xlane.f32.xlu2 %v1784_v7 }
 0x5ed   : > { %v1754_v27 = vpop.f32.mrf.mxu3 }
 0x5ee   : > { %v1755_v21 = vadd.f32 %v6988_v62, %v1754_v27 }
 0x5f0   : > { %v1771_v9 = vadd.f32 %v1755_v21, %v7743_v54  ;;  %v1800_v54 = vmul.f32 16.0, %v7048_v0 }
 0x5f2   : > { %v1787_v8 = vsel %vm999_vm0, %v1771_v9, 0.0  ;;  %v1801_v23 = vsub.f32 1.0, %v1800_v54 }
 0x5f3   : > { %1788 = vadd.xlane.f32.xlu1 %v1787_v8 }
 0x5f4   : > { %v1802_v55 = vmul.f32 %v7048_v0, %v1801_v23 }
 0x5f5   : > { %v1757_v44 = vpop.f32.mrf.mxu3 }
 0x5f6   : > { %v1758_v48 = vadd.f32 %v6988_v62, %v1757_v44  ;;  %v1803_v4 = vadd.f32 %v7048_v0, %v1802_v55 }
 0x5f8   : > { %v1772_v49 = vadd.f32 %v1758_v48, %v7681_v19  ;;  %v7930_v11 = vsel %vm1804_vm3, %v7048_v0, %v1803_v4 }
 0x5fa   : > { %v1790_v37 = vsel %vm999_vm0, %v1772_v49, 0.0 }
 0x5fb   : > { %1791 = vadd.xlane.f32.xlu0 %v1790_v37 }
 0x5fd   : > { %v1760_v51 = vpop.f32.mrf.mxu3 }
 0x5fe   : > { %v1761_v59 = vadd.f32 %v6988_v62, %v1760_v51 }
 0x600   : > { %v1773_v60 = vadd.f32 %v1761_v59, %v7701_v34 }
 0x602   : > { %v1793_v2 = vsel %vm999_vm0, %v1773_v60, 0.0 }
 0x603   : > { %1794 = vadd.xlane.f32.xlu1 %v1793_v2 }
 0x605   : > { %v1763_v38 = vpop.f32.mrf.mxu3 }
 0x606   : > { %v1764_v15 = vadd.f32 %v6988_v62, %v1763_v38 }
 0x608   : > { %v1774_v39 = vadd.f32 %v1764_v15, %v7721_v45 }
 0x617   : > { %v1777_v19 = vpop.xlane.xlu2 %1776 }
 0x618   : > { %v1806_v63 = vmul.f32 %v7930_v11, %v1777_v19 }
 0x61a   : > { %v7933_v3 = vsub.f32 %v1767_v58, %v1806_v63  ;;  %v1796_v58 = vsel %vm999_vm0, %v1774_v39, 0.0 }
 0x61c   : > { %v1822_v34 = vmul.f32 %v7933_v3, %v7933_v3 }
 0x61e   : > { %v1830_v46 = vsel %vm999_vm0, %v1822_v34, 0.0  ;;  %v1977_v34 = vld [vmem:[%s7552_s4 + $0x8] sm:$0xff] }
 0x61f   : > { %v1780_v1 = vpop.xlane.xlu1 %1779  ;;  %1831 = vadd.xlane.f32.xlu2 %v1830_v46  ;;  %2020 = vmatpush.msrb.mxu0 %v1977_v34 }
 0x620   : > { %v1807_v29 = vmul.f32 %v7930_v11, %v1780_v1 }
 0x622   : > { %v7939_v10 = vsub.f32 %v1768_v61, %v1807_v29 }
 0x624   : > { %v1823_v32 = vmul.f32 %v7939_v10, %v7939_v10 }
 0x626   : > { %v1833_v42 = vsel %vm999_vm0, %v1823_v32, 0.0 }
 0x627   : > { %1797 = vadd.xlane.f32.xlu2 %v1796_v58  ;;  %1834 = vadd.xlane.f32.xlu0 %v1833_v42 }
 0x656   : > { %v1783_v62 = vpop.xlane.xlu0 %1782 }
 0x657   : > { %v1808_v7 = vmul.f32 %v7930_v11, %v1783_v62 }
 0x659   : > { %v7947_v27 = vsub.f32 %v1769_v12, %v1808_v7 }
 0x65b   : > { %v1824_v61 = vmul.f32 %v7947_v27, %v7947_v27 }
 0x65d   : > { %v1836_v21 = vsel %vm999_vm0, %v1824_v61, 0.0 }
 0x65e   : > { %v1786_v45 = vpop.xlane.xlu2 %1785  ;;  %1837 = vadd.xlane.f32.xlu1 %v1836_v21 }
 0x65f   : > { %v1809_v8 = vmul.f32 %v7930_v11, %v1786_v45 }
 0x661   : > { %v7953_v44 = vsub.f32 %v1770_v43, %v1809_v8 }
 0x663   : > { %v1825_v48 = vmul.f32 %v7953_v44, %v7953_v44 }
 0x665   : > { %v1839_v37 = vsel %vm999_vm0, %v1825_v48, 0.0 }
 0x666   : > { %v1789_v56 = vpop.xlane.xlu1 %1788  ;;  %1840 = vadd.xlane.f32.xlu0 %v1839_v37 }
 0x667   : > { %v1810_v12 = vmul.f32 %v7930_v11, %v1789_v56  ;;  %v7987_v56 = vld [vmem:[%s9859_s23] sm:$0xf] }
 0x669   : > { %v7959_v51 = vsub.f32 %v1771_v9, %v1810_v12 }
 0x66b   : > { %v1826_v59 = vmul.f32 %v7959_v51, %v7959_v51 }
 0x66d   : > { %v1842_v0 = vsel %vm999_vm0, %v1826_v59, 0.0 }
 0x66e   : > { %1843 = vadd.xlane.f32.xlu2 %v1842_v0  ;;  %v1792_v43 = vpop.xlane.xlu0 %1791  ;;  %v7990_v0 = vperm.slane %v7987_v56, 0 }
 0x66f   : > { %v1811_v2 = vmul.f32 %v7930_v11, %v1792_v43 }
 0x671   : > { %v7965_v54 = vsub.f32 %v1772_v49, %v1811_v2  ;;  %v1976_v49 = vld [vmem:[%s7552_s4] sm:$0xff] }
 0x672   : > { %2021 = vmatpush.msrb.mxu0 %v1976_v49 }
 0x673   : > { %v1827_v23 = vmul.f32 %v7965_v54, %v7965_v54 }
 0x675   : > { %v1845_v55 = vsel %vm999_vm0, %v1827_v23, 0.0 }
 0x676   : > { %v1795_v9 = vpop.xlane.xlu1 %1794  ;;  %1846 = vadd.xlane.f32.xlu1 %v1845_v55  ;;  %v7994_v55 = vperm.slane %v7987_v56, 1 }
 0x677   : > { %v1812_v4 = vmul.f32 %v7930_v11, %v1795_v9 }
 0x679   : > { %v7971_v19 = vsub.f32 %v1773_v60, %v1812_v4 }
 0x67b   : > { %v1828_v63 = vmul.f32 %v7971_v19, %v7971_v19 }
 0x67d   : > { %v1848_v38 = vsel %vm999_vm0, %v1828_v63, 0.0 }
 0x67e   : > { %1849 = vadd.xlane.f32.xlu0 %v1848_v38 }
 0x692   : > { %v1832_v15 = vpop.xlane.xlu2 %1831 }
 0x693   : > { %v1854_v46 = vmul.f32 %v1832_v15, %v7930_v11 }
 0x695   : > { %v1862_v1 = vadd.f32 1e-05, %v1854_v46 }
 0x697   : > { %7049 = vrsqrt.f32 %v1862_v1  ;;  %vm1876_vm5 = vweird.f32 %v1862_v1 }
 0x69a   : > { %v1798_v29 = vpop.xlane.xlu2 %1797  ;;  %v1835_v32 = vpop.xlane.xlu0 %1834 }
 0x69b   : > { %v1813_v60 = vmul.f32 %v7930_v11, %v1798_v29  ;;  %v1855_v58 = vmul.f32 %v1835_v32, %v7930_v11 }
 0x69d   : > { %v7050_v42 = vpop.eup %7049  ;;  %v7981_v62 = vsub.f32 %v1774_v39, %v1813_v60  ;;  %v1863_v7 = vadd.f32 1e-05, %v1855_v58 }
 0x69e   : > { %v1871_v61 = vmul.f32 %v7050_v42, %v1862_v1  ;;  %vm1877_vm4 = vweird.f32 %v7050_v42 }
 0x69f   : > { %7051 = vrsqrt.f32 %v1863_v7  ;;  %v1829_v21 = vmul.f32 %v7981_v62, %v7981_v62  ;;  %vm1878_vm6 = vmor %vm1876_vm5, %vm1877_vm4  ;;  %vm1886_vm8 = vweird.f32 %v1863_v7 }
 0x6a0   : > { %v1872_v45 = vmul.f32 %v7050_v42, %v1871_v61 }
 0x6a1   : > { %v1851_v8 = vsel %vm999_vm0, %v1829_v21, 0.0 }
 0x6a2   : > { %v1873_v48 = vmul.f32 0.5, %v1872_v45  ;;  %1852 = vadd.xlane.f32.xlu2 %v1851_v8 }
 0x6a4   : > { %v1874_v37 = vsub.f32 1.5, %v1873_v48 }
 0x6a5   : > { %v7052_v12 = vpop.eup %7051 }
 0x6a6   : > { %v1875_v59 = vmul.f32 %v7050_v42, %v1874_v37  ;;  %v1881_v39 = vmul.f32 %v7052_v12, %v1863_v7  ;;  %vm1887_vm7 = vweird.f32 %v7052_v12 }
 0x6a7   : > { %vm1888_vm9 = vmor %vm1886_vm8, %vm1887_vm7 }
 0x6a8   : > { %v1879_v43 = vsel %vm1878_vm6, %v7050_v42, %v1875_v59  ;;  %v1882_v2 = vmul.f32 %v7052_v12, %v1881_v39 }
 0x6a9   : > { %v1950_v23 = vmul.f32 %v1879_v43, %v7933_v3 }
 0x6aa   : > { %v1883_v9 = vmul.f32 0.5, %v1882_v2 }
 0x6ab   : > { %v1959_v4 = vmul.f32 %v7990_v0, %v1950_v23 }
 0x6ac   : > { %v1884_v63 = vsub.f32 1.5, %v1883_v9 }
 0x6ad   : > { %v7998_v38 = vadd.f32 %v7994_v55, %v1959_v4 }
 0x6ae   : > { %v1885_v34 = vmul.f32 %v7052_v12, %v1884_v63 }
 0x6af   : > { %6551 = vmatmul.msk.f32.vlgmr.msrb.gmra.mxu0 %vm999_vm0, %v7998_v38 }
 0x6b0   : > { %v1889_v49 = vsel %vm1888_vm9, %v7052_v12, %v1885_v34 }
 0x6b1   : > { %v1951_v3 = vmul.f32 %v1889_v49, %v7939_v10 }
 0x6b3   : > { %v1960_v15 = vmul.f32 %v7990_v0, %v1951_v3 }
 0x6b5   : > { %v8005_v46 = vadd.f32 %v7994_v55, %v1960_v15 }
 0x6b7   : > { %6552 = vmatmul.msk.f32.gmra.mxu0 %vm999_vm0, %v8005_v46 }
 0x6d1   : > { %v1838_v1 = vpop.xlane.xlu1 %1837 }
 0x6d2   : > { %v1856_v29 = vmul.f32 %v1838_v1, %v7930_v11 }
 0x6d4   : > { %v1864_v32 = vadd.f32 1e-05, %v1856_v29 }
 0x6d6   : > { %7053 = vrsqrt.f32 %v1864_v32  ;;  %vm1896_vm11 = vweird.f32 %v1864_v32 }
 0x6d9   : > { %v1841_v60 = vpop.xlane.xlu0 %1840 }
 0x6da   : > { %v1857_v58 = vmul.f32 %v1841_v60, %v7930_v11 }
 0x6dc   : > { %v7054_v42 = vpop.eup %7053  ;;  %v1865_v7 = vadd.f32 1e-05, %v1857_v58 }
 0x6dd   : > { %v1891_v61 = vmul.f32 %v7054_v42, %v1864_v32  ;;  %vm1897_vm10 = vweird.f32 %v7054_v42 }
 0x6de   : > { %7055 = vrsqrt.f32 %v1865_v7  ;;  %vm1898_vm12 = vmor %vm1896_vm11, %vm1897_vm10  ;;  %vm1906_vm14 = vweird.f32 %v1865_v7 }
 0x6df   : > { %v1892_v10 = vmul.f32 %v7054_v42, %v1891_v61 }
 0x6e1   : > { %v1893_v21 = vmul.f32 0.5, %v1892_v10  ;;  %v1844_v45 = vpop.xlane.xlu2 %1843 }
 0x6e2   : > { %v1858_v8 = vmul.f32 %v1844_v45, %v7930_v11 }
 0x6e3   : > { %v1894_v48 = vsub.f32 1.5, %v1893_v21 }
 0x6e4   : > { %v7056_v37 = vpop.eup %7055  ;;  %v1866_v12 = vadd.f32 1e-05, %v1858_v8 }
 0x6e5   : > { %v1895_v59 = vmul.f32 %v7054_v42, %v1894_v48  ;;  %v1901_v39 = vmul.f32 %v7056_v37, %v1865_v7  ;;  %vm1907_vm13 = vweird.f32 %v7056_v37 }
 0x6e6   : > { %7057 = vrsqrt.f32 %v1866_v12  ;;  %vm1908_vm15 = vmor %vm1906_vm14, %vm1907_vm13  ;;  %vm1916_vm3 = vweird.f32 %v1866_v12 }
 0x6e7   : > { %v1902_v43 = vmul.f32 %v7056_v37, %v1901_v39  ;;  %v1899_v2 = vsel %vm1898_vm12, %v7054_v42, %v1895_v59 }
 0x6e8   : > { %v1952_v23 = vmul.f32 %v1899_v2, %v7947_v27 }
 0x6e9   : > { %v1903_v9 = vmul.f32 0.5, %v1902_v43  ;;  %v1847_v4 = vpop.xlane.xlu1 %1846 }
 0x6ea   : > { %v1859_v63 = vmul.f32 %v1847_v4, %v7930_v11  ;;  %v1961_v34 = vmul.f32 %v7990_v0, %v1952_v23 }
 0x6eb   : > { %v1904_v49 = vsub.f32 1.5, %v1903_v9 }
 0x6ec   : > { %v7058_v3 = vpop.eup %7057  ;;  %v1867_v15 = vadd.f32 1e-05, %v1859_v63  ;;  %v8016_v1 = vadd.f32 %v7994_v55, %v1961_v34 }
 0x6ed   : > { %v1905_v29 = vmul.f32 %v7056_v37, %v1904_v49  ;;  %v1911_v32 = vmul.f32 %v7058_v3, %v1866_v12  ;;  %vm1917_vm2 = vweird.f32 %v7058_v3 }
 0x6ee   : > { %7059 = vrsqrt.f32 %v1867_v15  ;;  %6553 = vmatmul.msk.f32.gmra.mxu0 %vm999_vm0, %v8016_v1  ;;  %vm1918_vm4 = vmor %vm1916_vm3, %vm1917_vm2  ;;  %vm1926_vm6 = vweird.f32 %v1867_v15 }
 0x6ef   : > { %v1912_v27 = vmul.f32 %v7058_v3, %v1911_v32  ;;  %v1909_v60 = vsel %vm1908_vm15, %v7056_v37, %v1905_v29 }
 0x6f0   : > { %v1953_v58 = vmul.f32 %v1909_v60, %v7953_v44 }
 0x6f1   : > { %v1913_v42 = vmul.f32 0.5, %v1912_v27  ;;  %v1850_v61 = vpop.xlane.xlu0 %1849 }
 0x6f2   : > { %v1860_v10 = vmul.f32 %v1850_v61, %v7930_v11  ;;  %v1962_v21 = vmul.f32 %v7990_v0, %v1953_v58 }
 0x6f3   : > { %v1914_v45 = vsub.f32 1.5, %v1913_v42 }
 0x6f4   : > { %v7060_v8 = vpop.eup %7059  ;;  %v1868_v7 = vadd.f32 1e-05, %v1860_v10  ;;  %v8024_v48 = vadd.f32 %v7994_v55, %v1962_v21  ;;  %v2126_v21 = vld [vmem:[%s9860_s26 + $0x38] sm:$0xff] }
 0x6f5   : > { %v1915_v59 = vmul.f32 %v7058_v3, %v1914_v45  ;;  %v1921_v39 = vmul.f32 %v7060_v8, %v1867_v15  ;;  %vm1927_vm5 = vweird.f32 %v7060_v8  ;;  %2163 = vmatpush.msra.mxu2 %v2126_v21 }
 0x6f6   : > { %7061 = vrsqrt.f32 %v1868_v7  ;;  %6554 = vmatmul.msk.f32.gmra.mxu0 %vm999_vm0, %v8024_v48  ;;  %vm1928_vm7 = vmor %vm1926_vm6, %vm1927_vm5  ;;  %vm1936_vm9 = vweird.f32 %v1868_v7 }
 0x6f7   : > { %v1922_v44 = vmul.f32 %v7060_v8, %v1921_v39  ;;  %v1919_v37 = vsel %vm1918_vm4, %v7058_v3, %v1915_v59  ;;  %v2123_v59 = vld [vmem:[%s9860_s26 + $0x20] sm:$0xff]  ;;  %v2122_v39 = vld [vmem:[%s9860_s26 + $0x18] sm:$0xff] }
 0x6f8   : > { %v1954_v43 = vmul.f32 %v1919_v37, %v7959_v51  ;;  %v2120_v37 = vld [vmem:[%s9860_s26 + $0x8] sm:$0xff] }
 0x6f9   : > { %v1923_v2 = vmul.f32 0.5, %v1922_v44  ;;  %v2121_v44 = vld [vmem:[%s9860_s26 + $0x10] sm:$0xff] }
 0x6fa   : > { %v1963_v23 = vmul.f32 %v7990_v0, %v1954_v43 }
 0x6fb   : > { %v1924_v9 = vsub.f32 1.5, %v1923_v2 }
 0x6fc   : > { %v7062_v4 = vpop.eup %7061  ;;  %v8031_v63 = vadd.f32 %v7994_v55, %v1963_v23  ;;  %v2119_v23 = vld [vmem:[%s9860_s26] sm:$0xff] }
 0x6fd   : > { %v1925_v12 = vmul.f32 %v7060_v8, %v1924_v9  ;;  %v1931_v34 = vmul.f32 %v7062_v4, %v1868_v7  ;;  %vm1937_vm8 = vweird.f32 %v7062_v4 }
 0x6fe   : > { %6555 = vmatmul.msk.f32.gmra.mxu0 %vm999_vm0, %v8031_v63  ;;  %vm1938_vm10 = vmor %vm1936_vm9, %vm1937_vm8 }
 0x6ff   : > { %v1932_v49 = vmul.f32 %v7062_v4, %v1931_v34  ;;  %v1929_v3 = vsel %vm1928_vm7, %v7060_v8, %v1925_v12  ;;  %v2125_v8 = vld [vmem:[%s9860_s26 + $0x30] sm:$0xff] }
 0x700   : > { %v1955_v51 = vmul.f32 %v1929_v3, %v7965_v54  ;;  %2164 = vmatpush.msra.mxu2 %v2125_v8 }
 0x701   : > { %v1933_v29 = vmul.f32 0.5, %v1932_v49  ;;  %v8059_v49 = vld [vmem:[%s9861_s1] ss:$0 sm:$0xff] }
 0x702   : > { %v1964_v32 = vmul.f32 %v7990_v0, %v1955_v51 }
 0x703   : > { %v1934_v27 = vsub.f32 1.5, %v1933_v29 }
 0x704   : > { %v8038_v60 = vadd.f32 %v7994_v55, %v1964_v32 }
 0x705   : > { %v1935_v15 = vmul.f32 %v7062_v4, %v1934_v27 }
 0x706   : > { %6556 = vmatmul.msk.f32.gmra.mxu0 %vm999_vm0, %v8038_v60 }
 0x707   : > { %v1939_v58 = vsel %vm1938_vm10, %v7062_v4, %v1935_v15 }
 0x708   : > { %v1956_v54 = vmul.f32 %v1939_v58, %v7971_v19  ;;  %v2124_v19 = vld [vmem:[%s9860_s26 + $0x28] sm:$0xff] }
 0x709   : > { %2165 = vmatpush.msra.mxu2 %v2124_v19 }
 0x70a   : > { %v1965_v42 = vmul.f32 %v7990_v0, %v1956_v54 }
 0x70b   : > { %2166 = vmatpush.msra.mxu2 %v2123_v59 }
 0x70c   : > { %v8045_v61 = vadd.f32 %v7994_v55, %v1965_v42 }
 0x70d   : > { %2167 = vmatpush.msra.mxu2 %v2122_v39 }
 0x70e   : > { %6557 = vmatmul.msk.f32.gmra.mxu0 %vm999_vm0, %v8045_v61 }
 0x70f   : > { %2168 = vmatpush.msra.mxu2 %v2121_v44 }
 0x711   : > { %2169 = vmatpush.msra.mxu2 %v2120_v37 }
 0x713   : > { %2170 = vmatpush.msra.mxu2 %v2119_v23 }
 0x715   : > { %v1853_v10 = vpop.xlane.xlu2 %1852 }
 0x716   : > { %v1861_v45 = vmul.f32 %v1853_v10, %v7930_v11 }
 0x718   : > { %v1869_v7 = vadd.f32 1e-05, %v1861_v45 }
 0x71a   : > { %7063 = vrsqrt.f32 %v1869_v7  ;;  %vm1946_vm12 = vweird.f32 %v1869_v7 }
 0x720   : > { %v7064_v43 = vpop.eup %7063 }
 0x721   : > { %v1941_v2 = vmul.f32 %v7064_v43, %v1869_v7  ;;  %vm1947_vm11 = vweird.f32 %v7064_v43 }
 0x722   : > { %vm1948_vm13 = vmor %vm1946_vm12, %vm1947_vm11 }
 0x723   : > { %v1942_v9 = vmul.f32 %v7064_v43, %v1941_v2 }
 0x725   : > { %v1943_v4 = vmul.f32 0.5, %v1942_v9 }
 0x727   : > { %v1944_v12 = vsub.f32 1.5, %v1943_v4 }
 0x729   : > { %v1945_v34 = vmul.f32 %v7064_v43, %v1944_v12 }
 0x72b   : > { %v1949_v3 = vsel %vm1948_vm13, %v7064_v43, %v1945_v34 }
 0x72c   : > { %v2023_v51 = vpop.f32.mrf.mxu0  ;;  %v1957_v29 = vmul.f32 %v1949_v3, %v7981_v62 }
 0x72d   : > { %v2024_v32 = vadd.f32 %v8059_v49, %v2023_v51 }
 0x72e   : > { %v1966_v27 = vmul.f32 %v7990_v0, %v1957_v29 }
 0x72f   : > { %v2055_v15 = vmul.f32 0.044715, %v2024_v32  ;;  %v2047_v44 = vmul.f32 0.5, %v2024_v32 }
 0x730   : > { %v8065_v58 = vadd.f32 %v7994_v55, %v1966_v27 }
 0x731   : > { %v2063_v54 = vmul.f32 %v2055_v15, %v2024_v32 }
 0x732   : > { %6558 = vmatmul.msk.f32.gmra.mxu0 %vm999_vm0, %v8065_v58 }
 0x733   : > { %v2071_v42 = vmul.f32 %v2063_v54, %v2024_v32 }
 0x734   : > { %v2026_v10 = vpop.f32.mrf.mxu0 }
 0x735   : > { %v2079_v21 = vadd.f32 %v2071_v42, %v2024_v32  ;;  %v2027_v45 = vadd.f32 %v8059_v49, %v2026_v10 }
 0x737   : > { %v2087_v8 = vmul.f32 0.7978846, %v2079_v21  ;;  %v2056_v7 = vmul.f32 0.044715, %v2027_v45  ;;  %v2048_v2 = vmul.f32 0.5, %v2027_v45 }
 0x739   : > { %7065 = vtanh.f32 %v2087_v8  ;;  %v2064_v62 = vmul.f32 %v2056_v7, %v2027_v45 }
 0x73b   : > { %v2072_v19 = vmul.f32 %v2064_v62, %v2027_v45 }
 0x73d   : > { %v2080_v59 = vadd.f32 %v2072_v19, %v2027_v45 }
 0x73f   : > { %v7066_v0 = vpop.eup %7065  ;;  %v2088_v39 = vmul.f32 0.7978846, %v2080_v59 }
 0x740   : > { %v2103_v55 = vadd.f32 1.0, %v7066_v0 }
 0x741   : > { %7067 = vtanh.f32 %v2088_v39 }
 0x742   : > { %v2111_v37 = vmul.f32 %v2103_v55, %v2047_v44 }
 0x744   : > { %6559 = vmatmul.msk.f32.vlgmr.msra.gmra.mxu2 %vm1517_vm1, %v2111_v37 }
 0x747   : > { %v7068_v43 = vpop.eup %7067 }
 0x748   : > { %v2104_v23 = vadd.f32 1.0, %v7068_v43 }
 0x74a   : > { %v2112_v9 = vmul.f32 %v2104_v23, %v2048_v2 }
 0x74c   : > { %6560 = vmatmul.msk.f32.gmra.mxu2 %vm1517_vm1, %v2112_v9 }
 0x76b   : > { %v2029_v4 = vpop.f32.mrf.mxu0 }
 0x76c   : > { %v2030_v12 = vadd.f32 %v8059_v49, %v2029_v4 }
 0x76e   : > { %v2057_v34 = vmul.f32 0.044715, %v2030_v12  ;;  %v2049_v59 = vmul.f32 0.5, %v2030_v12 }
 0x770   : > { %v2065_v3 = vmul.f32 %v2057_v34, %v2030_v12 }
 0x772   : > { %v2073_v51 = vmul.f32 %v2065_v3, %v2030_v12 }
 0x773   : > { %v2032_v29 = vpop.f32.mrf.mxu0 }
 0x774   : > { %v2033_v32 = vadd.f32 %v8059_v49, %v2032_v29  ;;  %v2081_v27 = vadd.f32 %v2073_v51, %v2030_v12 }
 0x776   : > { %v2058_v15 = vmul.f32 0.044715, %v2033_v32  ;;  %v2089_v54 = vmul.f32 0.7978846, %v2081_v27  ;;  %v2050_v34 = vmul.f32 0.5, %v2033_v32 }
 0x778   : > { %7069 = vtanh.f32 %v2089_v54  ;;  %v2066_v42 = vmul.f32 %v2058_v15, %v2033_v32 }
 0x77a   : > { %v2074_v10 = vmul.f32 %v2066_v42, %v2033_v32 }
 0x77b   : > { %v2035_v21 = vpop.f32.mrf.mxu0 }
 0x77c   : > { %v2036_v45 = vadd.f32 %v8059_v49, %v2035_v21  ;;  %v2082_v8 = vadd.f32 %v2074_v10, %v2033_v32 }
 0x77e   : > { %v7070_v7 = vpop.eup %7069  ;;  %v2059_v62 = vmul.f32 0.044715, %v2036_v45  ;;  %v2090_v19 = vmul.f32 0.7978846, %v2082_v8  ;;  %v2051_v8 = vmul.f32 0.5, %v2036_v45 }
 0x77f   : > { %v2105_v0 = vadd.f32 1.0, %v7070_v7 }
 0x780   : > { %7071 = vtanh.f32 %v2090_v19  ;;  %v2067_v39 = vmul.f32 %v2059_v62, %v2036_v45 }
 0x781   : > { %v2113_v44 = vmul.f32 %v2105_v0, %v2049_v59 }
 0x782   : > { %v2075_v55 = vmul.f32 %v2067_v39, %v2036_v45 }
 0x783   : > { %v2038_v37 = vpop.f32.mrf.mxu0  ;;  %6561 = vmatmul.msk.f32.gmra.mxu2 %vm1517_vm1, %v2113_v44 }
 0x784   : > { %v2039_v43 = vadd.f32 %v8059_v49, %v2038_v37  ;;  %v2083_v2 = vadd.f32 %v2075_v55, %v2036_v45 }
 0x786   : > { %v7072_v23 = vpop.eup %7071  ;;  %v2060_v9 = vmul.f32 0.044715, %v2039_v43  ;;  %v2091_v4 = vmul.f32 0.7978846, %v2083_v2  ;;  %v2052_v44 = vmul.f32 0.5, %v2039_v43 }
 0x787   : > { %v2106_v3 = vadd.f32 1.0, %v7072_v23 }
 0x788   : > { %7073 = vtanh.f32 %v2091_v4  ;;  %v2068_v51 = vmul.f32 %v2060_v9, %v2039_v43 }
 0x789   : > { %v2114_v29 = vmul.f32 %v2106_v3, %v2050_v34 }
 0x78a   : > { %v2076_v12 = vmul.f32 %v2068_v51, %v2039_v43 }
 0x78b   : > { %v2041_v27 = vpop.f32.mrf.mxu0  ;;  %6562 = vmatmul.msk.f32.gmra.mxu2 %vm1517_vm1, %v2114_v29 }
 0x78c   : > { %v2042_v15 = vadd.f32 %v8059_v49, %v2041_v27  ;;  %v2084_v54 = vadd.f32 %v2076_v12, %v2039_v43 }
 0x78e   : > { %v7074_v42 = vpop.eup %7073  ;;  %v2061_v10 = vmul.f32 0.044715, %v2042_v15  ;;  %v2092_v21 = vmul.f32 0.7978846, %v2084_v54  ;;  %v2053_v23 = vmul.f32 0.5, %v2042_v15 }
 0x78f   : > { %v2107_v7 = vadd.f32 1.0, %v7074_v42 }
 0x790   : > { %7075 = vtanh.f32 %v2092_v21  ;;  %v2069_v62 = vmul.f32 %v2061_v10, %v2042_v15  ;;  %v6991_v10 = vld [vmem:[%s9862_s28] ss:$0 sm:$0xff] }
 0x791   : > { %v2115_v19 = vmul.f32 %v2107_v7, %v2051_v8 }
 0x792   : > { %v2077_v32 = vmul.f32 %v2069_v62, %v2042_v15 }
 0x793   : > { %6563 = vmatmul.msk.f32.gmra.mxu2 %vm1517_vm1, %v2115_v19 }
 0x794   : > { %v2085_v59 = vadd.f32 %v2077_v32, %v2042_v15 }
 0x796   : > { %v7076_v0 = vpop.eup %7075  ;;  %v2093_v39 = vmul.f32 0.7978846, %v2085_v59 }
 0x797   : > { %v2108_v55 = vadd.f32 1.0, %v7076_v0 }
 0x798   : > { %7077 = vtanh.f32 %v2093_v39 }
 0x799   : > { %v2116_v37 = vmul.f32 %v2108_v55, %v2052_v44 }
 0x79b   : > { %6564 = vmatmul.msk.f32.gmra.mxu2 %vm1517_vm1, %v2116_v37 }
 0x79e   : > { %v7078_v2 = vpop.eup %7077 }
 0x79f   : > { %v2109_v45 = vadd.f32 1.0, %v7078_v2 }
 0x7a1   : > { %v2117_v9 = vmul.f32 %v2109_v45, %v2053_v23 }
 0x7a3   : > { %6565 = vmatmul.msk.f32.gmra.mxu2 %vm1517_vm1, %v2117_v9 }
 0x7af   : > { %v2044_v4 = vpop.f32.mrf.mxu0 }
 0x7b0   : > { %v2045_v34 = vadd.f32 %v8059_v49, %v2044_v4 }
 0x7b2   : > { %v2062_v3 = vmul.f32 0.044715, %v2045_v34  ;;  %v2054_v54 = vmul.f32 0.5, %v2045_v34 }
 0x7b4   : > { %v2070_v51 = vmul.f32 %v2062_v3, %v2045_v34 }
 0x7b6   : > { %v2078_v29 = vmul.f32 %v2070_v51, %v2045_v34 }
 0x7b8   : > { %v2086_v12 = vadd.f32 %v2078_v29, %v2045_v34 }
 0x7ba   : > { %v2094_v43 = vmul.f32 0.7978846, %v2086_v12 }
 0x7bc   : > { %7079 = vtanh.f32 %v2094_v43 }
 0x7c2   : > { %v7080_v27 = vpop.eup %7079 }
 0x7c3   : > { %v2110_v42 = vadd.f32 1.0, %v7080_v27 }
 0x7c5   : > { %v2118_v21 = vmul.f32 %v2110_v42, %v2054_v54 }
 0x7c7   : > { %v2172_v8 = vpop.f32.mrf.mxu2  ;;  %6566 = vmatmul.msk.f32.gmra.mxu2 %vm1517_vm1, %v2118_v21 }
 0x7c8   : > { %v2173_v15 = vadd.f32 %v6991_v10, %v2172_v8 }
 0x7ca   : > { %v2196_v7 = vadd.f32 %v2173_v15, %v7998_v38 }
 0x7cc   : > { %v2204_v62 = vsel %vm999_vm0, %v2196_v7, 0.0 }
 0x7cd   : > { %2205 = vadd.xlane.f32.xlu1 %v2204_v62 }
 0x7cf   : > { %v2175_v49 = vpop.f32.mrf.mxu2 }
 0x7d0   : > { %v2176_v19 = vadd.f32 %v6991_v10, %v2175_v49 }
 0x7d2   : > { %v2197_v32 = vadd.f32 %v2176_v19, %v8005_v46 }
 0x7d4   : > { %v2207_v59 = vsel %vm999_vm0, %v2197_v32, 0.0 }
 0x7d5   : > { %2208 = vadd.xlane.f32.xlu0 %v2207_v59 }
 0x806   : > { %v2178_v0 = vpop.f32.mrf.mxu2 }
 0x807   : > { %v2179_v39 = vadd.f32 %v6991_v10, %v2178_v0 }
 0x809   : > { %v2198_v44 = vadd.f32 %v2179_v39, %v8016_v1 }
 0x80b   : > { %v2210_v55 = vsel %vm999_vm0, %v2198_v44, 0.0 }
 0x80c   : > { %2211 = vadd.xlane.f32.xlu2 %v2210_v55 }
 0x80e   : > { %v2181_v37 = vpop.f32.mrf.mxu2 }
 0x80f   : > { %v2182_v2 = vadd.f32 %v6991_v10, %v2181_v37 }
 0x811   : > { %v2199_v38 = vadd.f32 %v2182_v2, %v8024_v48 }
 0x813   : > { %v2213_v23 = vsel %vm999_vm0, %v2199_v38, 0.0 }
 0x814   : > { %2214 = vadd.xlane.f32.xlu1 %v2213_v23 }
 0x816   : > { %v2184_v45 = vpop.f32.mrf.mxu2 }
 0x817   : > { %v2185_v9 = vadd.f32 %v6991_v10, %v2184_v45 }
 0x819   : > { %v2200_v46 = vadd.f32 %v2185_v9, %v8031_v63 }
 0x81b   : > { %v2216_v4 = vsel %vm999_vm0, %v2200_v46, 0.0 }
 0x81c   : > { %2217 = vadd.xlane.f32.xlu0 %v2216_v4 }
 0x81e   : > { %v2187_v34 = vpop.f32.mrf.mxu2 }
 0x81f   : > { %v2188_v3 = vadd.f32 %v6991_v10, %v2187_v34 }
 0x821   : > { %v2201_v1 = vadd.f32 %v2188_v3, %v8038_v60 }
 0x823   : > { %v2219_v51 = vsel %vm999_vm0, %v2201_v1, 0.0 }
 0x824   : > { %2220 = vadd.xlane.f32.xlu2 %v2219_v51 }
 0x826   : > { %v2190_v29 = vpop.f32.mrf.mxu2 }
 0x827   : > { %v2191_v12 = vadd.f32 %v6991_v10, %v2190_v29 }
 0x829   : > { %v2202_v48 = vadd.f32 %v2191_v12, %v8045_v61 }
 0x82b   : > { %v2222_v43 = vsel %vm999_vm0, %v2202_v48, 0.0 }
 0x82c   : > { %2223 = vadd.xlane.f32.xlu0 %v2222_v43 }
 0x840   : > { %v2206_v27 = vpop.xlane.xlu1 %2205 }
 0x841   : > { %v2228_v63 = vmul.f32 %v2206_v27, %v7930_v11 }
 0x843   : > { %v8100_v54 = vsub.f32 %v2196_v7, %v2228_v63 }
 0x845   : > { %v2244_v42 = vmul.f32 %v8100_v54, %v8100_v54 }
 0x847   : > { %v2252_v60 = vsel %vm999_vm0, %v2244_v42, 0.0 }
 0x848   : > { %2253 = vadd.xlane.f32.xlu1 %v2252_v60  ;;  %v2209_v21 = vpop.xlane.xlu0 %2208 }
 0x849   : > { %v2229_v8 = vmul.f32 %v2209_v21, %v7930_v11  ;;  %v6568_v21 = vld [vmem:[%s7527_s30 + $0x28] sm:$0xff] }
 0x84a   : > { %v2193_v15 = vpop.f32.mrf.mxu2  ;;  %2444 = vmatpush.msrb.mxu1 %v6568_v21 }
 0x84b   : > { %v8106_v62 = vsub.f32 %v2197_v32, %v2229_v8  ;;  %v2194_v61 = vadd.f32 %v6991_v10, %v2193_v15 }
 0x84d   : > { %v2203_v49 = vadd.f32 %v2194_v61, %v8065_v58  ;;  %v2245_v19 = vmul.f32 %v8106_v62, %v8106_v62 }
 0x84f   : > { %v2225_v7 = vsel %vm999_vm0, %v2203_v49, 0.0  ;;  %v2255_v59 = vsel %vm999_vm0, %v2245_v19, 0.0 }
 0x850   : > { %2226 = vadd.xlane.f32.xlu1 %v2225_v7  ;;  %2256 = vadd.xlane.f32.xlu2 %v2255_v59 }
 0x87f   : > { %v2212_v0 = vpop.xlane.xlu2 %2211 }
 0x880   : > { %v2230_v39 = vmul.f32 %v2212_v0, %v7930_v11 }
 0x882   : > { %v8114_v55 = vsub.f32 %v2198_v44, %v2230_v39 }
 0x884   : > { %v2246_v32 = vmul.f32 %v8114_v55, %v8114_v55 }
 0x886   : > { %v2258_v10 = vsel %vm999_vm0, %v2246_v32, 0.0 }
 0x887   : > { %v2215_v58 = vpop.xlane.xlu1 %2214  ;;  %2259 = vadd.xlane.f32.xlu0 %v2258_v10 }
 0x888   : > { %v2231_v37 = vmul.f32 %v2215_v58, %v7930_v11 }
 0x88a   : > { %v8120_v2 = vsub.f32 %v2199_v38, %v2231_v37 }
 0x88c   : > { %v2247_v23 = vmul.f32 %v8120_v2, %v8120_v2 }
 0x88e   : > { %v2261_v45 = vsel %vm999_vm0, %v2247_v23, 0.0 }
 0x88f   : > { %2262 = vadd.xlane.f32.xlu2 %v2261_v45  ;;  %v2218_v9 = vpop.xlane.xlu0 %2217 }
 0x890   : > { %v2232_v44 = vmul.f32 %v2218_v9, %v7930_v11 }
 0x892   : > { %v8126_v4 = vsub.f32 %v2200_v46, %v2232_v44 }
 0x894   : > { %v2248_v34 = vmul.f32 %v8126_v4, %v8126_v4 }
 0x896   : > { %v2264_v3 = vsel %vm999_vm0, %v2248_v34, 0.0 }
 0x897   : > { %v2221_v38 = vpop.xlane.xlu2 %2220  ;;  %2265 = vadd.xlane.f32.xlu1 %v2264_v3 }
 0x898   : > { %v2233_v51 = vmul.f32 %v2221_v38, %v7930_v11 }
 0x89a   : > { %v8132_v29 = vsub.f32 %v2201_v1, %v2233_v51  ;;  %v6567_v1 = vld [vmem:[%s7527_s30 + $0x20] sm:$0xff] }
 0x89b   : > { %2445 = vmatpush.msrb.mxu1 %v6567_v1 }
 0x89c   : > { %v2249_v12 = vmul.f32 %v8132_v29, %v8132_v29 }
 0x89e   : > { %v2267_v43 = vsel %vm999_vm0, %v2249_v12, 0.0 }
 0x89f   : > { %2268 = vadd.xlane.f32.xlu0 %v2267_v43  ;;  %v2224_v46 = vpop.xlane.xlu0 %2223  ;;  %v8158_v43 = vperm.slane %v7987_v56, 3 }
 0x8a0   : > { %v2234_v27 = vmul.f32 %v2224_v46, %v7930_v11 }
 0x8a2   : > { %v8138_v63 = vsub.f32 %v2202_v48, %v2234_v27 }
 0x8a4   : > { %v2250_v42 = vmul.f32 %v8138_v63, %v8138_v63 }
 0x8a6   : > { %v2270_v60 = vsel %vm999_vm0, %v2250_v42, 0.0 }
 0x8a7   : > { %2271 = vadd.xlane.f32.xlu2 %v2270_v60 }
 0x8bb   : > { %v2254_v8 = vpop.xlane.xlu1 %2253 }
 0x8bc   : > { %v2276_v15 = vmul.f32 %v2254_v8, %v7930_v11 }
 0x8be   : > { %v2284_v61 = vadd.f32 1e-05, %v2276_v15 }
 0x8c0   : > { %7081 = vrsqrt.f32 %v2284_v61  ;;  %vm2298_vm15 = vweird.f32 %v2284_v61 }
 0x8c3   : > { %v2227_v19 = vpop.xlane.xlu1 %2226  ;;  %v2257_v7 = vpop.xlane.xlu2 %2256 }
 0x8c4   : > { %v2235_v48 = vmul.f32 %v2227_v19, %v7930_v11  ;;  %v2277_v59 = vmul.f32 %v2257_v7, %v7930_v11 }
 0x8c6   : > { %v7082_v0 = vpop.eup %7081  ;;  %v8148_v39 = vsub.f32 %v2203_v49, %v2235_v48  ;;  %v2285_v32 = vadd.f32 1e-05, %v2277_v59  ;;  %v8154_v49 = vperm.slane %v7987_v56, 2 }
 0x8c7   : > { %v2293_v10 = vmul.f32 %v7082_v0, %v2284_v61  ;;  %vm2299_vm14 = vweird.f32 %v7082_v0 }
 0x8c8   : > { %7083 = vrsqrt.f32 %v2285_v32  ;;  %v2251_v58 = vmul.f32 %v8148_v39, %v8148_v39  ;;  %vm2300_vm2 = vmor %vm2298_vm15, %vm2299_vm14  ;;  %vm2308_vm4 = vweird.f32 %v2285_v32 }
 0x8c9   : > { %v2294_v37 = vmul.f32 %v7082_v0, %v2293_v10 }
 0x8ca   : > { %v2273_v23 = vsel %vm999_vm0, %v2251_v58, 0.0 }
 0x8cb   : > { %v2295_v45 = vmul.f32 0.5, %v2294_v37  ;;  %2274 = vadd.xlane.f32.xlu1 %v2273_v23 }
 0x8cd   : > { %v2296_v9 = vsub.f32 1.5, %v2295_v45 }
 0x8ce   : > { %v7084_v44 = vpop.eup %7083 }
 0x8cf   : > { %v2297_v34 = vmul.f32 %v7082_v0, %v2296_v9  ;;  %v2303_v3 = vmul.f32 %v7084_v44, %v2285_v32  ;;  %vm2309_vm3 = vweird.f32 %v7084_v44 }
 0x8d0   : > { %vm2310_vm5 = vmor %vm2308_vm4, %vm2309_vm3 }
 0x8d1   : > { %v2301_v38 = vsel %vm2300_vm2, %v7082_v0, %v2297_v34  ;;  %v2304_v51 = vmul.f32 %v7084_v44, %v2303_v3 }
 0x8d2   : > { %v2372_v12 = vmul.f32 %v2301_v38, %v8100_v54 }
 0x8d3   : > { %v2305_v46 = vmul.f32 0.5, %v2304_v51 }
 0x8d4   : > { %v2381_v27 = vmul.f32 %v8154_v49, %v2372_v12 }
 0x8d5   : > { %v2306_v42 = vsub.f32 1.5, %v2305_v46 }
 0x8d6   : > { %v8162_v60 = vadd.f32 %v8158_v43, %v2381_v27 }
 0x8d7   : > { %v2307_v21 = vmul.f32 %v7084_v44, %v2306_v42 }
 0x8d8   : > { %6570 = vmatmul.msk.f32.vlgmr.msrb.gmra.mxu1 %vm999_vm0, %v8162_v60 }
 0x8d9   : > { %v2311_v1 = vsel %vm2310_vm5, %v7084_v44, %v2307_v21 }
 0x8da   : > { %v2373_v54 = vmul.f32 %v2311_v1, %v8106_v62 }
 0x8dc   : > { %v2382_v56 = vmul.f32 %v8154_v49, %v2373_v54 }
 0x8de   : > { %v8169_v8 = vadd.f32 %v8158_v43, %v2382_v56 }
 0x8e0   : > { %6571 = vmatmul.msk.f32.gmra.mxu1 %vm999_vm0, %v8169_v8 }
 0x8fa   : > { %v2260_v15 = vpop.xlane.xlu0 %2259 }
 0x8fb   : > { %v2278_v61 = vmul.f32 %v2260_v15, %v7930_v11 }
 0x8fd   : > { %v2286_v19 = vadd.f32 1e-05, %v2278_v61 }
 0x8ff   : > { %7085 = vrsqrt.f32 %v2286_v19  ;;  %vm2318_vm7 = vweird.f32 %v2286_v19 }
 0x902   : > { %v2263_v7 = vpop.xlane.xlu2 %2262 }
 0x903   : > { %v2279_v48 = vmul.f32 %v2263_v7, %v7930_v11 }
 0x905   : > { %v7086_v59 = vpop.eup %7085  ;;  %v2287_v0 = vadd.f32 1e-05, %v2279_v48 }
 0x906   : > { %v2313_v32 = vmul.f32 %v7086_v59, %v2286_v19  ;;  %vm2319_vm6 = vweird.f32 %v7086_v59 }
 0x907   : > { %7087 = vrsqrt.f32 %v2287_v0  ;;  %vm2320_vm8 = vmor %vm2318_vm7, %vm2319_vm6  ;;  %vm2328_vm10 = vweird.f32 %v2287_v0 }
 0x908   : > { %v2314_v62 = vmul.f32 %v7086_v59, %v2313_v32 }
 0x90a   : > { %v2315_v10 = vmul.f32 0.5, %v2314_v62  ;;  %v2266_v58 = vpop.xlane.xlu1 %2265 }
 0x90b   : > { %v2280_v37 = vmul.f32 %v2266_v58, %v7930_v11 }
 0x90c   : > { %v2316_v23 = vsub.f32 1.5, %v2315_v10 }
 0x90d   : > { %v7088_v45 = vpop.eup %7087  ;;  %v2288_v9 = vadd.f32 1e-05, %v2280_v37 }
 0x90e   : > { %v2317_v44 = vmul.f32 %v7086_v59, %v2316_v23  ;;  %v2323_v34 = vmul.f32 %v7088_v45, %v2287_v0  ;;  %vm2329_vm9 = vweird.f32 %v7088_v45 }
 0x90f   : > { %7089 = vrsqrt.f32 %v2288_v9  ;;  %vm2330_vm11 = vmor %vm2328_vm10, %vm2329_vm9  ;;  %vm2338_vm13 = vweird.f32 %v2288_v9 }
 0x910   : > { %v2324_v3 = vmul.f32 %v7088_v45, %v2323_v34  ;;  %v2321_v38 = vsel %vm2320_vm8, %v7086_v59, %v2317_v44 }
 0x911   : > { %v2374_v51 = vmul.f32 %v2321_v38, %v8114_v55 }
 0x912   : > { %v2325_v12 = vmul.f32 0.5, %v2324_v3  ;;  %v2269_v46 = vpop.xlane.xlu0 %2268 }
 0x913   : > { %v2281_v27 = vmul.f32 %v2269_v46, %v7930_v11  ;;  %v2383_v42 = vmul.f32 %v8154_v49, %v2374_v51 }
 0x914   : > { %v2326_v21 = vsub.f32 1.5, %v2325_v12 }
 0x915   : > { %v7090_v1 = vpop.eup %7089  ;;  %v2289_v54 = vadd.f32 1e-05, %v2281_v27  ;;  %v8180_v56 = vadd.f32 %v8158_v43, %v2383_v42 }
 0x916   : > { %v2327_v15 = vmul.f32 %v7088_v45, %v2326_v21  ;;  %v2333_v61 = vmul.f32 %v7090_v1, %v2288_v9  ;;  %vm2339_vm12 = vweird.f32 %v7090_v1 }
 0x917   : > { %7091 = vrsqrt.f32 %v2289_v54  ;;  %6572 = vmatmul.msk.f32.gmra.mxu1 %vm999_vm0, %v8180_v56  ;;  %vm2340_vm14 = vmor %vm2338_vm13, %vm2339_vm12  ;;  %vm2348_vm2 = vweird.f32 %v2289_v54 }
 0x918   : > { %v2334_v55 = vmul.f32 %v7090_v1, %v2333_v61  ;;  %v2331_v19 = vsel %vm2330_vm11, %v7088_v45, %v2327_v15 }
 0x919   : > { %v2375_v7 = vmul.f32 %v2331_v19, %v8120_v2 }
 0x91a   : > { %v2335_v48 = vmul.f32 0.5, %v2334_v55  ;;  %v2272_v59 = vpop.xlane.xlu2 %2271 }
 0x91b   : > { %v2282_v32 = vmul.f32 %v2272_v59, %v7930_v11  ;;  %v2384_v62 = vmul.f32 %v8154_v49, %v2375_v7 }
 0x91c   : > { %v2336_v10 = vsub.f32 1.5, %v2335_v48 }
 0x91d   : > { %v7092_v58 = vpop.eup %7091  ;;  %v2290_v0 = vadd.f32 1e-05, %v2282_v32  ;;  %v8188_v37 = vadd.f32 %v8158_v43, %v2384_v62 }
 0x91e   : > { %v2337_v23 = vmul.f32 %v7090_v1, %v2336_v10  ;;  %v2343_v44 = vmul.f32 %v7092_v58, %v2289_v54  ;;  %vm2349_vm15 = vweird.f32 %v7092_v58 }
 0x91f   : > { %7093 = vrsqrt.f32 %v2290_v0  ;;  %6573 = vmatmul.msk.f32.gmra.mxu1 %vm999_vm0, %v8188_v37  ;;  %vm2350_vm3 = vmor %vm2348_vm2, %vm2349_vm15  ;;  %vm2358_vm5 = vweird.f32 %v2290_v0 }
 0x920   : > { %v2344_v2 = vmul.f32 %v7092_v58, %v2343_v44  ;;  %v2341_v45 = vsel %vm2340_vm14, %v7090_v1, %v2337_v23 }
 0x921   : > { %v2376_v34 = vmul.f32 %v2341_v45, %v8126_v4 }
 0x922   : > { %v2345_v3 = vmul.f32 0.5, %v2344_v2 }
 0x923   : > { %v2385_v38 = vmul.f32 %v8154_v49, %v2376_v34 }
 0x924   : > { %v2346_v51 = vsub.f32 1.5, %v2345_v3 }
 0x925   : > { %v7094_v12 = vpop.eup %7093  ;;  %v8195_v46 = vadd.f32 %v8158_v43, %v2385_v38 }
 0x926   : > { %v2347_v9 = vmul.f32 %v7092_v58, %v2346_v51  ;;  %v2353_v27 = vmul.f32 %v7094_v12, %v2290_v0  ;;  %vm2359_vm4 = vweird.f32 %v7094_v12 }
 0x927   : > { %6574 = vmatmul.msk.f32.gmra.mxu1 %vm999_vm0, %v8195_v46  ;;  %vm2360_vm6 = vmor %vm2358_vm5, %vm2359_vm4 }
 0x928   : > { %v2354_v42 = vmul.f32 %v7094_v12, %v2353_v27  ;;  %v2351_v21 = vsel %vm2350_vm3, %v7092_v58, %v2347_v9 }
 0x929   : > { %v2377_v4 = vmul.f32 %v2351_v21, %v8132_v29 }
 0x92a   : > { %v2355_v1 = vmul.f32 0.5, %v2354_v42  ;;  %v6992_v42 = vld [vmem:[%s7532_s6 + $0x2] ss:$0 sm:$0xff] }
 0x92b   : > { %v2386_v15 = vmul.f32 %v8154_v49, %v2377_v4 }
 0x92c   : > { %v2356_v61 = vsub.f32 1.5, %v2355_v1 }
 0x92d   : > { %v8202_v55 = vadd.f32 %v8158_v43, %v2386_v15 }
 0x92e   : > { %v2357_v19 = vmul.f32 %v7094_v12, %v2356_v61 }
 0x92f   : > { %6575 = vmatmul.msk.f32.gmra.mxu1 %vm999_vm0, %v8202_v55 }
 0x930   : > { %v2361_v54 = vsel %vm2360_vm6, %v7094_v12, %v2357_v19 }
 0x931   : > { %v2378_v7 = vmul.f32 %v2361_v54, %v8138_v63 }
 0x933   : > { %v2387_v48 = vmul.f32 %v8154_v49, %v2378_v7 }
 0x935   : > { %v8209_v29 = vadd.f32 %v8158_v43, %v2387_v48 }
 0x937   : > { %6576 = vmatmul.msk.f32.gmra.mxu1 %vm999_vm0, %v8209_v29 }
 0x93e   : > { %v2275_v59 = vpop.xlane.xlu1 %2274 }
 0x93f   : > { %v2283_v32 = vmul.f32 %v2275_v59, %v7930_v11 }
 0x941   : > { %v2291_v62 = vadd.f32 1e-05, %v2283_v32 }
 0x943   : > { %7095 = vrsqrt.f32 %v2291_v62  ;;  %vm2368_vm8 = vweird.f32 %v2291_v62 }
 0x949   : > { %v7096_v10 = vpop.eup %7095 }
 0x94a   : > { %v2363_v58 = vmul.f32 %v7096_v10, %v2291_v62  ;;  %vm2369_vm7 = vweird.f32 %v7096_v10 }
 0x94b   : > { %vm2370_vm9 = vmor %vm2368_vm8, %vm2369_vm7 }
 0x94c   : > { %v2364_v0 = vmul.f32 %v7096_v10, %v2363_v58 }
 0x94e   : > { %v2365_v23 = vmul.f32 0.5, %v2364_v0 }
 0x950   : > { %v2366_v44 = vsub.f32 1.5, %v2365_v23 }
 0x952   : > { %v2367_v63 = vmul.f32 %v7096_v10, %v2366_v44  ;;  %v6503_v44 = vld [vmem:[%s7497_s29 + $0x40] sm:$0xff] }
 0x954   : > { %v2371_v2 = vsel %vm2370_vm9, %v7096_v10, %v2367_v63 }
 0x955   : > { %v2379_v45 = vmul.f32 %v2371_v2, %v8148_v39  ;;  %v2447_v38 = vpop.f32.mrf.mxu1 }
 0x956   : > { %v8238_v15 = vadd.f32 %v6992_v42, %v2447_v38 }
 0x957   : > { %v2388_v34 = vmul.f32 %v8154_v49, %v2379_v45 }
 0x959   : > { %v8217_v3 = vadd.f32 %v8158_v43, %v2388_v34  ;;  %v6504_v34 = vld [vmem:[%s7497_s29 + $0x48] sm:$0xff] }
 0x95b   : > { %6577 = vmatmul.msk.f32.gmra.mxu1 %vm999_vm0, %v8217_v3 }
 0x95d   : > { %v2450_v51 = vpop.f32.mrf.mxu1 }
 0x95e   : > { %v8226_v49 = vadd.f32 %v6992_v42, %v2450_v51 }
 0x994   : > { %v2453_v12 = vpop.f32.mrf.mxu1 }
 0x995   : > { %v8244_v7 = vadd.f32 %v6992_v42, %v2453_v12 }
 0x99c   : > { %v2456_v9 = vpop.f32.mrf.mxu1 }
 0x99d   : > { %v8234_v1 = vadd.f32 %v6992_v42, %v2456_v9  ;;  %v6505_v9 = vld [vmem:[%s7497_s29 + $0x50] sm:$0xff] }
 0x9a4   : > { %v2459_v27 = vpop.f32.mrf.mxu1 }
 0x9a5   : > { %v2460_v54 = vadd.f32 %v6992_v42, %v2459_v27 }
 0x9ac   : > { %v2462_v21 = vpop.f32.mrf.mxu1 }
 0x9ad   : > { %v8222_v4 = vadd.f32 %v6992_v42, %v2462_v21 }
 0x9af   : > { %2489 = vrot.lane.b32.xlu1 %v8222_v4, %s7454_s0 }
 0x9b4   : > { %v2465_v39 = vpop.f32.mrf.mxu1 }
 0x9b5   : > { %v8228_v43 = vadd.f32 %v6992_v42, %v2465_v39  ;;  %v6506_v39 = vld [vmem:[%s7497_s29 + $0x58] sm:$0xff] }
 0x9b7   : > { %2491 = vrot.lane.b32.xlu2 %v8228_v43, %s7454_s0  ;;  %2481 = vrot.lane.b32.xlu1 %v8226_v49, %s7454_s0 }
 0x9bf   : > { %2485 = vrot.lane.b32.xlu2 %v8234_v1, %s7454_s0 }
 0x9c7   : > { %2479 = vrot.lane.b32.xlu2 %v8238_v15, %s7454_s0 }
 0x9d8   : > { %v2468_v61 = vpop.f32.mrf.mxu1 }
 0x9d9   : > { %v2469_v19 = vadd.f32 %v6992_v42, %v2468_v61 }
 0x9db   : > { %2493 = vrot.lane.b32.xlu0 %v2469_v19, %s7454_s0 }
 0x9e3   : > { %2487 = vrot.lane.b32.xlu0 %v2460_v54, %s7454_s0 }
 0x9eb   : > { %2483 = vrot.lane.b32.xlu0 %v8244_v7, %s7454_s0 }
 0xa11   : > { %v2492_v59 = vpop.permute.xlu2 %2491 }
 0xa19   : > { %v2486_v10 = vpop.permute.xlu2 %2485 }
 0xa21   : > { %v2490_v32 = vpop.permute.xlu1 %2489  ;;  %v2480_v23 = vpop.permute.xlu2 %2479 }
 0xa29   : > { %v2482_v0 = vpop.permute.xlu1 %2481 }
 0xa4d   : > { %v2494_v48 = vpop.permute.xlu0 %2493 }
 0xa4e   : > { %6578 = vmatpush.xpose.msk.msrb.mxu3 %vm999_vm0, %v2494_v48 }
 0xa52   : > { %6579 = vmatpush.xpose.msk.msrb.mxu3 %vm999_vm0, %v2492_v59 }
 0xa55   : > { %v2488_v62 = vpop.permute.xlu0 %2487 }
 0xa56   : > { %6580 = vmatpush.xpose.msk.msrb.mxu3 %vm999_vm0, %v2490_v32  ;;  %v6507_v32 = vld [vmem:[%s7497_s29 + $0x60] sm:$0xff] }
 0xa5a   : > { %6581 = vmatpush.xpose.msk.msrb.mxu3 %vm999_vm0, %v2488_v62 }
 0xa5d   : > { %v2484_v58 = vpop.permute.xlu0 %2483 }
 0xa5e   : > { %6582 = vmatpush.xpose.msk.msrb.mxu3 %vm999_vm0, %v2486_v10 }
 0xa62   : > { %6583 = vmatpush.xpose.msk.msrb.mxu3 %vm999_vm0, %v2484_v58 }
 0xa66   : > { %6584 = vmatpush.xpose.msk.msrb.mxu3 %vm999_vm0, %v2482_v0 }
 0xa6a   : > { %6585 = vmatpush.xpose.msk.msrb.mxu3 %vm999_vm0, %v2480_v23  ;;  %v6931_v23 = vpack.i.bf16 %v2460_v54, %v8222_v4 }
 0xa6d   : > { %6586 = vmatmul.msk.f32.vlgmr.msrb.gmra.mxu3 %vm999_vm0, %v8238_v15 }
 0xa75   : > { %6587 = vmatmul.msk.f32.gmra.mxu3 %vm999_vm0, %v8226_v49 }
 0xa7d   : > { %6588 = vmatmul.msk.f32.gmra.mxu3 %vm999_vm0, %v8244_v7 }
 0xa85   : > { %6589 = vmatmul.msk.f32.gmra.mxu3 %vm999_vm0, %v8234_v1 }
 0xa8d   : > { %6590 = vmatmul.msk.f32.gmra.mxu3 %vm999_vm0, %v2460_v54 }
 0xa95   : > { %6591 = vmatmul.msk.f32.gmra.mxu3 %vm999_vm0, %v8222_v4 }
 0xa9d   : > { %6592 = vmatmul.msk.f32.gmra.mxu3 %vm999_vm0, %v8228_v43 }
 0xaa5   : > { %6593 = vmatmul.msk.f32.gmra.mxu3 %vm999_vm0, %v2469_v19 }
 0xaf0   : > { %v2544_v63 = vpop.f32.mrf.mxu3 }
 0xaf1   : > { %v2545_v2 = vadd.f32 %v6503_v44, %v2544_v63  ;;  %v6509_v44 = vld [vmem:[%s7497_s29 + $0x70] sm:$0xff]  ;;  %v6926_v63 = vpack.i.bf16 %v8228_v43, %v2469_v19  ;;  %v6941_v19 = vpack.i.bf16 %v8238_v15, %v8226_v49 }
 0xaf3   : > { %v2568_v45 = vsel %vm1517_vm1, %v2545_v2, -inf }
 0xaf4   : > { %2569 = vmax.xlane.f32.xlu0 %v2568_v45 }
 0xaf8   : > { %v2547_v38 = vpop.f32.mrf.mxu3 }
 0xaf9   : > { %v2548_v51 = vadd.f32 %v6504_v34, %v2547_v38 }
 0xafb   : > { %v2571_v12 = vsel %vm1517_vm1, %v2548_v51, -inf }
 0xafc   : > { %2572 = vmax.xlane.f32.xlu1 %v2571_v12  ;;  %v6508_v12 = vld [vmem:[%s7497_s29 + $0x68] sm:$0xff] }
 0xb00   : > { %v2550_v27 = vpop.f32.mrf.mxu3 }
 0xb01   : > { %v8275_v42 = vadd.f32 %v6505_v9, %v2550_v27  ;;  %v6510_v27 = vld [vmem:[%s7497_s29 + $0x78] sm:$0xff] }
 0xb03   : > { %v2574_v21 = vsel %vm1517_vm1, %v8275_v42, -inf }
 0xb04   : > { %2575 = vmax.xlane.f32.xlu2 %v2574_v21 }
 0xb08   : > { %v2553_v61 = vpop.f32.mrf.mxu3 }
 0xb09   : > { %v2554_v48 = vadd.f32 %v6506_v39, %v2553_v61 }
 0xb0b   : > { %v2577_v59 = vsel %vm1517_vm1, %v2554_v48, -inf }
 0xb0c   : > { %2578 = vmax.xlane.f32.xlu0 %v2577_v59 }
 0xb10   : > { %v2556_v62 = vpop.f32.mrf.mxu3 }
 0xb11   : > { %v2557_v10 = vadd.f32 %v6507_v32, %v2556_v62 }
 0xb13   : > { %v2580_v58 = vsel %vm1517_vm1, %v2557_v10, -inf }
 0xb14   : > { %2581 = vmax.xlane.f32.xlu1 %v2580_v58 }
 0xb18   : > { %v2559_v0 = vpop.f32.mrf.mxu3 }
 0xb19   : > { %v8290_v9 = vadd.f32 %v6508_v12, %v2559_v0 }
 0xb1b   : > { %v2583_v4 = vsel %vm1517_vm1, %v8290_v9, -inf }
 0xb1c   : > { %6932 = vrot.lane.b32.xlu2 %v6931_v23, %s7456_s16 }
 0xb20   : > { %v2562_v45 = vpop.f32.mrf.mxu3  ;;  %6927 = vrot.lane.b32.xlu0 %v6926_v63, %s7456_s16 }
 0xb21   : > { %v2563_v34 = vadd.f32 %v6509_v44, %v2562_v45 }
 0xb23   : > { %v2586_v38 = vsel %vm1517_vm1, %v2563_v34, -inf }
 0xb24   : > { %2587 = vmax.xlane.f32.xlu1 %v2586_v38 }
 0xb28   : > { %v2565_v21 = vpop.f32.mrf.mxu3 }
 0xb29   : > { %v8295_v54 = vadd.f32 %v6510_v27, %v2565_v21 }
 0xb2b   : > { %v2589_v43 = vsel %vm1517_vm1, %v8295_v54, -inf }
 0xb45   : > { %2584 = vmax.xlane.f32.xlu2 %v2583_v4 }
 0xb4a   : > { %2590 = vmax.xlane.f32.xlu0 %v2589_v43 }
 0xb5d   : > { %6942 = vrot.lane.b32.xlu2 %v6941_v19, %s7456_s16 }
 0xb67   : > { %v2570_v39 = vpop.xlane.xlu0 %2569 }
 0xb68   : > { %v2592_v61 = vsub.f32 %v2545_v2, %v2570_v39 }
 0xb6a   : > { %v2600_v59 = vmul.f32 1.442695, %v2592_v61 }
 0xb6c   : > { %7097 = vpow2.f32 %v2600_v59 }
 0xb6f   : > { %v2573_v32 = vpop.xlane.xlu1 %2572 }
 0xb70   : > { %v2593_v0 = vsub.f32 %v2548_v51, %v2573_v32 }
 0xb72   : > { %v8302_v62 = vpop.eup %7097  ;;  %v2602_v23 = vmul.f32 1.442695, %v2593_v0 }
 0xb73   : > { %v2616_v58 = vsel %vm1517_vm1, %v8302_v62, 0.0 }
 0xb74   : > { %2617 = vadd.xlane.f32.xlu1 %v2616_v58  ;;  %7099 = vpow2.f32 %v2602_v23 }
 0xb77   : > { %v2576_v27 = vpop.xlane.xlu2 %2575 }
 0xb7a   : > { %v8306_v45 = vpop.eup %7099 }
 0xb7b   : > { %v2619_v15 = vsel %vm1517_vm1, %v8306_v45, 0.0 }
 0xb7f   : > { %v2579_v44 = vpop.xlane.xlu0 %2578  ;;  %v6933_v39 = vpop.permute.xlu2 %6932 }
 0xb80   : > { %v2595_v63 = vsub.f32 %v2554_v48, %v2579_v44  ;;  %v6936_v48 = vpack.i.bf16 %v8244_v7, %v8234_v1  ;;  %v6934_v59 = vunpack.i.l.bf16 %v6933_v39  ;;  %v6935_v1 = vunpack.i.h.bf16 %v6933_v39 }
 0xb81   : > { %v2594_v44 = vsub.f32 %v8275_v42, %v2576_v27 }
 0xb82   : > { %v2606_v49 = vmul.f32 1.442695, %v2595_v63 }
 0xb83   : > { %v2604_v63 = vmul.f32 1.442695, %v2594_v44 }
 0xb84   : > { %7101 = vpow2.f32 %v2606_v49 }
 0xb86   : > { %2620 = vadd.xlane.f32.xlu2 %v2619_v15 }
 0xb87   : > { %v2582_v2 = vpop.xlane.xlu1 %2581 }
 0xb88   : > { %v2596_v38 = vsub.f32 %v2557_v10, %v2582_v2 }
 0xb8a   : > { %v8310_v12 = vpop.eup %7101  ;;  %v2608_v21 = vmul.f32 1.442695, %v2596_v38 }
 0xb8b   : > { %v2625_v51 = vsel %vm1517_vm1, %v8310_v12, 0.0 }
 0xb8c   : > { %7103 = vpow2.f32 %v2608_v21  ;;  %2626 = vadd.xlane.f32.xlu0 %v2625_v51 }
 0xb8d   : > { %6937 = vrot.lane.b32.xlu1 %v6936_v48, %s7456_s16 }
 0xb92   : > { %v8317_v4 = vpop.eup %7103  ;;  %v6928_v43 = vpop.permute.xlu0 %6927 }
 0xb93   : > { %v6929_v19 = vunpack.i.l.bf16 %v6928_v43  ;;  %v2628_v10 = vsel %vm1517_vm1, %v8317_v4, 0.0  ;;  %v6930_v61 = vunpack.i.h.bf16 %v6928_v43 }
 0xb94   : > { %2629 = vadd.xlane.f32.xlu0 %v2628_v10 }
 0xb95   : > { %2712 = vmatpush.msra.mxu0 %v6929_v19 }
 0xb97   : > { %v2588_v32 = vpop.xlane.xlu1 %2587  ;;  %2713 = vmatpush.msra.mxu0 %v6930_v61 }
 0xb98   : > { %v2598_v58 = vsub.f32 %v2563_v34, %v2588_v32 }
 0xb99   : > { %2714 = vmatpush.msra.mxu0 %v6934_v59 }
 0xb9a   : > { %v2612_v7 = vmul.f32 1.442695, %v2598_v58 }
 0xb9b   : > { %2715 = vmatpush.msra.mxu0 %v6935_v1 }
 0xb9c   : > { %7105 = vpow2.f32 %v2612_v7 }
 0xb9d   : > { %7107 = vpow2.f32 %v2604_v63 }
 0xba2   : > { %v8321_v0 = vpop.eup %7105 }
 0xba3   : > { %v2634_v23 = vsel %vm1517_vm1, %v8321_v0, 0.0  ;;  %v7108_v49 = vpop.eup %7107 }
 0xba4   : > { %2635 = vadd.xlane.f32.xlu2 %v2634_v23  ;;  %v2622_v15 = vsel %vm1517_vm1, %v7108_v49, 0.0 }
 0xbb7   : > { %2623 = vadd.xlane.f32.xlu1 %v2622_v15 }
 0xbb8   : > { %v2585_v34 = vpop.xlane.xlu2 %2584 }
 0xbb9   : > { %v2597_v2 = vsub.f32 %v8290_v9, %v2585_v34 }
 0xbbb   : > { %v2610_v38 = vmul.f32 1.442695, %v2597_v2 }
 0xbbd   : > { %7109 = vpow2.f32 %v2610_v38  ;;  %v2591_v21 = vpop.xlane.xlu0 %2590 }
 0xbbe   : > { %v2599_v51 = vsub.f32 %v8295_v54, %v2591_v21 }
 0xbc0   : > { %v2614_v48 = vmul.f32 1.442695, %v2599_v51  ;;  %v6943_v39 = vpop.permute.xlu2 %6942  ;;  %v6603_v51 = vld [vmem:[%s7537_s12 + $0x28] sm:$0xff] }
 0xbc1   : > { %v6944_v54 = vunpack.i.l.bf16 %v6943_v39  ;;  %v6945_v1 = vunpack.i.h.bf16 %v6943_v39  ;;  %2791 = vmatpush.msrb.mxu2 %v6603_v51 }
 0xbc2   : > { %7111 = vpow2.f32 %v2614_v48 }
 0xbc3   : > { %v7110_v43 = vpop.eup %7109 }
 0xbc4   : > { %v2631_v19 = vsel %vm1517_vm1, %v7110_v43, 0.0 }
 0xbc5   : > { %2632 = vadd.xlane.f32.xlu0 %v2631_v19 }
 0xbc8   : > { %v7112_v42 = vpop.eup %7111 }
 0xbc9   : > { %v2637_v27 = vsel %vm1517_vm1, %v7112_v42, 0.0 }
 0xbca   : > { %2638 = vadd.xlane.f32.xlu1 %v2637_v27 }
 0xbe7   : > { %v2618_v10 = vpop.xlane.xlu1 %2617 }
 0xbe8   : > { %7113 = vrcp.f32 %v2618_v10 }
 0xbee   : > { %v7114_v58 = vpop.eup %7113 }
 0xbef   : > { %v2648_v7 = vmul.f32 %v7114_v58, %v8302_v62 }
 0xbf9   : > { %v2621_v32 = vpop.xlane.xlu2 %2620 }
 0xbfa   : > { %7115 = vrcp.f32 %v2621_v32 }
 0xbff   : > { %v6938_v61 = vpop.permute.xlu1 %6937  ;;  %v2627_v15 = vpop.xlane.xlu0 %2626 }
 0xc00   : > { %v6939_v9 = vunpack.i.l.bf16 %v6938_v61  ;;  %v6940_v59 = vunpack.i.h.bf16 %v6938_v61  ;;  %v7116_v23 = vpop.eup %7115 }
 0xc01   : > { %v2649_v44 = vmul.f32 %v7116_v23, %v8306_v45  ;;  %v6993_v23 = vld [vmem:[%s7542_s20 + $0x2] ss:$0 sm:$0xff] }
 0xc02   : > { %2716 = vmatpush.msra.mxu0 %v6939_v9 }
 0xc04   : > { %2717 = vmatpush.msra.mxu0 %v6940_v59 }
 0xc06   : > { %2718 = vmatpush.msra.mxu0 %v6944_v54 }
 0xc07   : > { %v2630_v38 = vpop.xlane.xlu0 %2629 }
 0xc08   : > { %2719 = vmatpush.msra.mxu0 %v6945_v1 }
 0xc09   : > { %6594 = vmatmul.msk.f32.vlgmr.msra.gmra.mxu0 %vm1517_vm1, %v2648_v7 }
 0xc11   : > { %6595 = vmatmul.msk.f32.gmra.mxu0 %vm1517_vm1, %v2649_v44 }
 0xc2a   : > { %v2624_v63 = vpop.xlane.xlu1 %2623 }
 0xc2b   : > { %7117 = vrcp.f32 %v2624_v63 }
 0xc2c   : > { %7119 = vrcp.f32 %v2627_v15 }
 0xc2d   : > { %7121 = vrcp.f32 %v2630_v38 }
 0xc31   : > { %v7118_v34 = vpop.eup %7117 }
 0xc32   : > { %v2650_v2 = vmul.f32 %v7118_v34, %v7108_v49  ;;  %v7120_v21 = vpop.eup %7119  ;;  %v2636_v49 = vpop.xlane.xlu2 %2635 }
 0xc33   : > { %v2651_v62 = vmul.f32 %v7120_v21, %v8310_v12  ;;  %v7122_v48 = vpop.eup %7121 }
 0xc34   : > { %6596 = vmatmul.msk.f32.gmra.mxu0 %vm1517_vm1, %v2650_v2  ;;  %v2652_v19 = vmul.f32 %v7122_v48, %v8317_v4  ;;  %v6602_v4 = vld [vmem:[%s7537_s12 + $0x20] sm:$0xff] }
 0xc35   : > { %2792 = vmatpush.msrb.mxu2 %v6602_v4 }
 0xc38   : > { %v2633_v45 = vpop.xlane.xlu0 %2632 }
 0xc39   : > { %7123 = vrcp.f32 %v2633_v45 }
 0xc3a   : > { %7125 = vrcp.f32 %v2636_v49 }
 0xc3c   : > { %6597 = vmatmul.msk.f32.gmra.mxu0 %vm1517_vm1, %v2651_v62 }
 0xc3d   : > { %v2639_v39 = vpop.xlane.xlu1 %2638 }
 0xc3e   : > { %7127 = vrcp.f32 %v2639_v39 }
 0xc3f   : > { %v7124_v27 = vpop.eup %7123 }
 0xc40   : > { %v2653_v10 = vmul.f32 %v7124_v27, %v7110_v43  ;;  %v7126_v12 = vpop.eup %7125 }
 0xc41   : > { %v2654_v61 = vmul.f32 %v7126_v12, %v8321_v0 }
 0xc44   : > { %6598 = vmatmul.msk.f32.gmra.mxu0 %vm1517_vm1, %v2652_v19  ;;  %v7128_v9 = vpop.eup %7127 }
 0xc45   : > { %v2655_v59 = vmul.f32 %v7128_v9, %v7112_v42 }
 0xc4c   : > { %6599 = vmatmul.msk.f32.gmra.mxu0 %vm1517_vm1, %v2653_v10 }
 0xc54   : > { %6600 = vmatmul.msk.f32.gmra.mxu0 %vm1517_vm1, %v2654_v61 }
 0xc5c   : > { %6601 = vmatmul.msk.f32.gmra.mxu0 %vm1517_vm1, %v2655_v59 }
 0xc86   : > { %v2721_v32 = vpop.f32.mrf.mxu0 }
 0xc87   : > { %6605 = vmatmul.msk.f32.vlgmr.msrb.gmra.mxu2 %vm999_vm0, %v2721_v32 }
 0xc8e   : > { %v2724_v43 = vpop.f32.mrf.mxu0 }
 0xc8f   : > { %6606 = vmatmul.msk.f32.gmra.mxu2 %vm999_vm0, %v2724_v43 }
 0xcb1   : > { %v2727_v58 = vpop.f32.mrf.mxu0 }
 0xcb2   : > { %6607 = vmatmul.msk.f32.gmra.mxu2 %vm999_vm0, %v2727_v58 }
 0xcb9   : > { %v2730_v54 = vpop.f32.mrf.mxu0 }
 0xcba   : > { %6608 = vmatmul.msk.f32.gmra.mxu2 %vm999_vm0, %v2730_v54 }
 0xcc1   : > { %v2733_v0 = vpop.f32.mrf.mxu0 }
 0xcc2   : > { %6609 = vmatmul.msk.f32.gmra.mxu2 %vm999_vm0, %v2733_v0 }
 0xcc9   : > { %v2736_v42 = vpop.f32.mrf.mxu0 }
 0xcca   : > { %6610 = vmatmul.msk.f32.gmra.mxu2 %vm999_vm0, %v2736_v42 }
 0xcd1   : > { %v2739_v1 = vpop.f32.mrf.mxu0 }
 0xcd2   : > { %6611 = vmatmul.msk.f32.gmra.mxu2 %vm999_vm0, %v2739_v1 }
 0xcd9   : > { %v2742_v7 = vpop.f32.mrf.mxu0 }
 0xcda   : > { %6612 = vmatmul.msk.f32.gmra.mxu2 %vm999_vm0, %v2742_v7 }
 0xd0a   : > { %v2794_v44 = vpop.f32.mrf.mxu2 }
 0xd0b   : > { %v2795_v63 = vadd.f32 %v6993_v23, %v2794_v44 }
 0xd0d   : > { %v2820_v15 = vadd.f32 %v2795_v63, %v8162_v60 }
 0xd0f   : > { %v2828_v34 = vsel %vm999_vm0, %v2820_v15, 0.0 }
 0xd10   : > { %2829 = vadd.xlane.f32.xlu0 %v2828_v34 }
 0xd12   : > { %v2797_v2 = vpop.f32.mrf.mxu2 }
 0xd13   : > { %v2798_v38 = vadd.f32 %v6993_v23, %v2797_v2 }
 0xd15   : > { %v2821_v21 = vadd.f32 %v2798_v38, %v8169_v8 }
 0xd17   : > { %v2831_v62 = vsel %vm999_vm0, %v2821_v21, 0.0 }
 0xd18   : > { %2832 = vadd.xlane.f32.xlu2 %v2831_v62 }
 0xd35   : > { %v2800_v51 = vpop.f32.mrf.mxu2 }
 0xd36   : > { %v2801_v45 = vadd.f32 %v6993_v23, %v2800_v51 }
 0xd38   : > { %v2822_v48 = vadd.f32 %v2801_v45, %v8180_v56 }
 0xd3a   : > { %v2834_v19 = vsel %vm999_vm0, %v2822_v48, 0.0 }
 0xd3b   : > { %2835 = vadd.xlane.f32.xlu1 %v2834_v19  ;;  %v6615_v19 = vld [vmem:[%s7552_s4 + $0x28] sm:$0xff] }
 0xd3c   : > { %3068 = vmatpush.msra.mxu1 %v6615_v19 }
 0xd3d   : > { %v2803_v49 = vpop.f32.mrf.mxu2 }
 0xd3e   : > { %v2804_v27 = vadd.f32 %v6993_v23, %v2803_v49 }
 0xd40   : > { %v2823_v60 = vadd.f32 %v2804_v27, %v8188_v37 }
 0xd42   : > { %v2837_v10 = vsel %vm999_vm0, %v2823_v60, 0.0 }
 0xd43   : > { %2838 = vadd.xlane.f32.xlu0 %v2837_v10 }
 0xd45   : > { %v2806_v39 = vpop.f32.mrf.mxu2 }
 0xd46   : > { %v2807_v12 = vadd.f32 %v6993_v23, %v2806_v39 }
 0xd48   : > { %v2824_v8 = vadd.f32 %v2807_v12, %v8195_v46 }
 0xd4a   : > { %v2840_v61 = vsel %vm999_vm0, %v2824_v8, 0.0 }
 0xd4b   : > { %2841 = vadd.xlane.f32.xlu2 %v2840_v61 }
 0xd4d   : > { %v2809_v9 = vpop.f32.mrf.mxu2 }
 0xd4e   : > { %v2810_v59 = vadd.f32 %v6993_v23, %v2809_v9 }
 0xd50   : > { %v2825_v56 = vadd.f32 %v2810_v59, %v8202_v55 }
 0xd52   : > { %v2843_v4 = vsel %vm999_vm0, %v2825_v56, 0.0 }
 0xd53   : > { %2844 = vadd.xlane.f32.xlu1 %v2843_v4 }
 0xd55   : > { %v2812_v32 = vpop.f32.mrf.mxu2 }
 0xd56   : > { %v2813_v43 = vadd.f32 %v6993_v23, %v2812_v32 }
 0xd58   : > { %v2826_v37 = vadd.f32 %v2813_v43, %v8209_v29 }
 0xd5a   : > { %v2846_v58 = vsel %vm999_vm0, %v2826_v37, 0.0 }
 0xd5b   : > { %2847 = vadd.xlane.f32.xlu2 %v2846_v58 }
 0xd5d   : > { %v2815_v42 = vpop.f32.mrf.mxu2 }
 0xd5e   : > { %v2816_v55 = vadd.f32 %v6993_v23, %v2815_v42 }
 0xd60   : > { %v2827_v34 = vadd.f32 %v2816_v55, %v8217_v3  ;;  %v6614_v55 = vld [vmem:[%s7552_s4 + $0x20] sm:$0xff] }
 0xd61   : > { %3069 = vmatpush.msra.mxu1 %v6614_v55 }
 0xd62   : > { %v2849_v38 = vsel %vm999_vm0, %v2827_v34, 0.0 }
 0xd83   : > { %v2830_v54 = vpop.xlane.xlu0 %2829 }
 0xd84   : > { %v2852_v46 = vmul.f32 %v2830_v54, %v7930_v11 }
 0xd86   : > { %v8370_v0 = vsub.f32 %v2820_v15, %v2852_v46 }
 0xd88   : > { %v2868_v1 = vmul.f32 %v8370_v0, %v8370_v0 }
 0xd8a   : > { %v2876_v7 = vsel %vm999_vm0, %v2868_v1, 0.0 }
 0xd8b   : > { %v2833_v44 = vpop.xlane.xlu2 %2832  ;;  %2877 = vadd.xlane.f32.xlu0 %v2876_v7 }
 0xd8c   : > { %v2853_v29 = vmul.f32 %v2833_v44, %v7930_v11 }
 0xd8e   : > { %v8376_v63 = vsub.f32 %v2821_v21, %v2853_v29 }
 0xd90   : > { %v2869_v15 = vmul.f32 %v8376_v63, %v8376_v63 }
 0xd92   : > { %v2879_v2 = vsel %vm999_vm0, %v2869_v15, 0.0 }
 0xd93   : > { %2880 = vadd.xlane.f32.xlu1 %v2879_v2  ;;  %2850 = vadd.xlane.f32.xlu0 %v2849_v38 }
 0xdae   : > { %v2836_v23 = vpop.xlane.xlu1 %2835 }
 0xdaf   : > { %v2854_v62 = vmul.f32 %v2836_v23, %v7930_v11 }
 0xdb1   : > { %v8384_v51 = vsub.f32 %v2822_v48, %v2854_v62 }
 0xdb3   : > { %v2870_v21 = vmul.f32 %v8384_v51, %v8384_v51 }
 0xdb5   : > { %v2882_v45 = vsel %vm999_vm0, %v2870_v21, 0.0 }
 0xdb6   : > { %v2839_v3 = vpop.xlane.xlu0 %2838  ;;  %2883 = vadd.xlane.f32.xlu2 %v2882_v45 }
 0xdb7   : > { %v2855_v49 = vmul.f32 %v2839_v3, %v7930_v11 }
 0xdb9   : > { %v8391_v27 = vsub.f32 %v2823_v60, %v2855_v49 }
 0xdbb   : > { %v2871_v10 = vmul.f32 %v8391_v27, %v8391_v27 }
 0xdbd   : > { %v2885_v39 = vsel %vm999_vm0, %v2871_v10, 0.0  ;;  %v8424_v10 = vld [vmem:[%s9859_s23 + $0x8] sm:$0xf] }
 0xdbe   : > { %v2842_v48 = vpop.xlane.xlu2 %2841  ;;  %2886 = vadd.xlane.f32.xlu1 %v2885_v39 }
 0xdbf   : > { %v2856_v12 = vmul.f32 %v2842_v48, %v7930_v11 }
 0xdc1   : > { %v8397_v61 = vsub.f32 %v2824_v8, %v2856_v12 }
 0xdc3   : > { %v2872_v9 = vmul.f32 %v8397_v61, %v8397_v61 }
 0xdc5   : > { %v2888_v59 = vsel %vm999_vm0, %v2872_v9, 0.0 }
 0xdc6   : > { %v2845_v4 = vpop.xlane.xlu1 %2844  ;;  %2889 = vadd.xlane.f32.xlu0 %v2888_v59 }
 0xdc7   : > { %v2857_v60 = vmul.f32 %v2845_v4, %v7930_v11 }
 0xdc9   : > { %v8403_v32 = vsub.f32 %v2825_v56, %v2857_v60 }
 0xdcb   : > { %v2873_v43 = vmul.f32 %v8403_v32, %v8403_v32 }
 0xdcd   : > { %v2891_v58 = vsel %vm999_vm0, %v2873_v43, 0.0  ;;  %v8431_v43 = vperm.slane %v8424_v10, 1 }
 0xdce   : > { %2892 = vadd.xlane.f32.xlu2 %v2891_v58  ;;  %v2848_v8 = vpop.xlane.xlu2 %2847 }
 0xdcf   : > { %v2858_v54 = vmul.f32 %v2848_v8, %v7930_v11 }
 0xdd1   : > { %v8409_v46 = vsub.f32 %v2826_v37, %v2858_v54 }
 0xdd3   : > { %v2874_v42 = vmul.f32 %v8409_v46, %v8409_v46 }
 0xdd5   : > { %v2894_v1 = vsel %vm999_vm0, %v2874_v42, 0.0 }
 0xdd6   : > { %2895 = vadd.xlane.f32.xlu1 %v2894_v1 }
 0xdfe   : > { %v2878_v56 = vpop.xlane.xlu0 %2877 }
 0xdff   : > { %v2900_v7 = vmul.f32 %v2878_v56, %v7930_v11 }
 0xe01   : > { %v2908_v44 = vadd.f32 1e-05, %v2900_v7 }
 0xe03   : > { %7129 = vrsqrt.f32 %v2908_v44  ;;  %vm2922_vm11 = vweird.f32 %v2908_v44 }
 0xe06   : > { %v2881_v29 = vpop.xlane.xlu1 %2880  ;;  %v2851_v15 = vpop.xlane.xlu0 %2850 }
 0xe07   : > { %v2901_v2 = vmul.f32 %v2881_v29, %v7930_v11  ;;  %v2859_v37 = vmul.f32 %v2851_v15, %v7930_v11 }
 0xe09   : > { %v7130_v38 = vpop.eup %7129  ;;  %v2909_v23 = vadd.f32 1e-05, %v2901_v2  ;;  %v8418_v62 = vsub.f32 %v2827_v34, %v2859_v37  ;;  %v8427_v34 = vperm.slane %v8424_v10, 0 }
 0xe0a   : > { %v2917_v21 = vmul.f32 %v7130_v38, %v2908_v44  ;;  %vm2923_vm10 = vweird.f32 %v7130_v38 }
 0xe0b   : > { %7131 = vrsqrt.f32 %v2909_v23  ;;  %v2875_v45 = vmul.f32 %v8418_v62, %v8418_v62  ;;  %vm2924_vm12 = vmor %vm2922_vm11, %vm2923_vm10  ;;  %vm2932_vm14 = vweird.f32 %v2909_v23 }
 0xe0c   : > { %v2918_v3 = vmul.f32 %v7130_v38, %v2917_v21 }
 0xe0d   : > { %v2897_v19 = vsel %vm999_vm0, %v2875_v45, 0.0 }
 0xe0e   : > { %v2919_v49 = vmul.f32 0.5, %v2918_v3  ;;  %2898 = vadd.xlane.f32.xlu0 %v2897_v19 }
 0xe10   : > { %v2920_v39 = vsub.f32 1.5, %v2919_v49 }
 0xe11   : > { %v7132_v48 = vpop.eup %7131 }
 0xe12   : > { %v2921_v12 = vmul.f32 %v7130_v38, %v2920_v39  ;;  %v2927_v9 = vmul.f32 %v7132_v48, %v2909_v23  ;;  %vm2933_vm13 = vweird.f32 %v7132_v48 }
 0xe13   : > { %vm2934_vm15 = vmor %vm2932_vm14, %vm2933_vm13 }
 0xe14   : > { %v2925_v59 = vsel %vm2924_vm12, %v7130_v38, %v2921_v12  ;;  %v2928_v4 = vmul.f32 %v7132_v48, %v2927_v9 }
 0xe15   : > { %v2996_v60 = vmul.f32 %v2925_v59, %v8370_v0 }
 0xe16   : > { %v2929_v58 = vmul.f32 0.5, %v2928_v4 }
 0xe17   : > { %v3005_v8 = vmul.f32 %v8427_v34, %v2996_v60 }
 0xe18   : > { %v2930_v54 = vsub.f32 1.5, %v2929_v58 }
 0xe19   : > { %v8435_v42 = vadd.f32 %v8431_v43, %v3005_v8 }
 0xe1a   : > { %v2931_v1 = vmul.f32 %v7132_v48, %v2930_v54 }
 0xe1b   : > { %6617 = vmatmul.msk.f32.vlgmr.msra.gmra.mxu1 %vm999_vm0, %v8435_v42 }
 0xe1c   : > { %v2935_v55 = vsel %vm2934_vm15, %v7132_v48, %v2931_v1 }
 0xe1d   : > { %v2997_v0 = vmul.f32 %v2935_v55, %v8376_v63 }
 0xe1f   : > { %v3006_v56 = vmul.f32 %v8427_v34, %v2997_v0 }
 0xe21   : > { %v8442_v7 = vadd.f32 %v8431_v43, %v3006_v56 }
 0xe23   : > { %6618 = vmatmul.msk.f32.gmra.mxu1 %vm999_vm0, %v8442_v7 }
 0xe29   : > { %v2884_v44 = vpop.xlane.xlu2 %2883 }
 0xe2a   : > { %v2902_v29 = vmul.f32 %v2884_v44, %v7930_v11 }
 0xe2c   : > { %v2910_v15 = vadd.f32 1e-05, %v2902_v29 }
 0xe2e   : > { %7133 = vrsqrt.f32 %v2910_v15  ;;  %vm2942_vm3 = vweird.f32 %v2910_v15 }
 0xe31   : > { %v2887_v2 = vpop.xlane.xlu1 %2886 }
 0xe32   : > { %v2903_v37 = vmul.f32 %v2887_v2, %v7930_v11 }
 0xe34   : > { %v7134_v38 = vpop.eup %7133  ;;  %v2911_v23 = vadd.f32 1e-05, %v2903_v37 }
 0xe35   : > { %v2937_v21 = vmul.f32 %v7134_v38, %v2910_v15  ;;  %vm2943_vm2 = vweird.f32 %v7134_v38 }
 0xe36   : > { %7135 = vrsqrt.f32 %v2911_v23  ;;  %vm2944_vm4 = vmor %vm2942_vm3, %vm2943_vm2  ;;  %vm2952_vm6 = vweird.f32 %v2911_v23 }
 0xe37   : > { %v2938_v63 = vmul.f32 %v7134_v38, %v2937_v21 }
 0xe39   : > { %v2939_v45 = vmul.f32 0.5, %v2938_v63  ;;  %v2890_v3 = vpop.xlane.xlu0 %2889 }
 0xe3a   : > { %v2904_v19 = vmul.f32 %v2890_v3, %v7930_v11 }
 0xe3b   : > { %v2940_v49 = vsub.f32 1.5, %v2939_v45 }
 0xe3c   : > { %v7136_v39 = vpop.eup %7135  ;;  %v2912_v48 = vadd.f32 1e-05, %v2904_v19 }
 0xe3d   : > { %v2941_v12 = vmul.f32 %v7134_v38, %v2940_v49  ;;  %v2947_v9 = vmul.f32 %v7136_v39, %v2911_v23  ;;  %vm2953_vm5 = vweird.f32 %v7136_v39 }
 0xe3e   : > { %7137 = vrsqrt.f32 %v2912_v48  ;;  %vm2954_vm7 = vmor %vm2952_vm6, %vm2953_vm5  ;;  %vm2962_vm9 = vweird.f32 %v2912_v48 }
 0xe3f   : > { %v2948_v59 = vmul.f32 %v7136_v39, %v2947_v9  ;;  %v2945_v4 = vsel %vm2944_vm4, %v7134_v38, %v2941_v12 }
 0xe40   : > { %v2998_v60 = vmul.f32 %v2945_v4, %v8384_v51 }
 0xe41   : > { %v2949_v58 = vmul.f32 0.5, %v2948_v59  ;;  %v2893_v8 = vpop.xlane.xlu2 %2892 }
 0xe42   : > { %v2905_v54 = vmul.f32 %v2893_v8, %v7930_v11  ;;  %v3007_v1 = vmul.f32 %v8427_v34, %v2998_v60 }
 0xe43   : > { %v2950_v55 = vsub.f32 1.5, %v2949_v58 }
 0xe44   : > { %v7138_v0 = vpop.eup %7137  ;;  %v2913_v56 = vadd.f32 1e-05, %v2905_v54  ;;  %v8453_v44 = vadd.f32 %v8431_v43, %v3007_v1 }
 0xe45   : > { %v2951_v29 = vmul.f32 %v7136_v39, %v2950_v55  ;;  %v2957_v15 = vmul.f32 %v7138_v0, %v2912_v48  ;;  %vm2963_vm8 = vweird.f32 %v7138_v0 }
 0xe46   : > { %7139 = vrsqrt.f32 %v2913_v56  ;;  %6619 = vmatmul.msk.f32.gmra.mxu1 %vm999_vm0, %v8453_v44  ;;  %vm2964_vm10 = vmor %vm2962_vm9, %vm2963_vm8  ;;  %vm2972_vm12 = vweird.f32 %v2913_v56 }
 0xe47   : > { %v2958_v51 = vmul.f32 %v7138_v0, %v2957_v15  ;;  %v2955_v2 = vsel %vm2954_vm7, %v7136_v39, %v2951_v29 }
 0xe48   : > { %v2999_v37 = vmul.f32 %v2955_v2, %v8391_v27 }
 0xe49   : > { %v2959_v38 = vmul.f32 0.5, %v2958_v51  ;;  %v2896_v21 = vpop.xlane.xlu1 %2895 }
 0xe4a   : > { %v2906_v63 = vmul.f32 %v2896_v21, %v7930_v11  ;;  %v3008_v45 = vmul.f32 %v8427_v34, %v2999_v37 }
 0xe4b   : > { %v2960_v3 = vsub.f32 1.5, %v2959_v38 }
 0xe4c   : > { %v7140_v19 = vpop.eup %7139  ;;  %v2914_v23 = vadd.f32 1e-05, %v2906_v63  ;;  %v8461_v49 = vadd.f32 %v8431_v43, %v3008_v45  ;;  %v6632_v63 = vld [vmem:[%s9860_s26 + $0xb8] sm:$0xff] }
 0xe4d   : > { %v2961_v12 = vmul.f32 %v7138_v0, %v2960_v3  ;;  %v2967_v9 = vmul.f32 %v7140_v19, %v2913_v56  ;;  %vm2973_vm11 = vweird.f32 %v7140_v19  ;;  %3213 = vmatpush.msra.mxu3 %v6632_v63 }
 0xe4e   : > { %7141 = vrsqrt.f32 %v2914_v23  ;;  %6620 = vmatmul.msk.f32.gmra.mxu1 %vm999_vm0, %v8461_v49  ;;  %vm2974_vm13 = vmor %vm2972_vm12, %vm2973_vm11  ;;  %vm2982_vm15 = vweird.f32 %v2914_v23 }
 0xe4f   : > { %v2968_v27 = vmul.f32 %v7140_v19, %v2967_v9  ;;  %v2965_v39 = vsel %vm2964_vm10, %v7138_v0, %v2961_v12  ;;  %v6629_v12 = vld [vmem:[%s9860_s26 + $0xa0] sm:$0xff]  ;;  %v6628_v9 = vld [vmem:[%s9860_s26 + $0x98] sm:$0xff] }
 0xe50   : > { %v3000_v59 = vmul.f32 %v2965_v39, %v8397_v61  ;;  %v6626_v39 = vld [vmem:[%s9860_s26 + $0x88] sm:$0xff] }
 0xe51   : > { %v2969_v4 = vmul.f32 0.5, %v2968_v27  ;;  %v6627_v27 = vld [vmem:[%s9860_s26 + $0x90] sm:$0xff] }
 0xe52   : > { %v3009_v60 = vmul.f32 %v8427_v34, %v3000_v59 }
 0xe53   : > { %v2970_v58 = vsub.f32 1.5, %v2969_v4 }
 0xe54   : > { %v7142_v8 = vpop.eup %7141  ;;  %v8468_v54 = vadd.f32 %v8431_v43, %v3009_v60  ;;  %v6625_v60 = vld [vmem:[%s9860_s26 + $0x80] sm:$0xff] }
 0xe55   : > { %v2971_v48 = vmul.f32 %v7140_v19, %v2970_v58  ;;  %v2977_v1 = vmul.f32 %v7142_v8, %v2914_v23  ;;  %vm2983_vm14 = vweird.f32 %v7142_v8 }
 0xe56   : > { %6621 = vmatmul.msk.f32.gmra.mxu1 %vm999_vm0, %v8468_v54  ;;  %vm2984_vm2 = vmor %vm2982_vm15, %vm2983_vm14 }
 0xe57   : > { %v2975_v55 = vsel %vm2974_vm13, %v7140_v19, %v2971_v48  ;;  %v2978_v0 = vmul.f32 %v7142_v8, %v2977_v1  ;;  %v6631_v19 = vld [vmem:[%s9860_s26 + $0xb0] sm:$0xff] }
 0xe58   : > { %v3001_v61 = vmul.f32 %v2975_v55, %v8403_v32  ;;  %3214 = vmatpush.msra.mxu3 %v6631_v19  ;;  %v8496_v55 = vld [vmem:[%s9861_s1 + $0x2] ss:$0 sm:$0xff] }
 0xe59   : > { %v2979_v29 = vmul.f32 0.5, %v2978_v0 }
 0xe5a   : > { %v3010_v15 = vmul.f32 %v8427_v34, %v3001_v61 }
 0xe5b   : > { %v2980_v51 = vsub.f32 1.5, %v2979_v29 }
 0xe5c   : > { %v8475_v2 = vadd.f32 %v8431_v43, %v3010_v15 }
 0xe5d   : > { %v2981_v56 = vmul.f32 %v7142_v8, %v2980_v51 }
 0xe5e   : > { %6622 = vmatmul.msk.f32.gmra.mxu1 %vm999_vm0, %v8475_v2 }
 0xe5f   : > { %v2985_v37 = vsel %vm2984_vm2, %v7142_v8, %v2981_v56 }
 0xe60   : > { %v3002_v32 = vmul.f32 %v2985_v37, %v8409_v46  ;;  %v6630_v46 = vld [vmem:[%s9860_s26 + $0xa8] sm:$0xff] }
 0xe61   : > { %3215 = vmatpush.msra.mxu3 %v6630_v46 }
 0xe62   : > { %v3011_v38 = vmul.f32 %v8427_v34, %v3002_v32 }
 0xe63   : > { %3216 = vmatpush.msra.mxu3 %v6629_v12 }
 0xe64   : > { %v8482_v21 = vadd.f32 %v8431_v43, %v3011_v38 }
 0xe65   : > { %3217 = vmatpush.msra.mxu3 %v6628_v9 }
 0xe66   : > { %6623 = vmatmul.msk.f32.gmra.mxu1 %vm999_vm0, %v8482_v21 }
 0xe67   : > { %3218 = vmatpush.msra.mxu3 %v6627_v27 }
 0xe69   : > { %3219 = vmatpush.msra.mxu3 %v6626_v39 }
 0xe6b   : > { %3220 = vmatpush.msra.mxu3 %v6625_v60 }
 0xe81   : > { %v2899_v45 = vpop.xlane.xlu0 %2898 }
 0xe82   : > { %v2907_v3 = vmul.f32 %v2899_v45, %v7930_v11 }
 0xe84   : > { %v2915_v23 = vadd.f32 1e-05, %v2907_v3 }
 0xe86   : > { %7143 = vrsqrt.f32 %v2915_v23  ;;  %vm2992_vm4 = vweird.f32 %v2915_v23 }
 0xe8c   : > { %v7144_v59 = vpop.eup %7143 }
 0xe8d   : > { %v2987_v4 = vmul.f32 %v7144_v59, %v2915_v23  ;;  %vm2993_vm3 = vweird.f32 %v7144_v59 }
 0xe8e   : > { %vm2994_vm5 = vmor %vm2992_vm4, %vm2993_vm3 }
 0xe8f   : > { %v2988_v58 = vmul.f32 %v7144_v59, %v2987_v4 }
 0xe91   : > { %v2989_v8 = vmul.f32 0.5, %v2988_v58 }
 0xe93   : > { %v2990_v48 = vsub.f32 1.5, %v2989_v8 }
 0xe95   : > { %v2991_v1 = vmul.f32 %v7144_v59, %v2990_v48 }
 0xe97   : > { %v2995_v0 = vsel %vm2994_vm5, %v7144_v59, %v2991_v1 }
 0xe98   : > { %v3003_v61 = vmul.f32 %v2995_v0, %v8418_v62  ;;  %v3071_v29 = vpop.f32.mrf.mxu1 }
 0xe99   : > { %v3072_v15 = vadd.f32 %v8496_v55, %v3071_v29 }
 0xe9a   : > { %v3012_v51 = vmul.f32 %v8427_v34, %v3003_v61 }
 0xe9b   : > { %v3103_v56 = vmul.f32 0.044715, %v3072_v15  ;;  %v3095_v27 = vmul.f32 0.5, %v3072_v15 }
 0xe9c   : > { %v8502_v37 = vadd.f32 %v8431_v43, %v3012_v51 }
 0xe9d   : > { %v3111_v32 = vmul.f32 %v3103_v56, %v3072_v15 }
 0xe9e   : > { %6624 = vmatmul.msk.f32.gmra.mxu1 %vm999_vm0, %v8502_v37 }
 0xe9f   : > { %v3119_v38 = vmul.f32 %v3111_v32, %v3072_v15 }
 0xea0   : > { %v3074_v63 = vpop.f32.mrf.mxu1 }
 0xea1   : > { %v3127_v45 = vadd.f32 %v3119_v38, %v3072_v15  ;;  %v3075_v3 = vadd.f32 %v8496_v55, %v3074_v63 }
 0xea3   : > { %v3135_v19 = vmul.f32 0.7978846, %v3127_v45  ;;  %v3104_v62 = vmul.f32 0.044715, %v3075_v3  ;;  %v3096_v4 = vmul.f32 0.5, %v3075_v3 }
 0xea5   : > { %7145 = vtanh.f32 %v3135_v19  ;;  %v3112_v23 = vmul.f32 %v3104_v62, %v3075_v3 }
 0xea7   : > { %v3120_v46 = vmul.f32 %v3112_v23, %v3075_v3 }
 0xea9   : > { %v3128_v12 = vadd.f32 %v3120_v46, %v3075_v3 }
 0xeab   : > { %v7146_v34 = vpop.eup %7145  ;;  %v3136_v9 = vmul.f32 0.7978846, %v3128_v12 }
 0xeac   : > { %v3151_v43 = vadd.f32 1.0, %v7146_v34 }
 0xead   : > { %7147 = vtanh.f32 %v3136_v9 }
 0xeae   : > { %v3159_v39 = vmul.f32 %v3151_v43, %v3095_v27 }
 0xeb0   : > { %6634 = vmatmul.msk.f32.vlgmr.msra.gmra.mxu3 %vm1517_vm1, %v3159_v39 }
 0xeb3   : > { %v7148_v59 = vpop.eup %7147 }
 0xeb4   : > { %v3152_v60 = vadd.f32 1.0, %v7148_v59 }
 0xeb6   : > { %v3160_v58 = vmul.f32 %v3152_v60, %v3096_v4 }
 0xeb8   : > { %6635 = vmatmul.msk.f32.gmra.mxu3 %vm1517_vm1, %v3160_v58 }
 0xec3   : > { %v3077_v8 = vpop.f32.mrf.mxu1 }
 0xec4   : > { %v3078_v48 = vadd.f32 %v8496_v55, %v3077_v8 }
 0xec6   : > { %v3105_v1 = vmul.f32 0.044715, %v3078_v48  ;;  %v3097_v12 = vmul.f32 0.5, %v3078_v48 }
 0xec8   : > { %v3113_v0 = vmul.f32 %v3105_v1, %v3078_v48 }
 0xeca   : > { %v3121_v61 = vmul.f32 %v3113_v0, %v3078_v48 }
 0xecb   : > { %v3080_v29 = vpop.f32.mrf.mxu1 }
 0xecc   : > { %v3081_v15 = vadd.f32 %v8496_v55, %v3080_v29  ;;  %v3129_v51 = vadd.f32 %v3121_v61, %v3078_v48 }
 0xece   : > { %v3106_v56 = vmul.f32 0.044715, %v3081_v15  ;;  %v3137_v32 = vmul.f32 0.7978846, %v3129_v51  ;;  %v3098_v1 = vmul.f32 0.5, %v3081_v15 }
 0xed0   : > { %v3114_v38 = vmul.f32 %v3106_v56, %v3081_v15  ;;  %7149 = vtanh.f32 %v3137_v32 }
 0xed2   : > { %v3122_v63 = vmul.f32 %v3114_v38, %v3081_v15 }
 0xed3   : > { %v3083_v45 = vpop.f32.mrf.mxu1 }
 0xed4   : > { %v3084_v3 = vadd.f32 %v8496_v55, %v3083_v45  ;;  %v3130_v19 = vadd.f32 %v3122_v63, %v3081_v15 }
 0xed6   : > { %v7150_v62 = vpop.eup %7149  ;;  %v3107_v23 = vmul.f32 0.044715, %v3084_v3  ;;  %v3138_v46 = vmul.f32 0.7978846, %v3130_v19  ;;  %v3099_v19 = vmul.f32 0.5, %v3084_v3 }
 0xed7   : > { %v3153_v34 = vadd.f32 1.0, %v7150_v62 }
 0xed8   : > { %v3115_v9 = vmul.f32 %v3107_v23, %v3084_v3  ;;  %7151 = vtanh.f32 %v3138_v46 }
 0xed9   : > { %v3161_v27 = vmul.f32 %v3153_v34, %v3097_v12 }
 0xeda   : > { %v3123_v43 = vmul.f32 %v3115_v9, %v3084_v3 }
 0xedb   : > { %v3086_v39 = vpop.f32.mrf.mxu1  ;;  %6636 = vmatmul.msk.f32.gmra.mxu3 %vm1517_vm1, %v3161_v27 }
 0xedc   : > { %v3087_v59 = vadd.f32 %v8496_v55, %v3086_v39  ;;  %v3131_v4 = vadd.f32 %v3123_v43, %v3084_v3 }
 0xede   : > { %v7152_v60 = vpop.eup %7151  ;;  %v3108_v58 = vmul.f32 0.044715, %v3087_v59  ;;  %v3139_v8 = vmul.f32 0.7978846, %v3131_v4  ;;  %v3100_v27 = vmul.f32 0.5, %v3087_v59 }
 0xedf   : > { %v3154_v0 = vadd.f32 1.0, %v7152_v60 }
 0xee0   : > { %v3116_v61 = vmul.f32 %v3108_v58, %v3087_v59  ;;  %7153 = vtanh.f32 %v3139_v8 }
 0xee1   : > { %v3162_v29 = vmul.f32 %v3154_v0, %v3098_v1 }
 0xee2   : > { %v3124_v48 = vmul.f32 %v3116_v61, %v3087_v59 }
 0xee3   : > { %v3089_v51 = vpop.f32.mrf.mxu1  ;;  %6637 = vmatmul.msk.f32.gmra.mxu3 %vm1517_vm1, %v3162_v29 }
 0xee4   : > { %v3090_v56 = vadd.f32 %v8496_v55, %v3089_v51  ;;  %v3132_v32 = vadd.f32 %v3124_v48, %v3087_v59 }
 0xee6   : > { %v7154_v38 = vpop.eup %7153  ;;  %v3109_v63 = vmul.f32 0.044715, %v3090_v56  ;;  %v3140_v45 = vmul.f32 0.7978846, %v3132_v32  ;;  %v3101_v60 = vmul.f32 0.5, %v3090_v56 }
 0xee7   : > { %v3155_v62 = vadd.f32 1.0, %v7154_v38 }
 0xee8   : > { %v3117_v23 = vmul.f32 %v3109_v63, %v3090_v56  ;;  %7155 = vtanh.f32 %v3140_v45  ;;  %v6995_v63 = vld [vmem:[%s9862_s28 + $0x2] ss:$0 sm:$0xff] }
 0xee9   : > { %v3163_v46 = vmul.f32 %v3155_v62, %v3099_v19 }
 0xeea   : > { %v3125_v15 = vmul.f32 %v3117_v23, %v3090_v56 }
 0xeeb   : > { %6638 = vmatmul.msk.f32.gmra.mxu3 %vm1517_vm1, %v3163_v46 }
 0xeec   : > { %v3133_v12 = vadd.f32 %v3125_v15, %v3090_v56 }
 0xeee   : > { %v7156_v34 = vpop.eup %7155  ;;  %v3141_v9 = vmul.f32 0.7978846, %v3133_v12 }
 0xeef   : > { %v3156_v43 = vadd.f32 1.0, %v7156_v34 }
 0xef0   : > { %7157 = vtanh.f32 %v3141_v9 }
 0xef1   : > { %v3164_v39 = vmul.f32 %v3156_v43, %v3100_v27 }
 0xef3   : > { %6639 = vmatmul.msk.f32.gmra.mxu3 %vm1517_vm1, %v3164_v39 }
 0xef6   : > { %v7158_v4 = vpop.eup %7157 }
 0xef7   : > { %v3157_v3 = vadd.f32 1.0, %v7158_v4 }
 0xef9   : > { %v3165_v58 = vmul.f32 %v3157_v3, %v3101_v60 }
 0xefb   : > { %6640 = vmatmul.msk.f32.gmra.mxu3 %vm1517_vm1, %v3165_v58 }
 0xf1b   : > { %v3092_v8 = vpop.f32.mrf.mxu1 }
 0xf1c   : > { %v3093_v1 = vadd.f32 %v8496_v55, %v3092_v8 }
 0xf1e   : > { %v3110_v0 = vmul.f32 0.044715, %v3093_v1  ;;  %v3102_v32 = vmul.f32 0.5, %v3093_v1 }
 0xf20   : > { %v3118_v61 = vmul.f32 %v3110_v0, %v3093_v1 }
 0xf22   : > { %v3126_v29 = vmul.f32 %v3118_v61, %v3093_v1 }
 0xf24   : > { %v3134_v48 = vadd.f32 %v3126_v29, %v3093_v1 }
 0xf26   : > { %v3142_v59 = vmul.f32 0.7978846, %v3134_v48 }
 0xf28   : > { %7159 = vtanh.f32 %v3142_v59 }
 0xf2e   : > { %v7160_v51 = vpop.eup %7159 }
 0xf2f   : > { %v3158_v38 = vadd.f32 1.0, %v7160_v51 }
 0xf31   : > { %v3166_v45 = vmul.f32 %v3158_v38, %v3102_v32 }
 0xf33   : > { %v3222_v19 = vpop.f32.mrf.mxu3  ;;  %6641 = vmatmul.msk.f32.gmra.mxu3 %vm1517_vm1, %v3166_v45 }
 0xf34   : > { %v3223_v56 = vadd.f32 %v6995_v63, %v3222_v19 }
 0xf36   : > { %v3246_v62 = vadd.f32 %v3223_v56, %v8435_v42 }
 0xf38   : > { %v3254_v23 = vsel %vm999_vm0, %v3246_v62, 0.0 }
 0xf39   : > { %3255 = vadd.xlane.f32.xlu2 %v3254_v23 }
 0xf3b   : > { %v3225_v55 = vpop.f32.mrf.mxu3 }
 0xf3c   : > { %v3226_v46 = vadd.f32 %v6995_v63, %v3225_v55 }
 0xf3e   : > { %v3247_v15 = vadd.f32 %v3226_v46, %v8442_v7 }
 0xf40   : > { %v3257_v12 = vsel %vm999_vm0, %v3247_v15, 0.0 }
 0xf41   : > { %3258 = vadd.xlane.f32.xlu1 %v3257_v12 }
 0xf5e   : > { %v3228_v34 = vpop.f32.mrf.mxu3 }
 0xf5f   : > { %v3229_v9 = vadd.f32 %v6995_v63, %v3228_v34 }
 0xf61   : > { %v3248_v27 = vadd.f32 %v3229_v9, %v8453_v44 }
 0xf63   : > { %v3260_v43 = vsel %vm999_vm0, %v3248_v27, 0.0 }
 0xf64   : > { %3261 = vadd.xlane.f32.xlu0 %v3260_v43 }
 0xf66   : > { %v3231_v39 = vpop.f32.mrf.mxu3 }
 0xf67   : > { %v3232_v4 = vadd.f32 %v6995_v63, %v3231_v39 }
 0xf69   : > { %v3249_v42 = vadd.f32 %v3232_v4, %v8461_v49 }
 0xf6b   : > { %v3263_v60 = vsel %vm999_vm0, %v3249_v42, 0.0 }
 0xf6c   : > { %3264 = vadd.xlane.f32.xlu2 %v3263_v60 }
 0xf6e   : > { %v3234_v3 = vpop.f32.mrf.mxu3 }
 0xf6f   : > { %v3235_v58 = vadd.f32 %v6995_v63, %v3234_v3 }
 0xf71   : > { %v3250_v7 = vadd.f32 %v3235_v58, %v8468_v54 }
 0xf73   : > { %v3266_v8 = vsel %vm999_vm0, %v3250_v7, 0.0 }
 0xf74   : > { %3267 = vadd.xlane.f32.xlu1 %v3266_v8 }
 0xf76   : > { %v3237_v1 = vpop.f32.mrf.mxu3 }
 0xf77   : > { %v3238_v0 = vadd.f32 %v6995_v63, %v3237_v1 }
 0xf79   : > { %v3251_v44 = vadd.f32 %v3238_v0, %v8475_v2 }
 0xf7b   : > { %v3269_v61 = vsel %vm999_vm0, %v3251_v44, 0.0 }
 0xf7c   : > { %3270 = vadd.xlane.f32.xlu0 %v3269_v61 }
 0xf7e   : > { %v3240_v29 = vpop.f32.mrf.mxu3 }
 0xf7f   : > { %v3241_v48 = vadd.f32 %v6995_v63, %v3240_v29 }
 0xf81   : > { %v3252_v49 = vadd.f32 %v3241_v48, %v8482_v21 }
 0xf83   : > { %v3272_v59 = vsel %vm999_vm0, %v3252_v49, 0.0 }
 0xf84   : > { %3273 = vadd.xlane.f32.xlu1 %v3272_v59 }
 0xfac   : > { %v3256_v51 = vpop.xlane.xlu2 %3255 }
 0xfad   : > { %v3278_v54 = vmul.f32 %v3256_v51, %v7930_v11 }
 0xfaf   : > { %v8537_v32 = vsub.f32 %v3246_v62, %v3278_v54 }
 0xfb1   : > { %v3294_v38 = vmul.f32 %v8537_v32, %v8537_v32 }
 0xfb3   : > { %v3302_v2 = vsel %vm999_vm0, %v3294_v38, 0.0 }
 0xfb4   : > { %v3259_v45 = vpop.xlane.xlu1 %3258  ;;  %3303 = vadd.xlane.f32.xlu2 %v3302_v2 }
 0xfb5   : > { %v3279_v19 = vmul.f32 %v3259_v45, %v7930_v11  ;;  %v3449_v45 = vld [vmem:[%s9863_s2 + $0x8] sm:$0xff] }
 0xfb6   : > { %v3243_v56 = vpop.f32.mrf.mxu3  ;;  %3492 = vmatpush.msrb.mxu0 %v3449_v45 }
 0xfb7   : > { %v8543_v23 = vsub.f32 %v3247_v15, %v3279_v19  ;;  %v3244_v21 = vadd.f32 %v6995_v63, %v3243_v56 }
 0xfb9   : > { %v3295_v55 = vmul.f32 %v8543_v23, %v8543_v23  ;;  %v3253_v46 = vadd.f32 %v3244_v21, %v8502_v37 }
 0xfbb   : > { %v3305_v62 = vsel %vm999_vm0, %v3295_v55, 0.0  ;;  %v3275_v12 = vsel %vm999_vm0, %v3253_v46, 0.0 }
 0xfbc   : > { %3306 = vadd.xlane.f32.xlu0 %v3305_v62  ;;  %3276 = vadd.xlane.f32.xlu2 %v3275_v12 }
 0xfd7   : > { %v3262_v34 = vpop.xlane.xlu0 %3261 }
 0xfd8   : > { %v3280_v9 = vmul.f32 %v3262_v34, %v7930_v11 }
 0xfda   : > { %v8551_v43 = vsub.f32 %v3248_v27, %v3280_v9 }
 0xfdc   : > { %v3296_v15 = vmul.f32 %v8551_v43, %v8551_v43 }
 0xfde   : > { %v3308_v63 = vsel %vm999_vm0, %v3296_v15, 0.0 }
 0xfdf   : > { %v3265_v39 = vpop.xlane.xlu2 %3264  ;;  %3309 = vadd.xlane.f32.xlu1 %v3308_v63 }
 0xfe0   : > { %v3281_v37 = vmul.f32 %v3265_v39, %v7930_v11 }
 0xfe2   : > { %v8557_v4 = vsub.f32 %v3249_v42, %v3281_v37 }
 0xfe4   : > { %v3297_v60 = vmul.f32 %v8557_v4, %v8557_v4 }
 0xfe6   : > { %v3311_v3 = vsel %vm999_vm0, %v3297_v60, 0.0 }
 0xfe7   : > { %3312 = vadd.xlane.f32.xlu0 %v3311_v3  ;;  %v3268_v58 = vpop.xlane.xlu1 %3267 }
 0xfe8   : > { %v3282_v27 = vmul.f32 %v3268_v58, %v7930_v11 }
 0xfea   : > { %v8563_v8 = vsub.f32 %v3250_v7, %v3282_v27 }
 0xfec   : > { %v3298_v1 = vmul.f32 %v8563_v8, %v8563_v8 }
 0xfee   : > { %v3314_v0 = vsel %vm999_vm0, %v3298_v1, 0.0 }
 0xfef   : > { %3315 = vadd.xlane.f32.xlu2 %v3314_v0  ;;  %v3271_v42 = vpop.xlane.xlu0 %3270 }
 0xff0   : > { %v3283_v61 = vmul.f32 %v3271_v42, %v7930_v11 }
 0xff2   : > { %v8569_v29 = vsub.f32 %v3251_v44, %v3283_v61  ;;  %v3448_v44 = vld [vmem:[%s9863_s2] sm:$0xff] }
 0xff3   : > { %3493 = vmatpush.msrb.mxu0 %v3448_v44 }
 0xff4   : > { %v3299_v48 = vmul.f32 %v8569_v29, %v8569_v29 }
 0xff6   : > { %v3317_v59 = vsel %vm999_vm0, %v3299_v48, 0.0 }
 0xff7   : > { %v3274_v7 = vpop.xlane.xlu1 %3273  ;;  %3318 = vadd.xlane.f32.xlu1 %v3317_v59  ;;  %v8595_v59 = vperm.slane %v8424_v10, 3 }
 0xff8   : > { %v3284_v51 = vmul.f32 %v3274_v7, %v7930_v11 }
 0xffa   : > { %v8575_v54 = vsub.f32 %v3252_v49, %v3284_v51 }
 0xffc   : > { %v3300_v38 = vmul.f32 %v8575_v54, %v8575_v54 }
 0xffe   : > { %v3320_v2 = vsel %vm999_vm0, %v3300_v38, 0.0 }
 0xfff   : > { %3321 = vadd.xlane.f32.xlu0 %v3320_v2 }
0x1027   : > { %v3304_v19 = vpop.xlane.xlu2 %3303 }
0x1028   : > { %v3326_v56 = vmul.f32 %v3304_v19, %v7930_v11 }
0x102a   : > { %v3334_v21 = vadd.f32 1e-05, %v3326_v56 }
0x102c   : > { %7161 = vrsqrt.f32 %v3334_v21  ;;  %vm3348_vm7 = vweird.f32 %v3334_v21 }
0x102f   : > { %v3277_v55 = vpop.xlane.xlu2 %3276  ;;  %v3307_v62 = vpop.xlane.xlu0 %3306 }
0x1030   : > { %v3285_v49 = vmul.f32 %v3277_v55, %v7930_v11  ;;  %v3327_v12 = vmul.f32 %v3307_v62, %v7930_v11 }
0x1032   : > { %v7162_v34 = vpop.eup %7161  ;;  %v8585_v9 = vsub.f32 %v3253_v46, %v3285_v49  ;;  %v3335_v15 = vadd.f32 1e-05, %v3327_v12  ;;  %v8591_v46 = vperm.slane %v8424_v10, 2 }
0x1033   : > { %v3343_v63 = vmul.f32 %v7162_v34, %v3334_v21  ;;  %vm3349_vm6 = vweird.f32 %v7162_v34 }
0x1034   : > { %7163 = vrsqrt.f32 %v3335_v15  ;;  %v3301_v39 = vmul.f32 %v8585_v9, %v8585_v9  ;;  %vm3350_vm8 = vmor %vm3348_vm7, %vm3349_vm6  ;;  %vm3358_vm10 = vweird.f32 %v3335_v15 }
0x1035   : > { %v3344_v37 = vmul.f32 %v7162_v34, %v3343_v63 }
0x1036   : > { %v3323_v60 = vsel %vm999_vm0, %v3301_v39, 0.0 }
0x1037   : > { %v3345_v3 = vmul.f32 0.5, %v3344_v37  ;;  %3324 = vadd.xlane.f32.xlu2 %v3323_v60 }
0x1039   : > { %v3346_v58 = vsub.f32 1.5, %v3345_v3 }
0x103a   : > { %v7164_v27 = vpop.eup %7163 }
0x103b   : > { %v3347_v1 = vmul.f32 %v7162_v34, %v3346_v58  ;;  %v3353_v0 = vmul.f32 %v7164_v27, %v3335_v15  ;;  %vm3359_vm9 = vweird.f32 %v7164_v27 }
0x103c   : > { %vm3360_vm11 = vmor %vm3358_vm10, %vm3359_vm9 }
0x103d   : > { %v3351_v42 = vsel %vm3350_vm8, %v7162_v34, %v3347_v1  ;;  %v3354_v61 = vmul.f32 %v7164_v27, %v3353_v0 }
0x103e   : > { %v3422_v48 = vmul.f32 %v3351_v42, %v8537_v32 }
0x103f   : > { %v3355_v7 = vmul.f32 0.5, %v3354_v61 }
0x1040   : > { %v3431_v51 = vmul.f32 %v8591_v46, %v3422_v48 }
0x1041   : > { %v3356_v38 = vsub.f32 1.5, %v3355_v7 }
0x1042   : > { %v3440_v2 = vadd.f32 %v8595_v59, %v3431_v51 }
0x1043   : > { %v3357_v45 = vmul.f32 %v7164_v27, %v3356_v38 }
0x1044   : > { %6642 = vmatmul.msk.f32.vlgmr.msrb.gmra.mxu0 %vm999_vm0, %v3440_v2 }
0x1045   : > { %v3361_v44 = vsel %vm3360_vm11, %v7164_v27, %v3357_v45 }
0x1046   : > { %v3423_v19 = vmul.f32 %v3361_v44, %v8543_v23 }
0x1048   : > { %v3432_v32 = vmul.f32 %v8591_v46, %v3423_v19 }
0x104a   : > { %v3441_v10 = vadd.f32 %v8595_v59, %v3432_v32 }
0x104c   : > { %6643 = vmatmul.msk.f32.gmra.mxu0 %vm999_vm0, %v3441_v10 }
0x1052   : > { %v3310_v56 = vpop.xlane.xlu1 %3309 }
0x1053   : > { %v3328_v21 = vmul.f32 %v3310_v56, %v7930_v11 }
0x1055   : > { %v3336_v55 = vadd.f32 1e-05, %v3328_v21 }
0x1057   : > { %7165 = vrsqrt.f32 %v3336_v55  ;;  %vm3368_vm13 = vweird.f32 %v3336_v55 }
0x105a   : > { %v3313_v62 = vpop.xlane.xlu0 %3312 }
0x105b   : > { %v3329_v49 = vmul.f32 %v3313_v62, %v7930_v11 }
0x105d   : > { %v7166_v12 = vpop.eup %7165  ;;  %v3337_v34 = vadd.f32 1e-05, %v3329_v49 }
0x105e   : > { %v3363_v15 = vmul.f32 %v7166_v12, %v3336_v55  ;;  %vm3369_vm12 = vweird.f32 %v7166_v12 }
0x105f   : > { %7167 = vrsqrt.f32 %v3337_v34  ;;  %vm3370_vm14 = vmor %vm3368_vm13, %vm3369_vm12  ;;  %vm3378_vm2 = vweird.f32 %v3337_v34 }
0x1060   : > { %v3364_v63 = vmul.f32 %v7166_v12, %v3363_v15 }
0x1062   : > { %v3365_v23 = vmul.f32 0.5, %v3364_v63  ;;  %v3316_v39 = vpop.xlane.xlu2 %3315 }
0x1063   : > { %v3330_v37 = vmul.f32 %v3316_v39, %v7930_v11 }
0x1064   : > { %v3366_v60 = vsub.f32 1.5, %v3365_v23 }
0x1065   : > { %v7168_v3 = vpop.eup %7167  ;;  %v3338_v58 = vadd.f32 1e-05, %v3330_v37 }
0x1066   : > { %v3367_v27 = vmul.f32 %v7166_v12, %v3366_v60  ;;  %v3373_v1 = vmul.f32 %v7168_v3, %v3337_v34  ;;  %vm3379_vm15 = vweird.f32 %v7168_v3 }
0x1067   : > { %7169 = vrsqrt.f32 %v3338_v58  ;;  %vm3380_vm3 = vmor %vm3378_vm2, %vm3379_vm15  ;;  %vm3388_vm5 = vweird.f32 %v3338_v58 }
0x1068   : > { %v3374_v0 = vmul.f32 %v7168_v3, %v3373_v1  ;;  %v3371_v42 = vsel %vm3370_vm14, %v7166_v12, %v3367_v27 }
0x1069   : > { %v3424_v61 = vmul.f32 %v3371_v42, %v8551_v43 }
0x106a   : > { %v3375_v48 = vmul.f32 0.5, %v3374_v0  ;;  %v3319_v7 = vpop.xlane.xlu1 %3318 }
0x106b   : > { %v3331_v51 = vmul.f32 %v3319_v7, %v7930_v11  ;;  %v3433_v38 = vmul.f32 %v8591_v46, %v3424_v61 }
0x106c   : > { %v3376_v2 = vsub.f32 1.5, %v3375_v48 }
0x106d   : > { %v7170_v45 = vpop.eup %7169  ;;  %v3339_v44 = vadd.f32 1e-05, %v3331_v51  ;;  %v3442_v19 = vadd.f32 %v8595_v59, %v3433_v38 }
0x106e   : > { %v3377_v32 = vmul.f32 %v7168_v3, %v3376_v2  ;;  %v3383_v10 = vmul.f32 %v7170_v45, %v3338_v58  ;;  %vm3389_vm4 = vweird.f32 %v7170_v45 }
0x106f   : > { %7171 = vrsqrt.f32 %v3339_v44  ;;  %6644 = vmatmul.msk.f32.gmra.mxu0 %vm999_vm0, %v3442_v19  ;;  %vm3390_vm6 = vmor %vm3388_vm5, %vm3389_vm4  ;;  %vm3398_vm8 = vweird.f32 %v3339_v44 }
0x1070   : > { %v3381_v43 = vsel %vm3380_vm3, %v7168_v3, %v3377_v32  ;;  %v3384_v56 = vmul.f32 %v7170_v45, %v3383_v10 }
0x1071   : > { %v3425_v21 = vmul.f32 %v3381_v43, %v8557_v4 }
0x1072   : > { %v3385_v55 = vmul.f32 0.5, %v3384_v56  ;;  %v3322_v62 = vpop.xlane.xlu0 %3321 }
0x1073   : > { %v3332_v49 = vmul.f32 %v3322_v62, %v7930_v11  ;;  %v3434_v12 = vmul.f32 %v8591_v46, %v3425_v21 }
0x1074   : > { %v3386_v15 = vsub.f32 1.5, %v3385_v55 }
0x1075   : > { %v7172_v63 = vpop.eup %7171  ;;  %v3340_v23 = vadd.f32 1e-05, %v3332_v49  ;;  %v3443_v34 = vadd.f32 %v8595_v59, %v3434_v12 }
0x1076   : > { %v3387_v39 = vmul.f32 %v7170_v45, %v3386_v15  ;;  %v3393_v37 = vmul.f32 %v7172_v63, %v3339_v44  ;;  %vm3399_vm7 = vweird.f32 %v7172_v63 }
0x1077   : > { %7173 = vrsqrt.f32 %v3340_v23  ;;  %6645 = vmatmul.msk.f32.gmra.mxu0 %vm999_vm0, %v3443_v34  ;;  %vm3400_vm9 = vmor %vm3398_vm8, %vm3399_vm7  ;;  %vm3408_vm11 = vweird.f32 %v3340_v23  ;;  %v8634_v34 = vld [vmem:[%s9865_s15] ss:$0 sm:$0xff] }
0x1078   : > { %v3391_v4 = vsel %vm3390_vm6, %v7170_v45, %v3387_v39  ;;  %v3394_v60 = vmul.f32 %v7172_v63, %v3393_v37 }
0x1079   : > { %v3426_v3 = vmul.f32 %v3391_v4, %v8563_v8 }
0x107a   : > { %v3395_v27 = vmul.f32 0.5, %v3394_v60 }
0x107b   : > { %v3435_v1 = vmul.f32 %v8591_v46, %v3426_v3 }
0x107c   : > { %v3396_v0 = vsub.f32 1.5, %v3395_v27 }
0x107d   : > { %v7174_v42 = vpop.eup %7173  ;;  %v3444_v61 = vadd.f32 %v8595_v59, %v3435_v1 }
0x107e   : > { %v3397_v48 = vmul.f32 %v7172_v63, %v3396_v0  ;;  %v3403_v58 = vmul.f32 %v7174_v42, %v3340_v23  ;;  %vm3409_vm10 = vweird.f32 %v7174_v42  ;;  %v8631_v23 = vld [vmem:[%s9864_s24] ss:$0 sm:$0xff] }
0x107f   : > { %6646 = vmatmul.msk.f32.gmra.mxu0 %vm999_vm0, %v3444_v61  ;;  %vm3410_vm12 = vmor %vm3408_vm11, %vm3409_vm10  ;;  %v8639_v60 = vadd.f32 %v8631_v23, %v7900_v13 }
0x1080   : > { %v3401_v7 = vsel %vm3400_vm9, %v7172_v63, %v3397_v48  ;;  %v3404_v51 = vmul.f32 %v7174_v42, %v3403_v58  ;;  %v8656_v58 = vadd.f32 %v8631_v23, %v7908_v25 }
0x1081   : > { %v3427_v38 = vmul.f32 %v3401_v7, %v8569_v29 }
0x1082   : > { %v3405_v2 = vmul.f32 0.5, %v3404_v51 }
0x1083   : > { %v3436_v8 = vmul.f32 %v8591_v46, %v3427_v38  ;;  %v8662_v38 = vadd.f32 %v8631_v23, %v7910_v26 }
0x1084   : > { %v3406_v45 = vsub.f32 1.5, %v3405_v2 }
0x1085   : > { %v3445_v19 = vadd.f32 %v8595_v59, %v3436_v8 }
0x1086   : > { %v3407_v32 = vmul.f32 %v7174_v42, %v3406_v45 }
0x1087   : > { %6647 = vmatmul.msk.f32.gmra.mxu0 %vm999_vm0, %v3445_v19  ;;  %v3608_v19 = vld [vmem:[%s9866_s18 + $0x8] sm:$0xff] }
0x1088   : > { %v3411_v44 = vsel %vm3410_vm12, %v7174_v42, %v3407_v32  ;;  %3651 = vmatpush.msra.mxu2 %v3608_v19  ;;  %v8670_v32 = vadd.f32 %v8631_v23, %v7912_v57 }
0x1089   : > { %v3428_v10 = vmul.f32 %v3411_v44, %v8575_v54 }
0x108b   : > { %v3437_v43 = vmul.f32 %v8591_v46, %v3428_v10 }
0x108d   : > { %v3446_v29 = vadd.f32 %v8595_v59, %v3437_v43 }
0x108f   : > { %6648 = vmatmul.msk.f32.gmra.mxu0 %vm999_vm0, %v3446_v29  ;;  %v8677_v29 = vadd.f32 %v8631_v23, %v7914_v28 }
0x10aa   : > { %v3325_v56 = vpop.xlane.xlu2 %3324 }
0x10ab   : > { %v3333_v21 = vmul.f32 %v3325_v56, %v7930_v11 }
0x10ad   : > { %v3341_v55 = vadd.f32 1e-05, %v3333_v21 }
0x10af   : > { %7175 = vrsqrt.f32 %v3341_v55  ;;  %vm3418_vm14 = vweird.f32 %v3341_v55 }
0x10b5   : > { %v7176_v62 = vpop.eup %7175 }
0x10b6   : > { %v3413_v49 = vmul.f32 %v7176_v62, %v3341_v55  ;;  %vm3419_vm13 = vweird.f32 %v7176_v62 }
0x10b7   : > { %vm3420_vm15 = vmor %vm3418_vm14, %vm3419_vm13 }
0x10b8   : > { %v3414_v12 = vmul.f32 %v7176_v62, %v3413_v49 }
0x10ba   : > { %v3415_v15 = vmul.f32 0.5, %v3414_v12 }
0x10bc   : > { %v3416_v63 = vsub.f32 1.5, %v3415_v15 }
0x10be   : > { %v3417_v54 = vmul.f32 %v7176_v62, %v3416_v63  ;;  %v3607_v63 = vld [vmem:[%s9866_s18] sm:$0xff] }
0x10bf   : > { %3652 = vmatpush.msra.mxu2 %v3607_v63 }
0x10c0   : > { %v3421_v39 = vsel %vm3420_vm15, %v7176_v62, %v3417_v54  ;;  %v8684_v62 = vadd.f32 %v8631_v23, %v7916_v18 }
0x10c1   : > { %v3429_v37 = vmul.f32 %v3421_v39, %v8585_v9  ;;  %v3495_v4 = vpop.f32.mrf.mxu0  ;;  %v8648_v9 = vadd.f32 %v8631_v23, %v7904_v22 }
0x10c2   : > { %v3496_v3 = vadd.f32 %v8634_v34, %v3495_v4 }
0x10c3   : > { %v3438_v27 = vmul.f32 %v8591_v46, %v3429_v37 }
0x10c4   : > { %v3519_v1 = vadd.f32 %v3496_v3, %v8639_v60 }
0x10c5   : > { %v3447_v0 = vadd.f32 %v8595_v59, %v3438_v27 }
0x10c6   : > { %7177 = vtanh.f32 %v3519_v1  ;;  %v3527_v54 = vmul.f32 0.5, %v3519_v1 }
0x10c7   : > { %6649 = vmatmul.msk.f32.gmra.mxu0 %vm999_vm0, %v3447_v0 }
0x10c9   : > { %v3498_v42 = vpop.f32.mrf.mxu0 }
0x10ca   : > { %v3499_v61 = vadd.f32 %v8634_v34, %v3498_v42 }
0x10cc   : > { %v7178_v13 = vpop.eup %7177  ;;  %v3520_v48 = vadd.f32 %v3499_v61, %v8648_v9 }
0x10cd   : > { %3575 = vrot.lane.b32.xlu1 %v7178_v13, %s7454_s0 }
0x10ce   : > { %7179 = vtanh.f32 %v3520_v48  ;;  %v3528_v18 = vmul.f32 0.5, %v3520_v48 }
0x10d4   : > { %v7180_v46 = vpop.eup %7179 }
0x10d5   : > { %3577 = vrot.lane.b32.xlu0 %v7180_v46, %s7454_s0 }
0x10ec   : > { %v3501_v59 = vpop.f32.mrf.mxu0 }
0x10ed   : > { %v3502_v22 = vadd.f32 %v8634_v34, %v3501_v59 }
0x10ef   : > { %v3521_v7 = vadd.f32 %v3502_v22, %v8656_v58 }
0x10f1   : > { %7181 = vtanh.f32 %v3521_v7  ;;  %v3529_v0 = vmul.f32 0.5, %v3521_v7 }
0x10f4   : > { %v3504_v51 = vpop.f32.mrf.mxu0 }
0x10f5   : > { %v3505_v2 = vadd.f32 %v8634_v34, %v3504_v51 }
0x10f7   : > { %v7182_v8 = vpop.eup %7181  ;;  %v3522_v45 = vadd.f32 %v3505_v2, %v8662_v38 }
0x10f8   : > { %3579 = vrot.lane.b32.xlu2 %v7182_v8, %s7454_s0 }
0x10f9   : > { %7183 = vtanh.f32 %v3522_v45 }
0x10fc   : > { %v3507_v25 = vpop.f32.mrf.mxu0 }
0x10fd   : > { %v3508_v44 = vadd.f32 %v8634_v34, %v3507_v25 }
0x10ff   : > { %v7184_v10 = vpop.eup %7183  ;;  %v3523_v26 = vadd.f32 %v3508_v44, %v8670_v32 }
0x1100   : > { %3581 = vrot.lane.b32.xlu0 %v7184_v10, %s7454_s0 }
0x1101   : > { %7185 = vtanh.f32 %v3523_v26 }
0x1104   : > { %v3510_v43 = vpop.f32.mrf.mxu0 }
0x1105   : > { %v3511_v56 = vadd.f32 %v8634_v34, %v3510_v43 }
0x1107   : > { %v7186_v21 = vpop.eup %7185  ;;  %v3524_v57 = vadd.f32 %v3511_v56, %v8677_v29 }
0x1108   : > { %3583 = vrot.lane.b32.xlu1 %v7186_v21, %s7454_s0 }
0x1109   : > { %7187 = vtanh.f32 %v3524_v57  ;;  %v3532_v10 = vmul.f32 0.5, %v3524_v57 }
0x110c   : > { %v3513_v55 = vpop.f32.mrf.mxu0 }
0x110d   : > { %v3514_v49 = vadd.f32 %v8634_v34, %v3513_v55 }
0x110f   : > { %v7188_v12 = vpop.eup %7187  ;;  %v3525_v28 = vadd.f32 %v3514_v49, %v8684_v62 }
0x1110   : > { %3585 = vrot.lane.b32.xlu2 %v7188_v12, %s7454_s0 }
0x1111   : > { %7189 = vtanh.f32 %v3525_v28  ;;  %v3533_v12 = vmul.f32 0.5, %v3525_v28 }
0x1112   : > { %7191 = vtanh.f32 %v3527_v54 }
0x1113   : > { %7193 = vtanh.f32 %v3528_v18 }
0x1114   : > { %7195 = vtanh.f32 %v3529_v0  ;;  %v6659_v0 = vld [vmem:[%s7527_s30 + $0x18] sm:$0xff] }
0x1115   : > { %3752 = vmatpush.msrb.mxu1 %v6659_v0 }
0x1117   : > { %v7190_v15 = vpop.eup %7189 }
0x1118   : > { %3695 = vrot.lane.b32.xlu2 %v7670_v16, %s7454_s0  ;;  %3587 = vrot.lane.b32.xlu0 %v7190_v15, %s7454_s0  ;;  %v7192_v39 = vpop.eup %7191  ;;  %v8696_v16 = vadd.f32 %v8631_v23, %v7920_v33  ;;  %v3530_v33 = vmul.f32 0.5, %v3522_v45  ;;  %v3531_v23 = vmul.f32 0.5, %v3523_v26 }
0x1119   : > { %v3543_v37 = vadd.f32 1.0, %v7192_v39  ;;  %v7194_v3 = vpop.eup %7193 }
0x111a   : > { %v3544_v61 = vadd.f32 1.0, %v7194_v3  ;;  %v7196_v51 = vpop.eup %7195 }
0x111b   : > { %v3551_v4 = vmul.f32 0.5, %v3543_v37  ;;  %v3545_v7 = vadd.f32 1.0, %v7196_v51 }
0x111c   : > { %v3552_v48 = vmul.f32 0.5, %v3544_v61 }
0x111d   : > { %v3553_v8 = vmul.f32 0.5, %v3545_v7 }
0x113f   : > { %v3576_v27 = vpop.permute.xlu1 %3575 }
0x1140   : > { %v3599_v42 = vmul.f32 %v3576_v27, %v3551_v4 }
0x1142   : > { %6650 = vmatmul.msk.f32.vlgmr.msra.gmra.mxu2 %vm999_vm0, %v3599_v42  ;;  %v6658_v42 = vld [vmem:[%s7527_s30 + $0x10] sm:$0xff] }
0x1143   : > { %3753 = vmatpush.msrb.mxu1 %v6658_v42 }
0x1144   : > { %v3516_v13 = vpop.f32.mrf.mxu0 }
0x1145   : > { %v3517_v1 = vadd.f32 %v8634_v34, %v3516_v13 }
0x1147   : > { %v3526_v46 = vadd.f32 %v3517_v1, %v8696_v16  ;;  %v3578_v59 = vpop.permute.xlu0 %3577 }
0x1148   : > { %v3600_v22 = vmul.f32 %v3578_v59, %v3552_v48 }
0x1149   : > { %7197 = vtanh.f32 %v3526_v46  ;;  %v3534_v61 = vmul.f32 0.5, %v3526_v46 }
0x114a   : > { %6651 = vmatmul.msk.f32.gmra.mxu2 %vm999_vm0, %v3600_v22  ;;  %7199 = vtanh.f32 %v3530_v33  ;;  %v6997_v22 = vld [vmem:[%s9867_s22] ss:$0 sm:$0xff] }
0x114b   : > { %7201 = vtanh.f32 %v3531_v23 }
0x114c   : > { %7203 = vtanh.f32 %v3532_v10 }
0x114d   : > { %7205 = vtanh.f32 %v3533_v12 }
0x114e   : > { %7207 = vtanh.f32 %v3534_v61  ;;  %v6998_v61 = vld [vmem:[%s7532_s6 + $0x1] ss:$0 sm:$0xff] }
0x114f   : > { %v7198_v2 = vpop.eup %7197 }
0x1150   : > { %3589 = vrot.lane.b32.xlu1 %v7198_v2, %s7454_s0  ;;  %v7200_v34 = vpop.eup %7199 }
0x1151   : > { %v3546_v44 = vadd.f32 1.0, %v7200_v34  ;;  %v7202_v56 = vpop.eup %7201 }
0x1152   : > { %v3580_v19 = vpop.permute.xlu2 %3579  ;;  %v3547_v49 = vadd.f32 1.0, %v7202_v56  ;;  %v7204_v63 = vpop.eup %7203 }
0x1153   : > { %v3601_v25 = vmul.f32 %v3580_v19, %v3553_v8  ;;  %v3554_v43 = vmul.f32 0.5, %v3546_v44  ;;  %v3548_v26 = vadd.f32 1.0, %v7204_v63  ;;  %v7206_v39 = vpop.eup %7205 }
0x1154   : > { %v3555_v15 = vmul.f32 0.5, %v3547_v49  ;;  %v3549_v4 = vadd.f32 1.0, %v7206_v39  ;;  %v7208_v13 = vpop.eup %7207 }
0x1155   : > { %6652 = vmatmul.msk.f32.gmra.mxu2 %vm999_vm0, %v3601_v25  ;;  %v3556_v18 = vmul.f32 0.5, %v3548_v26  ;;  %v3550_v1 = vadd.f32 1.0, %v7208_v13 }
0x1156   : > { %v3557_v3 = vmul.f32 0.5, %v3549_v4 }
0x1157   : > { %v3558_v48 = vmul.f32 0.5, %v3550_v1 }
0x116a   : > { %v3586_v57 = vpop.permute.xlu2 %3585 }
0x116b   : > { %v3604_v37 = vmul.f32 %v3586_v57, %v3556_v18 }
0x1172   : > { %v3582_v21 = vpop.permute.xlu0 %3581  ;;  %v3696_v25 = vpop.permute.xlu2 %3695 }
0x1173   : > { %v3602_v55 = vmul.f32 %v3582_v21, %v3554_v43 }
0x1175   : > { %6653 = vmatmul.msk.f32.gmra.mxu2 %vm999_vm0, %v3602_v55 }
0x117a   : > { %v3584_v54 = vpop.permute.xlu1 %3583 }
0x117b   : > { %v3603_v45 = vmul.f32 %v3584_v54, %v3555_v15 }
0x117d   : > { %6654 = vmatmul.msk.f32.gmra.mxu2 %vm999_vm0, %v3603_v45 }
0x1185   : > { %6655 = vmatmul.msk.f32.gmra.mxu2 %vm999_vm0, %v3604_v37 }
0x118a   : > { %v3588_v28 = vpop.permute.xlu0 %3587 }
0x118b   : > { %v3605_v27 = vmul.f32 %v3588_v28, %v3557_v3 }
0x118d   : > { %6656 = vmatmul.msk.f32.gmra.mxu2 %vm999_vm0, %v3605_v27 }
0x11c2   : > { %v3590_v59 = vpop.permute.xlu1 %3589 }
0x11c3   : > { %v3606_v51 = vmul.f32 %v3590_v59, %v3558_v48 }
0x11c5   : > { %v3654_v7 = vpop.f32.mrf.mxu2  ;;  %6657 = vmatmul.msk.f32.gmra.mxu2 %vm999_vm0, %v3606_v51 }
0x11c6   : > { %v8711_v2 = vadd.f32 %v6997_v22, %v3654_v7 }
0x11c8   : > { %v3678_v8 = vadd.f32 %v8711_v2, %v1315_v17 }
0x11ca   : > { %v3686_v19 = vmul.f32 0.70710677, %v3678_v8 }
0x11cc   : > { %v8716_v33 = vadd.f32 %v3696_v25, %v3686_v19 }
0x11cd   : > { %v3657_v46 = vpop.f32.mrf.mxu2 }
0x11ce   : > { %v8718_v23 = vadd.f32 %v6997_v22, %v3657_v46  ;;  %6661 = vmatmul.msk.f32.vlgmr.msrb.gmra.mxu1 %vm999_vm0, %v8716_v33 }
0x11d0   : > { %v3679_v34 = vadd.f32 %v8718_v23, %v1316_v30 }
0x11d2   : > { %v3687_v44 = vmul.f32 0.70710677, %v3679_v34 }
0x11d4   : > { %v8725_v10 = vadd.f32 %v3696_v25, %v3687_v44 }
0x11d6   : > { %6662 = vmatmul.msk.f32.gmra.mxu1 %vm999_vm0, %v8725_v10 }
0x11d8   : > { %v3660_v6 = vpop.f32.mrf.mxu2 }
0x11d9   : > { %v8729_v17 = vadd.f32 %v6997_v22, %v3660_v6 }
0x11db   : > { %v3680_v43 = vadd.f32 %v8729_v17, %v1317_v40 }
0x11dd   : > { %v3688_v56 = vmul.f32 0.70710677, %v3680_v43 }
0x11df   : > { %v8734_v21 = vadd.f32 %v3696_v25, %v3688_v56 }
0x11e1   : > { %6663 = vmatmul.msk.f32.gmra.mxu1 %vm999_vm0, %v8734_v21 }
0x11f8   : > { %v3663_v24 = vpop.f32.mrf.mxu2 }
0x11f9   : > { %v8738_v30 = vadd.f32 %v6997_v22, %v3663_v24 }
0x11fb   : > { %v3681_v55 = vadd.f32 %v8738_v30, %v1318_v50 }
0x11fd   : > { %v3689_v49 = vmul.f32 0.70710677, %v3681_v55 }
0x11ff   : > { %v8743_v12 = vadd.f32 %v3696_v25, %v3689_v49  ;;  %v7401_v49 = vld [vmem:[%s7497_s29] sm:$0xff] }
0x1200   : > { %v3666_v15 = vpop.f32.mrf.mxu2 }
0x1201   : > { %v8745_v36 = vadd.f32 %v6997_v22, %v3666_v15  ;;  %6664 = vmatmul.msk.f32.gmra.mxu1 %vm999_vm0, %v8743_v12 }
0x1203   : > { %v3682_v40 = vadd.f32 %v8745_v36, %v1319_v53 }
0x1205   : > { %v3690_v63 = vmul.f32 0.70710677, %v3682_v40 }
0x1207   : > { %v8752_v54 = vadd.f32 %v3696_v25, %v3690_v63 }
0x1208   : > { %v3669_v45 = vpop.f32.mrf.mxu2 }
0x1209   : > { %v8754_v47 = vadd.f32 %v6997_v22, %v3669_v45  ;;  %6665 = vmatmul.msk.f32.gmra.mxu1 %vm999_vm0, %v8752_v54  ;;  %v7402_v45 = vld [vmem:[%s7497_s29 + $0x8] sm:$0xff] }
0x120b   : > { %v3683_v50 = vadd.f32 %v8754_v47, %v1320_v14 }
0x120d   : > { %v3691_v26 = vmul.f32 0.70710677, %v3683_v50 }
0x120f   : > { %v8761_v57 = vadd.f32 %v3696_v25, %v3691_v26 }
0x1210   : > { %v3672_v18 = vpop.f32.mrf.mxu2 }
0x1211   : > { %v8763_v52 = vadd.f32 %v6997_v22, %v3672_v18  ;;  %6666 = vmatmul.msk.f32.gmra.mxu1 %vm999_vm0, %v8761_v57 }
0x1213   : > { %v3684_v53 = vadd.f32 %v8763_v52, %v1321_v31 }
0x1215   : > { %v3692_v39 = vmul.f32 0.70710677, %v3684_v53  ;;  %v7403_v53 = vld [vmem:[%s7497_s29 + $0x10] sm:$0xff] }
0x1217   : > { %v8770_v37 = vadd.f32 %v3696_v25, %v3692_v39 }
0x1219   : > { %6667 = vmatmul.msk.f32.gmra.mxu1 %vm999_vm0, %v8770_v37 }
0x1248   : > { %v3675_v5 = vpop.f32.mrf.mxu2 }
0x1249   : > { %v8774_v14 = vadd.f32 %v6997_v22, %v3675_v5 }
0x124b   : > { %v3685_v4 = vadd.f32 %v8774_v14, %v1322_v41  ;;  %v3755_v20 = vpop.f32.mrf.mxu1 }
0x124c   : > { %v8797_v22 = vadd.f32 %v6998_v61, %v3755_v20 }
0x124d   : > { %v3693_v3 = vmul.f32 0.70710677, %v3685_v4 }
0x124f   : > { %v8779_v28 = vadd.f32 %v3696_v25, %v3693_v3 }
0x1251   : > { %6668 = vmatmul.msk.f32.gmra.mxu1 %vm999_vm0, %v8779_v28 }
0x1253   : > { %v3758_v31 = vpop.f32.mrf.mxu1 }
0x1254   : > { %v8803_v19 = vadd.f32 %v6998_v61, %v3758_v31  ;;  %v7404_v31 = vld [vmem:[%s7497_s29 + $0x20] sm:$0xff] }
0x125e   : > { %v3761_v27 = vpop.f32.mrf.mxu1 }
0x125f   : > { %v8785_v35 = vadd.f32 %v6998_v61, %v3761_v27 }
0x127e   : > { %v3764_v0 = vpop.f32.mrf.mxu1 }
0x127f   : > { %v8793_v59 = vadd.f32 %v6998_v61, %v3764_v0 }
0x1286   : > { %v3767_v42 = vpop.f32.mrf.mxu1 }
0x1287   : > { %v3768_v8 = vadd.f32 %v6998_v61, %v3767_v42 }
0x128e   : > { %v3770_v13 = vpop.f32.mrf.mxu1 }
0x128f   : > { %v3771_v1 = vadd.f32 %v6998_v61, %v3770_v13 }
0x1291   : > { %3797 = vrot.lane.b32.xlu2 %v3771_v1, %s7454_s0  ;;  %v6951_v3 = vpack.i.bf16 %v3768_v8, %v3771_v1 }
0x1296   : > { %v3773_v48 = vpop.f32.mrf.mxu1 }
0x1297   : > { %v8787_v41 = vadd.f32 %v6998_v61, %v3773_v48  ;;  %v7405_v48 = vld [vmem:[%s7497_s29 + $0x30] sm:$0xff] }
0x1299   : > { %3791 = vrot.lane.b32.xlu2 %v8785_v35, %s7454_s0  ;;  %3799 = vrot.lane.b32.xlu1 %v8787_v41, %s7454_s0 }
0x12a1   : > { %3793 = vrot.lane.b32.xlu1 %v8793_v59, %s7454_s0 }
0x12a9   : > { %3787 = vrot.lane.b32.xlu1 %v8797_v22, %s7454_s0 }
0x12ce   : > { %v3776_v51 = vpop.f32.mrf.mxu1 }
0x12cf   : > { %v3777_v7 = vadd.f32 %v6998_v61, %v3776_v51 }
0x12d1   : > { %3801 = vrot.lane.b32.xlu0 %v3777_v7, %s7454_s0  ;;  %v6946_v61 = vpack.i.bf16 %v8787_v41, %v3777_v7 }
0x12d9   : > { %3795 = vrot.lane.b32.xlu0 %v3768_v8, %s7454_s0 }
0x12e1   : > { %3789 = vrot.lane.b32.xlu0 %v8803_v19, %s7454_s0 }
0x12eb   : > { %v3798_v34 = vpop.permute.xlu2 %3797 }
0x12f3   : > { %v3792_v43 = vpop.permute.xlu2 %3791 }
0x130b   : > { %v3800_v46 = vpop.permute.xlu1 %3799 }
0x1313   : > { %v3794_v6 = vpop.permute.xlu1 %3793 }
0x131b   : > { %v3788_v24 = vpop.permute.xlu1 %3787 }
0x1343   : > { %v3802_v25 = vpop.permute.xlu0 %3801 }
0x1344   : > { %6669 = vmatpush.xpose.msk.msrb.mxu3 %vm999_vm0, %v3802_v25 }
0x1348   : > { %6670 = vmatpush.xpose.msk.msrb.mxu3 %vm999_vm0, %v3800_v46 }
0x134b   : > { %v3796_v44 = vpop.permute.xlu0 %3795 }
0x134c   : > { %6671 = vmatpush.xpose.msk.msrb.mxu3 %vm999_vm0, %v3798_v34  ;;  %v7407_v34 = vld [vmem:[%s7497_s29 + $0x28] sm:$0xff] }
0x1350   : > { %6672 = vmatpush.xpose.msk.msrb.mxu3 %vm999_vm0, %v3796_v44 }
0x1353   : > { %v3790_v56 = vpop.permute.xlu0 %3789 }
0x1354   : > { %6673 = vmatpush.xpose.msk.msrb.mxu3 %vm999_vm0, %v3794_v6 }
0x1358   : > { %6674 = vmatpush.xpose.msk.msrb.mxu3 %vm999_vm0, %v3792_v43 }
0x135c   : > { %6675 = vmatpush.xpose.msk.msrb.mxu3 %vm999_vm0, %v3790_v56 }
0x1360   : > { %6676 = vmatpush.xpose.msk.msrb.mxu3 %vm999_vm0, %v3788_v24  ;;  %v6961_v24 = vpack.i.bf16 %v8797_v22, %v8803_v19 }
0x1363   : > { %6677 = vmatmul.msk.f32.vlgmr.msrb.gmra.mxu3 %vm999_vm0, %v8797_v22 }
0x136b   : > { %6678 = vmatmul.msk.f32.gmra.mxu3 %vm999_vm0, %v8803_v19  ;;  %v6956_v19 = vpack.i.bf16 %v8785_v35, %v8793_v59 }
0x1373   : > { %6679 = vmatmul.msk.f32.gmra.mxu3 %vm999_vm0, %v8785_v35 }
0x137b   : > { %6680 = vmatmul.msk.f32.gmra.mxu3 %vm999_vm0, %v8793_v59 }
0x1383   : > { %6681 = vmatmul.msk.f32.gmra.mxu3 %vm999_vm0, %v3768_v8  ;;  %v7406_v8 = vld [vmem:[%s7497_s29 + $0x18] sm:$0xff] }
0x138b   : > { %6682 = vmatmul.msk.f32.gmra.mxu3 %vm999_vm0, %v3771_v1 }
0x1393   : > { %6683 = vmatmul.msk.f32.gmra.mxu3 %vm999_vm0, %v8787_v41 }
0x139b   : > { %6684 = vmatmul.msk.f32.gmra.mxu3 %vm999_vm0, %v3777_v7  ;;  %v7408_v7 = vld [vmem:[%s7497_s29 + $0x38] sm:$0xff] }
0x13e6   : > { %v3852_v55 = vpop.f32.mrf.mxu3 }
0x13e7   : > { %v3853_v15 = vadd.f32 %v7401_v49, %v3852_v55 }
0x13e9   : > { %v3876_v40 = vsel %vm1517_vm1, %v3853_v15, -inf }
0x13ea   : > { %3877 = vmax.xlane.f32.xlu2 %v3876_v40 }
0x13ee   : > { %v3855_v63 = vpop.f32.mrf.mxu3 }
0x13ef   : > { %v3856_v50 = vadd.f32 %v7402_v45, %v3855_v63 }
0x13f1   : > { %v3879_v26 = vsel %vm1517_vm1, %v3856_v50, -inf }
0x13f2   : > { %3880 = vmax.xlane.f32.xlu0 %v3879_v26 }
0x13f6   : > { %v3858_v18 = vpop.f32.mrf.mxu3 }
0x13f7   : > { %v8833_v39 = vadd.f32 %v7403_v53, %v3858_v18 }
0x13f9   : > { %v3882_v5 = vsel %vm1517_vm1, %v8833_v39, -inf }
0x13fa   : > { %3883 = vmax.xlane.f32.xlu1 %v3882_v5 }
0x13fe   : > { %v3861_v4 = vpop.f32.mrf.mxu3 }
0x13ff   : > { %v3862_v25 = vadd.f32 %v7406_v8, %v3861_v4 }
0x1401   : > { %v3885_v46 = vsel %vm1517_vm1, %v3862_v25, -inf }
0x1402   : > { %6952 = vrot.lane.b32.xlu2 %v6951_v3, %s7456_s16 }
0x1406   : > { %v3864_v20 = vpop.f32.mrf.mxu3 }
0x1407   : > { %v8839_v27 = vadd.f32 %v7404_v31, %v3864_v20 }
0x1409   : > { %v3888_v0 = vsel %vm1517_vm1, %v8839_v27, -inf }
0x140a   : > { %3889 = vmax.xlane.f32.xlu0 %v3888_v0 }
0x140e   : > { %v3867_v42 = vpop.f32.mrf.mxu3 }
0x140f   : > { %v3868_v44 = vadd.f32 %v7407_v34, %v3867_v42 }
0x1411   : > { %v3891_v6 = vsel %vm1517_vm1, %v3868_v44, -inf }
0x1413   : > { %6947 = vrot.lane.b32.xlu1 %v6946_v61, %s7456_s16 }
0x1416   : > { %v3870_v13 = vpop.f32.mrf.mxu3 }
0x1417   : > { %v3871_v1 = vadd.f32 %v7405_v48, %v3870_v13 }
0x1419   : > { %v3894_v51 = vsel %vm1517_vm1, %v3871_v1, -inf }
0x141a   : > { %3895 = vmax.xlane.f32.xlu0 %v3894_v51 }
0x141e   : > { %v3873_v41 = vpop.f32.mrf.mxu3 }
0x141f   : > { %v8852_v43 = vadd.f32 %v7408_v7, %v3873_v41 }
0x1421   : > { %v3897_v56 = vsel %vm1517_vm1, %v8852_v43, -inf }
0x142b   : > { %3886 = vmax.xlane.f32.xlu2 %v3885_v46 }
0x1433   : > { %3892 = vmax.xlane.f32.xlu2 %v3891_v6 }
0x143d   : > { %3898 = vmax.xlane.f32.xlu1 %v3897_v56 }
0x144b   : > { %6962 = vrot.lane.b32.xlu2 %v6961_v24, %s7456_s16 }
0x145d   : > { %v3878_v55 = vpop.xlane.xlu2 %3877 }
0x145e   : > { %v3900_v49 = vsub.f32 %v3853_v15, %v3878_v55 }
0x1460   : > { %v3908_v40 = vmul.f32 1.442695, %v3900_v49 }
0x1462   : > { %7209 = vpow2.f32 %v3908_v40 }
0x1465   : > { %v3881_v63 = vpop.xlane.xlu0 %3880  ;;  %v6953_v3 = vpop.permute.xlu2 %6952 }
0x1466   : > { %v3901_v45 = vsub.f32 %v3856_v50, %v3881_v63  ;;  %v6954_v31 = vunpack.i.l.bf16 %v6953_v3  ;;  %v6955_v0 = vunpack.i.h.bf16 %v6953_v3 }
0x1468   : > { %v8859_v26 = vpop.eup %7209  ;;  %v3910_v18 = vmul.f32 1.442695, %v3901_v45 }
0x1469   : > { %v3924_v53 = vsel %vm1517_vm1, %v8859_v26, 0.0 }
0x146a   : > { %7211 = vpow2.f32 %v3910_v18  ;;  %3925 = vadd.xlane.f32.xlu0 %v3924_v53 }
0x146d   : > { %v3884_v15 = vpop.xlane.xlu1 %3883 }
0x146e   : > { %v3902_v61 = vsub.f32 %v8833_v39, %v3884_v15 }
0x1470   : > { %v8863_v5 = vpop.eup %7211  ;;  %v3912_v13 = vmul.f32 1.442695, %v3902_v61 }
0x1471   : > { %v3927_v22 = vsel %vm1517_vm1, %v8863_v5, 0.0 }
0x1472   : > { %7213 = vpow2.f32 %v3912_v13 }
0x1474   : > { %3928 = vadd.xlane.f32.xlu2 %v3927_v22 }
0x1478   : > { %v7214_v6 = vpop.eup %7213 }
0x1479   : > { %v3930_v24 = vsel %vm1517_vm1, %v7214_v6, 0.0 }
0x147d   : > { %v3890_v42 = vpop.xlane.xlu0 %3889 }
0x147e   : > { %6957 = vrot.lane.b32.xlu0 %v6956_v19, %s7456_s16  ;;  %v3904_v8 = vsub.f32 %v8839_v27, %v3890_v42 }
0x1480   : > { %v3916_v41 = vmul.f32 1.442695, %v3904_v8 }
0x1485   : > { %v6948_v50 = vpop.permute.xlu1 %6947 }
0x1486   : > { %v6949_v4 = vunpack.i.l.bf16 %v6948_v50  ;;  %v6950_v20 = vunpack.i.h.bf16 %v6948_v50 }
0x1488   : > { %4020 = vmatpush.msra.mxu0 %v6949_v4 }
0x148a   : > { %4021 = vmatpush.msra.mxu0 %v6950_v20 }
0x148c   : > { %4022 = vmatpush.msra.mxu0 %v6954_v31 }
0x148d   : > { %v3896_v48 = vpop.xlane.xlu0 %3895 }
0x148e   : > { %4023 = vmatpush.msra.mxu0 %v6955_v0  ;;  %v3906_v35 = vsub.f32 %v3871_v1, %v3896_v48 }
0x1490   : > { %v3920_v34 = vmul.f32 1.442695, %v3906_v35 }
0x149e   : > { %v3887_v59 = vpop.xlane.xlu2 %3886 }
0x149f   : > { %v3903_v51 = vsub.f32 %v3862_v25, %v3887_v59 }
0x14a1   : > { %v3914_v46 = vmul.f32 1.442695, %v3903_v51 }
0x14a3   : > { %7215 = vpow2.f32 %v3914_v46 }
0x14a4   : > { %7217 = vpow2.f32 %v3920_v34 }
0x14a5   : > { %7219 = vpow2.f32 %v3916_v41  ;;  %v6694_v41 = vld [vmem:[%s7537_s12 + $0x18] sm:$0xff] }
0x14a6   : > { %v3893_v7 = vpop.xlane.xlu2 %3892  ;;  %4099 = vmatpush.msrb.mxu2 %v6694_v41 }
0x14a7   : > { %v3905_v56 = vsub.f32 %v3868_v44, %v3893_v7 }
0x14a8   : > { %3931 = vadd.xlane.f32.xlu0 %v3930_v24 }
0x14a9   : > { %v7216_v39 = vpop.eup %7215  ;;  %v3918_v55 = vmul.f32 1.442695, %v3905_v56 }
0x14aa   : > { %v3933_v1 = vsel %vm1517_vm1, %v7216_v39, 0.0  ;;  %v8874_v25 = vpop.eup %7217 }
0x14ab   : > { %7221 = vpow2.f32 %v3918_v55  ;;  %3934 = vadd.xlane.f32.xlu1 %v3933_v1  ;;  %v7220_v27 = vpop.eup %7219  ;;  %v3942_v49 = vsel %vm1517_vm1, %v8874_v25, 0.0 }
0x14ac   : > { %v3936_v45 = vsel %vm1517_vm1, %v7220_v27, 0.0 }
0x14ae   : > { %v6963_v50 = vpop.permute.xlu2 %6962 }
0x14af   : > { %v6964_v0 = vunpack.i.l.bf16 %v6963_v50  ;;  %v6965_v42 = vunpack.i.h.bf16 %v6963_v50  ;;  %v6999_v50 = vld [vmem:[%s7542_s20 + $0x1] ss:$0 sm:$0xff] }
0x14b0   : > { %v3899_v40 = vpop.xlane.xlu1 %3898  ;;  %3943 = vadd.xlane.f32.xlu0 %v3942_v49 }
0x14b1   : > { %v7222_v63 = vpop.eup %7221  ;;  %v3907_v44 = vsub.f32 %v8852_v43, %v3899_v40 }
0x14b2   : > { %v3939_v18 = vsel %vm1517_vm1, %v7222_v63, 0.0 }
0x14b3   : > { %v3922_v53 = vmul.f32 1.442695, %v3907_v44  ;;  %3937 = vadd.xlane.f32.xlu1 %v3936_v45  ;;  %3940 = vadd.xlane.f32.xlu2 %v3939_v18 }
0x14b5   : > { %7223 = vpow2.f32 %v3922_v53 }
0x14bb   : > { %v7224_v22 = vpop.eup %7223 }
0x14bc   : > { %v3945_v19 = vsel %vm1517_vm1, %v7224_v22, 0.0 }
0x14bd   : > { %3946 = vadd.xlane.f32.xlu1 %v3945_v19 }
0x14dd   : > { %v3926_v15 = vpop.xlane.xlu0 %3925 }
0x14de   : > { %7225 = vrcp.f32 %v3926_v15 }
0x14e4   : > { %v7226_v31 = vpop.eup %7225 }
0x14e5   : > { %v3956_v61 = vmul.f32 %v7226_v31, %v8859_v26 }
0x14e7   : > { %v3929_v43 = vpop.xlane.xlu2 %3928 }
0x14e8   : > { %7227 = vrcp.f32 %v3929_v43 }
0x14ee   : > { %v7228_v13 = vpop.eup %7227 }
0x14ef   : > { %v3957_v48 = vmul.f32 %v7228_v13, %v8863_v5 }
0x14f0   : > { %v6958_v4 = vpop.permute.xlu0 %6957 }
0x14f1   : > { %v6959_v3 = vunpack.i.l.bf16 %v6958_v4  ;;  %v6960_v20 = vunpack.i.h.bf16 %v6958_v4 }
0x14f3   : > { %4024 = vmatpush.msra.mxu0 %v6959_v3 }
0x14f5   : > { %4025 = vmatpush.msra.mxu0 %v6960_v20 }
0x14f7   : > { %4026 = vmatpush.msra.mxu0 %v6964_v0 }
0x14f9   : > { %4027 = vmatpush.msra.mxu0 %v6965_v42 }
0x14fa   : > { %6685 = vmatmul.msk.f32.vlgmr.msra.gmra.mxu0 %vm1517_vm1, %v3956_v61 }
0x1502   : > { %6686 = vmatmul.msk.f32.gmra.mxu0 %vm1517_vm1, %v3957_v48 }
0x151b   : > { %v3932_v35 = vpop.xlane.xlu0 %3931 }
0x151c   : > { %7229 = vrcp.f32 %v3932_v35 }
0x151e   : > { %v3935_v59 = vpop.xlane.xlu1 %3934 }
0x151f   : > { %7231 = vrcp.f32 %v3935_v59 }
0x1522   : > { %v7230_v51 = vpop.eup %7229 }
0x1523   : > { %v3958_v8 = vmul.f32 %v7230_v51, %v7214_v6  ;;  %v3944_v24 = vpop.xlane.xlu0 %3943 }
0x1525   : > { %6687 = vmatmul.msk.f32.gmra.mxu0 %vm1517_vm1, %v3958_v8  ;;  %v7232_v34 = vpop.eup %7231 }
0x1526   : > { %v3938_v46 = vpop.xlane.xlu1 %3937  ;;  %v3959_v26 = vmul.f32 %v7232_v34, %v7216_v39  ;;  %v3941_v7 = vpop.xlane.xlu2 %3940 }
0x1527   : > { %7233 = vrcp.f32 %v3938_v46 }
0x1528   : > { %7235 = vrcp.f32 %v3941_v7 }
0x1529   : > { %7237 = vrcp.f32 %v3944_v24 }
0x152d   : > { %6688 = vmatmul.msk.f32.gmra.mxu0 %vm1517_vm1, %v3959_v26  ;;  %v7234_v5 = vpop.eup %7233 }
0x152e   : > { %v3960_v56 = vmul.f32 %v7234_v5, %v7220_v27  ;;  %v7236_v55 = vpop.eup %7235  ;;  %v6693_v27 = vld [vmem:[%s7537_s12 + $0x10] sm:$0xff] }
0x152f   : > { %v3961_v6 = vmul.f32 %v7236_v55, %v7222_v63  ;;  %v7238_v49 = vpop.eup %7237  ;;  %4100 = vmatpush.msrb.mxu2 %v6693_v27 }
0x1530   : > { %v3947_v1 = vpop.xlane.xlu1 %3946  ;;  %v3962_v39 = vmul.f32 %v7238_v49, %v8874_v25 }
0x1531   : > { %7239 = vrcp.f32 %v3947_v1 }
0x1535   : > { %6689 = vmatmul.msk.f32.gmra.mxu0 %vm1517_vm1, %v3960_v56 }
0x1537   : > { %v7240_v40 = vpop.eup %7239 }
0x1538   : > { %v3963_v44 = vmul.f32 %v7240_v40, %v7224_v22 }
0x153d   : > { %6690 = vmatmul.msk.f32.gmra.mxu0 %vm1517_vm1, %v3961_v6 }
0x1545   : > { %6691 = vmatmul.msk.f32.gmra.mxu0 %vm1517_vm1, %v3962_v39 }
0x154d   : > { %6692 = vmatmul.msk.f32.gmra.mxu0 %vm1517_vm1, %v3963_v44 }
0x1577   : > { %v4029_v45 = vpop.f32.mrf.mxu0 }
0x1578   : > { %6696 = vmatmul.msk.f32.vlgmr.msrb.gmra.mxu2 %vm999_vm0, %v4029_v45 }
0x157f   : > { %v4032_v63 = vpop.f32.mrf.mxu0 }
0x1580   : > { %6697 = vmatmul.msk.f32.gmra.mxu2 %vm999_vm0, %v4032_v63 }
0x15a2   : > { %v4035_v18 = vpop.f32.mrf.mxu0 }
0x15a3   : > { %6698 = vmatmul.msk.f32.gmra.mxu2 %vm999_vm0, %v4035_v18 }
0x15aa   : > { %v4038_v53 = vpop.f32.mrf.mxu0 }
0x15ab   : > { %6699 = vmatmul.msk.f32.gmra.mxu2 %vm999_vm0, %v4038_v53 }
0x15b2   : > { %v4041_v25 = vpop.f32.mrf.mxu0 }
0x15b3   : > { %6700 = vmatmul.msk.f32.gmra.mxu2 %vm999_vm0, %v4041_v25 }
0x15ba   : > { %v4044_v22 = vpop.f32.mrf.mxu0 }
0x15bb   : > { %6701 = vmatmul.msk.f32.gmra.mxu2 %vm999_vm0, %v4044_v22 }
0x15c2   : > { %v4047_v19 = vpop.f32.mrf.mxu0 }
0x15c3   : > { %6702 = vmatmul.msk.f32.gmra.mxu2 %vm999_vm0, %v4047_v19 }
0x15ca   : > { %v4050_v15 = vpop.f32.mrf.mxu0 }
0x15cb   : > { %6703 = vmatmul.msk.f32.gmra.mxu2 %vm999_vm0, %v4050_v15 }
0x15fb   : > { %v4102_v4 = vpop.f32.mrf.mxu2 }
0x15fc   : > { %v4103_v3 = vadd.f32 %v6999_v50, %v4102_v4 }
0x15fe   : > { %v4128_v20 = vadd.f32 %v4103_v3, %v8716_v33  ;;  %v6706_v3 = vld [vmem:[%s7552_s4 + $0x18] sm:$0xff] }
0x15ff   : > { %4376 = vmatpush.msra.mxu1 %v6706_v3 }
0x1600   : > { %v4136_v43 = vsel %vm999_vm0, %v4128_v20, 0.0 }
0x1601   : > { %4137 = vadd.xlane.f32.xlu2 %v4136_v43 }
0x1603   : > { %v4105_v31 = vpop.f32.mrf.mxu2 }
0x1604   : > { %v4106_v0 = vadd.f32 %v6999_v50, %v4105_v31 }
0x1606   : > { %v4129_v42 = vadd.f32 %v4106_v0, %v8725_v10 }
0x1608   : > { %v4139_v61 = vsel %vm999_vm0, %v4129_v42, 0.0 }
0x1609   : > { %4140 = vadd.xlane.f32.xlu0 %v4139_v61 }
0x1626   : > { %v4108_v13 = vpop.f32.mrf.mxu2 }
0x1627   : > { %v4109_v48 = vadd.f32 %v6999_v50, %v4108_v13 }
0x1629   : > { %v4130_v35 = vadd.f32 %v4109_v48, %v8734_v21 }
0x162b   : > { %v4142_v59 = vsel %vm999_vm0, %v4130_v35, 0.0 }
0x162c   : > { %4143 = vadd.xlane.f32.xlu1 %v4142_v59 }
0x162e   : > { %v4111_v51 = vpop.f32.mrf.mxu2 }
0x162f   : > { %v4112_v8 = vadd.f32 %v6999_v50, %v4111_v51 }
0x1631   : > { %v4131_v33 = vadd.f32 %v4112_v8, %v8743_v12 }
0x1633   : > { %v4145_v46 = vsel %vm999_vm0, %v4131_v33, 0.0 }
0x1634   : > { %4146 = vadd.xlane.f32.xlu2 %v4145_v46 }
0x1636   : > { %v4114_v34 = vpop.f32.mrf.mxu2 }
0x1637   : > { %v4115_v26 = vadd.f32 %v6999_v50, %v4114_v34 }
0x1639   : > { %v4132_v10 = vadd.f32 %v4115_v26, %v8752_v54 }
0x163b   : > { %v4148_v41 = vsel %vm999_vm0, %v4132_v10, 0.0 }
0x163c   : > { %4149 = vadd.xlane.f32.xlu0 %v4148_v41 }
0x163e   : > { %v4117_v7 = vpop.f32.mrf.mxu2 }
0x163f   : > { %v4118_v5 = vadd.f32 %v6999_v50, %v4117_v7 }
0x1641   : > { %v4133_v21 = vadd.f32 %v4118_v5, %v8761_v57  ;;  %v6705_v5 = vld [vmem:[%s7552_s4 + $0x10] sm:$0xff] }
0x1642   : > { %4377 = vmatpush.msra.mxu1 %v6705_v5 }
0x1643   : > { %v4151_v56 = vsel %vm999_vm0, %v4133_v21, 0.0 }
0x1644   : > { %4152 = vadd.xlane.f32.xlu1 %v4151_v56 }
0x1646   : > { %v4120_v24 = vpop.f32.mrf.mxu2 }
0x1647   : > { %v4121_v55 = vadd.f32 %v6999_v50, %v4120_v24 }
0x1649   : > { %v4134_v12 = vadd.f32 %v4121_v55, %v8770_v37 }
0x164b   : > { %v4154_v6 = vsel %vm999_vm0, %v4134_v12, 0.0 }
0x164c   : > { %4155 = vadd.xlane.f32.xlu0 %v4154_v6 }
0x164e   : > { %v4123_v39 = vpop.f32.mrf.mxu2 }
0x164f   : > { %v4124_v57 = vadd.f32 %v6999_v50, %v4123_v39 }
0x1651   : > { %v4135_v45 = vadd.f32 %v4124_v57, %v8779_v28 }
0x1653   : > { %v4157_v25 = vsel %vm999_vm0, %v4135_v45, 0.0 }
0x1674   : > { %v4138_v1 = vpop.xlane.xlu2 %4137 }
0x1675   : > { %v4160_v54 = vmul.f32 %v4138_v1, %v7930_v11 }
0x1677   : > { %v8919_v49 = vsub.f32 %v4128_v20, %v4160_v54 }
0x1679   : > { %v4176_v40 = vmul.f32 %v8919_v49, %v8919_v49 }
0x167b   : > { %v4184_v44 = vsel %vm999_vm0, %v4176_v40, 0.0 }
0x167c   : > { %v4141_v27 = vpop.xlane.xlu0 %4140  ;;  %4185 = vadd.xlane.f32.xlu2 %v4184_v44 }
0x167d   : > { %v4161_v37 = vmul.f32 %v4141_v27, %v7930_v11 }
0x167f   : > { %v8926_v63 = vsub.f32 %v4129_v42, %v4161_v37 }
0x1681   : > { %v4177_v18 = vmul.f32 %v8926_v63, %v8926_v63 }
0x1683   : > { %v4187_v53 = vsel %vm999_vm0, %v4177_v18, 0.0 }
0x1684   : > { %4188 = vadd.xlane.f32.xlu1 %v4187_v53  ;;  %4158 = vadd.xlane.f32.xlu2 %v4157_v25  ;;  %v8973_v53 = vld [vmem:[%s9859_s23 + $0x4] sm:$0xf] }
0x1685   : > { %v8979_v3 = vperm.slane %v8973_v53, 1 }
0x169f   : > { %v4144_v22 = vpop.xlane.xlu1 %4143 }
0x16a0   : > { %v4162_v19 = vmul.f32 %v4144_v22, %v7930_v11 }
0x16a2   : > { %v8933_v15 = vsub.f32 %v4130_v35, %v4162_v19 }
0x16a4   : > { %v4178_v50 = vmul.f32 %v8933_v15, %v8933_v15 }
0x16a6   : > { %v4190_v28 = vsel %vm999_vm0, %v4178_v50, 0.0 }
0x16a7   : > { %v4147_v4 = vpop.xlane.xlu2 %4146  ;;  %4191 = vadd.xlane.f32.xlu0 %v4190_v28 }
0x16a8   : > { %v4163_v20 = vmul.f32 %v4147_v4, %v7930_v11 }
0x16aa   : > { %v8940_v43 = vsub.f32 %v4131_v33, %v4163_v20 }
0x16ac   : > { %v4179_v31 = vmul.f32 %v8940_v43, %v8940_v43 }
0x16ae   : > { %v4193_v0 = vsel %vm999_vm0, %v4179_v31, 0.0 }
0x16af   : > { %v4150_v42 = vpop.xlane.xlu0 %4149  ;;  %4194 = vadd.xlane.f32.xlu1 %v4193_v0 }
0x16b0   : > { %v4164_v61 = vmul.f32 %v4150_v42, %v7930_v11 }
0x16b2   : > { %v8946_v13 = vsub.f32 %v4132_v10, %v4164_v61 }
0x16b4   : > { %v4180_v48 = vmul.f32 %v8946_v13, %v8946_v13 }
0x16b6   : > { %v4196_v35 = vsel %vm999_vm0, %v4180_v48, 0.0 }
0x16b7   : > { %v4153_v59 = vpop.xlane.xlu1 %4152  ;;  %4197 = vadd.xlane.f32.xlu2 %v4196_v35 }
0x16b8   : > { %v4165_v51 = vmul.f32 %v4153_v59, %v7930_v11 }
0x16ba   : > { %v8952_v8 = vsub.f32 %v4133_v21, %v4165_v51 }
0x16bc   : > { %v4181_v33 = vmul.f32 %v8952_v8, %v8952_v8 }
0x16be   : > { %v4199_v46 = vsel %vm999_vm0, %v4181_v33, 0.0 }
0x16bf   : > { %4200 = vadd.xlane.f32.xlu0 %v4199_v46  ;;  %v4156_v34 = vpop.xlane.xlu0 %4155 }
0x16c0   : > { %v4166_v26 = vmul.f32 %v4156_v34, %v7930_v11 }
0x16c2   : > { %v8958_v10 = vsub.f32 %v4134_v12, %v4166_v26 }
0x16c4   : > { %v4182_v41 = vmul.f32 %v8958_v10, %v8958_v10 }
0x16c6   : > { %v4202_v7 = vsel %vm999_vm0, %v4182_v41, 0.0 }
0x16c7   : > { %4203 = vadd.xlane.f32.xlu1 %v4202_v7 }
0x16ef   : > { %v4186_v21 = vpop.xlane.xlu2 %4185 }
0x16f0   : > { %v4208_v56 = vmul.f32 %v4186_v21, %v7930_v11 }
0x16f2   : > { %v4216_v24 = vadd.f32 1e-05, %v4208_v56 }
0x16f4   : > { %7241 = vrsqrt.f32 %v4216_v24  ;;  %vm4230_vm3 = vweird.f32 %v4216_v24 }
0x16f7   : > { %v4189_v55 = vpop.xlane.xlu1 %4188  ;;  %v4159_v6 = vpop.xlane.xlu2 %4158 }
0x16f8   : > { %v4209_v1 = vmul.f32 %v4189_v55, %v7930_v11  ;;  %v4167_v12 = vmul.f32 %v4159_v6, %v7930_v11 }
0x16fa   : > { %v7242_v54 = vpop.eup %7241  ;;  %v4217_v39 = vadd.f32 1e-05, %v4209_v1  ;;  %v8967_v40 = vsub.f32 %v4135_v45, %v4167_v12  ;;  %v8976_v45 = vperm.slane %v8973_v53, 0 }
0x16fb   : > { %v4225_v57 = vmul.f32 %v7242_v54, %v4216_v24  ;;  %vm4231_vm2 = vweird.f32 %v7242_v54 }
0x16fc   : > { %7243 = vrsqrt.f32 %v4217_v39  ;;  %v4183_v44 = vmul.f32 %v8967_v40, %v8967_v40  ;;  %vm4232_vm4 = vmor %vm4230_vm3, %vm4231_vm2  ;;  %vm4240_vm6 = vweird.f32 %v4217_v39 }
0x16fd   : > { %v4226_v27 = vmul.f32 %v7242_v54, %v4225_v57 }
0x16fe   : > { %v4205_v37 = vsel %vm999_vm0, %v4183_v44, 0.0 }
0x16ff   : > { %v4227_v18 = vmul.f32 0.5, %v4226_v27  ;;  %4206 = vadd.xlane.f32.xlu2 %v4205_v37 }
0x1701   : > { %v4228_v25 = vsub.f32 1.5, %v4227_v18 }
0x1702   : > { %v7244_v22 = vpop.eup %7243 }
0x1703   : > { %v4229_v19 = vmul.f32 %v7242_v54, %v4228_v25  ;;  %v4235_v50 = vmul.f32 %v7244_v22, %v4217_v39  ;;  %vm4241_vm5 = vweird.f32 %v7244_v22 }
0x1704   : > { %vm4242_vm7 = vmor %vm4240_vm6, %vm4241_vm5 }
0x1705   : > { %v4233_v28 = vsel %vm4232_vm4, %v7242_v54, %v4229_v19  ;;  %v4236_v4 = vmul.f32 %v7244_v22, %v4235_v50 }
0x1706   : > { %v4304_v20 = vmul.f32 %v4233_v28, %v8919_v49 }
0x1707   : > { %v4237_v31 = vmul.f32 0.5, %v4236_v4 }
0x1708   : > { %v4313_v0 = vmul.f32 %v8976_v45, %v4304_v20 }
0x1709   : > { %v4238_v42 = vsub.f32 1.5, %v4237_v31 }
0x170a   : > { %v8984_v61 = vadd.f32 %v8979_v3, %v4313_v0 }
0x170b   : > { %v4239_v48 = vmul.f32 %v7244_v22, %v4238_v42 }
0x170c   : > { %6708 = vmatmul.msk.f32.vlgmr.msra.gmra.mxu1 %vm999_vm0, %v8984_v61 }
0x170d   : > { %v4243_v35 = vsel %vm4242_vm7, %v7244_v22, %v4239_v48 }
0x170e   : > { %v4305_v59 = vmul.f32 %v4243_v35, %v8926_v63 }
0x1710   : > { %v4314_v51 = vmul.f32 %v8976_v45, %v4305_v59 }
0x1712   : > { %v8991_v49 = vadd.f32 %v8979_v3, %v4314_v51 }
0x1714   : > { %6709 = vmatmul.msk.f32.gmra.mxu1 %vm999_vm0, %v8991_v49 }
0x171a   : > { %v4192_v33 = vpop.xlane.xlu0 %4191 }
0x171b   : > { %v4210_v46 = vmul.f32 %v4192_v33, %v7930_v11 }
0x171d   : > { %v4218_v34 = vadd.f32 1e-05, %v4210_v46 }
0x171f   : > { %7245 = vrsqrt.f32 %v4218_v34  ;;  %vm4250_vm9 = vweird.f32 %v4218_v34 }
0x1722   : > { %v4195_v26 = vpop.xlane.xlu1 %4194 }
0x1723   : > { %v4211_v41 = vmul.f32 %v4195_v26, %v7930_v11 }
0x1725   : > { %v7246_v7 = vpop.eup %7245  ;;  %v4219_v5 = vadd.f32 1e-05, %v4211_v41 }
0x1726   : > { %v4245_v21 = vmul.f32 %v7246_v7, %v4218_v34  ;;  %vm4251_vm8 = vweird.f32 %v7246_v7 }
0x1727   : > { %7247 = vrsqrt.f32 %v4219_v5  ;;  %vm4252_vm10 = vmor %vm4250_vm9, %vm4251_vm8  ;;  %vm4260_vm12 = vweird.f32 %v4219_v5 }
0x1728   : > { %v4246_v63 = vmul.f32 %v7246_v7, %v4245_v21 }
0x172a   : > { %v4247_v56 = vmul.f32 0.5, %v4246_v63  ;;  %v4198_v24 = vpop.xlane.xlu2 %4197 }
0x172b   : > { %v4212_v55 = vmul.f32 %v4198_v24, %v7930_v11 }
0x172c   : > { %v4248_v6 = vsub.f32 1.5, %v4247_v56 }
0x172d   : > { %v7248_v1 = vpop.eup %7247  ;;  %v4220_v12 = vadd.f32 1e-05, %v4212_v55 }
0x172e   : > { %v4249_v54 = vmul.f32 %v7246_v7, %v4248_v6  ;;  %v4255_v39 = vmul.f32 %v7248_v1, %v4219_v5  ;;  %vm4261_vm11 = vweird.f32 %v7248_v1 }
0x172f   : > { %7249 = vrsqrt.f32 %v4220_v12  ;;  %vm4262_vm13 = vmor %vm4260_vm12, %vm4261_vm11  ;;  %vm4270_vm15 = vweird.f32 %v4220_v12 }
0x1730   : > { %v4253_v57 = vsel %vm4252_vm10, %v7246_v7, %v4249_v54  ;;  %v4256_v44 = vmul.f32 %v7248_v1, %v4255_v39 }
0x1731   : > { %v4306_v27 = vmul.f32 %v4253_v57, %v8933_v15 }
0x1732   : > { %v4257_v37 = vmul.f32 0.5, %v4256_v44  ;;  %v4201_v18 = vpop.xlane.xlu0 %4200 }
0x1733   : > { %v4213_v25 = vmul.f32 %v4201_v18, %v7930_v11  ;;  %v4315_v22 = vmul.f32 %v8976_v45, %v4306_v27 }
0x1734   : > { %v4258_v19 = vsub.f32 1.5, %v4257_v37 }
0x1735   : > { %v7250_v50 = vpop.eup %7249  ;;  %v4221_v28 = vadd.f32 1e-05, %v4213_v25  ;;  %v9002_v4 = vadd.f32 %v8979_v3, %v4315_v22 }
0x1736   : > { %v4259_v20 = vmul.f32 %v7248_v1, %v4258_v19  ;;  %v4265_v31 = vmul.f32 %v7250_v50, %v4220_v12  ;;  %vm4271_vm14 = vweird.f32 %v7250_v50 }
0x1737   : > { %7251 = vrsqrt.f32 %v4221_v28  ;;  %6710 = vmatmul.msk.f32.gmra.mxu1 %vm999_vm0, %v9002_v4  ;;  %vm4272_vm2 = vmor %vm4270_vm15, %vm4271_vm14  ;;  %vm4280_vm4 = vweird.f32 %v4221_v28 }
0x1738   : > { %v4263_v15 = vsel %vm4262_vm13, %v7248_v1, %v4259_v20  ;;  %v4266_v0 = vmul.f32 %v7250_v50, %v4265_v31  ;;  %v6722_v31 = vld [vmem:[%s9860_s26 + $0x70] sm:$0xff] }
0x1739   : > { %v4307_v42 = vmul.f32 %v4263_v15, %v8940_v43 }
0x173a   : > { %v4267_v48 = vmul.f32 0.5, %v4266_v0  ;;  %v4204_v35 = vpop.xlane.xlu1 %4203  ;;  %v6720_v0 = vld [vmem:[%s9860_s26 + $0x60] sm:$0xff] }
0x173b   : > { %v4214_v59 = vmul.f32 %v4204_v35, %v7930_v11  ;;  %v4316_v51 = vmul.f32 %v8976_v45, %v4307_v42  ;;  %v6719_v42 = vld [vmem:[%s9860_s26 + $0x58] sm:$0xff] }
0x173c   : > { %v4268_v33 = vsub.f32 1.5, %v4267_v48  ;;  %v6718_v48 = vld [vmem:[%s9860_s26 + $0x50] sm:$0xff] }
0x173d   : > { %v7252_v46 = vpop.eup %7251  ;;  %v4222_v34 = vadd.f32 1e-05, %v4214_v59  ;;  %v9010_v26 = vadd.f32 %v8979_v3, %v4316_v51  ;;  %v6717_v51 = vld [vmem:[%s9860_s26 + $0x48] sm:$0xff] }
0x173e   : > { %v4269_v41 = vmul.f32 %v7250_v50, %v4268_v33  ;;  %v4275_v7 = vmul.f32 %v7252_v46, %v4221_v28  ;;  %vm4281_vm3 = vweird.f32 %v7252_v46  ;;  %v6716_v33 = vld [vmem:[%s9860_s26 + $0x40] sm:$0xff] }
0x173f   : > { %7253 = vrsqrt.f32 %v4222_v34  ;;  %6711 = vmatmul.msk.f32.gmra.mxu1 %vm999_vm0, %v9010_v26  ;;  %vm4282_vm5 = vmor %vm4280_vm4, %vm4281_vm3  ;;  %vm4290_vm7 = vweird.f32 %v4222_v34 }
0x1740   : > { %v4273_v43 = vsel %vm4272_vm2, %v7250_v50, %v4269_v41  ;;  %v4276_v5 = vmul.f32 %v7252_v46, %v4275_v7  ;;  %v6723_v50 = vld [vmem:[%s9860_s26 + $0x78] sm:$0xff] }
0x1741   : > { %v4308_v21 = vmul.f32 %v4273_v43, %v8946_v13  ;;  %4521 = vmatpush.msra.mxu3 %v6723_v50  ;;  %v9045_v43 = vld [vmem:[%s9861_s1 + $0x1] ss:$0 sm:$0xff] }
0x1742   : > { %v4277_v63 = vmul.f32 0.5, %v4276_v5 }
0x1743   : > { %v4317_v56 = vmul.f32 %v8976_v45, %v4308_v21  ;;  %4522 = vmatpush.msra.mxu3 %v6722_v31 }
0x1744   : > { %v4278_v24 = vsub.f32 1.5, %v4277_v63 }
0x1745   : > { %v7254_v55 = vpop.eup %7253  ;;  %v9017_v6 = vadd.f32 %v8979_v3, %v4317_v56 }
0x1746   : > { %v4279_v1 = vmul.f32 %v7252_v46, %v4278_v24  ;;  %v4285_v12 = vmul.f32 %v7254_v55, %v4222_v34  ;;  %vm4291_vm6 = vweird.f32 %v7254_v55 }
0x1747   : > { %6712 = vmatmul.msk.f32.gmra.mxu1 %vm999_vm0, %v9017_v6  ;;  %vm4292_vm8 = vmor %vm4290_vm7, %vm4291_vm6 }
0x1748   : > { %v4283_v54 = vsel %vm4282_vm5, %v7252_v46, %v4279_v1  ;;  %v4286_v39 = vmul.f32 %v7254_v55, %v4285_v12 }
0x1749   : > { %v4309_v13 = vmul.f32 %v4283_v54, %v8952_v8 }
0x174a   : > { %v4287_v57 = vmul.f32 0.5, %v4286_v39 }
0x174b   : > { %v4318_v44 = vmul.f32 %v8976_v45, %v4309_v13 }
0x174c   : > { %v4288_v27 = vsub.f32 1.5, %v4287_v57 }
0x174d   : > { %v9024_v37 = vadd.f32 %v8979_v3, %v4318_v44 }
0x174e   : > { %v4289_v18 = vmul.f32 %v7254_v55, %v4288_v27 }
0x174f   : > { %6713 = vmatmul.msk.f32.gmra.mxu1 %vm999_vm0, %v9024_v37 }
0x1750   : > { %v4293_v25 = vsel %vm4292_vm8, %v7254_v55, %v4289_v18 }
0x1751   : > { %v4310_v8 = vmul.f32 %v4293_v25, %v8958_v10  ;;  %v6721_v10 = vld [vmem:[%s9860_s26 + $0x68] sm:$0xff] }
0x1752   : > { %4523 = vmatpush.msra.mxu3 %v6721_v10 }
0x1753   : > { %v4319_v22 = vmul.f32 %v8976_v45, %v4310_v8 }
0x1754   : > { %4524 = vmatpush.msra.mxu3 %v6720_v0 }
0x1755   : > { %v9031_v19 = vadd.f32 %v8979_v3, %v4319_v22 }
0x1756   : > { %4525 = vmatpush.msra.mxu3 %v6719_v42 }
0x1757   : > { %6714 = vmatmul.msk.f32.gmra.mxu1 %vm999_vm0, %v9031_v19 }
0x1758   : > { %4526 = vmatpush.msra.mxu3 %v6718_v48 }
0x175a   : > { %4527 = vmatpush.msra.mxu3 %v6717_v51 }
0x175c   : > { %4528 = vmatpush.msra.mxu3 %v6716_v33 }
0x1772   : > { %v4207_v28 = vpop.xlane.xlu2 %4206 }
0x1773   : > { %v4215_v20 = vmul.f32 %v4207_v28, %v7930_v11 }
0x1775   : > { %v4223_v15 = vadd.f32 1e-05, %v4215_v20 }
0x1777   : > { %7255 = vrsqrt.f32 %v4223_v15  ;;  %vm4300_vm10 = vweird.f32 %v4223_v15 }
0x177d   : > { %v7256_v35 = vpop.eup %7255 }
0x177e   : > { %v4295_v59 = vmul.f32 %v7256_v35, %v4223_v15  ;;  %vm4301_vm9 = vweird.f32 %v7256_v35 }
0x177f   : > { %vm4302_vm11 = vmor %vm4300_vm10, %vm4301_vm9 }
0x1780   : > { %v4296_v46 = vmul.f32 %v7256_v35, %v4295_v59 }
0x1782   : > { %v4297_v34 = vmul.f32 0.5, %v4296_v46 }
0x1784   : > { %v4298_v41 = vsub.f32 1.5, %v4297_v34 }
0x1786   : > { %v4299_v7 = vmul.f32 %v7256_v35, %v4298_v41 }
0x1788   : > { %v4303_v5 = vsel %vm4302_vm11, %v7256_v35, %v4299_v7 }
0x1789   : > { %v4311_v21 = vmul.f32 %v4303_v5, %v8967_v40  ;;  %v4379_v63 = vpop.f32.mrf.mxu1 }
0x178a   : > { %v4380_v56 = vadd.f32 %v9045_v43, %v4379_v63 }
0x178b   : > { %v4320_v24 = vmul.f32 %v8976_v45, %v4311_v21 }
0x178c   : > { %v4411_v55 = vmul.f32 0.044715, %v4380_v56  ;;  %v4403_v22 = vmul.f32 0.5, %v4380_v56 }
0x178d   : > { %v9051_v1 = vadd.f32 %v8979_v3, %v4320_v24 }
0x178e   : > { %v4419_v12 = vmul.f32 %v4411_v55, %v4380_v56 }
0x178f   : > { %6715 = vmatmul.msk.f32.gmra.mxu1 %vm999_vm0, %v9051_v1 }
0x1790   : > { %v4427_v54 = vmul.f32 %v4419_v12, %v4380_v56 }
0x1791   : > { %v4382_v39 = vpop.f32.mrf.mxu1 }
0x1792   : > { %v4435_v13 = vadd.f32 %v4427_v54, %v4380_v56  ;;  %v4383_v57 = vadd.f32 %v9045_v43, %v4382_v39 }
0x1794   : > { %v4443_v44 = vmul.f32 0.7978846, %v4435_v13  ;;  %v4412_v40 = vmul.f32 0.044715, %v4383_v57  ;;  %v4404_v20 = vmul.f32 0.5, %v4383_v57 }
0x1796   : > { %7257 = vtanh.f32 %v4443_v44  ;;  %v4420_v27 = vmul.f32 %v4412_v40, %v4383_v57 }
0x1798   : > { %v4428_v18 = vmul.f32 %v4420_v27, %v4383_v57 }
0x179a   : > { %v4436_v25 = vadd.f32 %v4428_v18, %v4383_v57 }
0x179c   : > { %v7258_v45 = vpop.eup %7257  ;;  %v4444_v8 = vmul.f32 0.7978846, %v4436_v25 }
0x179d   : > { %v4459_v3 = vadd.f32 1.0, %v7258_v45 }
0x179e   : > { %7259 = vtanh.f32 %v4444_v8 }
0x179f   : > { %v4467_v50 = vmul.f32 %v4459_v3, %v4403_v22 }
0x17a1   : > { %6725 = vmatmul.msk.f32.vlgmr.msra.gmra.mxu3 %vm1517_vm1, %v4467_v50 }
0x17a4   : > { %v7260_v28 = vpop.eup %7259 }
0x17a5   : > { %v4460_v31 = vadd.f32 1.0, %v7260_v28 }
0x17a7   : > { %v4468_v15 = vmul.f32 %v4460_v31, %v4404_v20 }
0x17a9   : > { %6726 = vmatmul.msk.f32.gmra.mxu3 %vm1517_vm1, %v4468_v15 }
0x17b4   : > { %v4385_v10 = vpop.f32.mrf.mxu1 }
0x17b5   : > { %v4386_v0 = vadd.f32 %v9045_v43, %v4385_v10 }
0x17b7   : > { %v4413_v42 = vmul.f32 0.044715, %v4386_v0  ;;  %v4405_v12 = vmul.f32 0.5, %v4386_v0 }
0x17b9   : > { %v4421_v48 = vmul.f32 %v4413_v42, %v4386_v0 }
0x17bb   : > { %v4429_v35 = vmul.f32 %v4421_v48, %v4386_v0 }
0x17bc   : > { %v4388_v59 = vpop.f32.mrf.mxu1 }
0x17bd   : > { %v4389_v51 = vadd.f32 %v9045_v43, %v4388_v59  ;;  %v4437_v33 = vadd.f32 %v4429_v35, %v4386_v0 }
0x17bf   : > { %v4414_v46 = vmul.f32 0.044715, %v4389_v51  ;;  %v4445_v34 = vmul.f32 0.7978846, %v4437_v33  ;;  %v4406_v8 = vmul.f32 0.5, %v4389_v51 }
0x17c1   : > { %v4422_v41 = vmul.f32 %v4414_v46, %v4389_v51  ;;  %7261 = vtanh.f32 %v4445_v34 }
0x17c3   : > { %v4430_v7 = vmul.f32 %v4422_v41, %v4389_v51 }
0x17c4   : > { %v4391_v5 = vpop.f32.mrf.mxu1 }
0x17c5   : > { %v4392_v21 = vadd.f32 %v9045_v43, %v4391_v5  ;;  %v4438_v63 = vadd.f32 %v4430_v7, %v4389_v51 }
0x17c7   : > { %v7262_v56 = vpop.eup %7261  ;;  %v4415_v24 = vmul.f32 0.044715, %v4392_v21  ;;  %v4446_v55 = vmul.f32 0.7978846, %v4438_v63  ;;  %v4407_v48 = vmul.f32 0.5, %v4392_v21 }
0x17c8   : > { %v4461_v54 = vadd.f32 1.0, %v7262_v56 }
0x17c9   : > { %v4423_v39 = vmul.f32 %v4415_v24, %v4392_v21  ;;  %7263 = vtanh.f32 %v4446_v55 }
0x17ca   : > { %v4469_v13 = vmul.f32 %v4461_v54, %v4405_v12 }
0x17cb   : > { %v4431_v57 = vmul.f32 %v4423_v39, %v4392_v21 }
0x17cc   : > { %v4394_v44 = vpop.f32.mrf.mxu1  ;;  %6727 = vmatmul.msk.f32.gmra.mxu3 %vm1517_vm1, %v4469_v13 }
0x17cd   : > { %v4395_v40 = vadd.f32 %v9045_v43, %v4394_v44  ;;  %v4439_v27 = vadd.f32 %v4431_v57, %v4392_v21 }
0x17cf   : > { %v7264_v18 = vpop.eup %7263  ;;  %v4416_v25 = vmul.f32 0.044715, %v4395_v40  ;;  %v4447_v45 = vmul.f32 0.7978846, %v4439_v27  ;;  %v4408_v7 = vmul.f32 0.5, %v4395_v40 }
0x17d0   : > { %v4462_v22 = vadd.f32 1.0, %v7264_v18 }
0x17d1   : > { %v4424_v3 = vmul.f32 %v4416_v25, %v4395_v40  ;;  %7265 = vtanh.f32 %v4447_v45  ;;  %v7001_v45 = vld [vmem:[%s9862_s28 + $0x1] ss:$0 sm:$0xff] }
0x17d2   : > { %v4470_v50 = vmul.f32 %v4462_v22, %v4406_v8 }
0x17d3   : > { %v4432_v28 = vmul.f32 %v4424_v3, %v4395_v40 }
0x17d4   : > { %v4397_v20 = vpop.f32.mrf.mxu1  ;;  %6728 = vmatmul.msk.f32.gmra.mxu3 %vm1517_vm1, %v4470_v50 }
0x17d5   : > { %v4398_v31 = vadd.f32 %v9045_v43, %v4397_v20  ;;  %v4440_v15 = vadd.f32 %v4432_v28, %v4395_v40 }
0x17d7   : > { %v7266_v10 = vpop.eup %7265  ;;  %v4417_v0 = vmul.f32 0.044715, %v4398_v31  ;;  %v4448_v42 = vmul.f32 0.7978846, %v4440_v15  ;;  %v4409_v24 = vmul.f32 0.5, %v4398_v31 }
0x17d8   : > { %v4463_v35 = vadd.f32 1.0, %v7266_v10 }
0x17d9   : > { %v4425_v59 = vmul.f32 %v4417_v0, %v4398_v31  ;;  %7267 = vtanh.f32 %v4448_v42 }
0x17da   : > { %v4471_v33 = vmul.f32 %v4463_v35, %v4407_v48 }
0x17db   : > { %v4433_v51 = vmul.f32 %v4425_v59, %v4398_v31 }
0x17dc   : > { %6729 = vmatmul.msk.f32.gmra.mxu3 %vm1517_vm1, %v4471_v33 }
0x17dd   : > { %v4441_v46 = vadd.f32 %v4433_v51, %v4398_v31 }
0x17df   : > { %v7268_v34 = vpop.eup %7267  ;;  %v4449_v41 = vmul.f32 0.7978846, %v4441_v46 }
0x17e0   : > { %v4464_v5 = vadd.f32 1.0, %v7268_v34 }
0x17e1   : > { %7269 = vtanh.f32 %v4449_v41 }
0x17e2   : > { %v4472_v63 = vmul.f32 %v4464_v5, %v4408_v7 }
0x17e4   : > { %6730 = vmatmul.msk.f32.gmra.mxu3 %vm1517_vm1, %v4472_v63 }
0x17e7   : > { %v7270_v56 = vpop.eup %7269 }
0x17e8   : > { %v4465_v21 = vadd.f32 1.0, %v7270_v56 }
0x17ea   : > { %v4473_v55 = vmul.f32 %v4465_v21, %v4409_v24 }
0x17ec   : > { %6731 = vmatmul.msk.f32.gmra.mxu3 %vm1517_vm1, %v4473_v55 }
0x180c   : > { %v4400_v12 = vpop.f32.mrf.mxu1 }
0x180d   : > { %v4401_v54 = vadd.f32 %v9045_v43, %v4400_v12 }
0x180f   : > { %v4418_v39 = vmul.f32 0.044715, %v4401_v54  ;;  %v4410_v18 = vmul.f32 0.5, %v4401_v54 }
0x1811   : > { %v4426_v13 = vmul.f32 %v4418_v39, %v4401_v54 }
0x1813   : > { %v4434_v57 = vmul.f32 %v4426_v13, %v4401_v54 }
0x1815   : > { %v4442_v44 = vadd.f32 %v4434_v57, %v4401_v54 }
0x1817   : > { %v4450_v40 = vmul.f32 0.7978846, %v4442_v44 }
0x1819   : > { %7271 = vtanh.f32 %v4450_v40 }
0x181f   : > { %v7272_v27 = vpop.eup %7271 }
0x1820   : > { %v4466_v25 = vadd.f32 1.0, %v7272_v27 }
0x1822   : > { %v4474_v8 = vmul.f32 %v4466_v25, %v4410_v18 }
0x1824   : > { %v4530_v22 = vpop.f32.mrf.mxu3  ;;  %6732 = vmatmul.msk.f32.gmra.mxu3 %vm1517_vm1, %v4474_v8 }
0x1825   : > { %v4531_v3 = vadd.f32 %v7001_v45, %v4530_v22 }
0x1827   : > { %v4554_v50 = vadd.f32 %v4531_v3, %v8984_v61 }
0x1829   : > { %v4562_v28 = vsel %vm999_vm0, %v4554_v50, 0.0 }
0x182a   : > { %4563 = vadd.xlane.f32.xlu0 %v4562_v28 }
0x182c   : > { %v4533_v43 = vpop.f32.mrf.mxu3 }
0x182d   : > { %v4534_v20 = vadd.f32 %v7001_v45, %v4533_v43 }
0x182f   : > { %v4555_v31 = vadd.f32 %v4534_v20, %v8991_v49 }
0x1831   : > { %v4565_v15 = vsel %vm999_vm0, %v4555_v31, 0.0 }
0x1832   : > { %4566 = vadd.xlane.f32.xlu1 %v4565_v15 }
0x184f   : > { %v4536_v10 = vpop.f32.mrf.mxu3 }
0x1850   : > { %v4537_v0 = vadd.f32 %v7001_v45, %v4536_v10 }
0x1852   : > { %v4556_v42 = vadd.f32 %v4537_v0, %v9002_v4 }
0x1854   : > { %v4568_v48 = vsel %vm999_vm0, %v4556_v42, 0.0 }
0x1855   : > { %4569 = vadd.xlane.f32.xlu2 %v4568_v48 }
0x1857   : > { %v4539_v35 = vpop.f32.mrf.mxu3 }
0x1858   : > { %v4540_v59 = vadd.f32 %v7001_v45, %v4539_v35 }
0x185a   : > { %v4557_v61 = vadd.f32 %v4540_v59, %v9010_v26 }
0x185c   : > { %v4571_v33 = vsel %vm999_vm0, %v4557_v61, 0.0 }
0x185d   : > { %4572 = vadd.xlane.f32.xlu0 %v4571_v33 }
0x185f   : > { %v4542_v51 = vpop.f32.mrf.mxu3 }
0x1860   : > { %v4543_v46 = vadd.f32 %v7001_v45, %v4542_v51 }
0x1862   : > { %v4558_v49 = vadd.f32 %v4543_v46, %v9017_v6 }
0x1864   : > { %v4574_v34 = vsel %vm999_vm0, %v4558_v49, 0.0 }
0x1865   : > { %4575 = vadd.xlane.f32.xlu1 %v4574_v34 }
0x1867   : > { %v4545_v41 = vpop.f32.mrf.mxu3 }
0x1868   : > { %v4546_v7 = vadd.f32 %v7001_v45, %v4545_v41 }
0x186a   : > { %v4559_v4 = vadd.f32 %v4546_v7, %v9024_v37  ;;  %v6734_v7 = vld [vmem:[%s7527_s30 + $0x38] sm:$0xff] }
0x186b   : > { %4802 = vmatpush.msrb.mxu0 %v6734_v7 }
0x186c   : > { %v4577_v5 = vsel %vm999_vm0, %v4559_v4, 0.0 }
0x186d   : > { %4578 = vadd.xlane.f32.xlu2 %v4577_v5 }
0x186f   : > { %v4548_v63 = vpop.f32.mrf.mxu3 }
0x1870   : > { %v4549_v56 = vadd.f32 %v7001_v45, %v4548_v63 }
0x1872   : > { %v4560_v26 = vadd.f32 %v4549_v56, %v9031_v19 }
0x1874   : > { %v4580_v24 = vsel %vm999_vm0, %v4560_v26, 0.0 }
0x1875   : > { %4581 = vadd.xlane.f32.xlu1 %v4580_v24 }
0x189d   : > { %v4564_v21 = vpop.xlane.xlu0 %4563 }
0x189e   : > { %v4586_v6 = vmul.f32 %v4564_v21, %v7930_v11 }
0x18a0   : > { %v9086_v55 = vsub.f32 %v4554_v50, %v4586_v6 }
0x18a2   : > { %v4602_v12 = vmul.f32 %v9086_v55, %v9086_v55 }
0x18a4   : > { %v4610_v37 = vsel %vm999_vm0, %v4602_v12, 0.0 }
0x18a5   : > { %v4567_v54 = vpop.xlane.xlu1 %4566  ;;  %4611 = vadd.xlane.f32.xlu0 %v4610_v37 }
0x18a6   : > { %v4587_v39 = vmul.f32 %v4567_v54, %v7930_v11 }
0x18a7   : > { %v4551_v13 = vpop.f32.mrf.mxu3 }
0x18a8   : > { %v9092_v57 = vsub.f32 %v4555_v31, %v4587_v39  ;;  %v4552_v19 = vadd.f32 %v7001_v45, %v4551_v13 }
0x18aa   : > { %v4561_v44 = vadd.f32 %v4552_v19, %v9051_v1  ;;  %v4603_v40 = vmul.f32 %v9092_v57, %v9092_v57 }
0x18ac   : > { %v4613_v27 = vsel %vm999_vm0, %v4603_v40, 0.0  ;;  %v4583_v18 = vsel %vm999_vm0, %v4561_v44, 0.0 }
0x18ad   : > { %4614 = vadd.xlane.f32.xlu2 %v4613_v27  ;;  %4584 = vadd.xlane.f32.xlu0 %v4583_v18 }
0x18c8   : > { %v4570_v25 = vpop.xlane.xlu2 %4569 }
0x18c9   : > { %v4588_v8 = vmul.f32 %v4570_v25, %v7930_v11 }
0x18cb   : > { %v9100_v22 = vsub.f32 %v4556_v42, %v4588_v8 }
0x18cd   : > { %v4604_v3 = vmul.f32 %v9100_v22, %v9100_v22 }
0x18cf   : > { %v4616_v45 = vsel %vm999_vm0, %v4604_v3, 0.0 }
0x18d0   : > { %v4573_v1 = vpop.xlane.xlu0 %4572  ;;  %4617 = vadd.xlane.f32.xlu1 %v4616_v45 }
0x18d1   : > { %v4589_v50 = vmul.f32 %v4573_v1, %v7930_v11 }
0x18d3   : > { %v9106_v28 = vsub.f32 %v4557_v61, %v4589_v50  ;;  %v9143_v50 = vperm.slane %v8973_v53, 3 }
0x18d5   : > { %v4605_v43 = vmul.f32 %v9106_v28, %v9106_v28 }
0x18d7   : > { %v4619_v20 = vsel %vm999_vm0, %v4605_v43, 0.0 }
0x18d8   : > { %4620 = vadd.xlane.f32.xlu2 %v4619_v20  ;;  %v4576_v31 = vpop.xlane.xlu1 %4575 }
0x18d9   : > { %v4590_v15 = vmul.f32 %v4576_v31, %v7930_v11 }
0x18db   : > { %v9112_v10 = vsub.f32 %v4558_v49, %v4590_v15 }
0x18dd   : > { %v4606_v0 = vmul.f32 %v9112_v10, %v9112_v10 }
0x18df   : > { %v4622_v42 = vsel %vm999_vm0, %v4606_v0, 0.0 }
0x18e0   : > { %4623 = vadd.xlane.f32.xlu0 %v4622_v42  ;;  %v4579_v48 = vpop.xlane.xlu2 %4578 }
0x18e1   : > { %v4591_v35 = vmul.f32 %v4579_v48, %v7930_v11 }
0x18e3   : > { %v9118_v59 = vsub.f32 %v4559_v4, %v4591_v35  ;;  %v6733_v4 = vld [vmem:[%s7527_s30 + $0x30] sm:$0xff] }
0x18e4   : > { %4803 = vmatpush.msrb.mxu0 %v6733_v4 }
0x18e5   : > { %v4607_v61 = vmul.f32 %v9118_v59, %v9118_v59 }
0x18e7   : > { %v4625_v33 = vsel %vm999_vm0, %v4607_v61, 0.0 }
0x18e8   : > { %v4582_v51 = vpop.xlane.xlu1 %4581  ;;  %4626 = vadd.xlane.f32.xlu1 %v4625_v33 }
0x18e9   : > { %v4592_v46 = vmul.f32 %v4582_v51, %v7930_v11 }
0x18eb   : > { %v9124_v49 = vsub.f32 %v4560_v26, %v4592_v46 }
0x18ed   : > { %v4608_v34 = vmul.f32 %v9124_v49, %v9124_v49 }
0x18ef   : > { %v4628_v41 = vsel %vm999_vm0, %v4608_v34, 0.0 }
0x18f0   : > { %4629 = vadd.xlane.f32.xlu2 %v4628_v41 }
0x1918   : > { %v4612_v5 = vpop.xlane.xlu0 %4611 }
0x1919   : > { %v4634_v63 = vmul.f32 %v4612_v5, %v7930_v11 }
0x191b   : > { %v4642_v56 = vadd.f32 1e-05, %v4634_v63 }
0x191d   : > { %7273 = vrsqrt.f32 %v4642_v56  ;;  %vm4656_vm13 = vweird.f32 %v4642_v56 }
0x1920   : > { %v4585_v24 = vpop.xlane.xlu0 %4584  ;;  %v4615_v21 = vpop.xlane.xlu2 %4614 }
0x1921   : > { %v4593_v26 = vmul.f32 %v4585_v24, %v7930_v11  ;;  %v4635_v6 = vmul.f32 %v4615_v21, %v7930_v11 }
0x1923   : > { %v7274_v12 = vpop.eup %7273  ;;  %v9134_v37 = vsub.f32 %v4561_v44, %v4593_v26  ;;  %v4643_v54 = vadd.f32 1e-05, %v4635_v6  ;;  %v9140_v44 = vperm.slane %v8973_v53, 2 }
0x1924   : > { %v4651_v39 = vmul.f32 %v7274_v12, %v4642_v56  ;;  %vm4657_vm12 = vweird.f32 %v7274_v12 }
0x1925   : > { %7275 = vrsqrt.f32 %v4643_v54  ;;  %v4609_v13 = vmul.f32 %v9134_v37, %v9134_v37  ;;  %vm4658_vm14 = vmor %vm4656_vm13, %vm4657_vm12  ;;  %vm4666_vm2 = vweird.f32 %v4643_v54 }
0x1926   : > { %v4652_v19 = vmul.f32 %v7274_v12, %v4651_v39 }
0x1927   : > { %v4631_v40 = vsel %vm999_vm0, %v4609_v13, 0.0 }
0x1928   : > { %v4653_v27 = vmul.f32 0.5, %v4652_v19  ;;  %4632 = vadd.xlane.f32.xlu0 %v4631_v40 }
0x192a   : > { %v4654_v18 = vsub.f32 1.5, %v4653_v27 }
0x192b   : > { %v7276_v25 = vpop.eup %7275 }
0x192c   : > { %v4655_v8 = vmul.f32 %v7274_v12, %v4654_v18  ;;  %v4661_v3 = vmul.f32 %v7276_v25, %v4643_v54  ;;  %vm4667_vm15 = vweird.f32 %v7276_v25 }
0x192d   : > { %vm4668_vm3 = vmor %vm4666_vm2, %vm4667_vm15 }
0x192e   : > { %v4659_v45 = vsel %vm4658_vm14, %v7274_v12, %v4655_v8  ;;  %v4662_v1 = vmul.f32 %v7276_v25, %v4661_v3 }
0x192f   : > { %v4730_v43 = vmul.f32 %v4659_v45, %v9086_v55 }
0x1930   : > { %v4663_v20 = vmul.f32 0.5, %v4662_v1 }
0x1931   : > { %v4739_v31 = vmul.f32 %v9140_v44, %v4730_v43 }
0x1932   : > { %v4664_v15 = vsub.f32 1.5, %v4663_v20 }
0x1933   : > { %v9148_v0 = vadd.f32 %v9143_v50, %v4739_v31 }
0x1934   : > { %v4665_v42 = vmul.f32 %v7276_v25, %v4664_v15 }
0x1935   : > { %6736 = vmatmul.msk.f32.vlgmr.msrb.gmra.mxu0 %vm999_vm0, %v9148_v0 }
0x1936   : > { %v4669_v48 = vsel %vm4668_vm3, %v7276_v25, %v4665_v42 }
0x1937   : > { %v4731_v53 = vmul.f32 %v4669_v48, %v9092_v57 }
0x1939   : > { %v4740_v35 = vmul.f32 %v9140_v44, %v4731_v53 }
0x193b   : > { %v9155_v55 = vadd.f32 %v9143_v50, %v4740_v35 }
0x193d   : > { %6737 = vmatmul.msk.f32.gmra.mxu0 %vm999_vm0, %v9155_v55 }
0x1943   : > { %v4618_v61 = vpop.xlane.xlu1 %4617 }
0x1944   : > { %v4636_v33 = vmul.f32 %v4618_v61, %v7930_v11 }
0x1946   : > { %v4644_v51 = vadd.f32 1e-05, %v4636_v33 }
0x1948   : > { %7277 = vrsqrt.f32 %v4644_v51  ;;  %vm4676_vm5 = vweird.f32 %v4644_v51 }
0x194b   : > { %v4621_v46 = vpop.xlane.xlu2 %4620 }
0x194c   : > { %v4637_v34 = vmul.f32 %v4621_v46, %v7930_v11 }
0x194e   : > { %v7278_v41 = vpop.eup %7277  ;;  %v4645_v7 = vadd.f32 1e-05, %v4637_v34 }
0x194f   : > { %v4671_v4 = vmul.f32 %v7278_v41, %v4644_v51  ;;  %vm4677_vm4 = vweird.f32 %v7278_v41 }
0x1950   : > { %7279 = vrsqrt.f32 %v4645_v7  ;;  %vm4678_vm6 = vmor %vm4676_vm5, %vm4677_vm4  ;;  %vm4686_vm8 = vweird.f32 %v4645_v7 }
0x1951   : > { %v4672_v57 = vmul.f32 %v7278_v41, %v4671_v4 }
0x1953   : > { %v4673_v5 = vmul.f32 0.5, %v4672_v57  ;;  %v4624_v63 = vpop.xlane.xlu0 %4623 }
0x1954   : > { %v4638_v56 = vmul.f32 %v4624_v63, %v7930_v11 }
0x1955   : > { %v4674_v24 = vsub.f32 1.5, %v4673_v5 }
0x1956   : > { %v7280_v21 = vpop.eup %7279  ;;  %v4646_v26 = vadd.f32 1e-05, %v4638_v56 }
0x1957   : > { %v4675_v6 = vmul.f32 %v7278_v41, %v4674_v24  ;;  %v4681_v12 = vmul.f32 %v7280_v21, %v4645_v7  ;;  %vm4687_vm7 = vweird.f32 %v7280_v21 }
0x1958   : > { %7281 = vrsqrt.f32 %v4646_v26  ;;  %vm4688_vm9 = vmor %vm4686_vm8, %vm4687_vm7  ;;  %vm4696_vm11 = vweird.f32 %v4646_v26 }
0x1959   : > { %v4679_v54 = vsel %vm4678_vm6, %v7278_v41, %v4675_v6  ;;  %v4682_v39 = vmul.f32 %v7280_v21, %v4681_v12 }
0x195a   : > { %v4732_v13 = vmul.f32 %v4679_v54, %v9100_v22 }
0x195b   : > { %v4683_v19 = vmul.f32 0.5, %v4682_v39  ;;  %v4627_v40 = vpop.xlane.xlu1 %4626 }
0x195c   : > { %v4639_v27 = vmul.f32 %v4627_v40, %v7930_v11  ;;  %v4741_v18 = vmul.f32 %v9140_v44, %v4732_v13 }
0x195d   : > { %v4684_v25 = vsub.f32 1.5, %v4683_v19 }
0x195e   : > { %v7282_v8 = vpop.eup %7281  ;;  %v4647_v3 = vadd.f32 1e-05, %v4639_v27  ;;  %v9166_v45 = vadd.f32 %v9143_v50, %v4741_v18 }
0x195f   : > { %v4685_v1 = vmul.f32 %v7280_v21, %v4684_v25  ;;  %v4691_v43 = vmul.f32 %v7282_v8, %v4646_v26  ;;  %vm4697_vm10 = vweird.f32 %v7282_v8 }
0x1960   : > { %7283 = vrsqrt.f32 %v4647_v3  ;;  %6738 = vmatmul.msk.f32.gmra.mxu0 %vm999_vm0, %v9166_v45  ;;  %vm4698_vm12 = vmor %vm4696_vm11, %vm4697_vm10  ;;  %vm4706_vm14 = vweird.f32 %v4647_v3 }
0x1961   : > { %v4689_v22 = vsel %vm4688_vm9, %v7280_v21, %v4685_v1  ;;  %v4692_v20 = vmul.f32 %v7282_v8, %v4691_v43 }
0x1962   : > { %v4733_v31 = vmul.f32 %v4689_v22, %v9106_v28 }
0x1963   : > { %v4693_v15 = vmul.f32 0.5, %v4692_v20  ;;  %v4630_v42 = vpop.xlane.xlu2 %4629 }
0x1964   : > { %v4640_v48 = vmul.f32 %v4630_v42, %v7930_v11  ;;  %v4742_v53 = vmul.f32 %v9140_v44, %v4733_v31 }
0x1965   : > { %v4694_v35 = vsub.f32 1.5, %v4693_v15 }
0x1966   : > { %v7284_v61 = vpop.eup %7283  ;;  %v4648_v33 = vadd.f32 1e-05, %v4640_v48  ;;  %v9174_v51 = vadd.f32 %v9143_v50, %v4742_v53 }
0x1967   : > { %v4695_v46 = vmul.f32 %v7282_v8, %v4694_v35  ;;  %v4701_v34 = vmul.f32 %v7284_v61, %v4647_v3  ;;  %vm4707_vm13 = vweird.f32 %v7284_v61 }
0x1968   : > { %7285 = vrsqrt.f32 %v4648_v33  ;;  %6739 = vmatmul.msk.f32.gmra.mxu0 %vm999_vm0, %v9174_v51  ;;  %vm4708_vm15 = vmor %vm4706_vm14, %vm4707_vm13  ;;  %vm4716_vm3 = vweird.f32 %v4648_v33 }
0x1969   : > { %v4699_v28 = vsel %vm4698_vm12, %v7282_v8, %v4695_v46  ;;  %v4702_v41 = vmul.f32 %v7284_v61, %v4701_v34 }
0x196a   : > { %v4734_v7 = vmul.f32 %v4699_v28, %v9112_v10  ;;  %v7002_v28 = vld [vmem:[%s7532_s6 + $0x3] ss:$0 sm:$0xff] }
0x196b   : > { %v4703_v4 = vmul.f32 0.5, %v4702_v41 }
0x196c   : > { %v4743_v57 = vmul.f32 %v9140_v44, %v4734_v7 }
0x196d   : > { %v4704_v5 = vsub.f32 1.5, %v4703_v4 }
0x196e   : > { %v7286_v63 = vpop.eup %7285  ;;  %v9181_v56 = vadd.f32 %v9143_v50, %v4743_v57 }
0x196f   : > { %v4705_v24 = vmul.f32 %v7284_v61, %v4704_v5  ;;  %v4711_v21 = vmul.f32 %v7286_v63, %v4648_v33  ;;  %vm4717_vm2 = vweird.f32 %v7286_v63 }
0x1970   : > { %6740 = vmatmul.msk.f32.gmra.mxu0 %vm999_vm0, %v9181_v56  ;;  %vm4718_vm4 = vmor %vm4716_vm3, %vm4717_vm2 }
0x1971   : > { %v4709_v26 = vsel %vm4708_vm15, %v7284_v61, %v4705_v24  ;;  %v4712_v6 = vmul.f32 %v7286_v63, %v4711_v21 }
0x1972   : > { %v4735_v10 = vmul.f32 %v4709_v26, %v9118_v59 }
0x1973   : > { %v4713_v12 = vmul.f32 0.5, %v4712_v6 }
0x1974   : > { %v4744_v54 = vmul.f32 %v9140_v44, %v4735_v10 }
0x1975   : > { %v4714_v39 = vsub.f32 1.5, %v4713_v12 }
0x1976   : > { %v9188_v13 = vadd.f32 %v9143_v50, %v4744_v54 }
0x1977   : > { %v4715_v19 = vmul.f32 %v7286_v63, %v4714_v39 }
0x1978   : > { %6741 = vmatmul.msk.f32.gmra.mxu0 %vm999_vm0, %v9188_v13 }
0x1979   : > { %v4719_v40 = vsel %vm4718_vm4, %v7286_v63, %v4715_v19 }
0x197a   : > { %v4736_v27 = vmul.f32 %v4719_v40, %v9124_v49 }
0x197c   : > { %v4745_v18 = vmul.f32 %v9140_v44, %v4736_v27 }
0x197e   : > { %v9195_v59 = vadd.f32 %v9143_v50, %v4745_v18  ;;  %v7409_v18 = vld [vmem:[%s7497_s29 + $0x40] sm:$0xff] }
0x1980   : > { %6742 = vmatmul.msk.f32.gmra.mxu0 %vm999_vm0, %v9195_v59 }
0x199b   : > { %v4633_v25 = vpop.xlane.xlu0 %4632 }
0x199c   : > { %v4641_v8 = vmul.f32 %v4633_v25, %v7930_v11 }
0x199e   : > { %v4649_v3 = vadd.f32 1e-05, %v4641_v8 }
0x19a0   : > { %7287 = vrsqrt.f32 %v4649_v3  ;;  %vm4726_vm6 = vweird.f32 %v4649_v3 }
0x19a6   : > { %v7288_v1 = vpop.eup %7287 }
0x19a7   : > { %v4721_v43 = vmul.f32 %v7288_v1, %v4649_v3  ;;  %vm4727_vm5 = vweird.f32 %v7288_v1 }
0x19a8   : > { %vm4728_vm7 = vmor %vm4726_vm6, %vm4727_vm5 }
0x19a9   : > { %v4722_v22 = vmul.f32 %v7288_v1, %v4721_v43 }
0x19ab   : > { %v4723_v20 = vmul.f32 0.5, %v4722_v22 }
0x19ad   : > { %v4724_v31 = vsub.f32 1.5, %v4723_v20 }
0x19af   : > { %v4725_v49 = vmul.f32 %v7288_v1, %v4724_v31  ;;  %v7411_v31 = vld [vmem:[%s7497_s29 + $0x50] sm:$0xff] }
0x19b1   : > { %v4729_v15 = vsel %vm4728_vm7, %v7288_v1, %v4725_v49  ;;  %v7410_v1 = vld [vmem:[%s7497_s29 + $0x48] sm:$0xff] }
0x19b2   : > { %v4737_v42 = vmul.f32 %v4729_v15, %v9134_v37  ;;  %v4805_v35 = vpop.f32.mrf.mxu0 }
0x19b3   : > { %v9220_v4 = vadd.f32 %v7002_v28, %v4805_v35 }
0x19b4   : > { %v4746_v48 = vmul.f32 %v9140_v44, %v4737_v42 }
0x19b6   : > { %v9203_v53 = vadd.f32 %v9143_v50, %v4746_v48  ;;  %v7412_v48 = vld [vmem:[%s7497_s29 + $0x58] sm:$0xff] }
0x19b8   : > { %6743 = vmatmul.msk.f32.gmra.mxu0 %vm999_vm0, %v9203_v53 }
0x19ba   : > { %v4808_v61 = vpop.f32.mrf.mxu0 }
0x19bb   : > { %v9233_v21 = vadd.f32 %v7002_v28, %v4808_v61 }
0x19dd   : > { %v4811_v33 = vpop.f32.mrf.mxu0 }
0x19de   : > { %v9222_v57 = vadd.f32 %v7002_v28, %v4811_v33 }
0x19e5   : > { %v4814_v46 = vpop.f32.mrf.mxu0 }
0x19e6   : > { %v9212_v44 = vadd.f32 %v7002_v28, %v4814_v46  ;;  %v7413_v46 = vld [vmem:[%s7497_s29 + $0x60] sm:$0xff] }
0x19ed   : > { %v4817_v34 = vpop.f32.mrf.mxu0 }
0x19ee   : > { %v4818_v24 = vadd.f32 %v7002_v28, %v4817_v34 }
0x19f5   : > { %v4820_v41 = vpop.f32.mrf.mxu0 }
0x19f6   : > { %v9208_v7 = vadd.f32 %v7002_v28, %v4820_v41 }
0x19f8   : > { %4847 = vrot.lane.b32.xlu0 %v9208_v7, %s7454_s0  ;;  %v6971_v41 = vpack.i.bf16 %v4818_v24, %v9208_v7 }
0x19fd   : > { %v4823_v37 = vpop.f32.mrf.mxu0 }
0x19fe   : > { %v9214_v50 = vadd.f32 %v7002_v28, %v4823_v37 }
0x1a00   : > { %4843 = vrot.lane.b32.xlu0 %v9212_v44, %s7454_s0  ;;  %4849 = vrot.lane.b32.xlu2 %v9214_v50, %s7454_s0 }
0x1a08   : > { %4837 = vrot.lane.b32.xlu0 %v9220_v4, %s7454_s0  ;;  %4841 = vrot.lane.b32.xlu2 %v9222_v57, %s7454_s0 }
0x1a35   : > { %v4826_v5 = vpop.f32.mrf.mxu0 }
0x1a36   : > { %v9228_v63 = vadd.f32 %v7002_v28, %v4826_v5 }
0x1a38   : > { %4851 = vrot.lane.b32.xlu1 %v9228_v63, %s7454_s0 }
0x1a40   : > { %4845 = vrot.lane.b32.xlu1 %v4818_v24, %s7454_s0 }
0x1a48   : > { %4839 = vrot.lane.b32.xlu1 %v9233_v21, %s7454_s0 }
0x1a5a   : > { %v4850_v6 = vpop.permute.xlu2 %4849 }
0x1a62   : > { %v4842_v39 = vpop.permute.xlu2 %4841 }
0x1a6a   : > { %v4848_v10 = vpop.permute.xlu0 %4847 }
0x1a72   : > { %v4844_v54 = vpop.permute.xlu0 %4843 }
0x1a7a   : > { %v4838_v40 = vpop.permute.xlu0 %4837 }
0x1aaa   : > { %v4852_v26 = vpop.permute.xlu1 %4851 }
0x1aab   : > { %6744 = vmatpush.xpose.msk.msra.mxu2 %vm999_vm0, %v4852_v26  ;;  %v7414_v26 = vld [vmem:[%s7497_s29 + $0x70] sm:$0xff] }
0x1aaf   : > { %6745 = vmatpush.xpose.msk.msra.mxu2 %vm999_vm0, %v4850_v6 }
0x1ab2   : > { %v4846_v12 = vpop.permute.xlu1 %4845 }
0x1ab3   : > { %6746 = vmatpush.xpose.msk.msra.mxu2 %vm999_vm0, %v4848_v10  ;;  %v6966_v10 = vpack.i.bf16 %v9214_v50, %v9228_v63 }
0x1ab7   : > { %6747 = vmatpush.xpose.msk.msra.mxu2 %vm999_vm0, %v4846_v12 }
0x1aba   : > { %v4840_v19 = vpop.permute.xlu1 %4839 }
0x1abb   : > { %6748 = vmatpush.xpose.msk.msra.mxu2 %vm999_vm0, %v4844_v54  ;;  %v7415_v54 = vld [vmem:[%s7497_s29 + $0x68] sm:$0xff] }
0x1abf   : > { %6749 = vmatpush.xpose.msk.msra.mxu2 %vm999_vm0, %v4842_v39 }
0x1ac3   : > { %6750 = vmatpush.xpose.msk.msra.mxu2 %vm999_vm0, %v4840_v19  ;;  %v7416_v19 = vld [vmem:[%s7497_s29 + $0x78] sm:$0xff] }
0x1ac7   : > { %6751 = vmatpush.xpose.msk.msra.mxu2 %vm999_vm0, %v4838_v40 }
0x1aca   : > { %6752 = vmatmul.msk.f32.vlgmr.msra.gmra.mxu2 %vm999_vm0, %v9220_v4 }
0x1ad2   : > { %6753 = vmatmul.msk.f32.gmra.mxu2 %vm999_vm0, %v9233_v21 }
0x1ada   : > { %6754 = vmatmul.msk.f32.gmra.mxu2 %vm999_vm0, %v9222_v57 }
0x1ae2   : > { %6755 = vmatmul.msk.f32.gmra.mxu2 %vm999_vm0, %v9212_v44 }
0x1aea   : > { %6756 = vmatmul.msk.f32.gmra.mxu2 %vm999_vm0, %v4818_v24 }
0x1af2   : > { %6757 = vmatmul.msk.f32.gmra.mxu2 %vm999_vm0, %v9208_v7 }
0x1afa   : > { %6758 = vmatmul.msk.f32.gmra.mxu2 %vm999_vm0, %v9214_v50  ;;  %v6981_v50 = vpack.i.bf16 %v9220_v4, %v9233_v21 }
0x1b02   : > { %6759 = vmatmul.msk.f32.gmra.mxu2 %vm999_vm0, %v9228_v63 }
0x1b4d   : > { %v4902_v27 = vpop.f32.mrf.mxu2 }
0x1b4e   : > { %v4903_v25 = vadd.f32 %v7409_v18, %v4902_v27 }
0x1b50   : > { %v4926_v8 = vsel %vm1517_vm1, %v4903_v25, -inf }
0x1b51   : > { %4927 = vmax.xlane.f32.xlu2 %v4926_v8 }
0x1b55   : > { %v4905_v3 = vpop.f32.mrf.mxu2 }
0x1b56   : > { %v4906_v43 = vadd.f32 %v7410_v1, %v4905_v3 }
0x1b58   : > { %v4929_v22 = vsel %vm1517_vm1, %v4906_v43, -inf }
0x1b59   : > { %4930 = vmax.xlane.f32.xlu1 %v4929_v22 }
0x1b5d   : > { %v4908_v20 = vpop.f32.mrf.mxu2 }
0x1b5e   : > { %v9265_v49 = vadd.f32 %v7411_v31, %v4908_v20 }
0x1b60   : > { %v4932_v15 = vsel %vm1517_vm1, %v9265_v49, -inf }
0x1b61   : > { %4933 = vmax.xlane.f32.xlu0 %v4932_v15 }
0x1b65   : > { %v4911_v42 = vpop.f32.mrf.mxu2 }
0x1b66   : > { %v4912_v35 = vadd.f32 %v7412_v48, %v4911_v42 }
0x1b68   : > { %v4935_v61 = vsel %vm1517_vm1, %v4912_v35, -inf }
0x1b69   : > { %4936 = vmax.xlane.f32.xlu2 %v4935_v61 }
0x1b6d   : > { %v4914_v33 = vpop.f32.mrf.mxu2 }
0x1b6e   : > { %v4915_v34 = vadd.f32 %v7413_v46, %v4914_v33 }
0x1b70   : > { %v4938_v28 = vsel %vm1517_vm1, %v4915_v34, -inf }
0x1b71   : > { %4939 = vmax.xlane.f32.xlu1 %v4938_v28 }
0x1b75   : > { %v4917_v37 = vpop.f32.mrf.mxu2  ;;  %6972 = vrot.lane.b32.xlu0 %v6971_v41, %s7456_s16 }
0x1b76   : > { %v9281_v39 = vadd.f32 %v7415_v54, %v4917_v37 }
0x1b78   : > { %v4941_v7 = vsel %vm1517_vm1, %v9281_v39, -inf }
0x1b7d   : > { %v4920_v5 = vpop.f32.mrf.mxu2 }
0x1b7e   : > { %v4921_v6 = vadd.f32 %v7414_v26, %v4920_v5  ;;  %v6976_v26 = vpack.i.bf16 %v9222_v57, %v9212_v44 }
0x1b80   : > { %v4944_v12 = vsel %vm1517_vm1, %v4921_v6, -inf }
0x1b81   : > { %4945 = vmax.xlane.f32.xlu1 %v4944_v12  ;;  %6967 = vrot.lane.b32.xlu2 %v6966_v10, %s7456_s16 }
0x1b85   : > { %v4923_v24 = vpop.f32.mrf.mxu2 }
0x1b86   : > { %v9286_v40 = vadd.f32 %v7416_v19, %v4923_v24 }
0x1b88   : > { %v4947_v27 = vsel %vm1517_vm1, %v9286_v40, -inf }
0x1b9f   : > { %4942 = vmax.xlane.f32.xlu0 %v4941_v7 }
0x1baa   : > { %4948 = vmax.xlane.f32.xlu2 %v4947_v27 }
0x1bb3   : > { %6982 = vrot.lane.b32.xlu0 %v6981_v50, %s7456_s16 }
0x1bc4   : > { %v4928_v63 = vpop.xlane.xlu2 %4927 }
0x1bc5   : > { %v4950_v18 = vsub.f32 %v4903_v25, %v4928_v63 }
0x1bc7   : > { %v4958_v8 = vmul.f32 1.442695, %v4950_v18 }
0x1bc9   : > { %7289 = vpow2.f32 %v4958_v8 }
0x1bcc   : > { %v4931_v3 = vpop.xlane.xlu1 %4930 }
0x1bcd   : > { %v4951_v1 = vsub.f32 %v4906_v43, %v4931_v3 }
0x1bcf   : > { %v9293_v22 = vpop.eup %7289  ;;  %v4960_v20 = vmul.f32 1.442695, %v4951_v1 }
0x1bd0   : > { %v4974_v31 = vsel %vm1517_vm1, %v9293_v22, 0.0 }
0x1bd1   : > { %4975 = vadd.xlane.f32.xlu1 %v4974_v31  ;;  %7291 = vpow2.f32 %v4960_v20 }
0x1bd4   : > { %v4934_v25 = vpop.xlane.xlu0 %4933 }
0x1bd5   : > { %v4952_v27 = vsub.f32 %v9265_v49, %v4934_v25 }
0x1bd7   : > { %v9297_v15 = vpop.eup %7291  ;;  %v4962_v50 = vmul.f32 1.442695, %v4952_v27 }
0x1bd8   : > { %v4977_v4 = vsel %vm1517_vm1, %v9297_v15, 0.0 }
0x1bdc   : > { %v4937_v42 = vpop.xlane.xlu2 %4936 }
0x1bdd   : > { %v4953_v21 = vsub.f32 %v4912_v35, %v4937_v42  ;;  %4978 = vadd.xlane.f32.xlu0 %v4977_v4 }
0x1bdf   : > { %v4964_v48 = vmul.f32 1.442695, %v4953_v21 }
0x1be1   : > { %7293 = vpow2.f32 %v4964_v48 }
0x1be4   : > { %v4940_v43 = vpop.xlane.xlu1 %4939  ;;  %v6968_v61 = vpop.permute.xlu2 %6967 }
0x1be5   : > { %v4954_v33 = vsub.f32 %v4915_v34, %v4940_v43  ;;  %v6969_v46 = vunpack.i.l.bf16 %v6968_v61  ;;  %v6970_v37 = vunpack.i.h.bf16 %v6968_v61 }
0x1be7   : > { %v9301_v28 = vpop.eup %7293  ;;  %v4966_v41 = vmul.f32 1.442695, %v4954_v33  ;;  %v6973_v5 = vpop.permute.xlu0 %6972  ;;  %5070 = vmatpush.msrb.mxu1 %v6969_v46 }
0x1be8   : > { %v6974_v10 = vunpack.i.l.bf16 %v6973_v5  ;;  %v4983_v35 = vsel %vm1517_vm1, %v9301_v28, 0.0  ;;  %v6975_v34 = vunpack.i.h.bf16 %v6973_v5 }
0x1be9   : > { %7295 = vpow2.f32 %v4966_v41  ;;  %4984 = vadd.xlane.f32.xlu2 %v4983_v35  ;;  %5071 = vmatpush.msrb.mxu1 %v6970_v37 }
0x1bea   : > { %6977 = vrot.lane.b32.xlu1 %v6976_v26, %s7456_s16 }
0x1beb   : > { %5072 = vmatpush.msrb.mxu1 %v6974_v10 }
0x1bed   : > { %5073 = vmatpush.msrb.mxu1 %v6975_v34 }
0x1bef   : > { %v9308_v12 = vpop.eup %7295 }
0x1bf0   : > { %v4986_v54 = vsel %vm1517_vm1, %v9308_v12, 0.0 }
0x1bf1   : > { %4987 = vadd.xlane.f32.xlu2 %v4986_v54 }
0x1bf4   : > { %v4946_v7 = vpop.xlane.xlu1 %4945 }
0x1bf5   : > { %v4956_v44 = vsub.f32 %v4921_v6, %v4946_v7 }
0x1bf7   : > { %v4970_v57 = vmul.f32 1.442695, %v4956_v44 }
0x1bf9   : > { %7297 = vpow2.f32 %v4970_v57  ;;  %v6769_v57 = vld [vmem:[%s7537_s12 + $0x38] sm:$0xff] }
0x1bfa   : > { %7299 = vpow2.f32 %v4962_v50  ;;  %5149 = vmatpush.msrb.mxu3 %v6769_v57 }
0x1bff   : > { %v9312_v24 = vpop.eup %7297 }
0x1c00   : > { %v4992_v19 = vsel %vm1517_vm1, %v9312_v24, 0.0  ;;  %v7300_v63 = vpop.eup %7299 }
0x1c01   : > { %4993 = vadd.xlane.f32.xlu2 %v4992_v19  ;;  %v4980_v3 = vsel %vm1517_vm1, %v7300_v63, 0.0 }
0x1c12   : > { %v4943_v18 = vpop.xlane.xlu0 %4942 }
0x1c13   : > { %v4955_v8 = vsub.f32 %v9281_v39, %v4943_v18 }
0x1c14   : > { %4981 = vadd.xlane.f32.xlu1 %v4980_v3 }
0x1c15   : > { %v4968_v6 = vmul.f32 1.442695, %v4955_v8 }
0x1c17   : > { %7301 = vpow2.f32 %v4968_v6 }
0x1c1d   : > { %v7302_v1 = vpop.eup %7301  ;;  %v4949_v20 = vpop.xlane.xlu2 %4948 }
0x1c1e   : > { %v4957_v31 = vsub.f32 %v9286_v40, %v4949_v20  ;;  %v4989_v42 = vsel %vm1517_vm1, %v7302_v1, 0.0 }
0x1c1f   : > { %4990 = vadd.xlane.f32.xlu0 %v4989_v42 }
0x1c20   : > { %v4972_v4 = vmul.f32 1.442695, %v4957_v31 }
0x1c22   : > { %7303 = vpow2.f32 %v4972_v4 }
0x1c25   : > { %v6983_v39 = vpop.permute.xlu0 %6982 }
0x1c26   : > { %v6984_v41 = vunpack.i.l.bf16 %v6983_v39  ;;  %v6985_v40 = vunpack.i.h.bf16 %v6983_v39  ;;  %v7003_v39 = vld [vmem:[%s7542_s20 + $0x3] ss:$0 sm:$0xff] }
0x1c28   : > { %v7304_v49 = vpop.eup %7303 }
0x1c29   : > { %v4995_v21 = vsel %vm1517_vm1, %v7304_v49, 0.0 }
0x1c2a   : > { %4996 = vadd.xlane.f32.xlu0 %v4995_v21 }
0x1c44   : > { %v4976_v25 = vpop.xlane.xlu1 %4975 }
0x1c45   : > { %7305 = vrcp.f32 %v4976_v25 }
0x1c4b   : > { %v7306_v46 = vpop.eup %7305 }
0x1c4c   : > { %v5006_v37 = vmul.f32 %v7306_v46, %v9293_v22 }
0x1c50   : > { %v4979_v33 = vpop.xlane.xlu0 %4978 }
0x1c51   : > { %7307 = vrcp.f32 %v4979_v33 }
0x1c57   : > { %v7308_v5 = vpop.eup %7307 }
0x1c58   : > { %v5007_v26 = vmul.f32 %v7308_v5, %v9297_v15 }
0x1c5c   : > { %v6978_v48 = vpop.permute.xlu1 %6977  ;;  %v4985_v35 = vpop.xlane.xlu2 %4984 }
0x1c5d   : > { %v6979_v43 = vunpack.i.l.bf16 %v6978_v48  ;;  %v6980_v61 = vunpack.i.h.bf16 %v6978_v48 }
0x1c5f   : > { %5074 = vmatpush.msrb.mxu1 %v6979_v43 }
0x1c61   : > { %5075 = vmatpush.msrb.mxu1 %v6980_v61 }
0x1c63   : > { %5076 = vmatpush.msrb.mxu1 %v6984_v41 }
0x1c64   : > { %v4988_v7 = vpop.xlane.xlu2 %4987 }
0x1c65   : > { %5077 = vmatpush.msrb.mxu1 %v6985_v40 }
0x1c66   : > { %6760 = vmatmul.msk.f32.vlgmr.msrb.gmra.mxu1 %vm1517_vm1, %v5006_v37 }
0x1c6e   : > { %6761 = vmatmul.msk.f32.gmra.mxu1 %vm1517_vm1, %v5007_v26 }
0x1c74   : > { %v4994_v50 = vpop.xlane.xlu2 %4993 }
0x1c87   : > { %v4982_v10 = vpop.xlane.xlu1 %4981 }
0x1c88   : > { %7309 = vrcp.f32 %v4982_v10 }
0x1c89   : > { %7311 = vrcp.f32 %v4985_v35 }
0x1c8a   : > { %7313 = vrcp.f32 %v4988_v7 }
0x1c8e   : > { %v7310_v34 = vpop.eup %7309 }
0x1c8f   : > { %v5008_v54 = vmul.f32 %v7310_v34, %v7300_v63  ;;  %v7312_v44 = vpop.eup %7311 }
0x1c90   : > { %v5009_v22 = vmul.f32 %v7312_v44, %v9301_v28  ;;  %v7314_v19 = vpop.eup %7313 }
0x1c91   : > { %6762 = vmatmul.msk.f32.gmra.mxu1 %vm1517_vm1, %v5008_v54  ;;  %v5010_v27 = vmul.f32 %v7314_v19, %v9308_v12  ;;  %v6768_v12 = vld [vmem:[%s7537_s12 + $0x30] sm:$0xff] }
0x1c92   : > { %v4991_v15 = vpop.xlane.xlu0 %4990  ;;  %5150 = vmatpush.msrb.mxu3 %v6768_v12 }
0x1c93   : > { %7315 = vrcp.f32 %v4991_v15 }
0x1c94   : > { %7317 = vrcp.f32 %v4994_v50 }
0x1c99   : > { %6763 = vmatmul.msk.f32.gmra.mxu1 %vm1517_vm1, %v5009_v22  ;;  %v7316_v63 = vpop.eup %7315 }
0x1c9a   : > { %v5011_v18 = vmul.f32 %v7316_v63, %v7302_v1  ;;  %v7318_v28 = vpop.eup %7317 }
0x1c9b   : > { %v5012_v3 = vmul.f32 %v7318_v28, %v9312_v24 }
0x1c9d   : > { %v4997_v8 = vpop.xlane.xlu0 %4996 }
0x1c9e   : > { %7319 = vrcp.f32 %v4997_v8 }
0x1ca1   : > { %6764 = vmatmul.msk.f32.gmra.mxu1 %vm1517_vm1, %v5010_v27 }
0x1ca4   : > { %v7320_v6 = vpop.eup %7319 }
0x1ca5   : > { %v5013_v20 = vmul.f32 %v7320_v6, %v7304_v49 }
0x1ca9   : > { %6765 = vmatmul.msk.f32.gmra.mxu1 %vm1517_vm1, %v5011_v18 }
0x1cb1   : > { %6766 = vmatmul.msk.f32.gmra.mxu1 %vm1517_vm1, %v5012_v3 }
0x1cb9   : > { %6767 = vmatmul.msk.f32.gmra.mxu1 %vm1517_vm1, %v5013_v20 }
0x1ce3   : > { %v5079_v31 = vpop.f32.mrf.mxu1 }
0x1ce4   : > { %6771 = vmatmul.msk.f32.vlgmr.msrb.gmra.mxu3 %vm999_vm0, %v5079_v31 }
0x1ceb   : > { %v5082_v1 = vpop.f32.mrf.mxu1 }
0x1cec   : > { %6772 = vmatmul.msk.f32.gmra.mxu3 %vm999_vm0, %v5082_v1 }
0x1d0e   : > { %v5085_v42 = vpop.f32.mrf.mxu1 }
0x1d0f   : > { %6773 = vmatmul.msk.f32.gmra.mxu3 %vm999_vm0, %v5085_v42 }
0x1d16   : > { %v5088_v4 = vpop.f32.mrf.mxu1 }
0x1d17   : > { %6774 = vmatmul.msk.f32.gmra.mxu3 %vm999_vm0, %v5088_v4 }
0x1d1e   : > { %v5091_v24 = vpop.f32.mrf.mxu1 }
0x1d1f   : > { %6775 = vmatmul.msk.f32.gmra.mxu3 %vm999_vm0, %v5091_v24 }
0x1d26   : > { %v5094_v49 = vpop.f32.mrf.mxu1 }
0x1d27   : > { %6776 = vmatmul.msk.f32.gmra.mxu3 %vm999_vm0, %v5094_v49 }
0x1d2e   : > { %v5097_v21 = vpop.f32.mrf.mxu1 }
0x1d2f   : > { %6777 = vmatmul.msk.f32.gmra.mxu3 %vm999_vm0, %v5097_v21 }
0x1d36   : > { %v5100_v25 = vpop.f32.mrf.mxu1 }
0x1d37   : > { %6778 = vmatmul.msk.f32.gmra.mxu3 %vm999_vm0, %v5100_v25 }
0x1d67   : > { %v5152_v48 = vpop.f32.mrf.mxu3 }
0x1d68   : > { %v5153_v43 = vadd.f32 %v7003_v39, %v5152_v48 }
0x1d6a   : > { %v5178_v61 = vadd.f32 %v5153_v43, %v9148_v0  ;;  %v6781_v43 = vld [vmem:[%s7552_s4 + $0x38] sm:$0xff] }
0x1d6b   : > { %5426 = vmatpush.msra.mxu0 %v6781_v43 }
0x1d6c   : > { %v5186_v33 = vsel %vm999_vm0, %v5178_v61, 0.0 }
0x1d6d   : > { %5187 = vadd.xlane.f32.xlu1 %v5186_v33 }
0x1d6f   : > { %v5155_v46 = vpop.f32.mrf.mxu3 }
0x1d70   : > { %v5156_v41 = vadd.f32 %v7003_v39, %v5155_v46 }
0x1d72   : > { %v5179_v40 = vadd.f32 %v5156_v41, %v9155_v55 }
0x1d74   : > { %v5189_v37 = vsel %vm999_vm0, %v5179_v40, 0.0 }
0x1d75   : > { %5190 = vadd.xlane.f32.xlu2 %v5189_v37 }
0x1d92   : > { %v5158_v5 = vpop.f32.mrf.mxu3 }
0x1d93   : > { %v5159_v26 = vadd.f32 %v7003_v39, %v5158_v5 }
0x1d95   : > { %v5180_v10 = vadd.f32 %v5159_v26, %v9166_v45 }
0x1d97   : > { %v5192_v35 = vsel %vm999_vm0, %v5180_v10, 0.0 }
0x1d98   : > { %5193 = vadd.xlane.f32.xlu0 %v5192_v35 }
0x1d9a   : > { %v5161_v34 = vpop.f32.mrf.mxu3 }
0x1d9b   : > { %v5162_v54 = vadd.f32 %v7003_v39, %v5161_v34 }
0x1d9d   : > { %v5181_v0 = vadd.f32 %v5162_v54, %v9174_v51 }
0x1d9f   : > { %v5195_v7 = vsel %vm999_vm0, %v5181_v0, 0.0 }
0x1da0   : > { %5196 = vadd.xlane.f32.xlu1 %v5195_v7 }
0x1da2   : > { %v5164_v44 = vpop.f32.mrf.mxu3 }
0x1da3   : > { %v5165_v22 = vadd.f32 %v7003_v39, %v5164_v44 }
0x1da5   : > { %v5182_v55 = vadd.f32 %v5165_v22, %v9181_v56 }
0x1da7   : > { %v5198_v57 = vsel %vm999_vm0, %v5182_v55, 0.0 }
0x1da8   : > { %5199 = vadd.xlane.f32.xlu2 %v5198_v57 }
0x1daa   : > { %v5167_v15 = vpop.f32.mrf.mxu3 }
0x1dab   : > { %v5168_v19 = vadd.f32 %v7003_v39, %v5167_v15 }
0x1dad   : > { %v5183_v45 = vadd.f32 %v5168_v19, %v9188_v13  ;;  %v6780_v19 = vld [vmem:[%s7552_s4 + $0x30] sm:$0xff] }
0x1dae   : > { %5427 = vmatpush.msra.mxu0 %v6780_v19 }
0x1daf   : > { %v5201_v27 = vsel %vm999_vm0, %v5183_v45, 0.0 }
0x1db0   : > { %5202 = vadd.xlane.f32.xlu0 %v5201_v27 }
0x1db2   : > { %v5170_v50 = vpop.f32.mrf.mxu3 }
0x1db3   : > { %v5171_v63 = vadd.f32 %v7003_v39, %v5170_v50 }
0x1db5   : > { %v5184_v51 = vadd.f32 %v5171_v63, %v9195_v59 }
0x1db7   : > { %v5204_v18 = vsel %vm999_vm0, %v5184_v51, 0.0 }
0x1db8   : > { %5205 = vadd.xlane.f32.xlu2 %v5204_v18 }
0x1dba   : > { %v5173_v3 = vpop.f32.mrf.mxu3 }
0x1dbb   : > { %v5174_v13 = vadd.f32 %v7003_v39, %v5173_v3 }
0x1dbd   : > { %v5185_v31 = vadd.f32 %v5174_v13, %v9203_v53 }
0x1dbf   : > { %v5207_v24 = vsel %vm999_vm0, %v5185_v31, 0.0 }
0x1de0   : > { %v5188_v8 = vpop.xlane.xlu1 %5187 }
0x1de1   : > { %v5210_v56 = vmul.f32 %v5188_v8, %v7930_v11 }
0x1de3   : > { %v9361_v28 = vsub.f32 %v5178_v61, %v5210_v56 }
0x1de5   : > { %v5226_v6 = vmul.f32 %v9361_v28, %v9361_v28 }
0x1de7   : > { %v5234_v20 = vsel %vm999_vm0, %v5226_v6, 0.0 }
0x1de8   : > { %v5191_v12 = vpop.xlane.xlu2 %5190  ;;  %5235 = vadd.xlane.f32.xlu1 %v5234_v20 }
0x1de9   : > { %v5211_v59 = vmul.f32 %v5191_v12, %v7930_v11 }
0x1deb   : > { %v9368_v1 = vsub.f32 %v5179_v40, %v5211_v59 }
0x1ded   : > { %v5227_v42 = vmul.f32 %v9368_v1, %v9368_v1 }
0x1def   : > { %v5237_v4 = vsel %vm999_vm0, %v5227_v42, 0.0 }
0x1df0   : > { %5238 = vadd.xlane.f32.xlu0 %v5237_v4  ;;  %5208 = vadd.xlane.f32.xlu1 %v5207_v24  ;;  %v9415_v4 = vld [vmem:[%s9859_s23 + $0xc] sm:$0xf] }
0x1df1   : > { %v9421_v43 = vperm.slane %v9415_v4, 1 }
0x1e0b   : > { %v5194_v49 = vpop.xlane.xlu0 %5193 }
0x1e0c   : > { %v5212_v21 = vmul.f32 %v5194_v49, %v7930_v11 }
0x1e0e   : > { %v9375_v25 = vsub.f32 %v5180_v10, %v5212_v21 }
0x1e10   : > { %v5228_v39 = vmul.f32 %v9375_v25, %v9375_v25 }
0x1e12   : > { %v5240_v53 = vsel %vm999_vm0, %v5228_v39, 0.0 }
0x1e13   : > { %v5197_v48 = vpop.xlane.xlu1 %5196  ;;  %5241 = vadd.xlane.f32.xlu2 %v5240_v53 }
0x1e14   : > { %v5213_v61 = vmul.f32 %v5197_v48, %v7930_v11 }
0x1e16   : > { %v9382_v33 = vsub.f32 %v5181_v0, %v5213_v61 }
0x1e18   : > { %v5229_v46 = vmul.f32 %v9382_v33, %v9382_v33 }
0x1e1a   : > { %v5243_v41 = vsel %vm999_vm0, %v5229_v46, 0.0 }
0x1e1b   : > { %v5200_v40 = vpop.xlane.xlu2 %5199  ;;  %5244 = vadd.xlane.f32.xlu0 %v5243_v41 }
0x1e1c   : > { %v5214_v37 = vmul.f32 %v5200_v40, %v7930_v11 }
0x1e1e   : > { %v9388_v5 = vsub.f32 %v5182_v55, %v5214_v37 }
0x1e20   : > { %v5230_v26 = vmul.f32 %v9388_v5, %v9388_v5 }
0x1e22   : > { %v5246_v10 = vsel %vm999_vm0, %v5230_v26, 0.0 }
0x1e23   : > { %v5203_v35 = vpop.xlane.xlu0 %5202  ;;  %5247 = vadd.xlane.f32.xlu1 %v5246_v10 }
0x1e24   : > { %v5215_v34 = vmul.f32 %v5203_v35, %v7930_v11 }
0x1e26   : > { %v9394_v54 = vsub.f32 %v5183_v45, %v5215_v34 }
0x1e28   : > { %v5231_v0 = vmul.f32 %v9394_v54, %v9394_v54 }
0x1e2a   : > { %v5249_v7 = vsel %vm999_vm0, %v5231_v0, 0.0 }
0x1e2b   : > { %5250 = vadd.xlane.f32.xlu2 %v5249_v7  ;;  %v5206_v44 = vpop.xlane.xlu2 %5205 }
0x1e2c   : > { %v5216_v22 = vmul.f32 %v5206_v44, %v7930_v11 }
0x1e2e   : > { %v9400_v55 = vsub.f32 %v5184_v51, %v5216_v22 }
0x1e30   : > { %v5232_v57 = vmul.f32 %v9400_v55, %v9400_v55 }
0x1e32   : > { %v5252_v15 = vsel %vm999_vm0, %v5232_v57, 0.0 }
0x1e33   : > { %5253 = vadd.xlane.f32.xlu0 %v5252_v15 }
0x1e5b   : > { %v5236_v45 = vpop.xlane.xlu1 %5235 }
0x1e5c   : > { %v5258_v27 = vmul.f32 %v5236_v45, %v7930_v11 }
0x1e5e   : > { %v5266_v50 = vadd.f32 1e-05, %v5258_v27 }
0x1e60   : > { %7321 = vrsqrt.f32 %v5266_v50  ;;  %vm5280_vm9 = vweird.f32 %v5266_v50 }
0x1e63   : > { %v5239_v63 = vpop.xlane.xlu0 %5238  ;;  %v5209_v18 = vpop.xlane.xlu1 %5208 }
0x1e64   : > { %v5259_v8 = vmul.f32 %v5239_v63, %v7930_v11  ;;  %v5217_v51 = vmul.f32 %v5209_v18, %v7930_v11 }
0x1e66   : > { %v7322_v56 = vpop.eup %7321  ;;  %v5267_v3 = vadd.f32 1e-05, %v5259_v8  ;;  %v9409_v6 = vsub.f32 %v5185_v31, %v5217_v51  ;;  %v9418_v31 = vperm.slane %v9415_v4, 0 }
0x1e67   : > { %v5275_v13 = vmul.f32 %v7322_v56, %v5266_v50  ;;  %vm5281_vm8 = vweird.f32 %v7322_v56 }
0x1e68   : > { %7323 = vrsqrt.f32 %v5267_v3  ;;  %v5233_v20 = vmul.f32 %v9409_v6, %v9409_v6  ;;  %vm5282_vm10 = vmor %vm5280_vm9, %vm5281_vm8  ;;  %vm5290_vm12 = vweird.f32 %v5267_v3 }
0x1e69   : > { %v5276_v12 = vmul.f32 %v7322_v56, %v5275_v13 }
0x1e6a   : > { %v5255_v59 = vsel %vm999_vm0, %v5233_v20, 0.0 }
0x1e6b   : > { %v5277_v42 = vmul.f32 0.5, %v5276_v12  ;;  %5256 = vadd.xlane.f32.xlu1 %v5255_v59 }
0x1e6d   : > { %v5278_v24 = vsub.f32 1.5, %v5277_v42 }
0x1e6e   : > { %v7324_v49 = vpop.eup %7323 }
0x1e6f   : > { %v5279_v21 = vmul.f32 %v7322_v56, %v5278_v24  ;;  %v5285_v39 = vmul.f32 %v7324_v49, %v5267_v3  ;;  %vm5291_vm11 = vweird.f32 %v7324_v49 }
0x1e70   : > { %vm5292_vm13 = vmor %vm5290_vm12, %vm5291_vm11 }
0x1e71   : > { %v5283_v53 = vsel %vm5282_vm10, %v7322_v56, %v5279_v21  ;;  %v5286_v48 = vmul.f32 %v7324_v49, %v5285_v39 }
0x1e72   : > { %v5354_v61 = vmul.f32 %v5283_v53, %v9361_v28 }
0x1e73   : > { %v5287_v46 = vmul.f32 0.5, %v5286_v48 }
0x1e74   : > { %v5363_v41 = vmul.f32 %v9418_v31, %v5354_v61 }
0x1e75   : > { %v5288_v40 = vsub.f32 1.5, %v5287_v46 }
0x1e76   : > { %v9426_v37 = vadd.f32 %v9421_v43, %v5363_v41 }
0x1e77   : > { %v5289_v26 = vmul.f32 %v7324_v49, %v5288_v40 }
0x1e78   : > { %6783 = vmatmul.msk.f32.vlgmr.msra.gmra.mxu0 %vm999_vm0, %v9426_v37 }
0x1e79   : > { %v5293_v10 = vsel %vm5292_vm13, %v7324_v49, %v5289_v26 }
0x1e7a   : > { %v5355_v35 = vmul.f32 %v5293_v10, %v9368_v1 }
0x1e7c   : > { %v5364_v34 = vmul.f32 %v9418_v31, %v5355_v35 }
0x1e7e   : > { %v9433_v28 = vadd.f32 %v9421_v43, %v5364_v34 }
0x1e80   : > { %6784 = vmatmul.msk.f32.gmra.mxu0 %vm999_vm0, %v9433_v28 }
0x1e86   : > { %v5242_v0 = vpop.xlane.xlu2 %5241 }
0x1e87   : > { %v5260_v7 = vmul.f32 %v5242_v0, %v7930_v11 }
0x1e89   : > { %v5268_v44 = vadd.f32 1e-05, %v5260_v7 }
0x1e8b   : > { %7325 = vrsqrt.f32 %v5268_v44  ;;  %vm5300_vm15 = vweird.f32 %v5268_v44 }
0x1e8e   : > { %v5245_v22 = vpop.xlane.xlu0 %5244 }
0x1e8f   : > { %v5261_v57 = vmul.f32 %v5245_v22, %v7930_v11 }
0x1e91   : > { %v7326_v15 = vpop.eup %7325  ;;  %v5269_v19 = vadd.f32 1e-05, %v5261_v57 }
0x1e92   : > { %v5295_v45 = vmul.f32 %v7326_v15, %v5268_v44  ;;  %vm5301_vm14 = vweird.f32 %v7326_v15 }
0x1e93   : > { %7327 = vrsqrt.f32 %v5269_v19  ;;  %vm5302_vm2 = vmor %vm5300_vm15, %vm5301_vm14  ;;  %vm5310_vm4 = vweird.f32 %v5269_v19 }
0x1e94   : > { %v5296_v1 = vmul.f32 %v7326_v15, %v5295_v45 }
0x1e96   : > { %v5297_v27 = vmul.f32 0.5, %v5296_v1  ;;  %v5248_v50 = vpop.xlane.xlu1 %5247 }
0x1e97   : > { %v5262_v63 = vmul.f32 %v5248_v50, %v7930_v11 }
0x1e98   : > { %v5298_v18 = vsub.f32 1.5, %v5297_v27 }
0x1e99   : > { %v7328_v8 = vpop.eup %7327  ;;  %v5270_v51 = vadd.f32 1e-05, %v5262_v63 }
0x1e9a   : > { %v5299_v56 = vmul.f32 %v7326_v15, %v5298_v18  ;;  %v5305_v3 = vmul.f32 %v7328_v8, %v5269_v19  ;;  %vm5311_vm3 = vweird.f32 %v7328_v8 }
0x1e9b   : > { %7329 = vrsqrt.f32 %v5270_v51  ;;  %vm5312_vm5 = vmor %vm5310_vm4, %vm5311_vm3  ;;  %vm5320_vm7 = vweird.f32 %v5270_v51 }
0x1e9c   : > { %v5303_v13 = vsel %vm5302_vm2, %v7326_v15, %v5299_v56  ;;  %v5306_v20 = vmul.f32 %v7328_v8, %v5305_v3 }
0x1e9d   : > { %v5356_v12 = vmul.f32 %v5303_v13, %v9375_v25 }
0x1e9e   : > { %v5307_v59 = vmul.f32 0.5, %v5306_v20  ;;  %v5251_v42 = vpop.xlane.xlu2 %5250 }
0x1e9f   : > { %v5263_v24 = vmul.f32 %v5251_v42, %v7930_v11  ;;  %v5365_v49 = vmul.f32 %v9418_v31, %v5356_v12 }
0x1ea0   : > { %v5308_v21 = vsub.f32 1.5, %v5307_v59 }
0x1ea1   : > { %v7330_v39 = vpop.eup %7329  ;;  %v5271_v53 = vadd.f32 1e-05, %v5263_v24  ;;  %v9444_v48 = vadd.f32 %v9421_v43, %v5365_v49 }
0x1ea2   : > { %v5309_v61 = vmul.f32 %v7328_v8, %v5308_v21  ;;  %v5315_v46 = vmul.f32 %v7330_v39, %v5270_v51  ;;  %vm5321_vm6 = vweird.f32 %v7330_v39 }
0x1ea3   : > { %7331 = vrsqrt.f32 %v5271_v53  ;;  %6785 = vmatmul.msk.f32.gmra.mxu0 %vm999_vm0, %v9444_v48  ;;  %vm5322_vm8 = vmor %vm5320_vm7, %vm5321_vm6  ;;  %vm5330_vm10 = vweird.f32 %v5271_v53 }
0x1ea4   : > { %v5313_v25 = vsel %vm5312_vm5, %v7328_v8, %v5309_v61  ;;  %v5316_v41 = vmul.f32 %v7330_v39, %v5315_v46  ;;  %v6797_v46 = vld [vmem:[%s9860_s26 + $0xf0] sm:$0xff] }
0x1ea5   : > { %v5357_v40 = vmul.f32 %v5313_v25, %v9382_v33 }
0x1ea6   : > { %v5317_v26 = vmul.f32 0.5, %v5316_v41  ;;  %v5254_v10 = vpop.xlane.xlu0 %5253  ;;  %v6795_v41 = vld [vmem:[%s9860_s26 + $0xe0] sm:$0xff] }
0x1ea7   : > { %v5264_v35 = vmul.f32 %v5254_v10, %v7930_v11  ;;  %v5366_v34 = vmul.f32 %v9418_v31, %v5357_v40  ;;  %v6794_v40 = vld [vmem:[%s9860_s26 + $0xd8] sm:$0xff] }
0x1ea8   : > { %v5318_v0 = vsub.f32 1.5, %v5317_v26  ;;  %v6793_v26 = vld [vmem:[%s9860_s26 + $0xd0] sm:$0xff] }
0x1ea9   : > { %v7332_v7 = vpop.eup %7331  ;;  %v5272_v44 = vadd.f32 1e-05, %v5264_v35  ;;  %v9452_v22 = vadd.f32 %v9421_v43, %v5366_v34  ;;  %v6792_v34 = vld [vmem:[%s9860_s26 + $0xc8] sm:$0xff] }
0x1eaa   : > { %v5319_v57 = vmul.f32 %v7330_v39, %v5318_v0  ;;  %v5325_v15 = vmul.f32 %v7332_v7, %v5271_v53  ;;  %vm5331_vm9 = vweird.f32 %v7332_v7  ;;  %v6791_v0 = vld [vmem:[%s9860_s26 + $0xc0] sm:$0xff] }
0x1eab   : > { %7333 = vrsqrt.f32 %v5272_v44  ;;  %6786 = vmatmul.msk.f32.gmra.mxu0 %vm999_vm0, %v9452_v22  ;;  %vm5332_vm11 = vmor %vm5330_vm10, %vm5331_vm9  ;;  %vm5340_vm13 = vweird.f32 %v5272_v44 }
0x1eac   : > { %v5323_v33 = vsel %vm5322_vm8, %v7330_v39, %v5319_v57  ;;  %v5326_v19 = vmul.f32 %v7332_v7, %v5325_v15  ;;  %v6798_v39 = vld [vmem:[%s9860_s26 + $0xf8] sm:$0xff] }
0x1ead   : > { %v5358_v45 = vmul.f32 %v5323_v33, %v9388_v5  ;;  %5571 = vmatpush.msrb.mxu2 %v6798_v39  ;;  %v9487_v33 = vld [vmem:[%s9861_s1 + $0x3] ss:$0 sm:$0xff]  ;;  %s7458_s1 = smov 1  }
0x1eae   : > { %v5327_v1 = vmul.f32 0.5, %v5326_v19 }
0x1eaf   : > { %v5367_v27 = vmul.f32 %v9418_v31, %v5358_v45  ;;  %5572 = vmatpush.msrb.mxu2 %v6797_v46 }
0x1eb0   : > { %v5328_v50 = vsub.f32 1.5, %v5327_v1 }
0x1eb1   : > { %v7334_v63 = vpop.eup %7333  ;;  %v9459_v18 = vadd.f32 %v9421_v43, %v5367_v27 }
0x1eb2   : > { %v5329_v8 = vmul.f32 %v7332_v7, %v5328_v50  ;;  %v5335_v51 = vmul.f32 %v7334_v63, %v5272_v44  ;;  %vm5341_vm12 = vweird.f32 %v7334_v63 }
0x1eb3   : > { %6787 = vmatmul.msk.f32.gmra.mxu0 %vm999_vm0, %v9459_v18  ;;  %vm5342_vm14 = vmor %vm5340_vm13, %vm5341_vm12 }
0x1eb4   : > { %v5333_v56 = vsel %vm5332_vm11, %v7332_v7, %v5329_v8  ;;  %v5336_v3 = vmul.f32 %v7334_v63, %v5335_v51 }
0x1eb5   : > { %v5359_v5 = vmul.f32 %v5333_v56, %v9394_v54 }
0x1eb6   : > { %v5337_v13 = vmul.f32 0.5, %v5336_v3 }
0x1eb7   : > { %v5368_v20 = vmul.f32 %v9418_v31, %v5359_v5 }
0x1eb8   : > { %v5338_v12 = vsub.f32 1.5, %v5337_v13 }
0x1eb9   : > { %v9466_v59 = vadd.f32 %v9421_v43, %v5368_v20 }
0x1eba   : > { %v5339_v42 = vmul.f32 %v7334_v63, %v5338_v12 }
0x1ebb   : > { %6788 = vmatmul.msk.f32.gmra.mxu0 %vm999_vm0, %v9466_v59 }
0x1ebc   : > { %v5343_v24 = vsel %vm5342_vm14, %v7334_v63, %v5339_v42 }
0x1ebd   : > { %v5360_v54 = vmul.f32 %v5343_v24, %v9400_v55  ;;  %v6796_v55 = vld [vmem:[%s9860_s26 + $0xe8] sm:$0xff] }
0x1ebe   : > { %5573 = vmatpush.msrb.mxu2 %v6796_v55 }
0x1ebf   : > { %v5369_v49 = vmul.f32 %v9418_v31, %v5360_v54 }
0x1ec0   : > { %5574 = vmatpush.msrb.mxu2 %v6795_v41 }
0x1ec1   : > { %v9473_v21 = vadd.f32 %v9421_v43, %v5369_v49 }
0x1ec2   : > { %5575 = vmatpush.msrb.mxu2 %v6794_v40 }
0x1ec3   : > { %6789 = vmatmul.msk.f32.gmra.mxu0 %vm999_vm0, %v9473_v21 }
0x1ec4   : > { %5576 = vmatpush.msrb.mxu2 %v6793_v26 }
0x1ec6   : > { %5577 = vmatpush.msrb.mxu2 %v6792_v34 }
0x1ec8   : > { %5578 = vmatpush.msrb.mxu2 %v6791_v0 }
0x1ede   : > { %v5257_v53 = vpop.xlane.xlu1 %5256 }
0x1edf   : > { %v5265_v61 = vmul.f32 %v5257_v53, %v7930_v11 }
0x1ee1   : > { %v5273_v25 = vadd.f32 1e-05, %v5265_v61 }
0x1ee3   : > { %7335 = vrsqrt.f32 %v5273_v25  ;;  %vm5350_vm2 = vweird.f32 %v5273_v25 }
0x1ee9   : > { %v7336_v10 = vpop.eup %7335 }
0x1eea   : > { %v5345_v35 = vmul.f32 %v7336_v10, %v5273_v25  ;;  %vm5351_vm15 = vweird.f32 %v7336_v10 }
0x1eeb   : > { %vm5352_vm3 = vmor %vm5350_vm2, %vm5351_vm15 }
0x1eec   : > { %v5346_v7 = vmul.f32 %v7336_v10, %v5345_v35 }
0x1eee   : > { %v5347_v44 = vmul.f32 0.5, %v5346_v7 }
0x1ef0   : > { %v5348_v57 = vsub.f32 1.5, %v5347_v44 }
0x1ef2   : > { %v5349_v15 = vmul.f32 %v7336_v10, %v5348_v57 }
0x1ef4   : > { %v5353_v19 = vsel %vm5352_vm3, %v7336_v10, %v5349_v15 }
0x1ef5   : > { %v5361_v45 = vmul.f32 %v5353_v19, %v9409_v6  ;;  %v5429_v1 = vpop.f32.mrf.mxu0 }
0x1ef6   : > { %v5430_v27 = vadd.f32 %v9487_v33, %v5429_v1 }
0x1ef7   : > { %v5370_v50 = vmul.f32 %v9418_v31, %v5361_v45 }
0x1ef8   : > { %v5461_v63 = vmul.f32 0.044715, %v5430_v27  ;;  %v5453_v49 = vmul.f32 0.5, %v5430_v27 }
0x1ef9   : > { %v9493_v8 = vadd.f32 %v9421_v43, %v5370_v50 }
0x1efa   : > { %v5469_v51 = vmul.f32 %v5461_v63, %v5430_v27 }
0x1efb   : > { %6790 = vmatmul.msk.f32.gmra.mxu0 %vm999_vm0, %v9493_v8 }
0x1efc   : > { %v5477_v56 = vmul.f32 %v5469_v51, %v5430_v27 }
0x1efd   : > { %v5432_v3 = vpop.f32.mrf.mxu0 }
0x1efe   : > { %v5485_v5 = vadd.f32 %v5477_v56, %v5430_v27  ;;  %v5433_v13 = vadd.f32 %v9487_v33, %v5432_v3 }
0x1f00   : > { %v5493_v20 = vmul.f32 0.7978846, %v5485_v5  ;;  %v5462_v6 = vmul.f32 0.044715, %v5433_v13  ;;  %v5454_v61 = vmul.f32 0.5, %v5433_v13 }
0x1f02   : > { %7337 = vtanh.f32 %v5493_v20  ;;  %v5470_v12 = vmul.f32 %v5462_v6, %v5433_v13 }
0x1f04   : > { %v5478_v42 = vmul.f32 %v5470_v12, %v5433_v13 }
0x1f06   : > { %v5486_v24 = vadd.f32 %v5478_v42, %v5433_v13 }
0x1f08   : > { %v7338_v31 = vpop.eup %7337  ;;  %v5494_v54 = vmul.f32 0.7978846, %v5486_v24 }
0x1f09   : > { %v5509_v43 = vadd.f32 1.0, %v7338_v31 }
0x1f0a   : > { %7339 = vtanh.f32 %v5494_v54 }
0x1f0b   : > { %v5517_v39 = vmul.f32 %v5509_v43, %v5453_v49 }
0x1f0d   : > { %6800 = vmatmul.msk.f32.vlgmr.msrb.gmra.mxu2 %vm1517_vm1, %v5517_v39 }
0x1f10   : > { %v7340_v53 = vpop.eup %7339 }
0x1f11   : > { %v5510_v46 = vadd.f32 1.0, %v7340_v53 }
0x1f13   : > { %v5518_v25 = vmul.f32 %v5510_v46, %v5454_v61 }
0x1f15   : > { %6801 = vmatmul.msk.f32.gmra.mxu2 %vm1517_vm1, %v5518_v25 }
0x1f20   : > { %v5435_v55 = vpop.f32.mrf.mxu0 }
0x1f21   : > { %v5436_v41 = vadd.f32 %v9487_v33, %v5435_v55 }
0x1f23   : > { %v5463_v40 = vmul.f32 0.044715, %v5436_v41  ;;  %v5455_v51 = vmul.f32 0.5, %v5436_v41 }
0x1f25   : > { %v5471_v26 = vmul.f32 %v5463_v40, %v5436_v41 }
0x1f27   : > { %v5479_v10 = vmul.f32 %v5471_v26, %v5436_v41 }
0x1f28   : > { %v5438_v35 = vpop.f32.mrf.mxu0 }
0x1f29   : > { %v5439_v34 = vadd.f32 %v9487_v33, %v5438_v35  ;;  %v5487_v0 = vadd.f32 %v5479_v10, %v5436_v41 }
0x1f2b   : > { %v5464_v7 = vmul.f32 0.044715, %v5439_v34  ;;  %v5495_v44 = vmul.f32 0.7978846, %v5487_v0  ;;  %v5456_v54 = vmul.f32 0.5, %v5439_v34 }
0x1f2d   : > { %v5472_v57 = vmul.f32 %v5464_v7, %v5439_v34  ;;  %7341 = vtanh.f32 %v5495_v44 }
0x1f2f   : > { %v5480_v15 = vmul.f32 %v5472_v57, %v5439_v34 }
0x1f30   : > { %v5441_v19 = vpop.f32.mrf.mxu0 }
0x1f31   : > { %v5442_v45 = vadd.f32 %v9487_v33, %v5441_v19  ;;  %v5488_v1 = vadd.f32 %v5480_v15, %v5439_v34 }
0x1f33   : > { %v7342_v27 = vpop.eup %7341  ;;  %v5465_v50 = vmul.f32 0.044715, %v5442_v45  ;;  %v5496_v63 = vmul.f32 0.7978846, %v5488_v1  ;;  %v5457_v26 = vmul.f32 0.5, %v5442_v45 }
0x1f34   : > { %v5511_v56 = vadd.f32 1.0, %v7342_v27 }
0x1f35   : > { %v5473_v3 = vmul.f32 %v5465_v50, %v5442_v45  ;;  %7343 = vtanh.f32 %v5496_v63 }
0x1f36   : > { %v5519_v5 = vmul.f32 %v5511_v56, %v5455_v51 }
0x1f37   : > { %v5481_v13 = vmul.f32 %v5473_v3, %v5442_v45 }
0x1f38   : > { %v5444_v20 = vpop.f32.mrf.mxu0  ;;  %6802 = vmatmul.msk.f32.gmra.mxu2 %vm1517_vm1, %v5519_v5 }
0x1f39   : > { %v5445_v6 = vadd.f32 %v9487_v33, %v5444_v20  ;;  %v5489_v12 = vadd.f32 %v5481_v13, %v5442_v45 }
0x1f3b   : > { %v7344_v42 = vpop.eup %7343  ;;  %v5466_v24 = vmul.f32 0.044715, %v5445_v6  ;;  %v5497_v31 = vmul.f32 0.7978846, %v5489_v12  ;;  %v5458_v15 = vmul.f32 0.5, %v5445_v6 }
0x1f3c   : > { %v5512_v49 = vadd.f32 1.0, %v7344_v42 }
0x1f3d   : > { %v5474_v43 = vmul.f32 %v5466_v24, %v5445_v6  ;;  %7345 = vtanh.f32 %v5497_v31  ;;  %v7005_v31 = vld [vmem:[%s9862_s28 + $0x3] ss:$0 sm:$0xff] }
0x1f3e   : > { %v5520_v39 = vmul.f32 %v5512_v49, %v5456_v54 }
0x1f3f   : > { %v5482_v53 = vmul.f32 %v5474_v43, %v5445_v6 }
0x1f40   : > { %v5447_v61 = vpop.f32.mrf.mxu0  ;;  %6803 = vmatmul.msk.f32.gmra.mxu2 %vm1517_vm1, %v5520_v39 }
0x1f41   : > { %v5448_v46 = vadd.f32 %v9487_v33, %v5447_v61  ;;  %v5490_v25 = vadd.f32 %v5482_v53, %v5445_v6 }
0x1f43   : > { %v7346_v55 = vpop.eup %7345  ;;  %v5467_v41 = vmul.f32 0.044715, %v5448_v46  ;;  %v5498_v40 = vmul.f32 0.7978846, %v5490_v25  ;;  %v5459_v50 = vmul.f32 0.5, %v5448_v46 }
0x1f44   : > { %v5513_v10 = vadd.f32 1.0, %v7346_v55 }
0x1f45   : > { %v5475_v35 = vmul.f32 %v5467_v41, %v5448_v46  ;;  %7347 = vtanh.f32 %v5498_v40 }
0x1f46   : > { %v5521_v0 = vmul.f32 %v5513_v10, %v5457_v26 }
0x1f47   : > { %v5483_v34 = vmul.f32 %v5475_v35, %v5448_v46 }
0x1f48   : > { %6804 = vmatmul.msk.f32.gmra.mxu2 %vm1517_vm1, %v5521_v0 }
0x1f49   : > { %v5491_v7 = vadd.f32 %v5483_v34, %v5448_v46 }
0x1f4b   : > { %v7348_v44 = vpop.eup %7347  ;;  %v5499_v57 = vmul.f32 0.7978846, %v5491_v7 }
0x1f4c   : > { %v5514_v19 = vadd.f32 1.0, %v7348_v44 }
0x1f4d   : > { %7349 = vtanh.f32 %v5499_v57 }
0x1f4e   : > { %v5522_v1 = vmul.f32 %v5514_v19, %v5458_v15 }
0x1f50   : > { %6805 = vmatmul.msk.f32.gmra.mxu2 %vm1517_vm1, %v5522_v1 }
0x1f53   : > { %v7350_v27 = vpop.eup %7349 }
0x1f54   : > { %v5515_v45 = vadd.f32 1.0, %v7350_v27 }
0x1f56   : > { %v5523_v63 = vmul.f32 %v5515_v45, %v5459_v50 }
0x1f58   : > { %6806 = vmatmul.msk.f32.gmra.mxu2 %vm1517_vm1, %v5523_v63 }
0x1f78   : > { %v5450_v51 = vpop.f32.mrf.mxu0 }
0x1f79   : > { %v5451_v56 = vadd.f32 %v9487_v33, %v5450_v51 }
0x1f7b   : > { %v5468_v3 = vmul.f32 0.044715, %v5451_v56  ;;  %v5460_v42 = vmul.f32 0.5, %v5451_v56 }
0x1f7d   : > { %v5476_v5 = vmul.f32 %v5468_v3, %v5451_v56 }
0x1f7f   : > { %v5484_v13 = vmul.f32 %v5476_v5, %v5451_v56 }
0x1f81   : > { %v5492_v20 = vadd.f32 %v5484_v13, %v5451_v56 }
0x1f83   : > { %v5500_v6 = vmul.f32 0.7978846, %v5492_v20 }
0x1f85   : > { %7351 = vtanh.f32 %v5500_v6 }
0x1f8b   : > { %v7352_v12 = vpop.eup %7351 }
0x1f8c   : > { %v5516_v24 = vadd.f32 1.0, %v7352_v12 }
0x1f8e   : > { %v5524_v54 = vmul.f32 %v5516_v24, %v5460_v42 }
0x1f90   : > { %v5580_v49 = vpop.f32.mrf.mxu2  ;;  %6807 = vmatmul.msk.f32.gmra.mxu2 %vm1517_vm1, %v5524_v54 }
0x1f91   : > { %v5581_v43 = vadd.f32 %v7005_v31, %v5580_v49 }
0x1f93   : > { %v5604_v39 = vadd.f32 %v5581_v43, %v9426_v37 }
0x1f95   : > { %v5612_v53 = vsel %vm999_vm0, %v5604_v39, 0.0 }
0x1f96   : > { %5613 = vadd.xlane.f32.xlu2 %v5612_v53 }
0x1f98   : > { %v5583_v33 = vpop.f32.mrf.mxu2 }
0x1f99   : > { %v5584_v61 = vadd.f32 %v7005_v31, %v5583_v33 }
0x1f9b   : > { %v5605_v46 = vadd.f32 %v5584_v61, %v9433_v28 }
0x1f9d   : > { %v5615_v25 = vsel %vm999_vm0, %v5605_v46, 0.0 }
0x1f9e   : > { %5616 = vadd.xlane.f32.xlu0 %v5615_v25 }
0x1fbb   : > { %v5586_v55 = vpop.f32.mrf.mxu2 }
0x1fbc   : > { %v5587_v41 = vadd.f32 %v7005_v31, %v5586_v55 }
0x1fbe   : > { %v5606_v40 = vadd.f32 %v5587_v41, %v9444_v48 }
0x1fc0   : > { %v5618_v26 = vsel %vm999_vm0, %v5606_v40, 0.0 }
0x1fc1   : > { %5619 = vadd.xlane.f32.xlu1 %v5618_v26 }
0x1fc3   : > { %v5589_v10 = vpop.f32.mrf.mxu2 }
0x1fc4   : > { %v5590_v35 = vadd.f32 %v7005_v31, %v5589_v10 }
0x1fc6   : > { %v5607_v37 = vadd.f32 %v5590_v35, %v9452_v22 }
0x1fc8   : > { %v5621_v0 = vsel %vm999_vm0, %v5607_v37, 0.0 }
0x1fc9   : > { %5622 = vadd.xlane.f32.xlu2 %v5621_v0 }
0x1fcb   : > { %v5592_v34 = vpop.f32.mrf.mxu2 }
0x1fcc   : > { %v5593_v7 = vadd.f32 %v7005_v31, %v5592_v34 }
0x1fce   : > { %v5608_v28 = vadd.f32 %v5593_v7, %v9459_v18 }
0x1fd0   : > { %v5624_v44 = vsel %vm999_vm0, %v5608_v28, 0.0 }
0x1fd1   : > { %5625 = vadd.xlane.f32.xlu0 %v5624_v44 }
0x1fd3   : > { %v5595_v57 = vpop.f32.mrf.mxu2 }
0x1fd4   : > { %v5596_v15 = vadd.f32 %v7005_v31, %v5595_v57 }
0x1fd6   : > { %v5609_v48 = vadd.f32 %v5596_v15, %v9466_v59  ;;  %v6809_v15 = vld [vmem:[%s9863_s2 + $0x18] sm:$0xff] }
0x1fd7   : > { %5852 = vmatpush.msra.mxu1 %v6809_v15 }
0x1fd8   : > { %v5627_v19 = vsel %vm999_vm0, %v5609_v48, 0.0 }
0x1fd9   : > { %5628 = vadd.xlane.f32.xlu1 %v5627_v19 }
0x1fdb   : > { %v5598_v1 = vpop.f32.mrf.mxu2 }
0x1fdc   : > { %v5599_v27 = vadd.f32 %v7005_v31, %v5598_v1 }
0x1fde   : > { %v5610_v22 = vadd.f32 %v5599_v27, %v9473_v21 }
0x1fe0   : > { %v5630_v50 = vsel %vm999_vm0, %v5610_v22, 0.0 }
0x1fe1   : > { %5631 = vadd.xlane.f32.xlu0 %v5630_v50 }
0x2009   : > { %v5614_v45 = vpop.xlane.xlu2 %5613 }
0x200a   : > { %v5636_v18 = vmul.f32 %v5614_v45, %v7930_v11 }
0x200c   : > { %v9528_v63 = vsub.f32 %v5604_v39, %v5636_v18 }
0x200e   : > { %v5652_v51 = vmul.f32 %v9528_v63, %v9528_v63 }
0x2010   : > { %v5660_v59 = vsel %vm999_vm0, %v5652_v51, 0.0 }
0x2011   : > { %v5617_v56 = vpop.xlane.xlu0 %5616  ;;  %5661 = vadd.xlane.f32.xlu2 %v5660_v59 }
0x2012   : > { %v5637_v3 = vmul.f32 %v5617_v56, %v7930_v11 }
0x2013   : > { %v5601_v5 = vpop.f32.mrf.mxu2 }
0x2014   : > { %v9534_v13 = vsub.f32 %v5605_v46, %v5637_v3  ;;  %v5602_v21 = vadd.f32 %v7005_v31, %v5601_v5 }
0x2016   : > { %v5611_v20 = vadd.f32 %v5602_v21, %v9493_v8  ;;  %v5653_v6 = vmul.f32 %v9534_v13, %v9534_v13 }
0x2018   : > { %v5663_v12 = vsel %vm999_vm0, %v5653_v6, 0.0  ;;  %v5633_v42 = vsel %vm999_vm0, %v5611_v20, 0.0 }
0x2019   : > { %5664 = vadd.xlane.f32.xlu1 %v5663_v12  ;;  %5634 = vadd.xlane.f32.xlu2 %v5633_v42  ;;  %v9597_v42 = vperm.slane %v9415_v4, 3 }
0x2034   : > { %v5620_v24 = vpop.xlane.xlu1 %5619 }
0x2035   : > { %v5638_v54 = vmul.f32 %v5620_v24, %v7930_v11 }
0x2037   : > { %v9542_v49 = vsub.f32 %v5606_v40, %v5638_v54 }
0x2039   : > { %v5654_v43 = vmul.f32 %v9542_v49, %v9542_v49 }
0x203b   : > { %v5666_v31 = vsel %vm999_vm0, %v5654_v43, 0.0 }
0x203c   : > { %v5623_v8 = vpop.xlane.xlu2 %5622  ;;  %5667 = vadd.xlane.f32.xlu0 %v5666_v31 }
0x203d   : > { %v5639_v39 = vmul.f32 %v5623_v8, %v7930_v11 }
0x203f   : > { %v9548_v53 = vsub.f32 %v5607_v37, %v5639_v39 }
0x2041   : > { %v5655_v33 = vmul.f32 %v9548_v53, %v9548_v53 }
0x2043   : > { %v5669_v61 = vsel %vm999_vm0, %v5655_v33, 0.0 }
0x2044   : > { %5670 = vadd.xlane.f32.xlu1 %v5669_v61  ;;  %v5626_v46 = vpop.xlane.xlu0 %5625 }
0x2045   : > { %v5640_v25 = vmul.f32 %v5626_v46, %v7930_v11 }
0x2047   : > { %v9554_v55 = vsub.f32 %v5608_v28, %v5640_v25 }
0x2049   : > { %v5656_v41 = vmul.f32 %v9554_v55, %v9554_v55 }
0x204b   : > { %v5672_v40 = vsel %vm999_vm0, %v5656_v41, 0.0 }
0x204c   : > { %5673 = vadd.xlane.f32.xlu2 %v5672_v40  ;;  %v5629_v26 = vpop.xlane.xlu1 %5628 }
0x204d   : > { %v5641_v10 = vmul.f32 %v5629_v26, %v7930_v11 }
0x204f   : > { %v9560_v35 = vsub.f32 %v5609_v48, %v5641_v10  ;;  %v6808_v48 = vld [vmem:[%s9863_s2 + $0x10] sm:$0xff] }
0x2050   : > { %5853 = vmatpush.msra.mxu1 %v6808_v48 }
0x2051   : > { %v5657_v37 = vmul.f32 %v9560_v35, %v9560_v35 }
0x2053   : > { %v5675_v0 = vsel %vm999_vm0, %v5657_v37, 0.0 }
0x2054   : > { %v5632_v34 = vpop.xlane.xlu0 %5631  ;;  %5676 = vadd.xlane.f32.xlu0 %v5675_v0 }
0x2055   : > { %v5642_v7 = vmul.f32 %v5632_v34, %v7930_v11 }
0x2057   : > { %v9566_v28 = vsub.f32 %v5610_v22, %v5642_v7 }
0x2059   : > { %v5658_v44 = vmul.f32 %v9566_v28, %v9566_v28 }
0x205b   : > { %v5678_v57 = vsel %vm999_vm0, %v5658_v44, 0.0 }
0x205c   : > { %5679 = vadd.xlane.f32.xlu1 %v5678_v57 }
0x2068   : > { %5887 = vrot.lane.b32.xlu0 %v8639_v60, %s7456_s16 }
0x2070   : > { %5893 = vrot.lane.b32.xlu0 %v8662_v38, %s7456_s16 }
0x2075   : > { %5889 = vrot.lane.b32.xlu1 %v8648_v9, %s7456_s16 }
0x2078   : > { %5895 = vrot.lane.b32.xlu0 %v8670_v32, %s7456_s16 }
0x207d   : > { %5897 = vrot.lane.b32.xlu1 %v8677_v29, %s7456_s16 }
0x2084   : > { %v5662_v19 = vpop.xlane.xlu2 %5661 }
0x2085   : > { %v5684_v1 = vmul.f32 %v5662_v19, %v7930_v11  ;;  %5901 = vrot.lane.b32.xlu1 %v8696_v16, %s7456_s16 }
0x2087   : > { %v5692_v60 = vadd.f32 1e-05, %v5684_v1 }
0x2089   : > { %7353 = vrsqrt.f32 %v5692_v60  ;;  %vm5706_vm4 = vweird.f32 %v5692_v60 }
0x208c   : > { %v5635_v38 = vpop.xlane.xlu2 %5634  ;;  %v5665_v9 = vpop.xlane.xlu1 %5664 }
0x208d   : > { %v5643_v27 = vmul.f32 %v5635_v38, %v7930_v11  ;;  %v5685_v32 = vmul.f32 %v5665_v9, %v7930_v11 }
0x208f   : > { %v7354_v22 = vpop.eup %7353  ;;  %v9588_v29 = vsub.f32 %v5611_v20, %v5643_v27  ;;  %v5693_v50 = vadd.f32 1e-05, %v5685_v32  ;;  %v9594_v20 = vperm.slane %v9415_v4, 2 }
0x2090   : > { %v5701_v45 = vmul.f32 %v7354_v22, %v5692_v60  ;;  %vm5707_vm1 = vweird.f32 %v7354_v22 }
0x2091   : > { %7355 = vrsqrt.f32 %v5693_v50  ;;  %v5659_v18 = vmul.f32 %v9588_v29, %v9588_v29  ;;  %vm5708_vm5 = vmor %vm5706_vm4, %vm5707_vm1  ;;  %vm5716_vm7 = vweird.f32 %v5693_v50 }
0x2092   : > { %v5702_v51 = vmul.f32 %v7354_v22, %v5701_v45 }
0x2093   : > { %v5681_v16 = vsel %vm999_vm0, %v5659_v18, 0.0 }
0x2094   : > { %v5703_v59 = vmul.f32 0.5, %v5702_v51  ;;  %5682 = vadd.xlane.f32.xlu2 %v5681_v16 }
0x2096   : > { %v5704_v56 = vsub.f32 1.5, %v5703_v59 }
0x2097   : > { %v7356_v3 = vpop.eup %7355 }
0x2098   : > { %v5705_v5 = vmul.f32 %v7354_v22, %v5704_v56  ;;  %v5711_v21 = vmul.f32 %v7356_v3, %v5693_v50  ;;  %vm5717_vm6 = vweird.f32 %v7356_v3 }
0x2099   : > { %vm5718_vm8 = vmor %vm5716_vm7, %vm5717_vm6 }
0x209a   : > { %v5709_v6 = vsel %vm5708_vm5, %v7354_v22, %v5705_v5  ;;  %v5712_v12 = vmul.f32 %v7356_v3, %v5711_v21 }
0x209b   : > { %v5780_v24 = vmul.f32 %v5709_v6, %v9528_v63 }
0x209c   : > { %v5713_v54 = vmul.f32 0.5, %v5712_v12 }
0x209d   : > { %v5789_v43 = vmul.f32 %v9594_v20, %v5780_v24 }
0x209e   : > { %v5714_v31 = vsub.f32 1.5, %v5713_v54 }
0x209f   : > { %v5798_v8 = vadd.f32 %v9597_v42, %v5789_v43 }
0x20a0   : > { %v5715_v39 = vmul.f32 %v7356_v3, %v5714_v31 }
0x20a1   : > { %6811 = vmatmul.msk.f32.vlgmr.msra.gmra.mxu1 %vm999_vm0, %v5798_v8 }
0x20a2   : > { %v5719_v33 = vsel %vm5718_vm8, %v7356_v3, %v5715_v39 }
0x20a3   : > { %v5781_v61 = vmul.f32 %v5719_v33, %v9534_v13 }
0x20a5   : > { %v5790_v4 = vmul.f32 %v9594_v20, %v5781_v61 }
0x20a7   : > { %v5799_v46 = vadd.f32 %v9597_v42, %v5790_v4 }
0x20a9   : > { %6812 = vmatmul.msk.f32.gmra.mxu1 %vm999_vm0, %v5799_v46 }
0x20ac   : > { %5891 = vrot.lane.b32.xlu2 %v8656_v58, %s7456_s16 }
0x20af   : > { %v5668_v63 = vpop.xlane.xlu0 %5667 }
0x20b0   : > { %v5686_v25 = vmul.f32 %v5668_v63, %v7930_v11 }
0x20b2   : > { %v5694_v41 = vadd.f32 1e-05, %v5686_v25 }
0x20b4   : > { %7357 = vrsqrt.f32 %v5694_v41  ;;  %5899 = vrot.lane.b32.xlu2 %v8684_v62, %s7456_s16  ;;  %vm5726_vm10 = vweird.f32 %v5694_v41  ;;  %s9868_s16 = sld [smem:[#allocation14_spill]] }
0x20b7   : > { %v5671_v40 = vpop.xlane.xlu1 %5670 }
0x20b8   : > { %v5687_v13 = vmul.f32 %v5671_v40, %v7930_v11 }
0x20ba   : > { %v7358_v26 = vpop.eup %7357  ;;  %v5695_v10 = vadd.f32 1e-05, %v5687_v13 }
0x20bb   : > { %v5721_v37 = vmul.f32 %v7358_v26, %v5694_v41  ;;  %vm5727_vm9 = vweird.f32 %v7358_v26 }
0x20bc   : > { %7359 = vrsqrt.f32 %v5695_v10  ;;  %vm5728_vm11 = vmor %vm5726_vm10, %vm5727_vm9  ;;  %vm5736_vm13 = vweird.f32 %v5695_v10 }
0x20bd   : > { %v5722_v0 = vmul.f32 %v7358_v26, %v5721_v37 }
0x20bf   : > { %v5723_v34 = vmul.f32 0.5, %v5722_v0  ;;  %v5674_v7 = vpop.xlane.xlu2 %5673 }
0x20c0   : > { %v5688_v58 = vmul.f32 %v5674_v7, %v7930_v11 }
0x20c1   : > { %v5724_v44 = vsub.f32 1.5, %v5723_v34 }
0x20c2   : > { %v7360_v57 = vpop.eup %7359  ;;  %v5696_v15 = vadd.f32 1e-05, %v5688_v58 }
0x20c3   : > { %v5725_v48 = vmul.f32 %v7358_v26, %v5724_v44  ;;  %v5731_v19 = vmul.f32 %v7360_v57, %v5695_v10  ;;  %vm5737_vm12 = vweird.f32 %v7360_v57 }
0x20c4   : > { %7361 = vrsqrt.f32 %v5696_v15  ;;  %vm5738_vm14 = vmor %vm5736_vm13, %vm5737_vm12  ;;  %vm5746_vm2 = vweird.f32 %v5696_v15  ;;  %vm6320_vm12 = vcmask 15360   ;;  %vm6342_vm13 = vcmask 8192  }
0x20c5   : > { %v5729_v62 = vsel %vm5728_vm11, %v7358_v26, %v5725_v48  ;;  %v5732_v1 = vmul.f32 %v7360_v57, %v5731_v19 }
0x20c6   : > { %v5782_v60 = vmul.f32 %v5729_v62, %v9542_v49 }
0x20c7   : > { %v5733_v38 = vmul.f32 0.5, %v5732_v1  ;;  %v5677_v9 = vpop.xlane.xlu0 %5676 }
0x20c8   : > { %v5689_v27 = vmul.f32 %v5677_v9, %v7930_v11  ;;  %v5791_v32 = vmul.f32 %v9594_v20, %v5782_v60 }
0x20c9   : > { %v5734_v22 = vsub.f32 1.5, %v5733_v38 }
0x20ca   : > { %v7362_v50 = vpop.eup %7361  ;;  %v5697_v45 = vadd.f32 1e-05, %v5689_v27  ;;  %v5800_v18 = vadd.f32 %v9597_v42, %v5791_v32 }
0x20cb   : > { %v5735_v51 = vmul.f32 %v7360_v57, %v5734_v22  ;;  %v5741_v16 = vmul.f32 %v7362_v50, %v5696_v15  ;;  %vm5747_vm15 = vweird.f32 %v7362_v50 }
0x20cc   : > { %7363 = vrsqrt.f32 %v5697_v45  ;;  %6813 = vmatmul.msk.f32.gmra.mxu1 %vm999_vm0, %v5800_v18  ;;  %vm5748_vm3 = vmor %vm5746_vm2, %vm5747_vm15  ;;  %vm5756_vm4 = vweird.f32 %v5697_v45 }
0x20cd   : > { %v5739_v49 = vsel %vm5738_vm14, %v7360_v57, %v5735_v51  ;;  %v5742_v59 = vmul.f32 %v7362_v50, %v5741_v16 }
0x20ce   : > { %v5783_v56 = vmul.f32 %v5739_v49, %v9548_v53 }
0x20cf   : > { %v5743_v3 = vmul.f32 0.5, %v5742_v59  ;;  %v5680_v5 = vpop.xlane.xlu1 %5679 }
0x20d0   : > { %v5690_v21 = vmul.f32 %v5680_v5, %v7930_v11  ;;  %v5792_v6 = vmul.f32 %v9594_v20, %v5783_v56 }
0x20d1   : > { %v5744_v12 = vsub.f32 1.5, %v5743_v3 }
0x20d2   : > { %v7364_v24 = vpop.eup %7363  ;;  %v5698_v54 = vadd.f32 1e-05, %v5690_v21  ;;  %v5801_v43 = vadd.f32 %v9597_v42, %v5792_v6 }
0x20d3   : > { %v5745_v31 = vmul.f32 %v7362_v50, %v5744_v12  ;;  %v5751_v8 = vmul.f32 %v7364_v24, %v5697_v45  ;;  %vm5757_vm1 = vweird.f32 %v7364_v24 }
0x20d4   : > { %7365 = vrsqrt.f32 %v5698_v54  ;;  %6814 = vmatmul.msk.f32.gmra.mxu1 %vm999_vm0, %v5801_v43  ;;  %vm5758_vm5 = vmor %vm5756_vm4, %vm5757_vm1  ;;  %vm5766_vm7 = vweird.f32 %v5698_v54 }
0x20d5   : > { %v5749_v53 = vsel %vm5748_vm3, %v7362_v50, %v5745_v31  ;;  %v5752_v39 = vmul.f32 %v7364_v24, %v5751_v8  ;;  %v6820_v8 = vld [vmem:[%s9866_s18 + $0x18] sm:$0xff] }
0x20d6   : > { %v5784_v33 = vmul.f32 %v5749_v53, %v9554_v55  ;;  %6045 = vmatpush.msra.mxu3 %v6820_v8 }
0x20d7   : > { %v5753_v61 = vmul.f32 0.5, %v5752_v39 }
0x20d8   : > { %v5793_v4 = vmul.f32 %v9594_v20, %v5784_v33 }
0x20d9   : > { %v5754_v46 = vsub.f32 1.5, %v5753_v61 }
0x20da   : > { %v7366_v63 = vpop.eup %7365  ;;  %v5802_v25 = vadd.f32 %v9597_v42, %v5793_v4 }
0x20db   : > { %v5755_v41 = vmul.f32 %v7364_v24, %v5754_v46  ;;  %v5761_v40 = vmul.f32 %v7366_v63, %v5698_v54  ;;  %vm5767_vm6 = vweird.f32 %v7366_v63 }
0x20dc   : > { %6815 = vmatmul.msk.f32.gmra.mxu1 %vm999_vm0, %v5802_v25  ;;  %vm5768_vm8 = vmor %vm5766_vm7, %vm5767_vm6 }
0x20dd   : > { %v5759_v13 = vsel %vm5758_vm5, %v7364_v24, %v5755_v41  ;;  %v5762_v26 = vmul.f32 %v7366_v63, %v5761_v40 }
0x20de   : > { %v5785_v10 = vmul.f32 %v5759_v13, %v9560_v35 }
0x20df   : > { %v5763_v37 = vmul.f32 0.5, %v5762_v26 }
0x20e0   : > { %v5794_v55 = vmul.f32 %v9594_v20, %v5785_v10 }
0x20e1   : > { %v5764_v0 = vsub.f32 1.5, %v5763_v37 }
0x20e2   : > { %v5803_v34 = vadd.f32 %v9597_v42, %v5794_v55 }
0x20e3   : > { %v5765_v7 = vmul.f32 %v7366_v63, %v5764_v0 }
0x20e4   : > { %6816 = vmatmul.msk.f32.gmra.mxu1 %vm999_vm0, %v5803_v34  ;;  %v6819_v34 = vld [vmem:[%s9866_s18 + $0x10] sm:$0xff] }
0x20e5   : > { %v5769_v58 = vsel %vm5768_vm8, %v7366_v63, %v5765_v7  ;;  %6046 = vmatpush.msra.mxu3 %v6819_v34 }
0x20e6   : > { %v5786_v44 = vmul.f32 %v5769_v58, %v9566_v28  ;;  %v9638_v28 = vld [vmem:[%s9865_s15 + $0x1] ss:$0 sm:$0xff] }
0x20e7   : > { %v5890_v56 = vpop.permute.xlu1 %5889 }
0x20e8   : > { %v5795_v57 = vmul.f32 %v9594_v20, %v5786_v44 }
0x20ea   : > { %v5804_v35 = vadd.f32 %v9597_v42, %v5795_v57 }
0x20ec   : > { %6817 = vmatmul.msk.f32.gmra.mxu1 %vm999_vm0, %v5804_v35 }
0x20ef   : > { %v5898_v25 = vpop.permute.xlu1 %5897 }
0x2107   : > { %v5683_v15 = vpop.xlane.xlu2 %5682 }
0x2108   : > { %v5691_v48 = vmul.f32 %v5683_v15, %v7930_v11  ;;  %v5888_v11 = vpop.permute.xlu0 %5887 }
0x210a   : > { %v5699_v19 = vadd.f32 1e-05, %v5691_v48 }
0x210c   : > { %7367 = vrsqrt.f32 %v5699_v19  ;;  %vm5776_vm10 = vweird.f32 %v5699_v19 }
0x2110   : > { %v5894_v12 = vpop.permute.xlu0 %5893 }
0x2112   : > { %v7368_v62 = vpop.eup %7367 }
0x2113   : > { %v5771_v1 = vmul.f32 %v7368_v62, %v5699_v19  ;;  %vm5777_vm9 = vweird.f32 %v7368_v62 }
0x2114   : > { %vm5778_vm11 = vmor %vm5776_vm10, %vm5777_vm9 }
0x2115   : > { %v5772_v60 = vmul.f32 %v7368_v62, %v5771_v1 }
0x2117   : > { %v5773_v38 = vmul.f32 0.5, %v5772_v60 }
0x2118   : > { %v5896_v33 = vpop.permute.xlu0 %5895 }
0x2119   : > { %v5774_v9 = vsub.f32 1.5, %v5773_v38 }
0x211b   : > { %v5775_v27 = vmul.f32 %v7368_v62, %v5774_v9  ;;  %v5902_v9 = vpop.permute.xlu1 %5901 }
0x211d   : > { %v5779_v32 = vsel %vm5778_vm11, %v7368_v62, %v5775_v27 }
0x211e   : > { %v5787_v22 = vmul.f32 %v5779_v32, %v9588_v29  ;;  %v5855_v50 = vpop.f32.mrf.mxu1 }
0x211f   : > { %v5856_v45 = vadd.f32 %v9638_v28, %v5855_v50 }
0x2120   : > { %v5796_v18 = vmul.f32 %v9594_v20, %v5787_v22 }
0x2121   : > { %v5911_v51 = vadd.f32 %v5888_v11, %v5856_v45 }
0x2122   : > { %v5805_v16 = vadd.f32 %v9597_v42, %v5796_v18  ;;  %v5892_v42 = vpop.permute.xlu2 %5891 }
0x2123   : > { %7369 = vtanh.f32 %v5911_v51  ;;  %v5919_v7 = vmul.f32 0.5, %v5911_v51 }
0x2124   : > { %6818 = vmatmul.msk.f32.gmra.mxu1 %vm999_vm0, %v5805_v16 }
0x2126   : > { %v5858_v49 = vpop.f32.mrf.mxu1 }
0x2127   : > { %v5859_v59 = vadd.f32 %v9638_v28, %v5858_v49 }
0x2129   : > { %v7370_v3 = vpop.eup %7369  ;;  %v5912_v5 = vadd.f32 %v5890_v56, %v5859_v59 }
0x212a   : > { %5967 = vrot.lane.b32.xlu0 %v7370_v3, %s7454_s0  ;;  %v5900_v10 = vpop.permute.xlu2 %5899 }
0x212b   : > { %7371 = vtanh.f32 %v5912_v5  ;;  %v5920_v58 = vmul.f32 0.5, %v5912_v5 }
0x2131   : > { %v7372_v29 = vpop.eup %7371 }
0x2132   : > { %5969 = vrot.lane.b32.xlu2 %v7372_v29, %s7454_s0 }
0x2149   : > { %v5861_v20 = vpop.f32.mrf.mxu1 }
0x214a   : > { %v5862_v21 = vadd.f32 %v9638_v28, %v5861_v20 }
0x214c   : > { %v5913_v6 = vadd.f32 %v5892_v42, %v5862_v21 }
0x214e   : > { %7373 = vtanh.f32 %v5913_v6  ;;  %v5921_v45 = vmul.f32 0.5, %v5913_v6 }
0x2151   : > { %v5864_v24 = vpop.f32.mrf.mxu1 }
0x2152   : > { %v5865_v54 = vadd.f32 %v9638_v28, %v5864_v24 }
0x2154   : > { %v7374_v43 = vpop.eup %7373  ;;  %v5914_v31 = vadd.f32 %v5894_v12, %v5865_v54 }
0x2155   : > { %5971 = vrot.lane.b32.xlu0 %v7374_v43, %s7454_s0 }
0x2156   : > { %7375 = vtanh.f32 %v5914_v31  ;;  %v5922_v11 = vmul.f32 0.5, %v5914_v31 }
0x2159   : > { %v5867_v53 = vpop.f32.mrf.mxu1 }
0x215a   : > { %v5868_v39 = vadd.f32 %v9638_v28, %v5867_v53 }
0x215c   : > { %v7376_v61 = vpop.eup %7375  ;;  %v5915_v4 = vadd.f32 %v5896_v33, %v5868_v39 }
0x215d   : > { %5973 = vrot.lane.b32.xlu1 %v7376_v61, %s7454_s0 }
0x215e   : > { %7377 = vtanh.f32 %v5915_v4  ;;  %v5923_v16 = vmul.f32 0.5, %v5915_v4 }
0x2161   : > { %v5870_v46 = vpop.f32.mrf.mxu1 }
0x2162   : > { %v5871_v63 = vadd.f32 %v9638_v28, %v5870_v46 }
0x2164   : > { %v7378_v41 = vpop.eup %7377  ;;  %v5916_v40 = vadd.f32 %v5898_v25, %v5871_v63 }
0x2165   : > { %5975 = vrot.lane.b32.xlu2 %v7378_v41, %s7454_s0 }
0x2166   : > { %7379 = vtanh.f32 %v5916_v40  ;;  %v5924_v5 = vmul.f32 0.5, %v5916_v40 }
0x2169   : > { %v5873_v13 = vpop.f32.mrf.mxu1 }
0x216a   : > { %v5874_v26 = vadd.f32 %v9638_v28, %v5873_v13 }
0x216c   : > { %v7380_v37 = vpop.eup %7379  ;;  %v5917_v55 = vadd.f32 %v5900_v10, %v5874_v26 }
0x216d   : > { %5977 = vrot.lane.b32.xlu0 %v7380_v37, %s7454_s0 }
0x216e   : > { %7381 = vtanh.f32 %v5917_v55  ;;  %v5925_v12 = vmul.f32 0.5, %v5917_v55  ;;  %v7007_v55 = vld [vmem:[%s9867_s22 + $0x1] ss:$0 sm:$0xff] }
0x216f   : > { %7383 = vtanh.f32 %v5919_v7 }
0x2170   : > { %7385 = vtanh.f32 %v5920_v58 }
0x2174   : > { %v7382_v0 = vpop.eup %7381 }
0x2175   : > { %5979 = vrot.lane.b32.xlu1 %v7382_v0, %s7454_s0  ;;  %v7384_v44 = vpop.eup %7383 }
0x2176   : > { %v5935_v57 = vadd.f32 1.0, %v7384_v44  ;;  %v7386_v15 = vpop.eup %7385 }
0x2177   : > { %v5936_v62 = vadd.f32 1.0, %v7386_v15 }
0x2178   : > { %v5943_v35 = vmul.f32 0.5, %v5935_v57 }
0x2179   : > { %v5944_v27 = vmul.f32 0.5, %v5936_v62 }
0x218c   : > { %v5970_v60 = vpop.permute.xlu2 %5969 }
0x218d   : > { %v5992_v22 = vmul.f32 %v5970_v60, %v5944_v27  ;;  %v6089_v60 = vld [vmem:[%s9868_s16 + $0x8] sm:$0xff] }
0x218e   : > { %6148 = vmatpush.msrb.mxu0 %v6089_v60 }
0x219c   : > { %v5968_v48 = vpop.permute.xlu0 %5967 }
0x219d   : > { %v5991_v19 = vmul.f32 %v5968_v48, %v5943_v35 }
0x219f   : > { %6822 = vmatmul.msk.f32.vlgmr.msra.gmra.mxu3 %vm999_vm0, %v5991_v19 }
0x21a1   : > { %v5876_v1 = vpop.f32.mrf.mxu1 }
0x21a2   : > { %v5877_v38 = vadd.f32 %v9638_v28, %v5876_v1 }
0x21a4   : > { %v5918_v32 = vadd.f32 %v5902_v9, %v5877_v38 }
0x21a6   : > { %7387 = vtanh.f32 %v5918_v32  ;;  %v5926_v41 = vmul.f32 0.5, %v5918_v32 }
0x21a7   : > { %6823 = vmatmul.msk.f32.gmra.mxu3 %vm999_vm0, %v5992_v22  ;;  %7389 = vtanh.f32 %v5921_v45 }
0x21a8   : > { %7391 = vtanh.f32 %v5922_v11 }
0x21a9   : > { %7393 = vtanh.f32 %v5923_v16 }
0x21aa   : > { %7395 = vtanh.f32 %v5924_v5 }
0x21ab   : > { %7397 = vtanh.f32 %v5925_v12 }
0x21ac   : > { %v7388_v50 = vpop.eup %7387  ;;  %7399 = vtanh.f32 %v5926_v41 }
0x21ad   : > { %5981 = vrot.lane.b32.xlu2 %v7388_v50, %s7454_s0  ;;  %v7390_v18 = vpop.eup %7389 }
0x21ae   : > { %v5937_v51 = vadd.f32 1.0, %v7390_v18  ;;  %v7392_v59 = vpop.eup %7391 }
0x21af   : > { %v5938_v3 = vadd.f32 1.0, %v7392_v59  ;;  %v7394_v20 = vpop.eup %7393  ;;  %v6088_v59 = vld [vmem:[%s9868_s16] sm:$0xff] }
0x21b0   : > { %v5945_v49 = vmul.f32 0.5, %v5937_v51  ;;  %v5939_v6 = vadd.f32 1.0, %v7394_v20  ;;  %v7396_v43 = vpop.eup %7395  ;;  %6149 = vmatpush.msrb.mxu0 %v6088_v59 }
0x21b1   : > { %v5946_v29 = vmul.f32 0.5, %v5938_v3  ;;  %v5940_v8 = vadd.f32 1.0, %v7396_v43  ;;  %v7398_v39 = vpop.eup %7397 }
0x21b2   : > { %v5947_v54 = vmul.f32 0.5, %v5939_v6  ;;  %v5941_v4 = vadd.f32 1.0, %v7398_v39  ;;  %v7400_v40 = vpop.eup %7399  ;;  %v9698_v6 = vld [vmem:[%s7597_s13] ss:$0 sm:$0xff] }
0x21b3   : > { %v5948_v53 = vmul.f32 0.5, %v5940_v8  ;;  %v5942_v13 = vadd.f32 1.0, %v7400_v40 }
0x21b4   : > { %v5949_v46 = vmul.f32 0.5, %v5941_v4 }
0x21b5   : > { %v5950_v26 = vmul.f32 0.5, %v5942_v13 }
0x21bf   : > { %v5976_v24 = vpop.permute.xlu2 %5975 }
0x21c0   : > { %v5995_v31 = vmul.f32 %v5976_v24, %v5947_v54  ;;  %v9702_v54 = vld [vmem:[%s7602_s17] ss:$0 sm:$0xff] }
0x21c7   : > { %v5972_v28 = vpop.permute.xlu0 %5971 }
0x21c8   : > { %v5993_v56 = vmul.f32 %v5972_v28, %v5945_v49 }
0x21ca   : > { %6824 = vmatmul.msk.f32.gmra.mxu3 %vm999_vm0, %v5993_v56 }
0x21cf   : > { %v5974_v21 = vpop.permute.xlu1 %5973 }
0x21d0   : > { %v5994_v42 = vmul.f32 %v5974_v21, %v5946_v29 }
0x21d2   : > { %6825 = vmatmul.msk.f32.gmra.mxu3 %vm999_vm0, %v5994_v42 }
0x21da   : > { %6826 = vmatmul.msk.f32.gmra.mxu3 %vm999_vm0, %v5995_v31 }
0x21df   : > { %v5978_v33 = vpop.permute.xlu0 %5977 }
0x21e0   : > { %v5996_v61 = vmul.f32 %v5978_v33, %v5948_v53 }
0x21e2   : > { %6827 = vmatmul.msk.f32.gmra.mxu3 %vm999_vm0, %v5996_v61 }
0x21e7   : > { %v5980_v63 = vpop.permute.xlu1 %5979 }
0x21e8   : > { %v5997_v25 = vmul.f32 %v5980_v63, %v5949_v46 }
0x21ea   : > { %6828 = vmatmul.msk.f32.gmra.mxu3 %vm999_vm0, %v5997_v25 }
0x2207   : > { %v5982_v10 = vpop.permute.xlu2 %5981 }
0x2208   : > { %v5998_v37 = vmul.f32 %v5982_v10, %v5950_v26 }
0x220a   : > { %6829 = vmatmul.msk.f32.gmra.mxu3 %vm999_vm0, %v5998_v37 }
0x2222   : > { %v6048_v0 = vpop.f32.mrf.mxu3 }
0x2223   : > { %v6049_v34 = vadd.f32 %v7007_v55, %v6048_v0 }
0x2225   : > { %v6072_v7 = vadd.f32 %v6049_v34, %v8711_v2 }
0x2227   : > { %v6080_v58 = vmul.f32 0.70710677, %v6072_v7 }
0x2229   : > { %6102 = vrot.lane.b32.xlu0 %v6080_v58, %s7454_s0 }
0x222a   : > { %v6051_v44 = vpop.f32.mrf.mxu3 }
0x222b   : > { %v6052_v57 = vadd.f32 %v7007_v55, %v6051_v44 }
0x222d   : > { %v6073_v35 = vadd.f32 %v6052_v57, %v8718_v23 }
0x222f   : > { %v6081_v15 = vmul.f32 0.70710677, %v6073_v35 }
0x2231   : > { %6104 = vrot.lane.b32.xlu1 %v6081_v15, %s7454_s0 }
0x224d   : > { %v6054_v48 = vpop.f32.mrf.mxu3 }
0x224e   : > { %v6055_v19 = vadd.f32 %v7007_v55, %v6054_v48 }
0x2250   : > { %v6074_v62 = vadd.f32 %v6055_v19, %v8729_v17 }
0x2252   : > { %v6082_v1 = vmul.f32 0.70710677, %v6074_v62 }
0x2254   : > { %6106 = vrot.lane.b32.xlu2 %v6082_v1, %s7454_s0 }
0x2255   : > { %v6057_v38 = vpop.f32.mrf.mxu3 }
0x2256   : > { %v6058_v2 = vadd.f32 %v7007_v55, %v6057_v38 }
0x2258   : > { %v6075_v9 = vadd.f32 %v6058_v2, %v8738_v30 }
0x225a   : > { %v6083_v27 = vmul.f32 0.70710677, %v6075_v9 }
0x225c   : > { %6108 = vrot.lane.b32.xlu0 %v6083_v27, %s7454_s0 }
0x225d   : > { %v6060_v23 = vpop.f32.mrf.mxu3 }
0x225e   : > { %v6061_v32 = vadd.f32 %v7007_v55, %v6060_v23 }
0x2260   : > { %v6076_v22 = vadd.f32 %v6061_v32, %v8745_v36 }
0x2262   : > { %v6084_v50 = vmul.f32 0.70710677, %v6076_v22 }
0x2264   : > { %6110 = vrot.lane.b32.xlu1 %v6084_v50, %s7454_s0 }
0x2265   : > { %v6063_v17 = vpop.f32.mrf.mxu3 }
0x2266   : > { %v6064_v45 = vadd.f32 %v7007_v55, %v6063_v17 }
0x2268   : > { %v6077_v11 = vadd.f32 %v6064_v45, %v8754_v47 }
0x226a   : > { %v6085_v18 = vmul.f32 0.70710677, %v6077_v11 }
0x226c   : > { %6112 = vrot.lane.b32.xlu2 %v6085_v18, %s7454_s0 }
0x226d   : > { %v6066_v51 = vpop.f32.mrf.mxu3 }
0x226e   : > { %v6067_v30 = vadd.f32 %v7007_v55, %v6066_v51 }
0x2270   : > { %v6078_v16 = vadd.f32 %v6067_v30, %v8763_v52 }
0x2272   : > { %v6086_v49 = vmul.f32 0.70710677, %v6078_v16 }
0x2274   : > { %6114 = vrot.lane.b32.xlu0 %v6086_v49, %s7454_s0 }
0x228d   : > { %v6069_v36 = vpop.f32.mrf.mxu3 }
0x228e   : > { %v6070_v28 = vadd.f32 %v7007_v55, %v6069_v36 }
0x2290   : > { %v6079_v56 = vadd.f32 %v6070_v28, %v8774_v14 }
0x2292   : > { %v6087_v3 = vmul.f32 0.70710677, %v6079_v56 }
0x2294   : > { %6116 = vrot.lane.b32.xlu1 %v6087_v3, %s7454_s0  ;;  %s9869_s0 = sld [smem:[#allocation4_spill]] }
0x229a   : > { %s9712_s24 = scalar_lea.vmem %s9869_s0, %s7629_s11  ;;  %s9870_s0 = sld [smem:[#allocation3_spill]] }
0x229b   : > { %v6103_v47 = vpop.permute.xlu0 %6102  ;;  %v9716_v40 = vld [vmem:[%s9712_s24 + $0x8] sm:$0xff]  ;;  %v9721_v10 = vld [vmem:[%s9712_s24 + $0x10] sm:$0xff]  ;;  %v9731_v55 = vld [vmem:[%s9712_s24] sm:$0xff] }
0x229c   : > { %6830 = vmatmul.msk.f32.vlgmr.msrb.gmra.mxu0 %vm999_vm0, %v6103_v47  ;;  %v6240_v26 = vsub.f32 1.0, %v9716_v40  ;;  %v6241_v37 = vsub.f32 1.0, %v9721_v10  ;;  %v6239_v0 = vsub.f32 1.0, %v9731_v55  ;;  %v6234_v17 = vld [vmem:[%s9712_s24 + $0x18] sm:$0xff]  ;;  %v9751_v45 = vld [vmem:[%s9712_s24 + $0x20] sm:$0xff]  ;;  %v9757_v51 = vld [vmem:[%s9712_s24 + $0x28] sm:$0xff] }
0x229d   : > { %v6242_v11 = vsub.f32 1.0, %v6234_v17  ;;  %v6243_v18 = vsub.f32 1.0, %v9751_v45  ;;  %v9760_v16 = vld [vmem:[%s9712_s24 + $0x30] sm:$0xff]  ;;  %v6244_v59 = vsub.f32 1.0, %v9757_v51  ;;  %v9774_v47 = vld [vmem:[%s9712_s24 + $0x38] sm:$0xff] }
0x229e   : > { %v6245_v28 = vsub.f32 1.0, %v9760_v16 }
0x22a0   : > { %s9784_s2 = scalar_lea.vmem %s9870_s0, %s7629_s11  ;;  %s994_s11 = scalar_lea.vmem %s7610_s27, %s9872_s10 }
0x22a3   : > { %v6105_v5 = vpop.permute.xlu1 %6104 }
0x22a4   : > { %6831 = vmatmul.msk.f32.gmra.mxu0 %vm999_vm0, %v6105_v5  ;;  %v6246_v5 = vsub.f32 1.0, %v9774_v47 }
0x22ae   : > { %v6107_v52 = vpop.permute.xlu2 %6106 }
0x22af   : > { %6832 = vmatmul.msk.f32.gmra.mxu0 %vm999_vm0, %v6107_v52 }
0x22c6   : > { %v6113_v14 = vpop.permute.xlu2 %6112 }
0x22ce   : > { %v6109_v29 = vpop.permute.xlu0 %6108 }
0x22cf   : > { %6833 = vmatmul.msk.f32.gmra.mxu0 %vm999_vm0, %v6109_v29 }
0x22d6   : > { %v6111_v20 = vpop.permute.xlu1 %6110 }
0x22d7   : > { %6834 = vmatmul.msk.f32.gmra.mxu0 %vm999_vm0, %v6111_v20 }
0x22df   : > { %6835 = vmatmul.msk.f32.gmra.mxu0 %vm999_vm0, %v6113_v14 }
0x22e6   : > { %v6115_v21 = vpop.permute.xlu0 %6114 }
0x22e7   : > { %6836 = vmatmul.msk.f32.gmra.mxu0 %vm999_vm0, %v6115_v21 }
0x2306   : > { %v6117_v42 = vpop.permute.xlu1 %6116 }
0x2307   : > { %6837 = vmatmul.msk.f32.gmra.mxu0 %vm999_vm0, %v6117_v42  ;;  %v9780_v42 = vld [vmem:[#allocation2] ss:$0 sm:$0xff] }
0x2319   : > { %v6151_v12 = vpop.f32.mrf.mxu0 }
0x231a   : > { %v6152_v24 = vadd.f32 %v9698_v6, %v6151_v12 }
0x231c   : > { %v6175_v43 = vmax.f32 %v6152_v24, 0.0 }
0x231e   : > { %v6187_v31 = vmul.f32 %v9702_v54, %v6175_v43  ;;  %v6248_v43 = vld [vmem:[%s9784_s2 + $0x8] sm:$0xff] }
0x2320   : > { %v6195_v8 = vsel %vm999_vm0, %v6187_v31, 0.0 }
0x2321   : > { %6196 = vadd.xlane.f32.xlu2 %v6195_v8  ;;  %v6154_v53 = vpop.f32.mrf.mxu0 }
0x2322   : > { %v6155_v39 = vadd.f32 %v9698_v6, %v6154_v53 }
0x2324   : > { %v6176_v33 = vmax.f32 %v6155_v39, 0.0 }
0x2326   : > { %v6188_v61 = vmul.f32 %v9702_v54, %v6176_v33 }
0x2328   : > { %v6198_v4 = vsel %vm999_vm0, %v6188_v61, 0.0  ;;  %v6249_v61 = vld [vmem:[%s9784_s2 + $0x10] sm:$0xff] }
0x2329   : > { %6199 = vadd.xlane.f32.xlu0 %v6198_v4 }
0x232c   : > { %v6157_v46 = vpop.f32.mrf.mxu0 }
0x232d   : > { %v6158_v63 = vadd.f32 %v9698_v6, %v6157_v46  ;;  %v6250_v46 = vld [vmem:[%s9784_s2 + $0x18] sm:$0xff] }
0x232f   : > { %v6177_v25 = vmax.f32 %v6158_v63, 0.0 }
0x2331   : > { %v6189_v41 = vmul.f32 %v9702_v54, %v6177_v25 }
0x2333   : > { %v6201_v13 = vsel %vm999_vm0, %v6189_v41, 0.0 }
0x2334   : > { %6202 = vadd.xlane.f32.xlu1 %v6201_v13 }
0x2339   : > { %6289 = vrot.lane.b32.xlu2 %v6240_v26, %s7458_s1 }
0x233d   : > { %6291 = vrot.lane.b32.xlu0 %v6241_v37, %s7458_s1 }
0x234c   : > { %v6160_v34 = vpop.f32.mrf.mxu0 }
0x234d   : > { %6287 = vrot.lane.b32.xlu1 %v6239_v0, %s7458_s1  ;;  %v6161_v58 = vadd.f32 %v9698_v6, %v6160_v34 }
0x234f   : > { %v6178_v44 = vmax.f32 %v6161_v58, 0.0 }
0x2351   : > { %v6190_v35 = vmul.f32 %v9702_v54, %v6178_v44 }
0x2353   : > { %v6204_v1 = vsel %vm999_vm0, %v6190_v35, 0.0 }
0x2354   : > { %v6163_v7 = vpop.f32.mrf.mxu0 }
0x2355   : > { %v6164_v15 = vadd.f32 %v9698_v6, %v6163_v7  ;;  %v6251_v7 = vld [vmem:[%s9784_s2 + $0x20] sm:$0xff] }
0x2357   : > { %v6179_v62 = vmax.f32 %v6164_v15, 0.0 }
0x2359   : > { %v6191_v2 = vmul.f32 %v9702_v54, %v6179_v62  ;;  %v6252_v62 = vld [vmem:[%s9784_s2 + $0x28] sm:$0xff] }
0x235b   : > { %v6207_v32 = vsel %vm999_vm0, %v6191_v2, 0.0 }
0x235c   : > { %v6166_v57 = vpop.f32.mrf.mxu0 }
0x235d   : > { %v6167_v48 = vadd.f32 %v9698_v6, %v6166_v57 }
0x235f   : > { %v6180_v19 = vmax.f32 %v6167_v48, 0.0 }
0x2361   : > { %v6192_v60 = vmul.f32 %v9702_v54, %v6180_v19 }
0x2362   : > { %6205 = vadd.xlane.f32.xlu2 %v6204_v1  ;;  %v6253_v1 = vld [vmem:[%s9784_s2 + $0x30] sm:$0xff] }
0x2363   : > { %v6210_v27 = vsel %vm999_vm0, %v6192_v60, 0.0 }
0x2364   : > { %v6169_v38 = vpop.f32.mrf.mxu0 }
0x2365   : > { %v6170_v9 = vadd.f32 %v9698_v6, %v6169_v38 }
0x2367   : > { %v6181_v23 = vmax.f32 %v6170_v9, 0.0  ;;  %6211 = vadd.xlane.f32.xlu0 %v6210_v27 }
0x2369   : > { %v6193_v22 = vmul.f32 %v9702_v54, %v6181_v23 }
0x236a   : > { %6208 = vadd.xlane.f32.xlu2 %v6207_v32 }
0x236b   : > { %v6213_v50 = vsel %vm999_vm0, %v6193_v22, 0.0 }
0x236f   : > { %6214 = vadd.xlane.f32.xlu0 %v6213_v50 }
0x2382   : > { %6293 = vrot.lane.b32.xlu2 %v6242_v11, %s7458_s1 }
0x2383   : > { %6295 = vrot.lane.b32.xlu0 %v6243_v18, %s7458_s1 }
0x2384   : > { %v6172_v30 = vpop.f32.mrf.mxu0 }
0x2385   : > { %v6173_v49 = vadd.f32 %v9698_v6, %v6172_v30 }
0x2387   : > { %v6182_v36 = vmax.f32 %v6173_v49, 0.0 }
0x2389   : > { %v6194_v56 = vmul.f32 %v9702_v54, %v6182_v36  ;;  %v6247_v54 = vld [vmem:[%s9784_s2] sm:$0xff] }
0x238a   : > { %6297 = vrot.lane.b32.xlu2 %v6244_v59, %s7458_s1 }
0x238b   : > { %6299 = vrot.lane.b32.xlu0 %v6245_v28, %s7458_s1  ;;  %v6216_v3 = vsel %vm999_vm0, %v6194_v56, 0.0  ;;  %vm6311_vm0 = vcmask 7168  }
0x238c   : > { %6217 = vadd.xlane.f32.xlu1 %v6216_v3 }
0x2392   : > { %6301 = vrot.lane.b32.xlu2 %v6246_v5, %s7458_s1 }
0x2394   : > { %v6197_v52 = vpop.xlane.xlu2 %6196 }
0x2395   : > { %v6223_v12 = vadd.f32 %v9780_v42, %v6197_v52 }
0x2397   : > { %v6255_v53 = vsub.f32 %v6247_v54, %v6223_v12 }
0x2399   : > { %v6263_v25 = vmul.f32 %v6255_v53, %v6239_v0 }
0x239b   : > { %v6271_v57 = vmul.f32 %v6263_v25, %v6263_v25 }
0x239c   : > { %v6200_v29 = vpop.xlane.xlu0 %6199  ;;  %v6290_v20 = vpop.permute.xlu2 %6289 }
0x239d   : > { %v6224_v24 = vadd.f32 %v9780_v42, %v6200_v29 }
0x239f   : > { %v6256_v39 = vsub.f32 %v6248_v43, %v6224_v24 }
0x23a1   : > { %v6264_v41 = vmul.f32 %v6256_v39, %v6240_v26 }
0x23a3   : > { %v6272_v35 = vmul.f32 %v6264_v41, %v6264_v41 }
0x23a5   : > { %v6313_v38 = vsel %vm6311_vm0, %v6272_v35, %v6290_v20  ;;  %v6254_v20 = vld [vmem:[%s9784_s2 + $0x38] sm:$0xff] }
0x23a6   : > { %v6322_v32 = vsel %vm6320_vm12, %v6313_v38, 0.0 }
0x23a7   : > { %v6203_v31 = vpop.xlane.xlu1 %6202 }
0x23a8   : > { %v6225_v33 = vadd.f32 %v9780_v42, %v6203_v31 }
0x23aa   : > { %v6257_v13 = vsub.f32 %v6249_v61, %v6225_v33 }
0x23ac   : > { %v6265_v15 = vmul.f32 %v6257_v13, %v6241_v37 }
0x23ae   : > { %v6273_v2 = vmul.f32 %v6265_v15, %v6265_v15 }
0x23af   : > { %v6292_v14 = vpop.permute.xlu0 %6291 }
0x23b0   : > { %v6314_v22 = vsel %vm6311_vm0, %v6273_v2, %v6292_v14 }
0x23b1   : > { %v6324_v49 = vsel %vm6320_vm12, %v6314_v22, 0.0 }
0x23bf   : > { %v6288_v44 = vpop.permute.xlu1 %6287 }
0x23c0   : > { %v6312_v0 = vsel %vm6311_vm0, %v6271_v57, %v6288_v44 }
0x23c1   : > { %v6321_v10 = vsel %vm6320_vm12, %v6312_v0, 0.0 }
0x23c2   : > { %v6323_v50 = vadd.f32 %v6322_v32, %v6321_v10 }
0x23c4   : > { %v6325_v3 = vadd.f32 %v6324_v49, %v6323_v50 }
0x23d5   : > { %v6206_v21 = vpop.xlane.xlu2 %6205 }
0x23d6   : > { %v6226_v4 = vadd.f32 %v9780_v42, %v6206_v21 }
0x23d8   : > { %v6258_v58 = vsub.f32 %v6250_v46, %v6226_v4 }
0x23da   : > { %v6212_v6 = vpop.xlane.xlu0 %6211  ;;  %v6266_v40 = vmul.f32 %v6258_v58, %v6242_v11 }
0x23db   : > { %v6228_v26 = vadd.f32 %v9780_v42, %v6212_v6 }
0x23dc   : > { %v6274_v37 = vmul.f32 %v6266_v40, %v6266_v40 }
0x23dd   : > { %v6209_v8 = vpop.xlane.xlu2 %6208  ;;  %v6260_v27 = vsub.f32 %v6252_v62, %v6228_v26 }
0x23de   : > { %v6227_v34 = vadd.f32 %v9780_v42, %v6209_v8 }
0x23df   : > { %v6268_v11 = vmul.f32 %v6260_v27, %v6244_v59 }
0x23e0   : > { %v6259_v48 = vsub.f32 %v6251_v7, %v6227_v34 }
0x23e1   : > { %v6276_v21 = vmul.f32 %v6268_v11, %v6268_v11 }
0x23e2   : > { %v6215_v63 = vpop.xlane.xlu0 %6214  ;;  %v6267_v9 = vmul.f32 %v6259_v48, %v6243_v18 }
0x23e3   : > { %v6229_v19 = vadd.f32 %v9780_v42, %v6215_v63 }
0x23e4   : > { %v6275_v17 = vmul.f32 %v6267_v9, %v6267_v9 }
0x23e5   : > { %v6294_v55 = vpop.permute.xlu2 %6293  ;;  %v6261_v23 = vsub.f32 %v6253_v1, %v6229_v19 }
0x23e6   : > { %v6315_v45 = vsel %vm6311_vm0, %v6274_v37, %v6294_v55 }
0x23e7   : > { %v6269_v18 = vmul.f32 %v6261_v23, %v6245_v28  ;;  %v6326_v36 = vsel %vm6320_vm12, %v6315_v45, 0.0 }
0x23e8   : > { %v6327_v51 = vadd.f32 %v6326_v36, %v6325_v3 }
0x23e9   : > { %v6277_v6 = vmul.f32 %v6269_v18, %v6269_v18 }
0x23ed   : > { %v6298_v56 = vpop.permute.xlu2 %6297 }
0x23ee   : > { %v6317_v16 = vsel %vm6311_vm0, %v6276_v21, %v6298_v56 }
0x23ef   : > { %v6330_v43 = vsel %vm6320_vm12, %v6317_v16, 0.0 }
0x23f5   : > { %v6296_v60 = vpop.permute.xlu0 %6295  ;;  %v6302_v8 = vpop.permute.xlu2 %6301 }
0x23f6   : > { %v6316_v30 = vsel %vm6311_vm0, %v6275_v17, %v6296_v60 }
0x23f7   : > { %v6328_v52 = vsel %vm6320_vm12, %v6316_v30, 0.0 }
0x23f8   : > { %v6329_v28 = vadd.f32 %v6328_v52, %v6327_v51 }
0x23fa   : > { %v6331_v53 = vadd.f32 %v6330_v43, %v6329_v28 }
0x23fd   : > { %v6300_v29 = vpop.permute.xlu0 %6299 }
0x23fe   : > { %v6318_v12 = vsel %vm6311_vm0, %v6277_v6, %v6300_v29 }
0x23ff   : > { %v6218_v14 = vpop.xlane.xlu1 %6217  ;;  %v6332_v31 = vsel %vm6320_vm12, %v6318_v12, 0.0 }
0x2400   : > { %v6230_v59 = vadd.f32 %v9780_v42, %v6218_v14  ;;  %v6333_v33 = vadd.f32 %v6332_v31, %v6331_v53 }
0x2402   : > { %v6262_v24 = vsub.f32 %v6254_v20, %v6230_v59 }
0x2404   : > { %v6270_v54 = vmul.f32 %v6262_v24, %v6246_v5 }
0x2406   : > { %v6278_v39 = vmul.f32 %v6270_v54, %v6270_v54 }
0x2408   : > { %v6319_v42 = vsel %vm6311_vm0, %v6278_v39, %v6302_v8 }
0x2409   : > { %v6334_v61 = vsel %vm6320_vm12, %v6319_v42, 0.0 }
0x240a   : > { %v6335_v4 = vadd.f32 %v6334_v61, %v6333_v33 }
0x240c   : > { %v6336_v46 = vrot.slane %v6335_v4, 4 }
0x240e   : > { %v6337_v63 = vadd.f32 %v6336_v46, %v6335_v4 }
0x2410   : > { %v6338_v25 = vrot.slane %v6337_v63, 2 }
0x2412   : > { %v6339_v47 = vadd.f32 %v6338_v25, %v6337_v63 }
0x2414   : > { %v6340_v41 = vrot.slane %v6339_v47, 1 }
0x2416   : > { %v6341_v5 = vadd.f32 %v6340_v41, %v6339_v47 }
0x2418   : > { %6343 = vst.msk [vmem:[%s994_s11] sm:$0x1] %vm6342_vm13, %v6341_v5 }
0x2419 PF: > { %s71_s7 = sadd.s32 1, %s7423_s7  }
0x241a   : > { %p68_p4 = scmp.ge.s32.totalorder %s71_s7, 4  }
0x241c   :  { %70 = sbr.rel (!%p68_p4) target bundleno = 51 (0x33), region = 242 }

</bundles_post_ra>
